<compile_context>
chip_gen: v5e
topology: v5e:2x2
jax: 0.10.0
libtpu: 0.0.40
codegen_flags: <defaults>
</compile_context>

<pallas_src>
import numpy as np
import jax
import jax.numpy as jnp
from jax import lax
from jax.experimental import pallas as pl
from jax.experimental.pallas import tpu as pltpu


# --------------------------------------------------------------------------
# Pallas kernel: one block of W_TILE windows per grid step.
# --------------------------------------------------------------------------
def _make_swin_attn_kernel(w_tile, N, C, num_heads):
    hd = C // num_heads
    M = w_tile * N          # fused token rows per grid step

    def kernel(x_ref, qkvw_ref, qkvb_ref, projw_ref, projb_ref, bias_ref, o_ref):
        # x_ref:     (1, w_tile, N, C)   window block (compute dtype)
        # qkvw_ref:  (C, 3C)             pre-transposed (in, out); Q scale folded in
        # qkvb_ref:  (1, 3C)             f32; Q scale folded in
        # projw_ref: (C, C)              pre-transposed (in, out)
        # projb_ref: (1, C)              f32
        # bias_ref:  (1 | w_tile, num_heads, N, N)  rel-pos bias (+ shift mask), f32
        # o_ref:     (1, w_tile, N, C)   f32
        x = x_ref[0].reshape(M, C)                       # merge leading dims (free)
        qkvw = qkvw_ref[...]
        projw = projw_ref[...]
        bias = bias_ref[...]                             # (bw, nH, N, N)

        # Fused QKV projection for the whole window block: (M, C) @ (C, 3C).
        qkv = jnp.dot(x, qkvw, preferred_element_type=jnp.float32) + qkvb_ref[...]
        qkv = qkv.astype(x.dtype).reshape(w_tile, N, 3 * C)

        acc = None
        for h in range(num_heads):                       # static unroll (tiny)
            qh = qkv[:, :, h * hd:(h + 1) * hd]                      # (w, N, hd)
            kh = qkv[:, :, C + h * hd:C + (h + 1) * hd]
            vh = qkv[:, :, 2 * C + h * hd:2 * C + (h + 1) * hd]

            # Scores: contract head_dim of BOTH operands (no explicit k.T),
            # windows batched -> (w_tile, N, N), f32 accumulation.
            s = lax.dot_general(qh, kh, (((2,), (2,)), ((0,), (0,))),
                                preferred_element_type=jnp.float32)
            s = s + bias[:, h]                           # (1|w, N, N) broadcasts
            s = s - jnp.max(s, axis=-1, keepdims=True)
            e = jnp.exp(s)
            p = e * pl.reciprocal(jnp.sum(e, axis=-1, keepdims=True), approx=True)

            oh = lax.dot_general(p.astype(vh.dtype), vh,
                                 (((2,), (1,)), ((0,), (0,))),
                                 preferred_element_type=jnp.float32)  # (w, N, hd)

            # Fold the output projection into the head loop (no concat):
            #   acc += (p_h @ v_h) @ proj_w[h*hd:(h+1)*hd, :]
            contrib = jnp.dot(oh.reshape(M, hd).astype(projw.dtype),
                              projw[h * hd:(h + 1) * hd, :],
                              preferred_element_type=jnp.float32)     # (M, C)
            acc = contrib if acc is None else acc + contrib

        out = acc + projb_ref[...]
        o_ref[0] = out.reshape(w_tile, N, C).astype(o_ref.dtype)

    return kernel


def _pick_w_tile(n_windows, N):
    # Target ~256 fused token rows per grid step while keeping w_tile a divisor
    # of n_windows (so the window axis tiles evenly).
    max_w = max(1, min(n_windows, max(1, 256 // N)))
    for t in range(max_w, 0, -1):
        if n_windows % t == 0:
            return t
    return 1


def _window_attention_pallas(xw, qkv_w_t, qkv_b, proj_w_t, proj_b, bias,
                             num_heads, compute_dtype=jnp.float32):
    """xw: (B, nWnd, N, C); qkv_w_t: (C, 3C) (in,out, Q scale folded);
    proj_w_t: (C, C) (in,out); bias: (1 | nWnd, num_heads, N, N).
    Returns (B, nWnd, N, C) float32."""
    B, nWnd, N, C = xw.shape
    w_tile = _pick_w_tile(nWnd, N)
    nWT = nWnd // w_tile
    bias_windows = bias.shape[0]
    bias_blk = 1 if bias_windows == 1 else w_tile

    kernel = _make_swin_attn_kernel(w_tile, N, C, num_heads)

    if bias_windows == 1:                           # no shift: single shared slab
        bias_map = lambda b, w: (0, 0, 0, 0)
    else:                                           # shifted: per-window-block slab
        bias_map = lambda b, w: (w, 0, 0, 0)

    grid_spec = pltpu.PrefetchScalarGridSpec(
        num_scalar_prefetch=0,
        grid=(B, nWT),
        in_specs=[
            pl.BlockSpec((1, w_tile, N, C), lambda b, w: (b, w, 0, 0)),  # x block
            pl.BlockSpec((C, 3 * C), lambda b, w: (0, 0)),               # qkv W
            pl.BlockSpec((1, 3 * C), lambda b, w: (0, 0)),               # qkv b
            pl.BlockSpec((C, C), lambda b, w: (0, 0)),                   # proj W
            pl.BlockSpec((1, C), lambda b, w: (0, 0)),                   # proj b
            pl.BlockSpec((bias_blk, num_heads, N, N), bias_map),         # bias(+mask)
        ],
        out_specs=pl.BlockSpec((1, w_tile, N, C), lambda b, w: (b, w, 0, 0)),
    )

    return pl.pallas_call(
        kernel,
        out_shape=jax.ShapeDtypeStruct((B, nWnd, N, C), jnp.float32),
        grid_spec=grid_spec,
        compiler_params=pltpu.CompilerParams(
            dimension_semantics=("parallel", "parallel")),
    )(xw.astype(compute_dtype),
      qkv_w_t.astype(compute_dtype),
      qkv_b.reshape(1, -1).astype(jnp.float32),
      proj_w_t.astype(compute_dtype),
      proj_b.reshape(1, -1).astype(jnp.float32),
      bias.astype(jnp.float32))


# --------------------------------------------------------------------------
# Glue (rel-pos index/bias, shift mask, window partition) — plain JAX / numpy.
# --------------------------------------------------------------------------
def _relative_position_index(window_size):
    ct, ch, cw = np.meshgrid(np.arange(window_size[0]),
                             np.arange(window_size[1]),
                             np.arange(window_size[2]), indexing="ij")
    coords = np.stack([ct, ch, cw]).reshape(3, -1)                # (3, N)
    rel = coords[:, :, None] - coords[:, None, :]                 # (3, N, N)
    rel = rel.transpose(1, 2, 0).astype(np.int64)                 # (N, N, 3)
    rel[:, :, 0] += window_size[0] - 1
    rel[:, :, 1] += window_size[1] - 1
    rel[:, :, 2] += window_size[2] - 1
    rel[:, :, 0] *= (2 * window_size[1] - 1) * (2 * window_size[2] - 1)
    rel[:, :, 1] *= 2 * window_size[2] - 1
    return rel.sum(-1)                                            # (N, N)


def _get_relative_position_bias(table, rel_index, window_size, num_heads):
    wvol = window_size[0] * window_size[1] * window_size[2]
    idx = np.asarray(rel_index)[:wvol, :wvol].reshape(-1)
    bias = jnp.take(table, jnp.asarray(idx), axis=0)              # (N*N, nH)
    bias = bias.reshape(wvol, wvol, num_heads).transpose(2, 0, 1) # (nH, N, N)
    return bias.astype(jnp.float32)


def _compute_attention_mask_3d(size_dhw, window_size, shift_size):
    Tp, Hp, Wp = size_dhw
    m = np.zeros(size_dhw, np.float32)
    slices = [((0, -window_size[i]),
               (-window_size[i], -shift_size[i]),
               (-shift_size[i], None)) for i in range(3)]
    cnt = 0
    for d in slices[0]:
        for h in slices[1]:
            for w in slices[2]:
                m[d[0]:d[1], h[0]:h[1], w[0]:w[1]] = cnt
                cnt += 1
    m = m.reshape(Tp // window_size[0], window_size[0],
                  Hp // window_size[1], window_size[1],
                  Wp // window_size[2], window_size[2])
    N = window_size[0] * window_size[1] * window_size[2]
    m = m.transpose(0, 2, 4, 1, 3, 5).reshape(-1, N)
    diff = m[:, None, :] - m[:, :, None]
    return jnp.asarray(np.where(diff != 0, -100.0, 0.0).astype(np.float32))


def shifted_window_attention_3d(x, params, window_size, shift_size, num_heads,
                                compute_dtype=jnp.float32):
    """x: (B, T, H, W, C) float32 -> (B, T, H, W, C) float32."""
    B, T, H, W, C = x.shape
    size_dhw = [T, H, W]
    ws, ss = list(window_size), list(shift_size)
    for i in range(3):
        if size_dhw[i] <= ws[i]:
            ws[i] = size_dhw[i]
            ss[i] = 0

    rel_index = _relative_position_index(window_size)   # from module window size
    rel_bias = _get_relative_position_bias(params["rpb_table"], rel_index, ws,
                                           num_heads)   # (nH, N, N)

    pad = [(ws[i] - size_dhw[i] % ws[i]) % ws[i] for i in range(3)]
    xp = jnp.pad(x, ((0, 0), (0, pad[0]), (0, pad[1]), (0, pad[2]), (0, 0)))
    Tp, Hp, Wp = T + pad[0], H + pad[1], W + pad[2]

    if sum(ss) > 0:
        xp = jnp.roll(xp, shift=(-ss[0], -ss[1], -ss[2]), axis=(1, 2, 3))

    nT, nH_, nW_ = Tp // ws[0], Hp // ws[1], Wp // ws[2]
    nWnd = nT * nH_ * nW_
    N = ws[0] * ws[1] * ws[2]

    xw = xp.reshape(B, nT, ws[0], nH_, ws[1], nW_, ws[2], C)
    xw = xw.transpose(0, 1, 3, 5, 2, 4, 6, 7).reshape(B, nWnd, N, C)

    # Combined per-window bias (rel-pos bias + shift mask).  No shift -> a single
    # (1, nH, N, N) slab: no all-zeros mask array, no wasted DMA.
    if sum(ss) > 0:
        mask = _compute_attention_mask_3d((Tp, Hp, Wp), ws, ss)   # (nWnd, N, N)
        bias = rel_bias[None, :, :, :] + mask[:, None, :, :]      # (nWnd,nH,N,N)
    else:
        bias = rel_bias[None, :, :, :]                            # (1, nH, N, N)

    # Pre-transpose weights to (in, out) and fold the head-dim scale into Q.
    hd = C // num_heads
    scale = float(hd) ** -0.5
    scale_vec = jnp.concatenate([jnp.full((C,), scale, jnp.float32),
                                 jnp.ones((2 * C,), jnp.float32)])
    qkv_w_t = params["qkv_w"].T * scale_vec[None, :]              # (C, 3C)
    qkv_b_s = params["qkv_b"] * scale_vec                         # (3C,)
    proj_w_t = params["proj_w"].T                                 # (C, C)

    out = _window_attention_pallas(xw, qkv_w_t, qkv_b_s, proj_w_t,
                                   params["proj_b"], bias, num_heads,
                                   compute_dtype=compute_dtype)

    out = out.reshape(B, nT, nH_, nW_, ws[0], ws[1], ws[2], C)
    out = out.transpose(0, 1, 4, 2, 5, 3, 6, 7).reshape(B, Tp, Hp, Wp, C)
    if sum(ss) > 0:
        out = jnp.roll(out, shift=(ss[0], ss[1], ss[2]), axis=(1, 2, 3))
    return out[:, :T, :H, :W, :]


# --------------------------------------------------------------------------
# Pure-JAX end-to-end reference (torch semantics, no Pallas).
# --------------------------------------------------------------------------
def _ref_shifted_window_attention_3d(x, params, window_size, shift_size,
                                     num_heads):
    B, T, H, W, C = x.shape
    size_dhw = [T, H, W]
    ws, ss = list(window_size), list(shift_size)
    for i in range(3):
        if size_dhw[i] <= ws[i]:
            ws[i] = size_dhw[i]
            ss[i] = 0
    rel_bias = _get_relative_position_bias(params["rpb_table"],
                                           _relative_position_index(window_size),
                                           ws, num_heads)
    pad = [(ws[i] - size_dhw[i] % ws[i]) % ws[i] for i in range(3)]
    xp = jnp.pad(x, ((0, 0), (0, pad[0]), (0, pad[1]), (0, pad[2]), (0, 0)))
    Tp, Hp, Wp = T + pad[0], H + pad[1], W + pad[2]
    if sum(ss) > 0:
        xp = jnp.roll(xp, shift=(-ss[0], -ss[1], -ss[2]), axis=(1, 2, 3))
    nT, nH_, nW_ = Tp // ws[0], Hp // ws[1], Wp // ws[2]
    nWnd = nT * nH_ * nW_
    N = ws[0] * ws[1] * ws[2]
    xw = xp.reshape(B, nT, ws[0], nH_, ws[1], nW_, ws[2], C)
    xw = xw.transpose(0, 1, 3, 5, 2, 4, 6, 7).reshape(B * nWnd, N, C)

    hd = C // num_heads
    qkv = xw @ params["qkv_w"].T + params["qkv_b"]
    qkv = qkv.reshape(B * nWnd, N, 3, num_heads, hd).transpose(2, 0, 3, 1, 4)
    q, k, v = qkv[0], qkv[1], qkv[2]
    q = q * (hd ** -0.5)
    attn = jnp.einsum("bhnd,bhmd->bhnm", q, k)
    attn = attn + rel_bias[None]
    if sum(ss) > 0:
        mask = _compute_attention_mask_3d((Tp, Hp, Wp), ws, ss)
        attn = attn.reshape(B, nWnd, num_heads, N, N) + mask[None, :, None]
        attn = attn.reshape(B * nWnd, num_heads, N, N)
    attn = jax.nn.softmax(attn, axis=-1)
    out = jnp.einsum("bhnm,bhmd->bhnd", attn, v)
    out = out.transpose(0, 2, 1, 3).reshape(B * nWnd, N, C)
    out = out @ params["proj_w"].T + params["proj_b"]
    out = out.reshape(B, nT, nH_, nW_, ws[0], ws[1], ws[2], C)
    out = out.transpose(0, 1, 4, 2, 5, 3, 6, 7).reshape(B, Tp, Hp, Wp, C)
    if sum(ss) > 0:
        out = jnp.roll(out, shift=(ss[0], ss[1], ss[2]), axis=(1, 2, 3))
    return out[:, :T, :H, :W, :]


# --------------------------------------------------------------------------
# Main
# --------------------------------------------------------------------------
if __name__ == "__main__":
    # Module hyper-params (ShiftedWindowAttention3d.__init__)
    dim = 32
    window_size = [2, 4, 4]
    shift_size = [1, 2, 2]
    num_heads = 4

    key = jax.random.PRNGKey(0)
    k1, k2, k3, k4, k5, kx = jax.random.split(key, 6)
    table_rows = (2 * window_size[0] - 1) * (2 * window_size[1] - 1) * \
                 (2 * window_size[2] - 1)
    params = {
        "qkv_w": 0.02 * jax.random.normal(k1, (3 * dim, dim), jnp.float32),
        "qkv_b": 0.02 * jax.random.normal(k2, (3 * dim,), jnp.float32),
        "proj_w": 0.02 * jax.random.normal(k3, (dim, dim), jnp.float32),
        "proj_b": 0.02 * jax.random.normal(k4, (dim,), jnp.float32),
        "rpb_table": 0.02 * jax.random.normal(k5, (table_rows, num_heads),
                                              jnp.float32),
    }

    # Input [B, T, H, W, C]
    B, T, H, W = 2, 4, 8, 8
    x = jax.random.normal(kx, (B, T, H, W, dim), jnp.float32)

    # --- shifted path (f32 compute) ---
    out = shifted_window_attention_3d(x, params, window_size, shift_size,
                                      num_heads)
    out = jax.block_until_ready(out)
    assert out.shape == (B, T, H, W, dim)
    ref = _ref_shifted_window_attention_3d(x, params, window_size, shift_size,
                                           num_heads)
    np.testing.assert_allclose(np.asarray(out), np.asarray(ref),
                               rtol=1e-3, atol=5e-4)

    # --- non-shifted path (exercises the single-slab bias / no-mask branch) ---
    out_ns = shifted_window_attention_3d(x, params, window_size, [0, 0, 0],
                                         num_heads)
    out_ns = jax.block_until_ready(out_ns)
    ref_ns = _ref_shifted_window_attention_3d(x, params, window_size, [0, 0, 0],
                                              num_heads)
    np.testing.assert_allclose(np.asarray(out_ns), np.asarray(ref_ns),
                               rtol=1e-3, atol=5e-4)

    # --- bf16 MXU-operand path (v6e/v7x recommendation); loose sanity check ---
    out_bf16 = shifted_window_attention_3d(x, params, window_size, shift_size,
                                           num_heads,
                                           compute_dtype=jnp.bfloat16)
    out_bf16 = jax.block_until_ready(out_bf16)
    assert np.all(np.isfinite(np.asarray(out_bf16)))
    assert float(jnp.max(jnp.abs(out_bf16 - out))) < 5e-2

    print("KERNEL_OK")
</pallas_src>

<mosaic_0001>
module attributes {stable_mosaic.version = 11 : i64} {
  func.func @kernel(%arg0: i32, %arg1: i32, %arg2: memref<1x8x32x32xf32, #tpu.memory_space<vmem>>, %arg3: memref<32x96xf32, #tpu.memory_space<vmem>>, %arg4: memref<1x96xf32, #tpu.memory_space<vmem>>, %arg5: memref<32x32xf32, #tpu.memory_space<vmem>>, %arg6: memref<1x32xf32, #tpu.memory_space<vmem>>, %arg7: memref<8x4x32x32xf32, #tpu.memory_space<vmem>>, %arg8: memref<1x8x32x32xf32, #tpu.memory_space<vmem>>) attributes {dimension_semantics = [#tpu.dimension_semantics<parallel>, #tpu.dimension_semantics<parallel>], iteration_bounds = array<i64: 2, 1>, scalar_prefetch = 0 : i64, scratch_operands = 0 : i64, tpu.core_type = #tpu.core_type<tc>, window_params = [{transform_indices = @transform_0, window_bounds = array<i64: 1, 8, 32, 32>}, {pipeline_mode = #tpu.pipeline_mode<synchronous>, transform_indices = @transform_1, window_bounds = array<i64: 32, 96>}, {pipeline_mode = #tpu.pipeline_mode<synchronous>, transform_indices = @transform_2, window_bounds = array<i64: 1, 96>}, {pipeline_mode = #tpu.pipeline_mode<synchronous>, transform_indices = @transform_3, window_bounds = array<i64: 32, 32>}, {pipeline_mode = #tpu.pipeline_mode<synchronous>, transform_indices = @transform_4, window_bounds = array<i64: 1, 32>}, {transform_indices = @transform_5, window_bounds = array<i64: 8, 4, 32, 32>}, {transform_indices = @transform_6, window_bounds = array<i64: 1, 8, 32, 32>}]} {
    %c0 = arith.constant 0 : index
    %c0_0 = arith.constant 0 : index
    %c0_1 = arith.constant 0 : index
    %c0_2 = arith.constant 0 : index
    %0 = vector.load %arg2[%c0, %c0_0, %c0_1, %c0_2] : memref<1x8x32x32xf32, #tpu.memory_space<vmem>>, vector<1x8x32x32xf32>
    %1 = vector.shape_cast %0 : vector<1x8x32x32xf32> to vector<8x32x32xf32>
    %2 = vector.shape_cast %1 : vector<8x32x32xf32> to vector<256x32xf32>
    %c0_3 = arith.constant 0 : index
    %c0_4 = arith.constant 0 : index
    %3 = vector.load %arg3[%c0_3, %c0_4] : memref<32x96xf32, #tpu.memory_space<vmem>>, vector<32x96xf32>
    %c0_5 = arith.constant 0 : index
    %c0_6 = arith.constant 0 : index
    %4 = vector.load %arg5[%c0_5, %c0_6] : memref<32x32xf32, #tpu.memory_space<vmem>>, vector<32x32xf32>
    %c0_7 = arith.constant 0 : index
    %c0_8 = arith.constant 0 : index
    %c0_9 = arith.constant 0 : index
    %c0_10 = arith.constant 0 : index
    %5 = vector.load %arg7[%c0_7, %c0_8, %c0_9, %c0_10] : memref<8x4x32x32xf32, #tpu.memory_space<vmem>>, vector<8x4x32x32xf32>
    %cst = arith.constant dense<0.000000e+00> : vector<256x96xf32>
    %6 = tpu.matmul %2, %3, %cst {dimension_numbers = #tpu.dot_dimension_numbers<[1], [0], [0], [1], [0, 0, 1, 1], [], []>} : vector<256x32xf32>, vector<32x96xf32>, vector<256x96xf32> -> vector<256x96xf32>
    %c0_11 = arith.constant 0 : index
    %c0_12 = arith.constant 0 : index
    %7 = vector.load %arg4[%c0_11, %c0_12] : memref<1x96xf32, #tpu.memory_space<vmem>>, vector<1x96xf32>
    %8 = vector.broadcast %7 : vector<1x96xf32> to vector<256x96xf32>
    %9 = arith.addf %6, %8 : vector<256x96xf32>
    %10 = vector.shape_cast %9 : vector<256x96xf32> to vector<8x32x96xf32>
    %11 = vector.extract_strided_slice %10 {offsets = [0, 0, 0], sizes = [8, 32, 8], strides = [1, 1, 1]} : vector<8x32x96xf32> to vector<8x32x8xf32>
    %12 = vector.extract_strided_slice %10 {offsets = [0, 0, 32], sizes = [8, 32, 8], strides = [1, 1, 1]} : vector<8x32x96xf32> to vector<8x32x8xf32>
    %13 = vector.extract_strided_slice %10 {offsets = [0, 0, 64], sizes = [8, 32, 8], strides = [1, 1, 1]} : vector<8x32x96xf32> to vector<8x32x8xf32>
    %cst_13 = arith.constant dense<0.000000e+00> : vector<8x32x32xf32>
    %14 = tpu.matmul %11, %12, %cst_13 {dimension_numbers = #tpu.dot_dimension_numbers<[2], [2], [1], [1], [0, 0, 0, 1, 1, 1], [0], [0]>} : vector<8x32x8xf32>, vector<8x32x8xf32>, vector<8x32x32xf32> -> vector<8x32x32xf32>
    %15 = vector.extract_strided_slice %5 {offsets = [0, 0, 0, 0], sizes = [8, 1, 32, 32], strides = [1, 1, 1, 1]} : vector<8x4x32x32xf32> to vector<8x1x32x32xf32>
    %16 = vector.shape_cast %15 : vector<8x1x32x32xf32> to vector<8x32x32xf32>
    %17 = arith.addf %14, %16 : vector<8x32x32xf32>
    %cst_14 = arith.constant dense<0xFF800000> : vector<8x32xf32>
    %18 = vector.multi_reduction <maximumf>, %17, %cst_14 [2] : vector<8x32x32xf32> to vector<8x32xf32>
    %19 = vector.shape_cast %18 : vector<8x32xf32> to vector<8x32x1xf32>
    %20 = vector.broadcast %19 : vector<8x32x1xf32> to vector<8x32x32xf32>
    %21 = arith.subf %17, %20 : vector<8x32x32xf32>
    %22 = math.exp %21 : vector<8x32x32xf32>
    %cst_15 = arith.constant dense<0.000000e+00> : vector<8x32xf32>
    %23 = vector.multi_reduction <add>, %22, %cst_15 [2] : vector<8x32x32xf32> to vector<8x32xf32>
    %24 = vector.shape_cast %23 : vector<8x32xf32> to vector<8x32x1xf32>
    %25 = tpu.reciprocal %24 {approx = true} : vector<8x32x1xf32> -> vector<8x32x1xf32>
    %26 = vector.broadcast %25 : vector<8x32x1xf32> to vector<8x32x32xf32>
    %27 = arith.mulf %22, %26 : vector<8x32x32xf32>
    %cst_16 = arith.constant dense<0.000000e+00> : vector<8x32x8xf32>
    %28 = tpu.matmul %27, %13, %cst_16 {dimension_numbers = #tpu.dot_dimension_numbers<[2], [1], [1], [2], [0, 0, 0, 1, 1, 2], [0], [0]>} : vector<8x32x32xf32>, vector<8x32x8xf32>, vector<8x32x8xf32> -> vector<8x32x8xf32>
    %29 = vector.shape_cast %28 : vector<8x32x8xf32> to vector<256x8xf32>
    %30 = vector.extract_strided_slice %4 {offsets = [0, 0], sizes = [8, 32], strides = [1, 1]} : vector<32x32xf32> to vector<8x32xf32>
    %cst_17 = arith.constant dense<0.000000e+00> : vector<256x32xf32>
    %31 = tpu.matmul %29, %30, %cst_17 {dimension_numbers = #tpu.dot_dimension_numbers<[1], [0], [0], [1], [0, 0, 1, 1], [], []>} : vector<256x8xf32>, vector<8x32xf32>, vector<256x32xf32> -> vector<256x32xf32>
    %32 = vector.extract_strided_slice %10 {offsets = [0, 0, 8], sizes = [8, 32, 8], strides = [1, 1, 1]} : vector<8x32x96xf32> to vector<8x32x8xf32>
    %33 = vector.extract_strided_slice %10 {offsets = [0, 0, 40], sizes = [8, 32, 8], strides = [1, 1, 1]} : vector<8x32x96xf32> to vector<8x32x8xf32>
    %34 = vector.extract_strided_slice %10 {offsets = [0, 0, 72], sizes = [8, 32, 8], strides = [1, 1, 1]} : vector<8x32x96xf32> to vector<8x32x8xf32>
    %cst_18 = arith.constant dense<0.000000e+00> : vector<8x32x32xf32>
    %35 = tpu.matmul %32, %33, %cst_18 {dimension_numbers = #tpu.dot_dimension_numbers<[2], [2], [1], [1], [0, 0, 0, 1, 1, 1], [0], [0]>} : vector<8x32x8xf32>, vector<8x32x8xf32>, vector<8x32x32xf32> -> vector<8x32x32xf32>
    %36 = vector.extract_strided_slice %5 {offsets = [0, 1, 0, 0], sizes = [8, 1, 32, 32], strides = [1, 1, 1, 1]} : vector<8x4x32x32xf32> to vector<8x1x32x32xf32>
    %37 = vector.shape_cast %36 : vector<8x1x32x32xf32> to vector<8x32x32xf32>
    %38 = arith.addf %35, %37 : vector<8x32x32xf32>
    %cst_19 = arith.constant dense<0xFF800000> : vector<8x32xf32>
    %39 = vector.multi_reduction <maximumf>, %38, %cst_19 [2] : vector<8x32x32xf32> to vector<8x32xf32>
    %40 = vector.shape_cast %39 : vector<8x32xf32> to vector<8x32x1xf32>
    %41 = vector.broadcast %40 : vector<8x32x1xf32> to vector<8x32x32xf32>
    %42 = arith.subf %38, %41 : vector<8x32x32xf32>
    %43 = math.exp %42 : vector<8x32x32xf32>
    %cst_20 = arith.constant dense<0.000000e+00> : vector<8x32xf32>
    %44 = vector.multi_reduction <add>, %43, %cst_20 [2] : vector<8x32x32xf32> to vector<8x32xf32>
    %45 = vector.shape_cast %44 : vector<8x32xf32> to vector<8x32x1xf32>
    %46 = tpu.reciprocal %45 {approx = true} : vector<8x32x1xf32> -> vector<8x32x1xf32>
    %47 = vector.broadcast %46 : vector<8x32x1xf32> to vector<8x32x32xf32>
    %48 = arith.mulf %43, %47 : vector<8x32x32xf32>
    %cst_21 = arith.constant dense<0.000000e+00> : vector<8x32x8xf32>
    %49 = tpu.matmul %48, %34, %cst_21 {dimension_numbers = #tpu.dot_dimension_numbers<[2], [1], [1], [2], [0, 0, 0, 1, 1, 2], [0], [0]>} : vector<8x32x32xf32>, vector<8x32x8xf32>, vector<8x32x8xf32> -> vector<8x32x8xf32>
    %50 = vector.shape_cast %49 : vector<8x32x8xf32> to vector<256x8xf32>
    %51 = vector.extract_strided_slice %4 {offsets = [8, 0], sizes = [8, 32], strides = [1, 1]} : vector<32x32xf32> to vector<8x32xf32>
    %cst_22 = arith.constant dense<0.000000e+00> : vector<256x32xf32>
    %52 = tpu.matmul %50, %51, %cst_22 {dimension_numbers = #tpu.dot_dimension_numbers<[1], [0], [0], [1], [0, 0, 1, 1], [], []>} : vector<256x8xf32>, vector<8x32xf32>, vector<256x32xf32> -> vector<256x32xf32>
    %53 = arith.addf %31, %52 : vector<256x32xf32>
    %54 = vector.extract_strided_slice %10 {offsets = [0, 0, 16], sizes = [8, 32, 8], strides = [1, 1, 1]} : vector<8x32x96xf32> to vector<8x32x8xf32>
    %55 = vector.extract_strided_slice %10 {offsets = [0, 0, 48], sizes = [8, 32, 8], strides = [1, 1, 1]} : vector<8x32x96xf32> to vector<8x32x8xf32>
    %56 = vector.extract_strided_slice %10 {offsets = [0, 0, 80], sizes = [8, 32, 8], strides = [1, 1, 1]} : vector<8x32x96xf32> to vector<8x32x8xf32>
    %cst_23 = arith.constant dense<0.000000e+00> : vector<8x32x32xf32>
    %57 = tpu.matmul %54, %55, %cst_23 {dimension_numbers = #tpu.dot_dimension_numbers<[2], [2], [1], [1], [0, 0, 0, 1, 1, 1], [0], [0]>} : vector<8x32x8xf32>, vector<8x32x8xf32>, vector<8x32x32xf32> -> vector<8x32x32xf32>
    %58 = vector.extract_strided_slice %5 {offsets = [0, 2, 0, 0], sizes = [8, 1, 32, 32], strides = [1, 1, 1, 1]} : vector<8x4x32x32xf32> to vector<8x1x32x32xf32>
    %59 = vector.shape_cast %58 : vector<8x1x32x32xf32> to vector<8x32x32xf32>
    %60 = arith.addf %57, %59 : vector<8x32x32xf32>
    %cst_24 = arith.constant dense<0xFF800000> : vector<8x32xf32>
    %61 = vector.multi_reduction <maximumf>, %60, %cst_24 [2] : vector<8x32x32xf32> to vector<8x32xf32>
    %62 = vector.shape_cast %61 : vector<8x32xf32> to vector<8x32x1xf32>
    %63 = vector.broadcast %62 : vector<8x32x1xf32> to vector<8x32x32xf32>
    %64 = arith.subf %60, %63 : vector<8x32x32xf32>
    %65 = math.exp %64 : vector<8x32x32xf32>
    %cst_25 = arith.constant dense<0.000000e+00> : vector<8x32xf32>
    %66 = vector.multi_reduction <add>, %65, %cst_25 [2] : vector<8x32x32xf32> to vector<8x32xf32>
    %67 = vector.shape_cast %66 : vector<8x32xf32> to vector<8x32x1xf32>
    %68 = tpu.reciprocal %67 {approx = true} : vector<8x32x1xf32> -> vector<8x32x1xf32>
    %69 = vector.broadcast %68 : vector<8x32x1xf32> to vector<8x32x32xf32>
    %70 = arith.mulf %65, %69 : vector<8x32x32xf32>
    %cst_26 = arith.constant dense<0.000000e+00> : vector<8x32x8xf32>
    %71 = tpu.matmul %70, %56, %cst_26 {dimension_numbers = #tpu.dot_dimension_numbers<[2], [1], [1], [2], [0, 0, 0, 1, 1, 2], [0], [0]>} : vector<8x32x32xf32>, vector<8x32x8xf32>, vector<8x32x8xf32> -> vector<8x32x8xf32>
    %72 = vector.shape_cast %71 : vector<8x32x8xf32> to vector<256x8xf32>
    %73 = vector.extract_strided_slice %4 {offsets = [16, 0], sizes = [8, 32], strides = [1, 1]} : vector<32x32xf32> to vector<8x32xf32>
    %cst_27 = arith.constant dense<0.000000e+00> : vector<256x32xf32>
    %74 = tpu.matmul %72, %73, %cst_27 {dimension_numbers = #tpu.dot_dimension_numbers<[1], [0], [0], [1], [0, 0, 1, 1], [], []>} : vector<256x8xf32>, vector<8x32xf32>, vector<256x32xf32> -> vector<256x32xf32>
    %75 = arith.addf %53, %74 : vector<256x32xf32>
    %76 = vector.extract_strided_slice %10 {offsets = [0, 0, 24], sizes = [8, 32, 8], strides = [1, 1, 1]} : vector<8x32x96xf32> to vector<8x32x8xf32>
    %77 = vector.extract_strided_slice %10 {offsets = [0, 0, 56], sizes = [8, 32, 8], strides = [1, 1, 1]} : vector<8x32x96xf32> to vector<8x32x8xf32>
    %78 = vector.extract_strided_slice %10 {offsets = [0, 0, 88], sizes = [8, 32, 8], strides = [1, 1, 1]} : vector<8x32x96xf32> to vector<8x32x8xf32>
    %cst_28 = arith.constant dense<0.000000e+00> : vector<8x32x32xf32>
    %79 = tpu.matmul %76, %77, %cst_28 {dimension_numbers = #tpu.dot_dimension_numbers<[2], [2], [1], [1], [0, 0, 0, 1, 1, 1], [0], [0]>} : vector<8x32x8xf32>, vector<8x32x8xf32>, vector<8x32x32xf32> -> vector<8x32x32xf32>
    %80 = vector.extract_strided_slice %5 {offsets = [0, 3, 0, 0], sizes = [8, 1, 32, 32], strides = [1, 1, 1, 1]} : vector<8x4x32x32xf32> to vector<8x1x32x32xf32>
    %81 = vector.shape_cast %80 : vector<8x1x32x32xf32> to vector<8x32x32xf32>
    %82 = arith.addf %79, %81 : vector<8x32x32xf32>
    %cst_29 = arith.constant dense<0xFF800000> : vector<8x32xf32>
    %83 = vector.multi_reduction <maximumf>, %82, %cst_29 [2] : vector<8x32x32xf32> to vector<8x32xf32>
    %84 = vector.shape_cast %83 : vector<8x32xf32> to vector<8x32x1xf32>
    %85 = vector.broadcast %84 : vector<8x32x1xf32> to vector<8x32x32xf32>
    %86 = arith.subf %82, %85 : vector<8x32x32xf32>
    %87 = math.exp %86 : vector<8x32x32xf32>
    %cst_30 = arith.constant dense<0.000000e+00> : vector<8x32xf32>
    %88 = vector.multi_reduction <add>, %87, %cst_30 [2] : vector<8x32x32xf32> to vector<8x32xf32>
    %89 = vector.shape_cast %88 : vector<8x32xf32> to vector<8x32x1xf32>
    %90 = tpu.reciprocal %89 {approx = true} : vector<8x32x1xf32> -> vector<8x32x1xf32>
    %91 = vector.broadcast %90 : vector<8x32x1xf32> to vector<8x32x32xf32>
    %92 = arith.mulf %87, %91 : vector<8x32x32xf32>
    %cst_31 = arith.constant dense<0.000000e+00> : vector<8x32x8xf32>
    %93 = tpu.matmul %92, %78, %cst_31 {dimension_numbers = #tpu.dot_dimension_numbers<[2], [1], [1], [2], [0, 0, 0, 1, 1, 2], [0], [0]>} : vector<8x32x32xf32>, vector<8x32x8xf32>, vector<8x32x8xf32> -> vector<8x32x8xf32>
    %94 = vector.shape_cast %93 : vector<8x32x8xf32> to vector<256x8xf32>
    %95 = vector.extract_strided_slice %4 {offsets = [24, 0], sizes = [8, 32], strides = [1, 1]} : vector<32x32xf32> to vector<8x32xf32>
    %cst_32 = arith.constant dense<0.000000e+00> : vector<256x32xf32>
    %96 = tpu.matmul %94, %95, %cst_32 {dimension_numbers = #tpu.dot_dimension_numbers<[1], [0], [0], [1], [0, 0, 1, 1], [], []>} : vector<256x8xf32>, vector<8x32xf32>, vector<256x32xf32> -> vector<256x32xf32>
    %97 = arith.addf %75, %96 : vector<256x32xf32>
    %c0_33 = arith.constant 0 : index
    %c0_34 = arith.constant 0 : index
    %98 = vector.load %arg6[%c0_33, %c0_34] : memref<1x32xf32, #tpu.memory_space<vmem>>, vector<1x32xf32>
    %99 = vector.broadcast %98 : vector<1x32xf32> to vector<256x32xf32>
    %100 = arith.addf %97, %99 : vector<256x32xf32>
    %101 = vector.shape_cast %100 : vector<256x32xf32> to vector<8x32x32xf32>
    %c0_35 = arith.constant 0 : index
    %c0_36 = arith.constant 0 : index
    %c0_37 = arith.constant 0 : index
    %c0_38 = arith.constant 0 : index
    %102 = vector.load %arg8[%c0_35, %c0_36, %c0_37, %c0_38] : memref<1x8x32x32xf32, #tpu.memory_space<vmem>>, vector<1x8x32x32xf32>
    %103 = vector.shape_cast %102 : vector<1x8x32x32xf32> to vector<8x32x32xf32>
    %104 = vector.shape_cast %101 : vector<8x32x32xf32> to vector<1x8x32x32xf32>
    tpu.vector_store %arg8[%c0_35, %c0_36, %c0_37, %c0_38], %104 {strides = array<i32>} : memref<1x8x32x32xf32, #tpu.memory_space<vmem>>, vector<1x8x32x32xf32>,
    return
  }
  func.func @transform_0(%arg0: i32, %arg1: i32) -> (i32, i32, i32, i32) {
    %c0_i32 = arith.constant 0 : i32
    %c0_i32_0 = arith.constant 0 : i32
    %c0_i32_1 = arith.constant 0 : i32
    return %arg0, %arg1, %c0_i32, %c0_i32_0 : i32, i32, i32, i32
  }
  func.func @transform_1(%arg0: i32, %arg1: i32) -> (i32, i32) {
    %c0_i32 = arith.constant 0 : i32
    %c0_i32_0 = arith.constant 0 : i32
    %c0_i32_1 = arith.constant 0 : i32
    return %c0_i32, %c0_i32_0 : i32, i32
  }
  func.func @transform_2(%arg0: i32, %arg1: i32) -> (i32, i32) {
    %c0_i32 = arith.constant 0 : i32
    %c0_i32_0 = arith.constant 0 : i32
    %c0_i32_1 = arith.constant 0 : i32
    return %c0_i32, %c0_i32_0 : i32, i32
  }
  func.func @transform_3(%arg0: i32, %arg1: i32) -> (i32, i32) {
    %c0_i32 = arith.constant 0 : i32
    %c0_i32_0 = arith.constant 0 : i32
    %c0_i32_1 = arith.constant 0 : i32
    return %c0_i32, %c0_i32_0 : i32, i32
  }
  func.func @transform_4(%arg0: i32, %arg1: i32) -> (i32, i32) {
    %c0_i32 = arith.constant 0 : i32
    %c0_i32_0 = arith.constant 0 : i32
    %c0_i32_1 = arith.constant 0 : i32
    return %c0_i32, %c0_i32_0 : i32, i32
  }
  func.func @transform_5(%arg0: i32, %arg1: i32) -> (i32, i32, i32, i32) {
    %c0_i32 = arith.constant 0 : i32
    %c0_i32_0 = arith.constant 0 : i32
    %c0_i32_1 = arith.constant 0 : i32
    %c0_i32_2 = arith.constant 0 : i32
    return %arg1, %c0_i32, %c0_i32_0, %c0_i32_1 : i32, i32, i32, i32
  }
  func.func @transform_6(%arg0: i32, %arg1: i32) -> (i32, i32, i32, i32) {
    %c0_i32 = arith.constant 0 : i32
    %c0_i32_0 = arith.constant 0 : i32
    %c0_i32_1 = arith.constant 0 : i32
    return %arg0, %arg1, %c0_i32, %c0_i32_0 : i32, i32, i32, i32
  }
}

</mosaic_0001>

<bundles_post_ra>
// kernel: tpu_custom_call.1
= control target key start
LH: loop header
LB: loop body
LE: loop exit
PB: predicated region body
PF: predicated region fallthrough
CT: control target
= control target key end

     0   :  { %s12843_s0 = inlined_call_operand.hbm [shape: f32[2,8,32,32], index: 0, kind: input, shape index: {}]   ;;  %s12844_s1 = inlined_call_operand.hbm [shape: f32[32,96], index: 1, kind: input, shape index: {}]   ;;  %s12845_s2 = inlined_call_operand.vmem [shape: f32[1,96], index: 2, kind: input, shape index: {}]   ;;  %s12846_s3 = inlined_call_operand.hbm [shape: f32[32,32], index: 3, kind: input, shape index: {}]   ;;  %s12847_s4 = inlined_call_operand.vmem [shape: f32[1,32], index: 4, kind: input, shape index: {}]   ;;  %s12848_s5 = inlined_call_operand.hbm [shape: f32[8,4,32,32], index: 5, kind: input, shape index: {}]   ;;  %s12849_s6 = inlined_call_operand.hbm [shape: f32[2,8,32,32], index: 6, kind: output, shape index: {}]  }
   0x1   :  { %12964 = sst [smem:[#allocation176_spill]] %s12844_s1 }
   0x2   :  { %12965 = sst [smem:[#allocation177_spill]] %s12846_s3 }
   0x3   :  { %12966 = sst [smem:[#allocation178_spill]] %s12848_s5 }
   0x4   :  { %11 = vsyncpa [#allocation3], 0 }
   0x5   :  { %13 = vsyncpa [#allocation3 + $0x1], 0 }
   0x6   :  { %14 = vsyncpa [#allocation6], 0 }
   0x7   :  { %15 = vsyncpa [#allocation9], 0 }
   0x8   :  { %16 = vsyncpa [#allocation4], 0 }
   0x9   :  { %18 = vsyncpa [#allocation4 + $0x1], 0  ;;  %s8641_s21 = smov 0   ;;  %s8643_s22 = smov 0  }
   0xa   :  { %s8645_s23 = smov 0   ;;  %s8647_s24 = smov 0  }
   0xb   :  { %s8649_s25 = smov 0   ;;  %s8651_s26 = smov 0  }
   0xc LB: > { %s6865_s27 = sadd.s32 4294967295, %s8586_s26   ;;  %s6866_s28 = sadd.s32 4294967294, %s8586_s26   ;;  %s8586_s26 = sphi %s8651_s26, %s24_s26   ;;  %s8582_s25 = sphi %s8649_s25, %s13590_s25   ;;  %s8578_s24 = sphi %s8647_s24, %s13589_s24   ;;  %s8574_s23 = sphi %s8645_s23, %s13588_s23   ;;  %s8570_s22 = sphi %s8643_s22, %s13587_s22   ;;  %s8566_s21 = sphi %s8641_s21, %s13586_s21  }
   0xd   : > { %p58_p0 = scmp.ne.s32.totalorder %s8570_s22, %s8566_s21  ;;  %p8675_p1 = scmp.eq.s32.totalorder %s6865_s27, 0 }
   0xe   : > { %p8679_p2 = scmp.eq.s32.totalorder %s6865_s27, 1  ;;  %p200_p3 = scmp.eq.s32.totalorder %s6866_s28, 1 }
   0xf   : > { %p8685_p4 = por %p8675_p1, %p58_p0  ;;  %p6867_p5 = scmp.ge.s32.totalorder %s8586_s26, 1 }
  0x10   : > { %p8690_p6 = por %p200_p3, %p58_p0  ;;  %p207_p7 = scmp.lt.s32.totalorder %s8586_s26, 3 }
  0x11   : > { %s12971_s1 = sld [smem:[#allocation176_spill]]  ;;  %s8588_s13 = smov [#allocation5]  }
  0x12   : > { %p8698_p8 = pnand %p6867_p5, %p207_p7  ;;  %s220_s14 = sshll.u32 %s8588_s13, 4  ;;  %s221_s14 = int_to_ptr.vmem [resolvable:$true] %s220_s14 }
  0x13   : > { %p6871_p11 = scmp.ge.s32.totalorder %s8586_s26, 2  ;;  %s12974_s3 = sld [smem:[#allocation177_spill]] }
  0x14   : > { %p7450_p9 = pneg %p8698_p8  ;;  %s12850_s19 = smov 128  }
  0x15   : > { %s12851_s20 = smov 8   ;;  %s8591_s27 = smov [#allocation7]  }
  0x16   : > { %p8706_p10 = pnand %p7450_p9, %p8675_p1  ;;  %s237_s28 = sshll.u32 %s8591_s27, 4  ;;  %s238_s28 = int_to_ptr.vmem [resolvable:$true] %s237_s28 }
  0x17   : > { %s218_s11 = sshll.u32 %s12971_s1, 4  ;;  %s12975_s5 = sld [smem:[#allocation178_spill]]  ;;  %s219_s11 = int_to_ptr.hbm [resolvable:$true] %s218_s11 }
  0x18   : > { %7453 = dma.hbm_to_vmem [thread:$0]  (!%p8706_p10), %s219_s11, 512, %s221_s14, [#allocation6], %s12850_s19, %s12850_s19, %s12851_s20  }
  0x19   : > { %s235_s18 = sshll.u32 %s12974_s3, 4  ;;  %s8592_s16 = smov [#allocation8]   ;;  %s236_s18 = int_to_ptr.hbm [resolvable:$true] %s235_s18 }
  0x1a   : > { %7456 = dma.hbm_to_vmem [thread:$0]  (!%p8706_p10), %s236_s18, 512, %s238_s28, [#allocation6], %s12850_s19, %s12850_s19, %s12851_s20  }
  0x1b   : > { %s258_s17 = sshll.u32 %s8592_s16, 4  ;;  %s36_s11 = sadd.s32 1, %s8582_s25  ;;  %s259_s17 = int_to_ptr.vmem [resolvable:$true] %s258_s17 }
  0x1c   : > { %p38_p12 = scmp.ge.s32.totalorder %s36_s11, 2  ;;  %s45_s14 = sadd.s32 1, %s8574_s23 }
  0x1d   : > { %s256_s13 = sshll.u32 %s12975_s5, 4  ;;  %p52_p13 = scmp.ne.s32.totalorder %s8574_s23, %s8570_s22  ;;  %s257_s13 = int_to_ptr.hbm [resolvable:$true] %s256_s13 }
  0x1e   : > { %7459 = dma.hbm_to_vmem [thread:$0]  (!%p8706_p10), %s257_s13, 16384, %s259_s17, [#allocation9], %s12850_s19, %s12850_s19, %s12851_s20  }
  0x1f   : > { %p53_p0 = scmp.eq.s32.totalorder %s8586_s26, 0  ;;  %s13592_s11 = smov (%p38_p12, %s36_s11), 0 }
  0x20   : > { %12976 = sst [smem:[#allocation15_spill]] %s13592_s11  ;;  %p8745_p5 = por %p8679_p2, %p52_p13 }
  0x21   : > { %p8739_p3 = por %p53_p0, %p52_p13  ;;  %s40_s27 = ssub.s32 %s8582_s25, %s13592_s11 }
  0x22   : > { %p7471_p7 = scmp.lt.s32.totalorder %s8586_s26, 2  ;;  %p43_p9 = scmp.eq.s32.totalorder %s40_s27, 0 }
  0x23   : > { %s272_s28 = sand.u32 1, %s8574_s23   ;;  %s7430_s13 = sshll.u32 %s8582_s25, 8 }
  0x24   : > { %s6872_s9 = sshll.u32 %s272_s28, 8  ;;  %s284_s19 = scalar_lea.hbm %s12843_s0, %s7430_s13 }
  0x25   : > { %s8754_s10 = scalar_select %p43_p9, %s8574_s23, %s45_s14  }
  0x26   : > { %s276_s20 = scalar_lea.vmem [#allocation2], %s6872_s9  ;;  %s285_s30 = sshll.u32 %s284_s19, 4  ;;  %s286_s30 = int_to_ptr.hbm [resolvable:$true] %s285_s30 }
  0x27   : > { %s287_s1 = sshll.u32 %s276_s20, 4  ;;  %p7461_p2 = pnand %p7471_p7, %p8739_p3  ;;  %s288_s1 = int_to_ptr.vmem [resolvable:$true] %s287_s1 }
  0x28   : > { %s273_s3 = scalar_lea.sflag [#allocation3], %s272_s28  ;;  %s12979_s5 = smov 8  }
  0x29   : > { %s12980_s11 = smov 128   ;;  %299 = sbr.rel (%p8698_p8) target bundleno = 3912 (0xf48), region = 44 }
  0x2a   : > { %7463 = dma.hbm_to_vmem [thread:$0]  (!%p7461_p2), %s286_s30, 4096, %s288_s1, %s273_s3, %s12980_s11, %s12980_s11, %s12979_s5  }
  0x2e   : > { %s8768_s14 = sand.u32 1, %s8570_s22  }
  0x2f   : > { %s6876_s19 = sshll.u32 %s8768_s14, 8  ;;  %s302_s20 = scalar_lea.sflag [#allocation3], %s8768_s14 }
  0x30   : > { %s8774_s18 = scalar_lea.vmem [#allocation2], %s6876_s19 }
  0x31   : > { %8549 = dma.done.wait (%p8685_p4), %s302_s20, 4096  }
  0x32   : > { %8551 = vsyncadd (%p8685_p4), %s302_s20, 4294963200 }
  0x33   : > { %8553 = dma.done.wait (%p8675_p1), [#allocation6], 1024  }
  0x34   : > { %8555 = vsyncadd (%p8675_p1), [#allocation6], 4294966272 }
  0x35   : > { %8557 = dma.done.wait (%p8675_p1), [#allocation9], 16384  }
  0x36   : > { %8559 = vsyncadd (%p8675_p1), [#allocation9], 4294950912  ;;  %v388_v0 = vld [vmem:[#allocation5 + $0x18] sm:$0xff]  ;;  %v387_v1 = vld [vmem:[#allocation5 + $0x10] sm:$0xff]  ;;  %vm525_vm0 = vcmask 261120   ;;  %s8593_s5 = smov 88  }
  0x37   : > { %634 = vmatpush.msra.mxu0 %v388_v0  ;;  %v386_v2 = vld [vmem:[#allocation5 + $0x8] sm:$0xff]  ;;  %v385_v3 = vld [vmem:[#allocation5] sm:$0xff]  ;;  %v355_v6 = vld [vmem:[%s8774_s18 + $0x10] sm:$0xff]  ;;  %s8594_s29 = smov 120   ;;  %s8595_s7 = smov 96   ;;  %vm747_vm1 = vcmask 64512  }
  0x38   : > { %v353_v4 = vld [vmem:[%s8774_s18] sm:$0xff]  ;;  %v354_v5 = vld [vmem:[%s8774_s18 + $0x8] sm:$0xff]  ;;  %v356_v7 = vld [vmem:[%s8774_s18 + $0x18] sm:$0xff]  ;;  %s8596_s12 = smov 64   ;;  %s8597_s11 = smov 80  }
  0x39   : > { %635 = vmatpush.msra.mxu0 %v387_v1  ;;  %v357_v8 = vld [vmem:[%s8774_s18 + $0x20] sm:$0xff]  ;;  %v358_v9 = vld [vmem:[%s8774_s18 + $0x28] sm:$0xff]  ;;  %v359_v10 = vld [vmem:[%s8774_s18 + $0x30] sm:$0xff]  ;;  %s8598_s27 = smov 112   ;;  %s8599_s28 = smov 56  }
  0x3a   : > { %v360_v11 = vld [vmem:[%s8774_s18 + $0x38] sm:$0xff]  ;;  %v361_v12 = vld [vmem:[%s8774_s18 + $0x40] sm:$0xff]  ;;  %v362_v13 = vld [vmem:[%s8774_s18 + $0x48] sm:$0xff]  ;;  %s8600_s9 = smov 48   ;;  %s8601_s13 = smov 72  }
  0x3b   : > { %636 = vmatpush.msra.mxu0 %v386_v2  ;;  %v363_v14 = vld [vmem:[%s8774_s18 + $0x50] sm:$0xff]  ;;  %v364_v15 = vld [vmem:[%s8774_s18 + $0x58] sm:$0xff]  ;;  %v365_v16 = vld [vmem:[%s8774_s18 + $0x60] sm:$0xff]  ;;  %s8602_s16 = smov 104   ;;  %s8603_s17 = smov 40  }
  0x3c   : > { %v366_v17 = vld [vmem:[%s8774_s18 + $0x68] sm:$0xff]  ;;  %v367_v18 = vld [vmem:[%s8774_s18 + $0x70] sm:$0xff]  ;;  %v368_v19 = vld [vmem:[%s8774_s18 + $0x78] sm:$0xff] }
  0x3d   : > { %637 = vmatpush.msra.mxu0 %v385_v3  ;;  %v8823_v20 = vld [vmem:[%s12845_s2] ss:$0 sm:$0xff]  ;;  %v370_v25 = vld [vmem:[%s8774_s18 + $0x88] sm:$0xff]  ;;  %v371_v29 = vld [vmem:[%s8774_s18 + $0x90] sm:$0xff] }
  0x3e   : > { %6881 = vmatmul.msk.f32.vlgmr.msra.gmra.mxu0 %vm525_vm0, %v353_v4  ;;  %v369_v22 = vld [vmem:[%s8774_s18 + $0x80] sm:$0xff]  ;;  %v372_v32 = vld [vmem:[%s8774_s18 + $0x98] sm:$0xff]  ;;  %v374_v39 = vld [vmem:[%s8774_s18 + $0xa8] sm:$0xff] }
  0x3f   : > { %v373_v35 = vld [vmem:[%s8774_s18 + $0xa0] sm:$0xff]  ;;  %v375_v43 = vld [vmem:[%s8774_s18 + $0xb0] sm:$0xff]  ;;  %v376_v45 = vld [vmem:[%s8774_s18 + $0xb8] sm:$0xff] }
  0x40   : > { %v377_v46 = vld [vmem:[%s8774_s18 + $0xc0] sm:$0xff]  ;;  %v378_v50 = vld [vmem:[%s8774_s18 + $0xc8] sm:$0xff]  ;;  %v379_v54 = vld [vmem:[%s8774_s18 + $0xd0] sm:$0xff] }
  0x41   : > { %v380_v57 = vld [vmem:[%s8774_s18 + $0xd8] sm:$0xff]  ;;  %v381_v60 = vld [vmem:[%s8774_s18 + $0xe0] sm:$0xff]  ;;  %v382_v0 = vld [vmem:[%s8774_s18 + $0xe8] sm:$0xff] }
  0x46   : > { %6882 = vmatmul.msk.f32.gmra.mxu0 %vm525_vm0, %v354_v5 }
  0x4e   : > { %6883 = vmatmul.msk.f32.gmra.mxu0 %vm525_vm0, %v355_v6 }
  0x56   : > { %6884 = vmatmul.msk.f32.gmra.mxu0 %vm525_vm0, %v356_v7 }
  0x5e   : > { %6885 = vmatmul.msk.f32.gmra.mxu0 %vm525_vm0, %v357_v8 }
  0x66   : > { %6886 = vmatmul.msk.f32.gmra.mxu0 %vm525_vm0, %v358_v9 }
  0x6e   : > { %6887 = vmatmul.msk.f32.gmra.mxu0 %vm525_vm0, %v359_v10 }
  0x76   : > { %6888 = vmatmul.msk.f32.gmra.mxu0 %vm525_vm0, %v360_v11 }
  0x7e   : > { %6889 = vmatmul.msk.f32.gmra.mxu0 %vm525_vm0, %v361_v12 }
  0x86   : > { %6890 = vmatmul.msk.f32.gmra.mxu0 %vm525_vm0, %v362_v13 }
  0x8e   : > { %6891 = vmatmul.msk.f32.gmra.mxu0 %vm525_vm0, %v363_v14 }
  0x96   : > { %6892 = vmatmul.msk.f32.gmra.mxu0 %vm525_vm0, %v364_v15 }
  0x9e   : > { %6893 = vmatmul.msk.f32.gmra.mxu0 %vm525_vm0, %v365_v16 }
  0xa6   : > { %6894 = vmatmul.msk.f32.gmra.mxu0 %vm525_vm0, %v366_v17 }
  0xae   : > { %6895 = vmatmul.msk.f32.gmra.mxu0 %vm525_vm0, %v367_v18 }
  0xb6   : > { %6896 = vmatmul.msk.f32.gmra.mxu0 %vm525_vm0, %v368_v19 }
  0xbb   : > { %v639_v21 = vpop.f32.mrf.mxu0 }
  0xbc   : > { %v8827_v23 = vadd.f32 %v8823_v20, %v639_v21 }
  0xbe   : > { %12981 = vst [vmem:[#allocation16_spill] sm:$0xff] %v8827_v23  ;;  %6897 = vmatmul.msk.f32.gmra.mxu0 %vm525_vm0, %v369_v22  ;;  %1976 = vrot.lane.b32.xlu1 %v8827_v23, %s8593_s5 }
  0xbf   : > { %1968 = vrot.lane.b32.xlu2 %v8827_v23, %s8594_s29  ;;  %739 = vrot.lane.b32.xlu0 %v8827_v23, %s8595_s7 }
  0xc3   : > { %v642_v24 = vpop.f32.mrf.mxu0 }
  0xc4   : > { %v8838_v26 = vadd.f32 %v8823_v20, %v642_v24 }
  0xc6   : > { %12982 = vst [vmem:[#allocation17_spill] sm:$0xff] %v8838_v26  ;;  %6898 = vmatmul.msk.f32.gmra.mxu0 %vm525_vm0, %v370_v25  ;;  %1970 = vrot.lane.b32.xlu1 %v8838_v26, %s8594_s29  ;;  %v7542_v27 = vpack.i.bf16 %v8838_v26, %v8827_v23 }
  0xc7   : > { %741 = vrot.lane.b32.xlu0 %v8838_v26, %s8595_s7 }
  0xc8   : > { %7543 = vrot.lane.b32.xlu2 %v7542_v27, %s8596_s12 }
  0xcb   : > { %v645_v28 = vpop.f32.mrf.mxu0 }
  0xcc   : > { %v8850_v30 = vadd.f32 %v8823_v20, %v645_v28 }
  0xce   : > { %12983 = vst [vmem:[#allocation18_spill] sm:$0xff] %v8850_v30  ;;  %6899 = vmatmul.msk.f32.gmra.mxu0 %vm525_vm0, %v371_v29  ;;  %743 = vrot.lane.b32.xlu1 %v8850_v30, %s8595_s7 }
  0xcf   : > { %1978 = vrot.lane.b32.xlu0 %v8838_v26, %s8593_s5 }
  0xd0   : > { %1980 = vrot.lane.b32.xlu2 %v8850_v30, %s8593_s5 }
  0xd3   : > { %v648_v31 = vpop.f32.mrf.mxu0 }
  0xd4   : > { %v8861_v33 = vadd.f32 %v8823_v20, %v648_v31 }
  0xd6   : > { %12984 = vst [vmem:[#allocation19_spill] sm:$0xff] %v8861_v33  ;;  %6900 = vmatmul.msk.f32.gmra.mxu0 %vm525_vm0, %v372_v32  ;;  %745 = vrot.lane.b32.xlu1 %v8861_v33, %s8595_s7  ;;  %v7547_v37 = vpack.i.bf16 %v8861_v33, %v8850_v30  ;;  %v383_v32 = vld [vmem:[%s8774_s18 + $0xf0] sm:$0xff] }
  0xd7   : > { %1972 = vrot.lane.b32.xlu0 %v8850_v30, %s8594_s29 }
  0xd8   : > { %1974 = vrot.lane.b32.xlu2 %v8861_v33, %s8594_s29 }
  0xdb   : > { %v651_v34 = vpop.f32.mrf.mxu0 }
  0xdc   : > { %v8872_v36 = vadd.f32 %v8823_v20, %v651_v34 }
  0xde   : > { %12985 = vst [vmem:[#allocation20_spill] sm:$0xff] %v8872_v36  ;;  %6901 = vmatmul.msk.f32.gmra.mxu0 %vm525_vm0, %v373_v35  ;;  %1982 = vrot.lane.b32.xlu1 %v8861_v33, %s8593_s5 }
  0xdf   : > { %7548 = vrot.lane.b32.xlu0 %v7547_v37, %s8596_s12 }
  0xe0   : > { %797 = vrot.lane.b32.xlu2 %v8872_v36, %s8595_s7 }
  0xe3   : > { %v654_v38 = vpop.f32.mrf.mxu0 }
  0xe4   : > { %v8884_v40 = vadd.f32 %v8823_v20, %v654_v38  ;;  %v384_v38 = vld [vmem:[%s8774_s18 + $0xf8] sm:$0xff]  ;;  %s12620_s18 = scalar_lea.vmem [#allocation10], %s6876_s19  ;;  %s7431_s19 = sshll.u32 %s8578_s24, 8 }
  0xe5   : > { %s6729_s24 = scalar_lea.sflag [#allocation4], %s8768_s14 }
  0xe6   : > { %12986 = vst [vmem:[#allocation21_spill] sm:$0xff] %v8884_v40  ;;  %6902 = vmatmul.msk.f32.gmra.mxu0 %vm525_vm0, %v374_v39  ;;  %v7552_v41 = vpack.i.bf16 %v8884_v40, %v8872_v36 }
  0xe7   : > { %2029 = vrot.lane.b32.xlu0 %v8872_v36, %s8594_s29 }
  0xe8   : > { %7553 = vrot.lane.b32.xlu1 %v7552_v41, %s8596_s12  ;;  %2037 = vrot.lane.b32.xlu2 %v8872_v36, %s8593_s5 }
  0xeb   : > { %v657_v42 = vpop.f32.mrf.mxu0 }
  0xec   : > { %v8912_v47 = vadd.f32 %v8823_v20, %v657_v42 }
  0xee   : > { %6903 = vmatmul.msk.f32.gmra.mxu0 %vm525_vm0, %v375_v43  ;;  %12987 = vst [vmem:[#allocation22_spill] sm:$0xff] %v8912_v47 }
  0xef   : > { %3719 = vrot.lane.b32.xlu0 %v8872_v36, %s8597_s11 }
  0xf0   : > { %2039 = vrot.lane.b32.xlu1 %v8884_v40, %s8593_s5  ;;  %799 = vrot.lane.b32.xlu2 %v8884_v40, %s8595_s7 }
  0xf3   : > { %v660_v44 = vpop.f32.mrf.mxu0 }
  0xf4   : > { %v8915_v48 = vadd.f32 %v8823_v20, %v660_v44 }
  0xf6   : > { %6904 = vmatmul.msk.f32.gmra.mxu0 %vm525_vm0, %v376_v45  ;;  %12988 = vst [vmem:[#allocation23_spill] sm:$0xff] %v8915_v48  ;;  %v7557_v61 = vpack.i.bf16 %v8915_v48, %v8912_v47 }
  0xf7   : > { %3711 = vrot.lane.b32.xlu0 %v8872_v36, %s8598_s27 }
  0xf8   : > { %3721 = vrot.lane.b32.xlu1 %v8884_v40, %s8597_s11  ;;  %2031 = vrot.lane.b32.xlu2 %v8884_v40, %s8594_s29 }
  0xfb   : > { %v663_v49 = vpop.f32.mrf.mxu0 }
  0xfc   : > { %v8926_v51 = vadd.f32 %v8823_v20, %v663_v49 }
  0xfe   : > { %6905 = vmatmul.msk.f32.gmra.mxu0 %vm525_vm0, %v377_v46  ;;  %12989 = vst [vmem:[#allocation24_spill] sm:$0xff] %v8926_v51 }
  0xff   : > { %3713 = vrot.lane.b32.xlu0 %v8884_v40, %s8598_s27 }
 0x100   : > { %2033 = vrot.lane.b32.xlu1 %v8912_v47, %s8594_s29  ;;  %2043 = vrot.lane.b32.xlu2 %v8915_v48, %s8593_s5 }
 0x103   : > { %v666_v52 = vpop.f32.mrf.mxu0 }
 0x104   : > { %v8936_v53 = vadd.f32 %v8823_v20, %v666_v52 }
 0x106   : > { %6906 = vmatmul.msk.f32.gmra.mxu0 %vm525_vm0, %v378_v50  ;;  %12990 = vst [vmem:[#allocation25_spill] sm:$0xff] %v8936_v53  ;;  %v7562_v55 = vpack.i.bf16 %v8936_v53, %v8926_v51  ;;  %v9044_v29 = vpack.i.bf16 %v8926_v51, %v8936_v53 }
 0x107   : > { %801 = vrot.lane.b32.xlu0 %v8912_v47, %s8595_s7 }
 0x108   : > { %3715 = vrot.lane.b32.xlu1 %v8912_v47, %s8598_s27  ;;  %854 = vrot.lane.b32.xlu2 %v8926_v51, %s8595_s7  ;;  %13002 = vst [vmem:[#allocation37_spill] sm:$0xff] %v9044_v29 }
 0x10b   : > { %v669_v56 = vpop.f32.mrf.mxu0 }
 0x10c   : > { %v8961_v62 = vadd.f32 %v8823_v20, %v669_v56 }
 0x10e   : > { %6907 = vmatmul.msk.f32.gmra.mxu0 %vm525_vm0, %v379_v54  ;;  %12992 = vst [vmem:[#allocation27_spill] sm:$0xff] %v8961_v62 }
 0x10f   : > { %2041 = vrot.lane.b32.xlu0 %v8912_v47, %s8593_s5 }
 0x110   : > { %803 = vrot.lane.b32.xlu1 %v8915_v48, %s8595_s7  ;;  %7563 = vrot.lane.b32.xlu2 %v7562_v55, %s8596_s12 }
 0x113   : > { %v672_v59 = vpop.f32.mrf.mxu0 }
 0x114   : > { %v8973_v2 = vadd.f32 %v8823_v20, %v672_v59 }
 0x116   : > { %6908 = vmatmul.msk.f32.gmra.mxu0 %vm525_vm0, %v380_v57  ;;  %12993 = vst [vmem:[#allocation28_spill] sm:$0xff] %v8973_v2  ;;  %v7572_v4 = vpack.i.bf16 %v8973_v2, %v8961_v62 }
 0x117   : > { %3723 = vrot.lane.b32.xlu0 %v8912_v47, %s8597_s11 }
 0x118   : > { %2090 = vrot.lane.b32.xlu1 %v8926_v51, %s8594_s29  ;;  %2100 = vrot.lane.b32.xlu2 %v8936_v53, %s8593_s5 }
 0x119   : > { %v8955_v58 = vpop.permute.xlu2 %1968 }
 0x11a   : > { %12991 = vst [vmem:[#allocation26_spill] sm:$0xff] %v8955_v58 }
 0x11b   : > { %v675_v1 = vpop.f32.mrf.mxu0 }
 0x11c   : > { %v8987_v5 = vadd.f32 %v8823_v20, %v675_v1 }
 0x11e   : > { %6909 = vmatmul.msk.f32.gmra.mxu0 %vm525_vm0, %v381_v60  ;;  %12994 = vst [vmem:[#allocation29_spill] sm:$0xff] %v8987_v5 }
 0x11f   : > { %7558 = vrot.lane.b32.xlu0 %v7557_v61, %s8596_s12 }
 0x120   : > { %858 = vrot.lane.b32.xlu1 %v8961_v62, %s8595_s7  ;;  %2094 = vrot.lane.b32.xlu2 %v8961_v62, %s8594_s29 }
 0x122   : > { %v8969_v63 = vpop.permute.xlu2 %7543 }
 0x123   : > { %v678_v6 = vpop.f32.mrf.mxu0 }
 0x124   : > { %v8997_v9 = vadd.f32 %v8823_v20, %v678_v6 }
 0x126   : > { %6910 = vmatmul.msk.f32.gmra.mxu0 %vm525_vm0, %v382_v0  ;;  %12995 = vst [vmem:[#allocation30_spill] sm:$0xff] %v8997_v9  ;;  %v7582_v11 = vpack.i.bf16 %v8987_v5, %v8997_v9  ;;  %v7577_v55 = vpack.i.bf16 %v8997_v9, %v8987_v5 }
 0x127   : > { %2035 = vrot.lane.b32.xlu0 %v8915_v48, %s8594_s29 }
 0x128   : > { %2102 = vrot.lane.b32.xlu1 %v8961_v62, %s8593_s5  ;;  %860 = vrot.lane.b32.xlu2 %v8973_v2, %s8595_s7 }
 0x12a   : > { %v8982_v3 = vpop.permute.xlu2 %1980 }
 0x12b   : > { %v681_v15 = vpop.f32.mrf.mxu0 }
 0x12c   : > { %v9013_v16 = vadd.f32 %v8823_v20, %v681_v15 }
 0x12e   : > { %12998 = vst [vmem:[#allocation33_spill] sm:$0xff] %v9013_v16  ;;  %6911 = vmatmul.msk.f32.gmra.mxu0 %vm525_vm0, %v383_v32 }
 0x12f   : > { %3725 = vrot.lane.b32.xlu0 %v8915_v48, %s8597_s11 }
 0x130   : > { %7573 = vrot.lane.b32.xlu1 %v7572_v4, %s8596_s12  ;;  %v8992_v7 = vpop.permute.xlu1 %1976  ;;  %2151 = vrot.lane.b32.xlu2 %v8987_v5, %s8594_s29 }
 0x131   : > { %v740_v8 = vpop.permute.xlu0 %739 }
 0x132   : > { %v8999_v10 = vpop.permute.xlu2 %1974 }
 0x133   : > { %12996 = vst [vmem:[#allocation31_spill] sm:$0xff] %v8999_v10  ;;  %v684_v21 = vpop.f32.mrf.mxu0 }
 0x134   : > { %v9028_v22 = vadd.f32 %v8823_v20, %v684_v21 }
 0x136   : > { %13000 = vst [vmem:[#allocation35_spill] sm:$0xff] %v9028_v22  ;;  %v7587_v28 = vpack.i.bf16 %v9028_v22, %v9013_v16  ;;  %6912 = vmatmul.msk.f32.gmra.mxu0 %vm525_vm0, %v384_v38 }
 0x137   : > { %2098 = vrot.lane.b32.xlu0 %v8926_v51, %s8593_s5 }
 0x138   : > { %2096 = vrot.lane.b32.xlu1 %v8973_v2, %s8594_s29  ;;  %v9007_v12 = vpop.permute.xlu1 %1970  ;;  %7583 = vrot.lane.b32.xlu2 %v7582_v11, %s8599_s28 }
 0x139   : > { %12997 = vst [vmem:[#allocation32_spill] sm:$0xff] %v9007_v12  ;;  %v742_v13 = vpop.permute.xlu0 %741 }
 0x13a   : > { %v9010_v14 = vpop.permute.xlu2 %797 }
 0x13b   : > { %v687_v31 = vpop.f32.mrf.mxu0 }
 0x13c   : > { %v9078_v44 = vadd.f32 %v8823_v20, %v687_v31  ;;  %v9155_v31 = vpack.i.bf16 %v9013_v16, %v9028_v22 }
 0x13e   : > { %13005 = vst [vmem:[#allocation40_spill] sm:$0xff] %v9078_v44 }
 0x13f   : > { %856 = vrot.lane.b32.xlu0 %v8936_v53, %s8595_s7  ;;  %13019 = vst [vmem:[#allocation54_spill] sm:$0xff] %v9155_v31 }
 0x140   : > { %2159 = vrot.lane.b32.xlu1 %v8987_v5, %s8593_s5  ;;  %v744_v17 = vpop.permute.xlu1 %743  ;;  %915 = vrot.lane.b32.xlu2 %v9013_v16, %s8595_s7 }
 0x141   : > { %v9021_v18 = vpop.permute.xlu0 %1978 }
 0x142   : > { %v9023_v19 = vpop.permute.xlu2 %2037 }
 0x143   : > { %12999 = vst [vmem:[#allocation34_spill] sm:$0xff] %v9023_v19  ;;  %v690_v39 = vpop.f32.mrf.mxu0 }
 0x144   : > { %v9083_v45 = vadd.f32 %v8823_v20, %v690_v39 }
 0x146   : > { %13006 = vst [vmem:[#allocation41_spill] sm:$0xff] %v9083_v45  ;;  %v7597_v54 = vpack.i.bf16 %v9083_v45, %v9078_v44 }
 0x147   : > { %2092 = vrot.lane.b32.xlu0 %v8936_v53, %s8594_s29 }
 0x148   : > { %913 = vrot.lane.b32.xlu1 %v8997_v9, %s8595_s7  ;;  %v746_v24 = vpop.permute.xlu1 %745  ;;  %2163 = vrot.lane.b32.xlu2 %v9013_v16, %s8593_s5 }
 0x149   : > { %v9034_v25 = vpop.permute.xlu0 %1972  ;;  %6913 = vmatpush.xpose.msk.msra.mxu1 %vm747_vm1, %v746_v24 }
 0x14a   : > { %13001 = vst [vmem:[#allocation36_spill] sm:$0xff] %v9034_v25  ;;  %v9037_v27 = vpop.permute.xlu2 %799 }
 0x14b   : > { %v693_v52 = vpop.f32.mrf.mxu0 }
 0x14c   : > { %v9128_v4 = vadd.f32 %v8823_v20, %v693_v52 }
 0x14d   : > { %6914 = vmatpush.xpose.msk.msra.mxu1 %vm747_vm1, %v744_v17 }
 0x14e   : > { %13014 = vst [vmem:[#allocation49_spill] sm:$0xff] %v9128_v4 }
 0x14f   : > { %7568 = vrot.lane.b32.xlu0 %v9044_v29, %s8599_s28 }
 0x150   : > { %2153 = vrot.lane.b32.xlu1 %v8997_v9, %s8594_s29  ;;  %7588 = vrot.lane.b32.xlu2 %v7587_v28, %s8596_s12  ;;  %v9056_v35 = vpop.permute.xlu1 %1982 }
 0x151   : > { %v9052_v34 = vpop.permute.xlu0 %7548  ;;  %6915 = vmatpush.xpose.msk.msra.mxu1 %vm747_vm1, %v742_v13 }
 0x152   : > { %v9058_v37 = vpop.permute.xlu2 %2031 }
 0x153   : > { %13003 = vst [vmem:[#allocation38_spill] sm:$0xff] %v9058_v37  ;;  %v696_v60 = vpop.f32.mrf.mxu0 }
 0x154   : > { %v9141_v15 = vadd.f32 %v8823_v20, %v696_v60 }
 0x155   : > { %6916 = vmatpush.xpose.msk.msra.mxu1 %vm747_vm1, %v740_v8 }
 0x156   : > { %13017 = vst [vmem:[#allocation52_spill] sm:$0xff] %v9141_v15 }
 0x157   : > { %2104 = vrot.lane.b32.xlu0 %v8973_v2, %s8593_s5 }
 0x158   : > { %2165 = vrot.lane.b32.xlu1 %v9028_v22, %s8593_s5  ;;  %2157 = vrot.lane.b32.xlu2 %v9028_v22, %s8594_s29 }
 0x159   : > { %6917 = vmatmul.msk.f32.vlgmr.msra.gmra.mxu1 %vm747_vm1, %v8827_v23  ;;  %v9070_v41 = vpop.permute.xlu0 %2029 }
 0x15a   : > { %13004 = vst [vmem:[#allocation39_spill] sm:$0xff] %v9070_v41  ;;  %v9073_v42 = vpop.permute.xlu1 %7553  ;;  %v9075_v43 = vpop.permute.xlu2 %2043 }
 0x15b   : > { %v699_v6 = vpop.f32.mrf.mxu0 }
 0x15c   : > { %v9158_v32 = vadd.f32 %v8823_v20, %v699_v6 }
 0x15e   : > { %13020 = vst [vmem:[#allocation55_spill] sm:$0xff] %v9158_v32 }
 0x15f   : > { %911 = vrot.lane.b32.xlu0 %v8987_v5, %s8595_s7 }
 0x160   : > { %968 = vrot.lane.b32.xlu1 %v9078_v44, %s8595_s7  ;;  %3847 = vrot.lane.b32.xlu2 %v9028_v22, %s8597_s11 }
 0x161   : > { %6918 = vmatmul.msk.f32.gmra.mxu1 %vm747_vm1, %v8838_v26  ;;  %v9091_v46 = vpop.permute.xlu0 %3719 }
 0x162   : > { %13007 = vst [vmem:[#allocation42_spill] sm:$0xff] %v9091_v46  ;;  %v9093_v49 = vpop.permute.xlu1 %2039  ;;  %v9095_v50 = vpop.permute.xlu2 %854  ;;  %v7602_v46 = vpack.i.bf16 %v9141_v15, %v9128_v4 }
 0x163   : > { %13008 = vst [vmem:[#allocation43_spill] sm:$0xff] %v9093_v49  ;;  %v702_v17 = vpop.f32.mrf.mxu0 }
 0x164   : > { %v9170_v39 = vadd.f32 %v8823_v20, %v702_v17 }
 0x166   : > { %13022 = vst [vmem:[#allocation57_spill] sm:$0xff] %v9170_v39  ;;  %v7607_v60 = vpack.i.bf16 %v9170_v39, %v9158_v32 }
 0x167   : > { %7578 = vrot.lane.b32.xlu0 %v7577_v55, %s8596_s12 }
 0x168   : > { %7598 = vrot.lane.b32.xlu1 %v7597_v54, %s8596_s12  ;;  %2220 = vrot.lane.b32.xlu2 %v9078_v44, %s8593_s5 }
 0x169   : > { %6919 = vmatmul.msk.f32.gmra.mxu1 %vm747_vm1, %v8850_v30  ;;  %v9107_v56 = vpop.permute.xlu0 %3711 }
 0x16a   : > { %13009 = vst [vmem:[#allocation44_spill] sm:$0xff] %v9107_v56  ;;  %v9109_v57 = vpop.permute.xlu1 %3721  ;;  %v9111_v59 = vpop.permute.xlu2 %7563 }
 0x16b   : > { %13010 = vst [vmem:[#allocation45_spill] sm:$0xff] %v9109_v57  ;;  %v705_v55 = vpop.f32.mrf.mxu0 }
 0x16c   : > { %v9181_v6 = vadd.f32 %v8823_v20, %v705_v55 }
 0x16e   : > { %13025 = vst [vmem:[#allocation60_spill] sm:$0xff] %v9181_v6 }
 0x16f   : > { %2161 = vrot.lane.b32.xlu0 %v8997_v9, %s8593_s5 }
 0x170   : > { %2222 = vrot.lane.b32.xlu1 %v9083_v45, %s8593_s5  ;;  %970 = vrot.lane.b32.xlu2 %v9083_v45, %s8595_s7 }
 0x171   : > { %6920 = vmatmul.msk.f32.gmra.mxu1 %vm747_vm1, %v8861_v33  ;;  %v9121_v61 = vpop.permute.xlu0 %3713 }
 0x172   : > { %13011 = vst [vmem:[#allocation46_spill] sm:$0xff] %v9121_v61  ;;  %v9123_v0 = vpop.permute.xlu1 %2033  ;;  %v9125_v1 = vpop.permute.xlu2 %2100 }
 0x173   : > { %13012 = vst [vmem:[#allocation47_spill] sm:$0xff] %v9123_v0 }
 0x174   : > { %13013 = vst [vmem:[#allocation48_spill] sm:$0xff] %v9125_v1 }
 0x177   : > { %2155 = vrot.lane.b32.xlu0 %v9013_v16, %s8594_s29 }
 0x178   : > { %2216 = vrot.lane.b32.xlu1 %v9128_v4, %s8594_s29  ;;  %2214 = vrot.lane.b32.xlu2 %v9083_v45, %s8594_s29 }
 0x179   : > { %v802_v8 = vpop.permute.xlu0 %801 }
 0x17a   : > { %v9136_v11 = vpop.permute.xlu1 %3715  ;;  %v9138_v13 = vpop.permute.xlu2 %2094 }
 0x17b   : > { %13015 = vst [vmem:[#allocation50_spill] sm:$0xff] %v9136_v11 }
 0x17c   : > { %13016 = vst [vmem:[#allocation51_spill] sm:$0xff] %v9138_v13 }
 0x17f   : > { %917 = vrot.lane.b32.xlu0 %v9028_v22, %s8595_s7 }
 0x180   : > { %974 = vrot.lane.b32.xlu1 %v9141_v15, %s8595_s7  ;;  %2226 = vrot.lane.b32.xlu2 %v9141_v15, %s8593_s5 }
 0x181   : > { %v9149_v21 = vpop.permute.xlu0 %2041 }
 0x182   : > { %13018 = vst [vmem:[#allocation53_spill] sm:$0xff] %v9149_v21  ;;  %v804_v24 = vpop.permute.xlu1 %803  ;;  %v861_v28 = vpop.permute.xlu2 %860  ;;  %v409_v21 = vld [vmem:[#allocation8 + $0x80] sm:$0xff] }
 0x183   : > { %6921 = vmatpush.xpose.msk.msra.mxu2 %vm747_vm1, %v804_v24  ;;  %6929 = vmatpush.xpose.msk.msra.mxu3 %vm747_vm1, %v861_v28  ;;  %v708_v24 = vpop.f32.mrf.mxu0 }
 0x184   : > { %v9206_v28 = vadd.f32 %v8823_v20, %v708_v24 }
 0x186   : > { %13028 = vst [vmem:[#allocation63_spill] sm:$0xff] %v9206_v28 }
 0x187   : > { %7593 = vrot.lane.b32.xlu0 %v9155_v31, %s8599_s28  ;;  %6922 = vmatpush.xpose.msk.msra.mxu2 %vm747_vm1, %v802_v8 }
 0x188   : > { %2273 = vrot.lane.b32.xlu1 %v9158_v32, %s8594_s29  ;;  %1025 = vrot.lane.b32.xlu2 %v9158_v32, %s8595_s7 }
 0x189   : > { %v9167_v38 = vpop.permute.xlu0 %3723 }
 0x18a   : > { %13021 = vst [vmem:[#allocation56_spill] sm:$0xff] %v9167_v38  ;;  %v9172_v52 = vpop.permute.xlu1 %2090  ;;  %v9174_v54 = vpop.permute.xlu2 %2151 }
 0x18b   : > { %13023 = vst [vmem:[#allocation58_spill] sm:$0xff] %v9172_v52  ;;  %6923 = vmatpush.xpose.msk.msra.mxu2 %vm747_vm1, %v9037_v27  ;;  %v711_v11 = vpop.f32.mrf.mxu0 }
 0x18c   : > { %13024 = vst [vmem:[#allocation59_spill] sm:$0xff] %v9174_v54  ;;  %v9245_v13 = vadd.f32 %v8823_v20, %v711_v11 }
 0x18e   : > { %13034 = vst [vmem:[#allocation69_spill] sm:$0xff] %v9245_v13 }
 0x18f   : > { %2212 = vrot.lane.b32.xlu0 %v9078_v44, %s8594_s29  ;;  %6924 = vmatpush.xpose.msk.msra.mxu2 %vm747_vm1, %v9010_v14 }
 0x190   : > { %1029 = vrot.lane.b32.xlu1 %v9181_v6, %s8595_s7  ;;  %7608 = vrot.lane.b32.xlu2 %v7607_v60, %s8596_s12 }
 0x191   : > { %v9190_v8 = vpop.permute.xlu0 %7558 }
 0x192   : > { %v859_v27 = vpop.permute.xlu1 %858  ;;  %v9192_v17 = vpop.permute.xlu2 %7583  ;;  %6925 = vmatmul.msk.f32.vlgmr.msra.gmra.mxu2 %vm747_vm1, %v8872_v36 }
 0x193   : > { %13026 = vst [vmem:[#allocation61_spill] sm:$0xff] %v9192_v17  ;;  %6930 = vmatpush.xpose.msk.msra.mxu3 %vm747_vm1, %v859_v27  ;;  %v7612_v27 = vpack.i.bf16 %v9206_v28, %v9181_v6 }
 0x197   : > { %972 = vrot.lane.b32.xlu0 %v9128_v4, %s8595_s7 }
 0x198   : > { %2285 = vrot.lane.b32.xlu1 %v9181_v6, %s8593_s5  ;;  %2283 = vrot.lane.b32.xlu2 %v9170_v39, %s8593_s5 }
 0x199   : > { %v9203_v14 = vpop.permute.xlu0 %2035 }
 0x19a   : > { %13027 = vst [vmem:[#allocation62_spill] sm:$0xff] %v9203_v14  ;;  %v9208_v55 = vpop.permute.xlu1 %2102  ;;  %v9210_v60 = vpop.permute.xlu2 %915  ;;  %6926 = vmatmul.msk.f32.gmra.mxu2 %vm747_vm1, %v8884_v40 }
 0x19b   : > { %13029 = vst [vmem:[#allocation64_spill] sm:$0xff] %v9208_v55 }
 0x19f   : > { %2224 = vrot.lane.b32.xlu0 %v9128_v4, %s8593_s5 }
 0x1a0   : > { %7613 = vrot.lane.b32.xlu1 %v7612_v27, %s8596_s12  ;;  %2277 = vrot.lane.b32.xlu2 %v9181_v6, %s8594_s29  ;;  %v714_v27 = vpop.f32.mrf.mxu0 }
 0x1a1   : > { %v9221_v24 = vpop.permute.xlu0 %3725  ;;  %v9262_v14 = vadd.f32 %v8823_v20, %v714_v27 }
 0x1a2   : > { %13030 = vst [vmem:[#allocation65_spill] sm:$0xff] %v9221_v24  ;;  %v9223_v61 = vpop.permute.xlu1 %7573  ;;  %v9225_v56 = vpop.permute.xlu2 %2163  ;;  %6927 = vmatmul.msk.f32.gmra.mxu2 %vm747_vm1, %v8912_v47 }
 0x1a3   : > { %13031 = vst [vmem:[#allocation66_spill] sm:$0xff] %v9225_v56  ;;  %v7617_v31 = vpack.i.bf16 %v9262_v14, %v9245_v13 }
 0x1a4   : > { %13038 = vst [vmem:[#allocation73_spill] sm:$0xff] %v9262_v14 }
 0x1a7   : > { %7603 = vrot.lane.b32.xlu0 %v7602_v46, %s8596_s12 }
 0x1a8   : > { %2279 = vrot.lane.b32.xlu1 %v9206_v28, %s8594_s29  ;;  %1031 = vrot.lane.b32.xlu2 %v9206_v28, %s8595_s7  ;;  %v717_v17 = vpop.f32.mrf.mxu0 }
 0x1a9   : > { %v9236_v57 = vpop.permute.xlu0 %2098  ;;  %v9259_v11 = vadd.f32 %v8823_v20, %v717_v17 }
 0x1aa   : > { %13032 = vst [vmem:[#allocation67_spill] sm:$0xff] %v9236_v57  ;;  %v9238_v38 = vpop.permute.xlu1 %2096  ;;  %v9240_v24 = vpop.permute.xlu2 %7588  ;;  %6928 = vmatmul.msk.f32.gmra.mxu2 %vm747_vm1, %v8915_v48 }
 0x1ab   : > { %13033 = vst [vmem:[#allocation68_spill] sm:$0xff] %v9238_v38 }
 0x1ac   : > { %13037 = vst [vmem:[#allocation72_spill] sm:$0xff] %v9259_v11 }
 0x1af   : > { %2218 = vrot.lane.b32.xlu0 %v9141_v15, %s8594_s29 }
 0x1b0   : > { %2342 = vrot.lane.b32.xlu1 %v9245_v13, %s8593_s5  ;;  %2334 = vrot.lane.b32.xlu2 %v9245_v13, %s8594_s29  ;;  %v720_v0 = vpop.f32.mrf.mxu0 }
 0x1b1   : > { %v857_v46 = vpop.permute.xlu0 %856 }
 0x1b2   : > { %6931 = vmatpush.xpose.msk.msra.mxu3 %vm747_vm1, %v857_v46  ;;  %v9254_v38 = vpop.permute.xlu1 %2159  ;;  %v9256_v52 = vpop.permute.xlu2 %2157 }
 0x1b3   : > { %13035 = vst [vmem:[#allocation70_spill] sm:$0xff] %v9254_v38 }
 0x1b4   : > { %13036 = vst [vmem:[#allocation71_spill] sm:$0xff] %v9256_v52 }
 0x1b6   : > { %6932 = vmatpush.xpose.msk.msra.mxu3 %vm747_vm1, %v9095_v50  ;;  %v9283_v50 = vadd.f32 %v8823_v20, %v720_v0  ;;  %v9301_v0 = vpack.i.bf16 %v9245_v13, %v9262_v14 }
 0x1b7   : > { %2281 = vrot.lane.b32.xlu0 %v9158_v32, %s8593_s5 }
 0x1b8   : > { %1084 = vrot.lane.b32.xlu1 %v9262_v14, %s8595_s7  ;;  %1086 = vrot.lane.b32.xlu2 %v9259_v11, %s8595_s7  ;;  %13041 = vst [vmem:[#allocation76_spill] sm:$0xff] %v9283_v50  ;;  %v7627_v41 = vpack.i.bf16 %v9283_v50, %v9259_v11 }
 0x1b9   : > { %6933 = vmatmul.msk.f32.vlgmr.msra.gmra.mxu3 %vm747_vm1, %v8926_v51  ;;  %v9274_v17 = vpop.permute.xlu0 %2092  ;;  %13045 = vst [vmem:[#allocation80_spill] sm:$0xff] %v9301_v0 }
 0x1ba   : > { %13039 = vst [vmem:[#allocation74_spill] sm:$0xff] %v9274_v17  ;;  %v9276_v46 = vpop.permute.xlu1 %913  ;;  %v9278_v27 = vpop.permute.xlu2 %3847 }
 0x1bb   : > { %13040 = vst [vmem:[#allocation75_spill] sm:$0xff] %v9278_v27 }
 0x1bf   : > { %1027 = vrot.lane.b32.xlu0 %v9170_v39, %s8595_s7 }
 0x1c0   : > { %2336 = vrot.lane.b32.xlu1 %v9262_v14, %s8594_s29  ;;  %2346 = vrot.lane.b32.xlu2 %v9259_v11, %s8593_s5 }
 0x1c1   : > { %6934 = vmatmul.msk.f32.gmra.mxu3 %vm747_vm1, %v8936_v53  ;;  %v9291_v17 = vpop.permute.xlu0 %7568 }
 0x1c2   : > { %13042 = vst [vmem:[#allocation77_spill] sm:$0xff] %v9291_v17  ;;  %v9293_v37 = vpop.permute.xlu1 %2153  ;;  %v9295_v27 = vpop.permute.xlu2 %2220 }
 0x1c3   : > { %13043 = vst [vmem:[#allocation78_spill] sm:$0xff] %v9293_v37  ;;  %v723_v17 = vpop.f32.mrf.mxu0 }
 0x1c4   : > { %13044 = vst [vmem:[#allocation79_spill] sm:$0xff] %v9295_v27  ;;  %v9333_v27 = vpack.i.bf16 %v9259_v11, %v9283_v50 }
 0x1c6   : > { %13050 = vst [vmem:[#allocation85_spill] sm:$0xff] %v9333_v27 }
 0x1c7   : > { %2275 = vrot.lane.b32.xlu0 %v9170_v39, %s8594_s29 }
 0x1c8   : > { %7623 = vrot.lane.b32.xlu1 %v9301_v0, %s8599_s28  ;;  %7628 = vrot.lane.b32.xlu2 %v7627_v41, %s8596_s12  ;;  %v9325_v0 = vadd.f32 %v8823_v20, %v723_v17 }
 0x1c9   : > { %6935 = vmatmul.msk.f32.gmra.mxu3 %vm747_vm1, %v8961_v62  ;;  %v9310_v52 = vpop.permute.xlu0 %2104 }
 0x1ca   : > { %13046 = vst [vmem:[#allocation81_spill] sm:$0xff] %v9310_v52  ;;  %v9312_v29 = vpop.permute.xlu1 %2165  ;;  %v9314_v37 = vpop.permute.xlu2 %970  ;;  %v7637_v25 = vpack.i.bf16 %v8961_v62, %v9325_v0  ;;  %v396_v52 = vld [vmem:[#allocation8 + $0x18] sm:$0xff] }
 0x1cb   : > { %13047 = vst [vmem:[#allocation82_spill] sm:$0xff] %v9312_v29  ;;  %v726_v58 = vpop.f32.mrf.mxu0 }
 0x1cc   : > { %13048 = vst [vmem:[#allocation83_spill] sm:$0xff] %v9325_v0  ;;  %v9351_v38 = vadd.f32 %v8823_v20, %v726_v58 }
 0x1ce   : > { %13052 = vst [vmem:[#allocation87_spill] sm:$0xff] %v9351_v38  ;;  %v7642_v56 = vpack.i.bf16 %v9351_v38, %v9325_v0  ;;  %v7647_v1 = vpack.i.bf16 %v8973_v2, %v9351_v38 }
 0x1cf   : > { %2287 = vrot.lane.b32.xlu0 %v9206_v28, %s8593_s5 }
 0x1d0   : > { %2348 = vrot.lane.b32.xlu1 %v9283_v50, %s8593_s5  ;;  %2340 = vrot.lane.b32.xlu2 %v9283_v50, %s8594_s29 }
 0x1d1   : > { %6936 = vmatmul.msk.f32.gmra.mxu3 %vm747_vm1, %v8973_v2  ;;  %v912_v41 = vpop.permute.xlu0 %911 }
 0x1d2   : > { %v9327_v54 = vpop.permute.xlu1 %968  ;;  %v9329_v10 = vpop.permute.xlu2 %2214 }
 0x1d3   : > { %13049 = vst [vmem:[#allocation84_spill] sm:$0xff] %v9329_v10  ;;  %v729_v58 = vpop.f32.mrf.mxu0 }
 0x1d7   : > { %1082 = vrot.lane.b32.xlu0 %v9245_v13, %s8595_s7 }
 0x1d8   : > { %7633 = vrot.lane.b32.xlu1 %v9333_v27, %s8599_s28  ;;  %7638 = vrot.lane.b32.xlu2 %v7637_v25, %s8599_s28 }
 0x1d9   : > { %v9342_v17 = vpop.permute.xlu0 %7578 }
 0x1da   : > { %v9344_v12 = vpop.permute.xlu1 %7598  ;;  %v9346_v10 = vpop.permute.xlu2 %2226 }
 0x1db   : > { %13051 = vst [vmem:[#allocation86_spill] sm:$0xff] %v9346_v10  ;;  %v732_v57 = vpop.f32.mrf.mxu0 }
 0x1df   : > { %7618 = vrot.lane.b32.xlu0 %v7617_v31, %s8596_s12 }
 0x1e0   : > { %1139 = vrot.lane.b32.xlu1 %v9325_v0, %s8595_s7  ;;  %1141 = vrot.lane.b32.xlu2 %v9351_v38, %s8595_s7 }
 0x1e1   : > { %v9358_v25 = vpop.permute.xlu0 %2161 }
 0x1e2   : > { %13053 = vst [vmem:[#allocation88_spill] sm:$0xff] %v9358_v25  ;;  %v9360_v27 = vpop.permute.xlu1 %2222  ;;  %v9362_v10 = vpop.permute.xlu2 %1025 }
 0x1e3   : > { %13054 = vst [vmem:[#allocation89_spill] sm:$0xff] %v9360_v27  ;;  %v9378_v27 = vadd.f32 %v8823_v20, %v729_v58  ;;  %v9391_v58 = vadd.f32 %v8823_v20, %v732_v57 }
 0x1e5   : > { %13057 = vst [vmem:[#allocation92_spill] sm:$0xff] %v9378_v27 }
 0x1e6   : > { %13059 = vst [vmem:[#allocation94_spill] sm:$0xff] %v9391_v58 }
 0x1e7   : > { %2344 = vrot.lane.b32.xlu0 %v9262_v14, %s8593_s5 }
 0x1e8   : > { %7643 = vrot.lane.b32.xlu1 %v7642_v56, %s8596_s12  ;;  %2397 = vrot.lane.b32.xlu2 %v9351_v38, %s8594_s29 }
 0x1e9   : > { %v9371_v31 = vpop.permute.xlu0 %2155 }
 0x1ea   : > { %13055 = vst [vmem:[#allocation90_spill] sm:$0xff] %v9371_v31  ;;  %v9373_v29 = vpop.permute.xlu1 %2216  ;;  %v9375_v25 = vpop.permute.xlu2 %7608 }
 0x1eb   : > { %13056 = vst [vmem:[#allocation91_spill] sm:$0xff] %v9373_v29 }
 0x1ef   : > { %2338 = vrot.lane.b32.xlu0 %v9259_v11, %s8594_s29 }
 0x1f0   : > { %2405 = vrot.lane.b32.xlu1 %v9351_v38, %s8593_s5  ;;  %2407 = vrot.lane.b32.xlu2 %v9378_v27, %s8593_s5 }
 0x1f1   : > { %v918_v56 = vpop.permute.xlu0 %917 }
 0x1f2   : > { %6937 = vmatpush.xpose.msk.msrb.mxu1 %vm747_vm1, %v918_v56  ;;  %v975_v31 = vpop.permute.xlu1 %974  ;;  %v9387_v29 = vpop.permute.xlu2 %2283 }
 0x1f3   : > { %13058 = vst [vmem:[#allocation93_spill] sm:$0xff] %v9387_v29  ;;  %6945 = vmatpush.xpose.msk.msrb.mxu2 %vm747_vm1, %v975_v31 }
 0x1f6   : > { %6938 = vmatpush.xpose.msk.msrb.mxu1 %vm747_vm1, %v9210_v60 }
 0x1f7   : > { %1088 = vrot.lane.b32.xlu0 %v9283_v50, %s8595_s7 }
 0x1f8   : > { %7648 = vrot.lane.b32.xlu1 %v7647_v1, %s8599_s28  ;;  %2401 = vrot.lane.b32.xlu2 %v9391_v58, %s8594_s29 }
 0x1f9   : > { %v9402_v56 = vpop.permute.xlu0 %7593 }
 0x1fa   : > { %13060 = vst [vmem:[#allocation95_spill] sm:$0xff] %v9402_v56  ;;  %6939 = vmatpush.xpose.msk.msrb.mxu1 %vm747_vm1, %v9276_v46  ;;  %v9406_v20 = vpop.permute.xlu1 %2273  ;;  %v9408_v57 = vpop.permute.xlu2 %2277 }
 0x1fb   : > { %13061 = vst [vmem:[#allocation96_spill] sm:$0xff] %v9406_v20 }
 0x1fc   : > { %13062 = vst [vmem:[#allocation97_spill] sm:$0xff] %v9408_v57 }
 0x1fe   : > { %6940 = vmatpush.xpose.msk.msrb.mxu1 %vm747_vm1, %v912_v41 }
 0x1ff   : > { %2395 = vrot.lane.b32.xlu0 %v9325_v0, %s8594_s29 }
 0x200   : > { %1145 = vrot.lane.b32.xlu1 %v9391_v58, %s8595_s7 }
 0x201   : > { %6941 = vmatmul.msk.f32.vlgmr.msrb.gmra.mxu1 %vm747_vm1, %v8987_v5  ;;  %v9417_v1 = vpop.permute.xlu0 %2212 }
 0x202   : > { %13063 = vst [vmem:[#allocation98_spill] sm:$0xff] %v9417_v1  ;;  %v1030_v60 = vpop.permute.xlu1 %1029  ;;  %v1032_v31 = vpop.permute.xlu2 %1031  ;;  %v7652_v1 = vpack.i.bf16 %v9391_v58, %v9378_v27 }
 0x203   : > { %6953 = vmatpush.xpose.msk.msrb.mxu3 %vm747_vm1, %v1032_v31 }
 0x207   : > { %2403 = vrot.lane.b32.xlu0 %v9325_v0, %s8593_s5  ;;  %6954 = vmatpush.xpose.msk.msrb.mxu3 %vm747_vm1, %v1030_v60 }
 0x208   : > { %2409 = vrot.lane.b32.xlu1 %v9391_v58, %s8593_s5  ;;  %s6743_s5 = scalar_lea.hbm %s12849_s6, %s7431_s19 }
 0x209   : > { %6942 = vmatmul.msk.f32.gmra.mxu1 %vm747_vm1, %v8997_v9  ;;  %v973_v46 = vpop.permute.xlu0 %972 }
 0x20a   : > { %6946 = vmatpush.xpose.msk.msrb.mxu2 %vm747_vm1, %v973_v46  ;;  %v9428_v41 = vpop.permute.xlu1 %2285  ;;  %v781_v46 = vpop.f32.mrf.mxu1 }
 0x20b   : > { %13064 = vst [vmem:[#allocation99_spill] sm:$0xff] %v9428_v41 }
 0x20e   : > { %6947 = vmatpush.xpose.msk.msrb.mxu2 %vm747_vm1, %v9314_v37  ;;  %v393_v37 = vld [vmem:[#allocation8] sm:$0xff] }
 0x20f   : > { %1143 = vrot.lane.b32.xlu0 %v9378_v27, %s8595_s7  ;;  %s6746_s7 = sshll.u32 %s6743_s5, 4  ;;  %s6747_s7 = int_to_ptr.hbm [resolvable:$true] %s6746_s7 }
 0x210   : > { %3664 = vrot.lane.b32.xlu1 %v8861_v33, %s8597_s11 }
 0x211   : > { %6943 = vmatmul.msk.f32.gmra.mxu1 %vm747_vm1, %v9013_v16  ;;  %v9438_v60 = vpop.permute.xlu0 %2224 }
 0x212   : > { %13065 = vst [vmem:[#allocation100_spill] sm:$0xff] %v9438_v60  ;;  %6948 = vmatpush.xpose.msk.msrb.mxu2 %vm747_vm1, %v9327_v54  ;;  %v9442_v31 = vpop.permute.xlu1 %7613  ;;  %v9456_v54 = vadd.f32 %v781_v46, %v393_v37  ;;  %v9475_v37 = vpack.i.bf16 %v9378_v27, %v9391_v58  ;;  %v7545_v60 = vunpack.i.l.bf16 %v8969_v63 }
 0x214   : > { %v1192_v56 = vsel %vm525_vm0, %v9456_v54, -inf  ;;  %13069 = vst [vmem:[#allocation104_spill] sm:$0xff] %v9475_v37 }
 0x215   : > { %6949 = vmatmul.msk.f32.vlgmr.msrb.gmra.mxu2 %vm747_vm1, %v9078_v44 }
 0x217   : > { %2399 = vrot.lane.b32.xlu0 %v9378_v27, %s8594_s29  ;;  %s6744_s29 = sshll.u32 %s12620_s18, 4  ;;  %s6745_s29 = int_to_ptr.vmem [resolvable:$true] %s6744_s29 }
 0x218   : > { %3843 = vrot.lane.b32.xlu1 %v8997_v9, %s8597_s11 }
 0x219   : > { %6944 = vmatmul.msk.f32.gmra.mxu1 %vm747_vm1, %v9028_v22  ;;  %v9452_v57 = vpop.permute.xlu0 %7603 }
 0x21a   : > { %v9454_v20 = vpop.permute.xlu1 %2279 }
 0x21b   : > { %13066 = vst [vmem:[#allocation101_spill] sm:$0xff] %v9454_v20 }
 0x21d   : > { %6950 = vmatmul.msk.f32.gmra.mxu2 %vm747_vm1, %v9083_v45 }
 0x21f   : > { %7653 = vrot.lane.b32.xlu0 %v7652_v1, %s8596_s12  ;;  %s8510_s12 = sshra.s32 %s6747_s7, 4  ;;  %s8511_s12 = int_to_ptr.hbm [resolvable:$true] %s8510_s12 }
 0x220   : > { %3841 = vrot.lane.b32.xlu1 %v8987_v5, %s8597_s11  ;;  %p8517_p10 = scmp.lt.s32.totalorder %s8511_s12, %s12849_s6 }
 0x221   : > { %v9467_v29 = vpop.permute.xlu0 %2218  ;;  %1193 = vmax.xlane.f32.xlu2 %v1192_v56 }
 0x222   : > { %13067 = vst [vmem:[#allocation102_spill] sm:$0xff] %v9467_v29  ;;  %v9469_v20 = vpop.permute.xlu1 %2342 }
 0x223   : > { %13068 = vst [vmem:[#allocation103_spill] sm:$0xff] %v9469_v20 }
 0x225   : > { %6951 = vmatmul.msk.f32.gmra.mxu2 %vm747_vm1, %v9128_v4 }
 0x227   : > { %7658 = vrot.lane.b32.xlu0 %v9475_v37, %s8599_s28  ;;  %v7551_v37 = vunpack.i.h.bf16 %v9052_v34 }
 0x228   : > { %3658 = vrot.lane.b32.xlu1 %v8827_v23, %s8597_s11 }
 0x229   : > { %v9481_v1 = vpop.permute.xlu0 %2281 }
 0x22a   : > { %13070 = vst [vmem:[#allocation105_spill] sm:$0xff] %v9481_v1  ;;  %v9483_v46 = vpop.permute.xlu1 %1084  ;;  %v7550_v1 = vunpack.i.l.bf16 %v9052_v34  ;;  %v7590_v34 = vunpack.i.l.bf16 %v9240_v24 }
 0x22d   : > { %6952 = vmatmul.msk.f32.gmra.mxu2 %vm747_vm1, %v9141_v15 }
 0x22f   : > { %3845 = vrot.lane.b32.xlu0 %v9013_v16, %s8597_s11 }
 0x231   : > { %v1028_v56 = vpop.permute.xlu0 %1027 }
 0x232   : > { %6955 = vmatpush.xpose.msk.msrb.mxu3 %vm747_vm1, %v1028_v56  ;;  %v9490_v29 = vpop.permute.xlu1 %2336  ;;  %v7546_v56 = vunpack.i.h.bf16 %v8969_v63 }
 0x233   : > { %13071 = vst [vmem:[#allocation106_spill] sm:$0xff] %v9490_v29 }
 0x236   : > { %6956 = vmatpush.xpose.msk.msrb.mxu3 %vm747_vm1, %v9362_v10  ;;  %v7591_v10 = vunpack.i.h.bf16 %v9240_v24 }
 0x239   : > { %6957 = vmatmul.msk.f32.vlgmr.msrb.gmra.mxu3 %vm747_vm1, %v9158_v32  ;;  %v9498_v41 = vpop.permute.xlu0 %2275  ;;  %3660 = vrot.lane.b32.xlu2 %v8838_v26, %s8597_s11 }
 0x23a   : > { %1580 = vmatpush.msra.mxu3 %v7551_v37  ;;  %13072 = vst [vmem:[#allocation107_spill] sm:$0xff] %v9498_v41  ;;  %v9503_v29 = vpop.permute.xlu1 %7623  ;;  %v784_v37 = vpop.f32.mrf.mxu1  ;;  %v7581_v41 = vunpack.i.h.bf16 %v9342_v17 }
 0x23b   : > { %13073 = vst [vmem:[#allocation108_spill] sm:$0xff] %v9503_v29 }
 0x23c   : > { %1581 = vmatpush.msra.mxu3 %v7550_v1  ;;  %v7580_v1 = vunpack.i.l.bf16 %v9342_v17 }
 0x23e   : > { %1582 = vmatpush.msra.mxu3 %v7546_v56 }
 0x240   : > { %1583 = vmatpush.msra.mxu3 %v7545_v60  ;;  %v395_v60 = vld [vmem:[#allocation8 + $0x10] sm:$0xff] }
 0x241   : > { %v9509_v20 = vpop.permute.xlu0 %2287  ;;  %3650 = vrot.lane.b32.xlu2 %v8827_v23, %s8598_s27  ;;  %6958 = vmatmul.msk.f32.gmra.mxu3 %vm747_vm1, %v9170_v39 }
 0x242   : > { %1739 = vmatpush.msrb.mxu3 %v7591_v10  ;;  %13074 = vst [vmem:[#allocation109_spill] sm:$0xff] %v9509_v20  ;;  %v9515_v63 = vpop.permute.xlu1 %2348  ;;  %v787_v56 = vpop.f32.mrf.mxu1  ;;  %v394_v20 = vld [vmem:[#allocation8 + $0x8] sm:$0xff] }
 0x243   : > { %13075 = vst [vmem:[#allocation110_spill] sm:$0xff] %v9515_v63  ;;  %v9524_v29 = vadd.f32 %v787_v56, %v395_v60 }
 0x244   : > { %1740 = vmatpush.msrb.mxu3 %v7590_v34  ;;  %v9522_v34 = vpop.permute.xlu2 %2334 }
 0x245   : > { %13077 = vst [vmem:[#allocation112_spill] sm:$0xff] %v9522_v34  ;;  %v1198_v17 = vsel %vm525_vm0, %v9524_v29, -inf }
 0x246   : > { %1741 = vmatpush.msrb.mxu3 %v7581_v41 }
 0x248   : > { %1742 = vmatpush.msrb.mxu3 %v7580_v1  ;;  %v9534_v1 = vadd.f32 %v784_v37, %v394_v20 }
 0x249   : > { %v1083_v24 = vpop.permute.xlu0 %1082  ;;  %6959 = vmatmul.msk.f32.gmra.mxu3 %vm747_vm1, %v9181_v6 }
 0x24a   : > { %v9520_v10 = vpop.permute.xlu1 %7633  ;;  %v1195_v34 = vsel %vm525_vm0, %v9534_v1, -inf  ;;  %v790_v19 = vpop.f32.mrf.mxu1 }
 0x24b   : > { %13076 = vst [vmem:[#allocation111_spill] sm:$0xff] %v9520_v10 }
 0x24c   : > { %v1087_v63 = vpop.permute.xlu2 %1086 }
 0x251   : > { %v9526_v23 = vpop.permute.xlu0 %7618  ;;  %6960 = vmatmul.msk.f32.gmra.mxu3 %vm747_vm1, %v9206_v28 }
 0x252   : > { %v9532_v41 = vpop.permute.xlu1 %1139  ;;  %1199 = vmax.xlane.f32.xlu1 %v1198_v17  ;;  %v9548_v17 = vadd.f32 %v790_v19, %v396_v52 }
 0x254   : > { %v9542_v10 = vpop.permute.xlu2 %2346 }
 0x255   : > { %13079 = vst [vmem:[#allocation114_spill] sm:$0xff] %v9542_v10  ;;  %v838_v10 = vpop.f32.mrf.mxu2 }
 0x256   : > { %v9563_v19 = vadd.f32 %v838_v10, %v409_v21  ;;  %v7561_v21 = vunpack.i.h.bf16 %v9190_v8  ;;  %v7555_v10 = vunpack.i.l.bf16 %v9073_v42 }
 0x259   : > { %1196 = vmax.xlane.f32.xlu0 %v1195_v34  ;;  %v9538_v60 = vpop.permute.xlu0 %2344  ;;  %v1201_v34 = vsel %vm525_vm0, %v9548_v17, -inf }
 0x25a   : > { %13078 = vst [vmem:[#allocation113_spill] sm:$0xff] %v9538_v60  ;;  %v9540_v56 = vpop.permute.xlu1 %7643  ;;  %v9556_v60 = vpack.i.bf16 %v8912_v47, %v8915_v48  ;;  %v1204_v47 = vsel %vm525_vm0, %v9563_v19, -inf }
 0x25c   : > { %v9550_v20 = vpop.permute.xlu2 %7628  ;;  %13082 = vst [vmem:[#allocation117_spill] sm:$0xff] %v9556_v60 }
 0x261   : > { %v9544_v55 = vpop.permute.xlu0 %2338 }
 0x262   : > { %13080 = vst [vmem:[#allocation115_spill] sm:$0xff] %v9544_v55  ;;  %v9546_v49 = vpop.permute.xlu1 %2405 }
 0x263   : > { %13081 = vst [vmem:[#allocation116_spill] sm:$0xff] %v9546_v49 }
 0x269   : > { %v1089_v37 = vpop.permute.xlu0 %1088 }
 0x26a   : > { %6961 = vmatpush.xpose.msk.msra.mxu1 %vm747_vm1, %v1089_v37  ;;  %v9559_v55 = vpop.permute.xlu1 %7648  ;;  %1202 = vmax.xlane.f32.xlu2 %v1201_v34  ;;  %v9574_v34 = vpop.permute.xlu2 %2340 }
 0x26b   : > { %13083 = vst [vmem:[#allocation118_spill] sm:$0xff] %v9559_v55  ;;  %7663 = vrot.lane.b32.xlu1 %v9556_v60, %s8599_s28 }
 0x26c   : > { %13085 = vst [vmem:[#allocation120_spill] sm:$0xff] %v9574_v34 }
 0x26d   : > { %3717 = vrot.lane.b32.xlu0 %v8915_v48, %s8598_s27 }
 0x26e   : > { %6962 = vmatpush.xpose.msk.msra.mxu1 %vm747_vm1, %v1087_v63  ;;  %v7560_v63 = vunpack.i.l.bf16 %v9190_v8  ;;  %v7605_v8 = vunpack.i.l.bf16 %v9452_v57 }
 0x271   : > { %v9568_v52 = vpop.permute.xlu0 %2395 }
 0x272   : > { %13084 = vst [vmem:[#allocation119_spill] sm:$0xff] %v9568_v52  ;;  %6963 = vmatpush.xpose.msk.msra.mxu1 %vm747_vm1, %v9483_v46  ;;  %v1146_v37 = vpop.permute.xlu1 %1145  ;;  %1205 = vmax.xlane.f32.xlu2 %v1204_v47  ;;  %v7556_v46 = vunpack.i.h.bf16 %v9073_v42  ;;  %v7600_v42 = vunpack.i.l.bf16 %v9344_v12 }
 0x273   : > { %3837 = vrot.lane.b32.xlu1 %v9013_v16, %s8598_s27  ;;  %6969 = vmatpush.xpose.msk.msra.mxu2 %vm747_vm1, %v1146_v37  ;;  %v7606_v37 = vunpack.i.h.bf16 %v9452_v57  ;;  %v9591_v16 = vpop.permute.xlu2 %7638  ;;  %v841_v57 = vpop.f32.mrf.mxu2 }
 0x274   : > { %13087 = vst [vmem:[#allocation122_spill] sm:$0xff] %v9591_v16 }
 0x275   : > { %3662 = vrot.lane.b32.xlu0 %v8850_v30, %s8597_s11 }
 0x276   : > { %6964 = vmatpush.xpose.msk.msra.mxu1 %vm747_vm1, %v1083_v24  ;;  %v7601_v24 = vunpack.i.h.bf16 %v9344_v12  ;;  %v7575_v12 = vunpack.i.l.bf16 %v9223_v61 }
 0x279   : > { %6965 = vmatmul.msk.f32.vlgmr.msra.gmra.mxu1 %vm747_vm1, %v9245_v13  ;;  %v9586_v47 = vpop.permute.xlu0 %2403 }
 0x27a   : > { %1633 = vmatpush.msrb.mxu1 %v7561_v21  ;;  %13086 = vst [vmem:[#allocation121_spill] sm:$0xff] %v9586_v47  ;;  %v443_v47 = vld [vmem:[#allocation8 + $0x190] sm:$0xff] }
 0x27c   : > { %1634 = vmatpush.msrb.mxu1 %v7560_v63  ;;  %v1142_v63 = vpop.permute.xlu2 %1141 }
 0x27d   : > { %3833 = vrot.lane.b32.xlu0 %v8987_v5, %s8598_s27 }
 0x27e   : > { %1635 = vmatpush.msrb.mxu1 %v7556_v46  ;;  %v7576_v46 = vunpack.i.h.bf16 %v9223_v61  ;;  %v7611_v61 = vunpack.i.h.bf16 %v9375_v25 }
 0x280   : > { %1636 = vmatpush.msrb.mxu1 %v7555_v10  ;;  %v7566_v10 = vunpack.i.h.bf16 %v9111_v59 }
 0x281   : > { %v1144_v21 = vpop.permute.xlu0 %1143  ;;  %6966 = vmatmul.msk.f32.gmra.mxu1 %vm747_vm1, %v9262_v14 }
 0x282   : > { %1792 = vmatpush.msra.mxu1 %v7606_v37  ;;  %6970 = vmatpush.xpose.msk.msra.mxu2 %vm747_vm1, %v1144_v21  ;;  %v7565_v37 = vunpack.i.l.bf16 %v9111_v59  ;;  %v844_v21 = vpop.f32.mrf.mxu2  ;;  %v7610_v59 = vunpack.i.l.bf16 %v9375_v25 }
 0x284   : > { %1793 = vmatpush.msra.mxu1 %v7605_v8  ;;  %v7616_v8 = vunpack.i.h.bf16 %v9442_v31 }
 0x286   : > { %1794 = vmatpush.msra.mxu1 %v7601_v24  ;;  %6971 = vmatpush.xpose.msk.msra.mxu2 %vm747_vm1, %v1142_v63  ;;  %v411_v24 = vld [vmem:[#allocation8 + $0x90] sm:$0xff]  ;;  %v410_v63 = vld [vmem:[#allocation8 + $0x88] sm:$0xff] }
 0x288   : > { %1795 = vmatpush.msra.mxu1 %v7600_v42  ;;  %v9624_v42 = vadd.f32 %v844_v21, %v411_v24 }
 0x289   : > { %6967 = vmatmul.msk.f32.gmra.mxu1 %vm747_vm1, %v9259_v11 }
 0x28a   : > { %6972 = vmatpush.xpose.msk.msra.mxu2 %vm747_vm1, %v9532_v41  ;;  %3652 = vrot.lane.b32.xlu2 %v8838_v26, %s8598_s27  ;;  %v7615_v41 = vunpack.i.l.bf16 %v9442_v31  ;;  %v1210_v31 = vsel %vm525_vm0, %v9624_v42, -inf }
 0x28d   : > { %6973 = vmatmul.msk.f32.vlgmr.msra.gmra.mxu2 %vm747_vm1, %v9325_v0 }
 0x28e   : > { %1686 = vmatpush.msrb.mxu2 %v7576_v46  ;;  %v9630_v46 = vadd.f32 %v841_v57, %v410_v63 }
 0x290   : > { %1687 = vmatpush.msrb.mxu2 %v7575_v12  ;;  %v1207_v25 = vsel %vm525_vm0, %v9630_v46, -inf  ;;  %v412_v12 = vld [vmem:[#allocation8 + $0x98] sm:$0xff] }
 0x291   : > { %6968 = vmatmul.msk.f32.gmra.mxu1 %vm747_vm1, %v9283_v50 }
 0x292   : > { %1688 = vmatpush.msrb.mxu2 %v7566_v10  ;;  %3969 = vrot.lane.b32.xlu2 %v9206_v28, %s8597_s11  ;;  %v847_v10 = vpop.f32.mrf.mxu2 }
 0x294   : > { %1689 = vmatpush.msrb.mxu2 %v7565_v37  ;;  %v9638_v37 = vadd.f32 %v847_v10, %v412_v12  ;;  %v427_v12 = vld [vmem:[#allocation8 + $0x110] sm:$0xff] }
 0x295   : > { %6974 = vmatmul.msk.f32.gmra.mxu2 %vm747_vm1, %v9351_v38 }
 0x296   : > { %1845 = vmatpush.msra.mxu2 %v7616_v8  ;;  %v1213_v57 = vsel %vm525_vm0, %v9638_v37, -inf  ;;  %v9648_v8 = vpack.i.bf16 %v8872_v36, %v8884_v40  ;;  %v9688_v40 = vpop.permute.xlu0 %2399  ;;  %v442_v36 = vld [vmem:[#allocation8 + $0x188] sm:$0xff] }
 0x297   : > { %13089 = vst [vmem:[#allocation124_spill] sm:$0xff] %v9688_v40 }
 0x298   : > { %1846 = vmatpush.msra.mxu2 %v7615_v41  ;;  %13088 = vst [vmem:[#allocation123_spill] sm:$0xff] %v9648_v8  ;;  %v895_v41 = vpop.f32.mrf.mxu3 }
 0x29a   : > { %1847 = vmatpush.msra.mxu2 %v7611_v61  ;;  %v426_v61 = vld [vmem:[#allocation8 + $0x108] sm:$0xff] }
 0x29c   : > { %1848 = vmatpush.msra.mxu2 %v7610_v59  ;;  %v425_v59 = vld [vmem:[#allocation8 + $0x100] sm:$0xff] }
 0x29d   : > { %1211 = vmax.xlane.f32.xlu1 %v1210_v31  ;;  %6975 = vmatmul.msk.f32.gmra.mxu2 %vm747_vm1, %v9378_v27  ;;  %v9660_v63 = vadd.f32 %v895_v41, %v425_v59  ;;  %v428_v41 = vld [vmem:[#allocation8 + $0x118] sm:$0xff]  ;;  %v441_v59 = vld [vmem:[#allocation8 + $0x180] sm:$0xff] }
 0x2a0   : > { %v898_v24 = vpop.f32.mrf.mxu3 }
 0x2a1   : > { %v9656_v21 = vadd.f32 %v898_v24, %v426_v61 }
 0x2a3   : > { %v1219_v31 = vsel %vm525_vm0, %v9656_v21, -inf }
 0x2a5   : > { %6976 = vmatmul.msk.f32.gmra.mxu2 %vm747_vm1, %v9391_v58 }
 0x2a7   : > { %1208 = vmax.xlane.f32.xlu0 %v1207_v25  ;;  %v1216_v25 = vsel %vm525_vm0, %v9660_v63, -inf }
 0x2a8   : > { %v901_v10 = vpop.f32.mrf.mxu3 }
 0x2b0   : > { %v904_v24 = vpop.f32.mrf.mxu3 }
 0x2b6   : > { %3654 = vrot.lane.b32.xlu1 %v8850_v30, %s8598_s27 }
 0x2bb   : > { %3835 = vrot.lane.b32.xlu0 %v8997_v9, %s8598_s27  ;;  %1214 = vmax.xlane.f32.xlu2 %v1213_v57  ;;  %v9664_v57 = vadd.f32 %v901_v10, %v427_v12 }
 0x2bd   : > { %v1222_v61 = vsel %vm525_vm0, %v9664_v57, -inf }
 0x2be   : > { %3965 = vrot.lane.b32.xlu1 %v9170_v39, %s8597_s11 }
 0x2c3   : > { %7668 = vrot.lane.b32.xlu0 %v9648_v8, %s8599_s28 }
 0x2d3   : > { %3786 = vrot.lane.b32.xlu2 %v8973_v2, %s8597_s11 }
 0x2db   : > { %3784 = vrot.lane.b32.xlu2 %v8961_v62, %s8597_s11 }
 0x2e8   : > { %1220 = vmax.xlane.f32.xlu1 %v1219_v31  ;;  %v952_v31 = vpop.f32.mrf.mxu1 }
 0x2e9   : > { %v9682_v12 = vadd.f32 %v952_v31, %v441_v59 }
 0x2ed   : > { %1217 = vmax.xlane.f32.xlu0 %v1216_v25  ;;  %v9680_v25 = vadd.f32 %v904_v24, %v428_v41  ;;  %v9696_v41 = vpack.i.bf16 %v9181_v6, %v9206_v28  ;;  %v9700_v24 = vpop.permute.xlu0 %7653 }
 0x2ef   : > { %v1225_v10 = vsel %vm525_vm0, %v9680_v25, -inf  ;;  %13090 = vst [vmem:[#allocation125_spill] sm:$0xff] %v9696_v41 }
 0x2f5   : > { %v9706_v31 = vpop.permute.xlu0 %7658 }
 0x2f6   : > { %13091 = vst [vmem:[#allocation126_spill] sm:$0xff] %v9706_v31 }
 0x301   : > { %3967 = vrot.lane.b32.xlu0 %v9181_v6, %s8597_s11  ;;  %3656 = vrot.lane.b32.xlu1 %v8861_v33, %s8598_s27 }
 0x304   : > { %1223 = vmax.xlane.f32.xlu2 %v1222_v61  ;;  %v1228_v61 = vsel %vm525_vm0, %v9682_v12, -inf }
 0x309   : > { %3839 = vrot.lane.b32.xlu0 %v9028_v22, %s8598_s27  ;;  %3780 = vrot.lane.b32.xlu1 %v8926_v51, %s8597_s11  ;;  %v955_v22 = vpop.f32.mrf.mxu1 }
 0x30a   : > { %v9692_v48 = vadd.f32 %v955_v22, %v442_v36  ;;  %v9708_v36 = vpop.permute.xlu0 %3845 }
 0x30b   : > { %13092 = vst [vmem:[#allocation127_spill] sm:$0xff] %v9708_v36 }
 0x30c   : > { %v1231_v59 = vsel %vm525_vm0, %v9692_v48, -inf }
 0x311   : > { %v958_v22 = vpop.f32.mrf.mxu1 }
 0x319   : > { %v961_v40 = vpop.f32.mrf.mxu1 }
 0x31c   : > { %3782 = vrot.lane.b32.xlu2 %v8936_v53, %s8597_s11 }
 0x324   : > { %3772 = vrot.lane.b32.xlu2 %v8926_v51, %s8598_s27  ;;  %v444_v51 = vld [vmem:[#allocation8 + $0x198] sm:$0xff] }
 0x325   : > { %v9713_v34 = vadd.f32 %v961_v40, %v444_v51  ;;  %v1009_v40 = vpop.f32.mrf.mxu2  ;;  %v9725_v51 = vpop.permute.xlu2 %2397 }
 0x326   : > { %13093 = vst [vmem:[#allocation128_spill] sm:$0xff] %v9725_v51 }
 0x327   : > { %v1237_v31 = vsel %vm525_vm0, %v9713_v34, -inf }
 0x333   : > { %1226 = vmax.xlane.f32.xlu0 %v1225_v10  ;;  %1229 = vmax.xlane.f32.xlu1 %v1228_v61  ;;  %v1197_v10 = vpop.xlane.xlu0 %1196 }
 0x334   : > { %v1289_v61 = vsub.f32 %v9534_v1, %v1197_v10  ;;  %v457_v10 = vld [vmem:[#allocation8 + $0x200] sm:$0xff] }
 0x336   : > { %v1322_v52 = vmul.f32 1.442695, %v1289_v61 }
 0x338   : > { %7864 = vpow2.f32 %v1322_v52  ;;  %v9729_v52 = vpop.permute.xlu1 %2409 }
 0x339   : > { %13094 = vst [vmem:[#allocation129_spill] sm:$0xff] %v9729_v52  ;;  %v459_v52 = vld [vmem:[#allocation8 + $0x210] sm:$0xff] }
 0x347   : > { %3963 = vrot.lane.b32.xlu0 %v9158_v32, %s8597_s11 }
 0x34c   : > { %7673 = vrot.lane.b32.xlu1 %v9696_v41, %s8599_s28 }
 0x34d   : > { %1232 = vmax.xlane.f32.xlu2 %v1231_v59  ;;  %v9715_v59 = vadd.f32 %v958_v22, %v443_v47  ;;  %v9727_v47 = vadd.f32 %v1009_v40, %v457_v10  ;;  %v9737_v22 = vpop.permute.xlu1 %3664 }
 0x34e   : > { %13096 = vst [vmem:[#allocation131_spill] sm:$0xff] %v9737_v22  ;;  %v1012_v22 = vpop.f32.mrf.mxu2 }
 0x34f   : > { %3955 = vrot.lane.b32.xlu0 %v9158_v32, %s8598_s27  ;;  %v1234_v36 = vsel %vm525_vm0, %v9715_v59, -inf }
 0x365   : > { %3774 = vrot.lane.b32.xlu2 %v8936_v53, %s8598_s27  ;;  %v9721_v53 = vpop.eup %7864 }
 0x366   : > { %v1387_v1 = vsel %vm525_vm0, %v9721_v53, 0.0 }
 0x376   : > { %1238 = vmax.xlane.f32.xlu1 %v1237_v31  ;;  %v1240_v31 = vsel %vm525_vm0, %v9727_v47, -inf }
 0x379   : > { %1235 = vmax.xlane.f32.xlu0 %v1234_v36  ;;  %v9735_v36 = vpop.permute.xlu2 %2407 }
 0x37a   : > { %13095 = vst [vmem:[#allocation130_spill] sm:$0xff] %v9735_v36  ;;  %v9752_v36 = vpop.permute.xlu0 %3717 }
 0x37b   : > { %13101 = vst [vmem:[#allocation136_spill] sm:$0xff] %v9752_v36 }
 0x37e   : > { %1388 = vadd.xlane.f32.xlu1 %v1387_v1  ;;  %v9743_v1 = vpop.permute.xlu1 %3843 }
 0x37f   : > { %13098 = vst [vmem:[#allocation133_spill] sm:$0xff] %v9743_v1 }
 0x381   : > { %v9741_v61 = vpop.permute.xlu2 %2401 }
 0x382   : > { %13097 = vst [vmem:[#allocation132_spill] sm:$0xff] %v9741_v61 }
 0x386   : > { %v9748_v51 = vpop.permute.xlu1 %3841 }
 0x387   : > { %13099 = vst [vmem:[#allocation134_spill] sm:$0xff] %v9748_v51  ;;  %v1015_v51 = vpop.f32.mrf.mxu2 }
 0x388   : > { %v9766_v41 = vadd.f32 %v1015_v51, %v459_v52 }
 0x389   : > { %v1194_v10 = vpop.xlane.xlu2 %1193 }
 0x38a   : > { %v1288_v40 = vsub.f32 %v9456_v54, %v1194_v10  ;;  %v458_v54 = vld [vmem:[#allocation8 + $0x208] sm:$0xff] }
 0x38d   : > { %3957 = vrot.lane.b32.xlu0 %v9170_v39, %s8598_s27 }
 0x38e   : > { %1241 = vmax.xlane.f32.xlu2 %v1240_v31  ;;  %v1320_v31 = vmul.f32 1.442695, %v1288_v40  ;;  %v9756_v61 = vpop.permute.xlu1 %3658  ;;  %v9762_v40 = vadd.f32 %v1012_v22, %v458_v54 }
 0x38f   : > { %13102 = vst [vmem:[#allocation137_spill] sm:$0xff] %v9756_v61 }
 0x390   : > { %7866 = vpow2.f32 %v1320_v31  ;;  %v9764_v31 = vpop.permute.xlu0 %3662  ;;  %v1243_v61 = vsel %vm525_vm0, %v9762_v40, -inf }
 0x391   : > { %v9750_v49 = vpop.permute.xlu2 %3660  ;;  %13104 = vst [vmem:[#allocation139_spill] sm:$0xff] %v9764_v31  ;;  %v7677_v31 = vpack.i.bf16 %v9158_v32, %v9170_v39 }
 0x392   : > { %13100 = vst [vmem:[#allocation135_spill] sm:$0xff] %v9750_v49 }
 0x396   : > { %v1200_v49 = vpop.xlane.xlu1 %1199 }
 0x397   : > { %3959 = vrot.lane.b32.xlu1 %v9181_v6, %s8598_s27  ;;  %v9754_v6 = vpop.eup %7866  ;;  %v1290_v36 = vsub.f32 %v9524_v29, %v1200_v49  ;;  %v460_v49 = vld [vmem:[#allocation8 + $0x218] sm:$0xff] }
 0x398   : > { %v1384_v1 = vsel %vm525_vm0, %v9754_v6, 0.0  ;;  %v9773_v55 = vpop.permute.xlu0 %3833 }
 0x399   : > { %v9760_v10 = vpop.permute.xlu2 %3650  ;;  %13105 = vst [vmem:[#allocation140_spill] sm:$0xff] %v9773_v55 }
 0x39a   : > { %13103 = vst [vmem:[#allocation138_spill] sm:$0xff] %v9760_v10  ;;  %v1324_v10 = vmul.f32 1.442695, %v1290_v36 }
 0x39c   : > { %7868 = vpow2.f32 %v1324_v10 }
 0x39e   : > { %v9777_v52 = vpop.permute.xlu1 %7663 }
 0x39f   : > { %13106 = vst [vmem:[#allocation141_spill] sm:$0xff] %v9777_v52 }
 0x3a0   : > { %v1209_v51 = vpop.xlane.xlu0 %1208 }
 0x3a1   : > { %v1203_v16 = vpop.xlane.xlu2 %1202 }
 0x3a2   : > { %v9775_v54 = vpop.eup %7868 }
 0x3a3   : > { %v1390_v29 = vsel %vm525_vm0, %v9775_v54, 0.0 }
 0x3a6   : > { %4091 = vrot.lane.b32.xlu2 %v9391_v58, %s8597_s11  ;;  %v9792_v52 = vpop.permute.xlu1 %3837 }
 0x3a7   : > { %13109 = vst [vmem:[#allocation144_spill] sm:$0xff] %v9792_v52 }
 0x3a8   : > { %v9786_v36 = vpop.permute.xlu0 %3835 }
 0x3a9   : > { %v1206_v22 = vpop.xlane.xlu2 %1205  ;;  %13107 = vst [vmem:[#allocation142_spill] sm:$0xff] %v9786_v36 }
 0x3b1   : > { %v9788_v10 = vpop.permute.xlu2 %3652 }
 0x3b2   : > { %13108 = vst [vmem:[#allocation143_spill] sm:$0xff] %v9788_v10  ;;  %v1291_v10 = vsub.f32 %v9548_v17, %v1203_v16 }
 0x3b7   : > { %1385 = vadd.xlane.f32.xlu0 %v1384_v1  ;;  %v1246_v1 = vsel %vm525_vm0, %v9766_v41, -inf }
 0x3b9   : > { %v9798_v32 = vpop.permute.xlu2 %3969 }
 0x3ba   : > { %13111 = vst [vmem:[#allocation146_spill] sm:$0xff] %v9798_v32  ;;  %v1292_v32 = vsub.f32 %v9563_v19, %v1206_v22 }
 0x3bf   : > { %1244 = vmax.xlane.f32.xlu0 %v1243_v61  ;;  %v1018_v61 = vpop.f32.mrf.mxu2 }
 0x3c1   : > { %1247 = vmax.xlane.f32.xlu1 %v1246_v1  ;;  %v9783_v1 = vadd.f32 %v1018_v61, %v460_v49  ;;  %v9800_v49 = vpop.xlane.xlu1 %1211  ;;  %v9804_v61 = vpop.xlane.xlu2 %1214 }
 0x3c3   : > { %v1249_v55 = vsel %vm525_vm0, %v9783_v1, -inf }
 0x3c9   : > { %v9806_v36 = vpop.permute.xlu1 %3654  ;;  %v9813_v52 = vpop.permute.xlu2 %3786 }
 0x3ca   : > { %13112 = vst [vmem:[#allocation147_spill] sm:$0xff] %v9806_v36  ;;  %v1066_v36 = vpop.f32.mrf.mxu3 }
 0x3cb   : > { %13114 = vst [vmem:[#allocation149_spill] sm:$0xff] %v9813_v52 }
 0x3cf   : > { %1391 = vadd.xlane.f32.xlu2 %v1390_v29  ;;  %v9796_v29 = vpop.permute.xlu0 %7668 }
 0x3d0   : > { %13110 = vst [vmem:[#allocation145_spill] sm:$0xff] %v9796_v29 }
 0x3d1   : > { %v9816_v29 = vpop.permute.xlu1 %3965  ;;  %v9824_v17 = vpop.permute.xlu2 %3784 }
 0x3d2   : > { %13115 = vst [vmem:[#allocation150_spill] sm:$0xff] %v9816_v29  ;;  %v474_v29 = vld [vmem:[#allocation8 + $0x288] sm:$0xff] }
 0x3d3   : > { %7678 = vrot.lane.b32.xlu0 %v7677_v31, %s8599_s28  ;;  %13117 = vst [vmem:[#allocation152_spill] sm:$0xff] %v9824_v17  ;;  %v1069_v17 = vpop.f32.mrf.mxu3 }
 0x3d7   : > { %1250 = vmax.xlane.f32.xlu2 %v1249_v55  ;;  %v9802_v31 = vpop.xlane.xlu0 %1217  ;;  %v1326_v55 = vmul.f32 1.442695, %v1291_v10 }
 0x3d9   : > { %7870 = vpow2.f32 %v1326_v55  ;;  %v9822_v16 = vpop.xlane.xlu1 %1220 }
 0x3da   : > { %3776 = vrot.lane.b32.xlu1 %v8961_v62, %s8598_s27  ;;  %v1328_v62 = vmul.f32 1.442695, %v1292_v32 }
 0x3dc   : > { %7872 = vpow2.f32 %v1328_v62 }
 0x3df   : > { %v9809_v5 = vpop.permute.xlu0 %3967  ;;  %v9820_v9 = vpop.eup %7870 }
 0x3e0   : > { %13113 = vst [vmem:[#allocation148_spill] sm:$0xff] %v9809_v5  ;;  %v1393_v10 = vsel %vm525_vm0, %v9820_v9, 0.0  ;;  %v473_v5 = vld [vmem:[#allocation8 + $0x280] sm:$0xff] }
 0x3e1   : > { %v9830_v22 = vadd.f32 %v1066_v36, %v473_v5  ;;  %v9834_v55 = vpop.permute.xlu1 %3656  ;;  %v1293_v5 = vsub.f32 %v9630_v46, %v1209_v51  ;;  %v475_v51 = vld [vmem:[#allocation8 + $0x290] sm:$0xff] }
 0x3e2   : > { %v9828_v19 = vpop.eup %7872  ;;  %13119 = vst [vmem:[#allocation154_spill] sm:$0xff] %v9834_v55 }
 0x3e3   : > { %13118 = vst [vmem:[#allocation153_spill] sm:$0xff] %v9830_v22  ;;  %v1396_v62 = vsel %vm525_vm0, %v9828_v19, 0.0  ;;  %v1252_v52 = vsel %vm525_vm0, %v9830_v22, -inf  ;;  %v1330_v30 = vmul.f32 1.442695, %v1293_v5  ;;  %v7620_v22 = vunpack.i.l.bf16 %v9526_v23 }
 0x3e5   : > { %7874 = vpow2.f32 %v1330_v30 }
 0x3e7   : > { %v9818_v39 = vpop.permute.xlu0 %3839 }
 0x3e8   : > { %13116 = vst [vmem:[#allocation151_spill] sm:$0xff] %v9818_v39  ;;  %v9836_v39 = vpop.xlane.xlu2 %1223 }
 0x3e9   : > { %v9849_v33 = vpop.permute.xlu1 %3780 }
 0x3ea   : > { %13122 = vst [vmem:[#allocation157_spill] sm:$0xff] %v9849_v33 }
 0x3ef   : > { %3908 = vrot.lane.b32.xlu2 %v9141_v15, %s8597_s11  ;;  %v9832_v32 = vpop.xlane.xlu0 %1226 }
 0x3f0   : > { %v9851_v26 = vpop.permute.xlu2 %3782 }
 0x3f1   : > { %13123 = vst [vmem:[#allocation158_spill] sm:$0xff] %v9851_v26 }
 0x3f7   : > { %v9845_v36 = vpop.permute.xlu0 %3963 }
 0x3f8   : > { %13121 = vst [vmem:[#allocation156_spill] sm:$0xff] %v9845_v36 }
 0x3fd   : > { %1394 = vadd.xlane.f32.xlu0 %v1393_v10  ;;  %v9842_v10 = vadd.f32 %v1069_v17, %v474_v29  ;;  %v9859_v29 = vpop.permute.xlu2 %3772  ;;  %v1072_v17 = vpop.f32.mrf.mxu3 }
 0x3fe   : > { %13125 = vst [vmem:[#allocation160_spill] sm:$0xff] %v9859_v29  ;;  %v9867_v30 = vadd.f32 %v1072_v17, %v475_v51 }
 0x3ff   : > { %13120 = vst [vmem:[#allocation155_spill] sm:$0xff] %v9842_v10  ;;  %v1255_v55 = vsel %vm525_vm0, %v9842_v10, -inf  ;;  %v9853_v8 = vpop.permute.xlu0 %3955 }
 0x400   : > { %13124 = vst [vmem:[#allocation159_spill] sm:$0xff] %v9853_v8  ;;  %v1258_v36 = vsel %vm525_vm0, %v9867_v30, -inf }
 0x401   : > { %13126 = vst [vmem:[#allocation161_spill] sm:$0xff] %v9867_v30  ;;  %v7630_v30 = vunpack.i.l.bf16 %v9550_v20 }
 0x404   : > { %1397 = vadd.xlane.f32.xlu1 %v1396_v62  ;;  %v9855_v62 = vpop.xlane.xlu1 %1229 }
 0x405   : > { %1253 = vmax.xlane.f32.xlu0 %v1252_v52  ;;  %v9857_v52 = vpop.eup %7874  ;;  %v9871_v8 = vpop.xlane.xlu2 %1232 }
 0x406   : > { %v1399_v46 = vsel %vm525_vm0, %v9857_v52, 0.0 }
 0x40c   : > { %1256 = vmax.xlane.f32.xlu1 %v1255_v55  ;;  %v9865_v55 = vpop.xlane.xlu0 %1235  ;;  %v9869_v5 = vpop.permute.xlu1 %7673 }
 0x40d   : > { %13127 = vst [vmem:[#allocation162_spill] sm:$0xff] %v9869_v5  ;;  %v1294_v5 = vsub.f32 %v9624_v42, %v9800_v49 }
 0x40f   : > { %v1332_v10 = vmul.f32 1.442695, %v1294_v5 }
 0x414   : > { %v9875_v29 = vpop.permute.xlu0 %3957  ;;  %v9877_v33 = vpop.xlane.xlu1 %1238 }
 0x415   : > { %13128 = vst [vmem:[#allocation163_spill] sm:$0xff] %v9875_v29  ;;  %v7631_v29 = vunpack.i.h.bf16 %v9550_v20  ;;  %v1295_v20 = vsub.f32 %v9638_v37, %v9804_v61 }
 0x418   : > { %1400 = vadd.xlane.f32.xlu2 %v1399_v46  ;;  %v9881_v46 = vpop.permute.xlu2 %3774 }
 0x419   : > { %4089 = vrot.lane.b32.xlu0 %v9378_v27, %s8597_s11  ;;  %13129 = vst [vmem:[#allocation164_spill] sm:$0xff] %v9881_v46 }
 0x41c   : > { %v1389_v51 = vpop.xlane.xlu1 %1388 }
 0x420   : > { %1259 = vmax.xlane.f32.xlu2 %v1258_v36  ;;  %v9885_v60 = vpop.xlane.xlu2 %1241 }
 0x425   : > { %4087 = vrot.lane.b32.xlu1 %v9351_v38, %s8597_s11 }
 0x428   : > { %v9896_v42 = vpop.permute.xlu2 %4091 }
 0x429   : > { %13130 = vst [vmem:[#allocation165_spill] sm:$0xff] %v9896_v42  ;;  %v493_v42 = vld [vmem:[#allocation8 + $0x320] sm:$0xff] }
 0x42a   : > { %v1386_v26 = vpop.xlane.xlu0 %1385 }
 0x42b   : > { %7876 = vrcp.f32 %v1386_v26  ;;  %v7621_v26 = vunpack.i.h.bf16 %v9526_v23 }
 0x42c   : > { %7878 = vrcp.f32 %v1389_v51 }
 0x42d   : > { %7880 = vpow2.f32 %v1332_v10  ;;  %v476_v10 = vld [vmem:[#allocation8 + $0x298] sm:$0xff] }
 0x431   : > { %v7877_v17 = vpop.eup %7876 }
 0x432   : > { %v1512_v36 = vmul.f32 %v7877_v17, %v9754_v6  ;;  %v7879_v46 = vpop.eup %7878  ;;  %v489_v17 = vld [vmem:[#allocation8 + $0x300] sm:$0xff] }
 0x433   : > { %v1513_v6 = vmul.f32 %v7879_v46, %v9721_v53  ;;  %v9901_v49 = vpop.eup %7880 }
 0x434   : > { %6977 = vmatmul.msk.f32.vlgmr.msra.gmra.mxu3 %vm525_vm0, %v1512_v36  ;;  %v1402_v23 = vsel %vm525_vm0, %v9901_v49, 0.0  ;;  %v1123_v36 = vpop.f32.mrf.mxu1 }
 0x435   : > { %1898 = vmatpush.msra.mxu3 %v7631_v29  ;;  %v1334_v29 = vmul.f32 1.442695, %v1295_v20 }
 0x437   : > { %1899 = vmatpush.msra.mxu3 %v7630_v30  ;;  %v1075_v30 = vpop.f32.mrf.mxu3 }
 0x438   : > { %3906 = vrot.lane.b32.xlu2 %v9128_v4, %s8597_s11  ;;  %v9905_v53 = vadd.f32 %v1075_v30, %v476_v10  ;;  %v9927_v10 = vpop.xlane.xlu0 %1244 }
 0x439   : > { %1900 = vmatpush.msra.mxu3 %v7621_v26  ;;  %v1296_v26 = vsub.f32 %v9660_v63, %v9802_v31  ;;  %v490_v31 = vld [vmem:[#allocation8 + $0x308] sm:$0xff] }
 0x43a   : > { %v1261_v46 = vsel %vm525_vm0, %v9905_v53, -inf }
 0x43b   : > { %1901 = vmatpush.msra.mxu3 %v7620_v22  ;;  %v1336_v20 = vmul.f32 1.442695, %v1296_v26  ;;  %v1297_v26 = vsub.f32 %v9656_v21, %v9822_v16 }
 0x43c   : > { %6978 = vmatmul.msk.f32.gmra.mxu3 %vm525_vm0, %v1513_v6  ;;  %v9917_v6 = vadd.f32 %v1123_v36, %v489_v17  ;;  %v1126_v30 = vpop.f32.mrf.mxu1 }
 0x442   : > { %v1392_v5 = vpop.xlane.xlu2 %1391 }
 0x443   : > { %1403 = vadd.xlane.f32.xlu0 %v1402_v23  ;;  %7882 = vrcp.f32 %v1392_v5  ;;  %v9923_v23 = vpop.permute.xlu1 %3959  ;;  %v9931_v5 = vadd.f32 %v1126_v30, %v490_v31  ;;  %v1338_v31 = vmul.f32 1.442695, %v1297_v26  ;;  %v491_v26 = vld [vmem:[#allocation8 + $0x310] sm:$0xff] }
 0x444   : > { %7884 = vpow2.f32 %v1334_v29  ;;  %v1264_v29 = vsel %vm525_vm0, %v9917_v6, -inf  ;;  %13131 = vst [vmem:[#allocation166_spill] sm:$0xff] %v9923_v23  ;;  %v7656_v23 = vunpack.i.h.bf16 %v9700_v24 }
 0x445   : > { %7886 = vpow2.f32 %v1336_v20 }
 0x449   : > { %v7883_v22 = vpop.eup %7882 }
 0x44a   : > { %v9909_v51 = vpop.eup %7884  ;;  %v1514_v37 = vmul.f32 %v7883_v22, %v9775_v54 }
 0x44b   : > { %1262 = vmax.xlane.f32.xlu0 %v1261_v46  ;;  %v1405_v61 = vsel %vm525_vm0, %v9909_v51, 0.0  ;;  %v9921_v54 = vpop.eup %7886  ;;  %v9933_v22 = vpop.xlane.xlu1 %1247 }
 0x44c   : > { %6979 = vmatmul.msk.f32.gmra.mxu3 %vm525_vm0, %v1514_v37  ;;  %v1408_v63 = vsel %vm525_vm0, %v9921_v54, 0.0  ;;  %v9935_v46 = vpop.permute.xlu0 %7678  ;;  %v1267_v37 = vsel %vm525_vm0, %v9931_v5, -inf }
 0x44f   : > { %1406 = vadd.xlane.f32.xlu1 %v1405_v61 }
 0x453   : > { %v9939_v61 = vpop.permute.xlu1 %3776 }
 0x454   : > { %13132 = vst [vmem:[#allocation167_spill] sm:$0xff] %v9939_v61 }
 0x457   : > { %1265 = vmax.xlane.f32.xlu1 %v1264_v29 }
 0x45f   : > { %3961 = vrot.lane.b32.xlu0 %v9206_v28, %s8598_s27 }
 0x461   : > { %1409 = vadd.xlane.f32.xlu2 %v1408_v63  ;;  %v9946_v63 = vpop.xlane.xlu2 %1250 }
 0x469   : > { %1268 = vmax.xlane.f32.xlu2 %v1267_v37  ;;  %v9956_v21 = vpop.permute.xlu2 %3908 }
 0x470   : > { %v1395_v17 = vpop.xlane.xlu0 %1394  ;;  %3778 = vrot.lane.b32.xlu1 %v8973_v2, %s8598_s27 }
 0x471   : > { %7888 = vrcp.f32 %v1395_v17  ;;  %v7655_v17 = vunpack.i.l.bf16 %v9700_v24 }
 0x477   : > { %v7889_v36 = vpop.eup %7888  ;;  %v1398_v20 = vpop.xlane.xlu1 %1397 }
 0x478   : > { %7890 = vrcp.f32 %v1398_v20  ;;  %v1515_v29 = vmul.f32 %v7889_v36, %v9820_v9  ;;  %v7646_v9 = vunpack.i.h.bf16 %v9540_v56  ;;  %v7645_v36 = vunpack.i.l.bf16 %v9540_v56  ;;  %v1129_v20 = vpop.f32.mrf.mxu1 }
 0x479   : > { %7892 = vpow2.f32 %v1338_v31 }
 0x47a   : > { %6980 = vmatmul.msk.f32.gmra.mxu3 %vm525_vm0, %v1515_v29 }
 0x47e   : > { %v7891_v30 = vpop.eup %7890 }
 0x47f   : > { %v1516_v37 = vmul.f32 %v7891_v30, %v9828_v19  ;;  %v9958_v16 = vpop.eup %7892  ;;  %v1298_v19 = vsub.f32 %v9664_v57, %v9836_v39 }
 0x480   : > { %v1411_v24 = vsel %vm525_vm0, %v9958_v16, 0.0 }
 0x481   : > { %6981 = vmatmul.msk.f32.vlgmr.msrb.gmra.mxu1 %vm525_vm0, %v1516_v37  ;;  %3904 = vrot.lane.b32.xlu2 %v9083_v45, %s8597_s11  ;;  %v1340_v29 = vmul.f32 1.442695, %v1298_v19  ;;  %v1301_v37 = vsub.f32 %v9692_v48, %v9871_v8  ;;  %v1132_v19 = vpop.f32.mrf.mxu1  ;;  %v9987_v8 = vpop.xlane.xlu0 %1253 }
 0x482   : > { %1951 = vmatpush.msrb.mxu1 %v7656_v23  ;;  %v9965_v23 = vadd.f32 %v1129_v20, %v491_v26 }
 0x484   : > { %1952 = vmatpush.msrb.mxu1 %v7655_v17  ;;  %v1270_v56 = vsel %vm525_vm0, %v9965_v23, -inf  ;;  %v1299_v17 = vsub.f32 %v9680_v25, %v9832_v32 }
 0x486   : > { %1953 = vmatpush.msrb.mxu1 %v7646_v9 }
 0x488   : > { %1954 = vmatpush.msrb.mxu1 %v7645_v36  ;;  %v492_v36 = vld [vmem:[#allocation8 + $0x318] sm:$0xff] }
 0x489   : > { %1412 = vadd.xlane.f32.xlu0 %v1411_v24  ;;  %v1346_v24 = vmul.f32 1.442695, %v1301_v37  ;;  %v9979_v26 = vadd.f32 %v1132_v19, %v492_v36  ;;  %v9999_v37 = vpop.xlane.xlu1 %1256 }
 0x48b   : > { %v1401_v31 = vpop.xlane.xlu2 %1400  ;;  %v1273_v20 = vsel %vm525_vm0, %v9979_v26, -inf }
 0x48c   : > { %7894 = vrcp.f32 %v1401_v31  ;;  %v505_v31 = vld [vmem:[#allocation8 + $0x380] sm:$0xff] }
 0x48d   : > { %7896 = vpow2.f32 %v1340_v29 }
 0x48e   : > { %7898 = vpow2.f32 %v1346_v24  ;;  %v1300_v24 = vsub.f32 %v9682_v12, %v9855_v62 }
 0x491   : > { %1271 = vmax.xlane.f32.xlu0 %v1270_v56  ;;  %v1180_v56 = vpop.f32.mrf.mxu2 }
 0x492   : > { %v7895_v30 = vpop.eup %7894 }
 0x493   : > { %v1517_v39 = vmul.f32 %v7895_v30, %v9857_v52  ;;  %v9970_v57 = vpop.eup %7896  ;;  %v1342_v52 = vmul.f32 1.442695, %v1299_v17  ;;  %v9995_v30 = vadd.f32 %v1180_v56, %v505_v31 }
 0x494   : > { %v1414_v9 = vsel %vm525_vm0, %v9970_v57, 0.0  ;;  %v9985_v48 = vpop.eup %7898 }
 0x495   : > { %6982 = vmatmul.msk.f32.gmra.mxu1 %vm525_vm0, %v1517_v39  ;;  %7900 = vpow2.f32 %v1342_v52  ;;  %v1423_v32 = vsel %vm525_vm0, %v9985_v48, 0.0  ;;  %v9997_v39 = vpop.permute.xlu0 %4089  ;;  %v1276_v17 = vsel %vm525_vm0, %v9995_v30, -inf }
 0x496   : > { %13133 = vst [vmem:[#allocation168_spill] sm:$0xff] %v9997_v39 }
 0x497   : > { %v10003_v36 = vpop.permute.xlu1 %4087 }
 0x498   : > { %13134 = vst [vmem:[#allocation169_spill] sm:$0xff] %v10003_v36 }
 0x49a   : > { %1415 = vadd.xlane.f32.xlu1 %v1414_v9 }
 0x49b   : > { %v9989_v25 = vpop.eup %7900 }
 0x49c   : > { %v1417_v29 = vsel %vm525_vm0, %v9989_v25, 0.0 }
 0x4a2   : > { %1274 = vmax.xlane.f32.xlu1 %v1273_v20  ;;  %v1344_v20 = vmul.f32 1.442695, %v1300_v24 }
 0x4a5   : > { %4085 = vrot.lane.b32.xlu0 %v9325_v0, %s8597_s11 }
 0x4aa   : > { %1424 = vadd.xlane.f32.xlu1 %v1423_v32  ;;  %1418 = vadd.xlane.f32.xlu2 %v1417_v29  ;;  %v10009_v29 = vpop.xlane.xlu2 %1259 }
 0x4b2   : > { %1277 = vmax.xlane.f32.xlu2 %v1276_v17  ;;  %v10018_v62 = vpop.permute.xlu2 %3906  ;;  %v506_v17 = vld [vmem:[#allocation8 + $0x388] sm:$0xff] }
 0x4b6   : > { %v1404_v9 = vpop.xlane.xlu0 %1403 }
 0x4b7   : > { %7902 = vrcp.f32 %v1404_v9  ;;  %v1183_v9 = vpop.f32.mrf.mxu2 }
 0x4bd   : > { %v7903_v19 = vpop.eup %7902 }
 0x4be   : > { %v1518_v52 = vmul.f32 %v7903_v19, %v9901_v49  ;;  %v10023_v19 = vadd.f32 %v1183_v9, %v506_v17 }
 0x4c0   : > { %6983 = vmatmul.msk.f32.gmra.mxu1 %vm525_vm0, %v1518_v52  ;;  %v1279_v52 = vsel %vm525_vm0, %v10023_v19, -inf }
 0x4c2   : > { %v1407_v32 = vpop.xlane.xlu1 %1406 }
 0x4c3   : > { %3902 = vrot.lane.b32.xlu1 %v9078_v44, %s8597_s11  ;;  %7904 = vrcp.f32 %v1407_v32  ;;  %v1302_v32 = vsub.f32 %v9715_v59, %v9865_v55 }
 0x4c4   : > { %7906 = vpow2.f32 %v1344_v20 }
 0x4c9   : > { %v7905_v31 = vpop.eup %7904 }
 0x4ca   : > { %v10013_v56 = vpop.eup %7906  ;;  %3894 = vrot.lane.b32.xlu2 %v9078_v44, %s8598_s27  ;;  %v1519_v12 = vmul.f32 %v7905_v31, %v9909_v51  ;;  %v507_v31 = vld [vmem:[#allocation8 + $0x390] sm:$0xff]  ;;  %v10053_v9 = vpop.xlane.xlu1 %1265 }
 0x4cb   : > { %v1420_v49 = vsel %vm525_vm0, %v10013_v56, 0.0 }
 0x4cc   : > { %6984 = vmatmul.msk.f32.gmra.mxu1 %vm525_vm0, %v1519_v12  ;;  %v1186_v12 = vpop.f32.mrf.mxu2 }
 0x4cd   : > { %v10035_v17 = vadd.f32 %v1186_v12, %v507_v31 }
 0x4cf   : > { %1421 = vadd.xlane.f32.xlu0 %v1420_v49  ;;  %v1348_v49 = vmul.f32 1.442695, %v1302_v32 }
 0x4d4   : > { %v1410_v24 = vpop.xlane.xlu2 %1409 }
 0x4d5   : > { %7908 = vrcp.f32 %v1410_v24 }
 0x4d6   : > { %7910 = vpow2.f32 %v1348_v49 }
 0x4d7   : > { %1280 = vmax.xlane.f32.xlu0 %v1279_v52 }
 0x4db   : > { %v7909_v20 = vpop.eup %7908 }
 0x4dc   : > { %v1520_v51 = vmul.f32 %v7909_v20, %v9921_v54  ;;  %v10041_v54 = vpop.xlane.xlu0 %1262  ;;  %v10063_v32 = vpop.xlane.xlu2 %1268 }
 0x4de   : > { %6985 = vmatmul.msk.f32.vlgmr.msrb.gmra.mxu2 %vm525_vm0, %v1520_v51 }
 0x4df   : > { %7009 = vmatpush.xpose.msk.msrb.mxu2 %vm747_vm1, %v9056_v35  ;;  %v10047_v35 = vpop.eup %7910 }
 0x4e0   : > { %v1426_v59 = vsel %vm525_vm0, %v10047_v35, 0.0 }
 0x4e2   : > { %v10058_v20 = vpop.permute.xlu1 %3778 }
 0x4e3   : > { %7010 = vmatpush.xpose.msk.msrb.mxu2 %vm747_vm1, %v8982_v3  ;;  %v1282_v3 = vsel %vm525_vm0, %v10035_v17, -inf  ;;  %13136 = vst [vmem:[#allocation171_spill] sm:$0xff] %v10058_v20 }
 0x4e4   : > { %v10051_v55 = vpop.permute.xlu0 %3961  ;;  %v10076_v49 = vpop.permute.xlu2 %3904 }
 0x4e5   : > { %13135 = vst [vmem:[#allocation170_spill] sm:$0xff] %v10051_v55 }
 0x4e7   : > { %7011 = vmatpush.xpose.msk.msrb.mxu2 %vm747_vm1, %v9021_v18 }
 0x4eb   : > { %4077 = vrot.lane.b32.xlu0 %v9325_v0, %s8598_s27  ;;  %7012 = vmatpush.xpose.msk.msrb.mxu2 %vm747_vm1, %v8992_v7  ;;  %v1303_v7 = vsub.f32 %v9713_v34, %v9877_v33 }
 0x4ed   : > { %1283 = vmax.xlane.f32.xlu1 %v1282_v3  ;;  %v1350_v51 = vmul.f32 1.442695, %v1303_v7 }
 0x4f3   : > { %1427 = vadd.xlane.f32.xlu2 %v1426_v59 }
 0x4fc   : > { %v1413_v18 = vpop.xlane.xlu0 %1412 }
 0x4fd   : > { %7912 = vrcp.f32 %v1413_v18  ;;  %v1304_v18 = vsub.f32 %v9727_v47, %v9885_v60  ;;  %v508_v60 = vld [vmem:[#allocation8 + $0x398] sm:$0xff]  ;;  %v1189_v47 = vpop.f32.mrf.mxu2 }
 0x4fe   : > { %7914 = vpow2.f32 %v1350_v51 }
 0x4ff   : > { %v1352_v7 = vmul.f32 1.442695, %v1304_v18 }
 0x503   : > { %v7913_v24 = vpop.eup %7912 }
 0x504   : > { %v1521_v52 = vmul.f32 %v7913_v24, %v9958_v16  ;;  %v10069_v33 = vpop.eup %7914 }
 0x505   : > { %v1429_v16 = vsel %vm525_vm0, %v10069_v33, 0.0 }
 0x506   : > { %6986 = vmatmul.msk.f32.gmra.mxu2 %vm525_vm0, %v1521_v52  ;;  %3896 = vrot.lane.b32.xlu1 %v9083_v45, %s8598_s27  ;;  %v1305_v52 = vsub.f32 %v9762_v40, %v9927_v10 }
 0x50b   : > { %4081 = vrot.lane.b32.xlu2 %v9378_v27, %s8598_s27  ;;  %v13154_v27 = vld [vmem:[#allocation64_spill] sm:$0xff] }
 0x50d   : > { %v1416_v31 = vpop.xlane.xlu1 %1415 }
 0x50e   : > { %7916 = vrcp.f32 %v1416_v31  ;;  %4030 = vrot.lane.b32.xlu1 %v9283_v50, %s8597_s11 }
 0x513   : > { %4083 = vrot.lane.b32.xlu2 %v9391_v58, %s8598_s27 }
 0x514   : > { %v7917_v34 = vpop.eup %7916 }
 0x515   : > { %1430 = vadd.xlane.f32.xlu0 %v1429_v16  ;;  %v1522_v12 = vmul.f32 %v7917_v34, %v9970_v57  ;;  %v10087_v57 = vpop.xlane.xlu0 %1271  ;;  %v10095_v34 = vadd.f32 %v1189_v47, %v508_v60 }
 0x517   : > { %6987 = vmatmul.msk.f32.gmra.mxu2 %vm525_vm0, %v1522_v12  ;;  %v10099_v12 = vpop.xlane.xlu1 %1274 }
 0x51d   : > { %v1419_v3 = vpop.xlane.xlu2 %1418  ;;  %v10097_v16 = vpop.permute.xlu0 %4085 }
 0x51e   : > { %7918 = vrcp.f32 %v1419_v3  ;;  %13137 = vst [vmem:[#allocation172_spill] sm:$0xff] %v10097_v16  ;;  %v1285_v3 = vsel %vm525_vm0, %v10095_v34, -inf  ;;  %v415_v16 = vld [vmem:[#allocation8 + $0xb0] sm:$0xff] }
 0x51f   : > { %7920 = vpow2.f32 %v1352_v7  ;;  %v1425_v18 = vpop.xlane.xlu1 %1424  ;;  %v1306_v7 = vsub.f32 %v9766_v41, %v9933_v22  ;;  %v13139_v22 = vld [vmem:[#allocation43_spill] sm:$0xff] }
 0x521   : > { %v1356_v60 = vmul.f32 1.442695, %v1306_v7 }
 0x524   : > { %v7919_v59 = vpop.eup %7918 }
 0x525   : > { %v1523_v24 = vmul.f32 %v7919_v59, %v9989_v25  ;;  %v10091_v51 = vpop.eup %7920  ;;  %v1354_v25 = vmul.f32 1.442695, %v1305_v52  ;;  %v10119_v41 = vpop.xlane.xlu2 %1277 }
 0x526   : > { %v1432_v31 = vsel %vm525_vm0, %v10091_v51, 0.0 }
 0x527   : > { %6988 = vmatmul.msk.f32.gmra.mxu2 %vm525_vm0, %v1523_v24  ;;  %7922 = vpow2.f32 %v1354_v25  ;;  %v13138_v25 = vld [vmem:[#allocation53_spill] sm:$0xff] }
 0x529   : > { %4079 = vrot.lane.b32.xlu0 %v9351_v38, %s8598_s27 }
 0x52d   : > { %v10103_v40 = vpop.eup %7922 }
 0x52e   : > { %v1435_v59 = vsel %vm525_vm0, %v10103_v40, 0.0 }
 0x531   : > { %3898 = vrot.lane.b32.xlu0 %v9128_v4, %s8598_s27 }
 0x538   : > { %1433 = vadd.xlane.f32.xlu1 %v1432_v31 }
 0x53c   : > { %1286 = vmax.xlane.f32.xlu2 %v1285_v3 }
 0x542   : > { %v1422_v10 = vpop.xlane.xlu0 %1421 }
 0x543   : > { %7924 = vrcp.f32 %v1422_v10 }
 0x544   : > { %1436 = vadd.xlane.f32.xlu2 %v1435_v59  ;;  %7926 = vrcp.f32 %v1425_v18 }
 0x545   : > { %7928 = vpow2.f32 %v1356_v60  ;;  %v13142_v60 = vld [vmem:[#allocation153_spill] sm:$0xff] }
 0x549   : > { %v7925_v24 = vpop.eup %7924 }
 0x54a   : > { %v1524_v52 = vmul.f32 %v7925_v24, %v10013_v56  ;;  %v7927_v47 = vpop.eup %7926  ;;  %v1307_v24 = vsub.f32 %v9783_v1, %v9946_v63  ;;  %v1311_v63 = vsub.f32 %v9905_v53, %v10041_v54 }
 0x54b   : > { %v1525_v31 = vmul.f32 %v7927_v47, %v9985_v48  ;;  %v10123_v56 = vpop.eup %7928  ;;  %v10133_v48 = vpop.permute.xlu2 %3894  ;;  %v1308_v47 = vsub.f32 %v13142_v60, %v9987_v8 }
 0x54c   : > { %6989 = vmatmul.msk.f32.vlgmr.msrb.gmra.mxu3 %vm525_vm0, %v1524_v52  ;;  %v1438_v3 = vsel %vm525_vm0, %v10123_v56, 0.0  ;;  %13141 = vst [vmem:[#allocation53_spill] sm:$0xff] %v10133_v48  ;;  %v1358_v7 = vmul.f32 1.442695, %v1307_v24  ;;  %v10145_v52 = vpop.xlane.xlu0 %1280 }
 0x54d   : > { %7017 = vmatpush.xpose.msk.msrb.mxu3 %vm747_vm1, %v9075_v43  ;;  %v13140_v43 = vld [vmem:[#allocation34_spill] sm:$0xff] }
 0x551   : > { %7018 = vmatpush.xpose.msk.msrb.mxu3 %vm747_vm1, %v13138_v25  ;;  %3900 = vrot.lane.b32.xlu1 %v9141_v15, %s8598_s27 }
 0x554   : > { %6990 = vmatmul.msk.f32.gmra.mxu3 %vm525_vm0, %v1525_v31  ;;  %v1360_v31 = vmul.f32 1.442695, %v1308_v47 }
 0x555   : > { %7019 = vmatpush.xpose.msk.msrb.mxu3 %vm747_vm1, %v13139_v22 }
 0x559   : > { %7020 = vmatpush.xpose.msk.msrb.mxu3 %vm747_vm1, %v13140_v43  ;;  %4016 = vrot.lane.b32.xlu1 %v9245_v13, %s8598_s27 }
 0x55b   : > { %1439 = vadd.xlane.f32.xlu0 %v1438_v3  ;;  %v10157_v3 = vpop.permute.xlu1 %3902 }
 0x55c   : > { %4026 = vrot.lane.b32.xlu2 %v9262_v14, %s8597_s11  ;;  %13144 = vst [vmem:[#allocation34_spill] sm:$0xff] %v10157_v3 }
 0x55d   : > { %v10151_v22 = vpop.permute.xlu0 %4077 }
 0x55e   : > { %13143 = vst [vmem:[#allocation43_spill] sm:$0xff] %v10151_v22 }
 0x563   : > { %v10166_v60 = vpop.xlane.xlu1 %1283 }
 0x564   : > { %4018 = vrot.lane.b32.xlu2 %v9262_v14, %s8598_s27  ;;  %v1316_v14 = vsub.f32 %v9995_v30, %v10119_v41  ;;  %v13171_v30 = vld [vmem:[#allocation66_spill] sm:$0xff] }
 0x566   : > { %v1428_v10 = vpop.xlane.xlu2 %1427 }
 0x567   : > { %7930 = vrcp.f32 %v1428_v10 }
 0x568   : > { %7932 = vpow2.f32 %v1358_v7 }
 0x569   : > { %7934 = vpow2.f32 %v1360_v31 }
 0x56d   : > { %v7931_v59 = vpop.eup %7930 }
 0x56e   : > { %v1526_v18 = vmul.f32 %v7931_v59, %v10047_v35  ;;  %v10149_v25 = vpop.eup %7932  ;;  %v1366_v35 = vmul.f32 1.442695, %v1311_v63 }
 0x56f   : > { %4028 = vrot.lane.b32.xlu0 %v9259_v11, %s8597_s11  ;;  %v1441_v1 = vsel %vm525_vm0, %v10149_v25, 0.0  ;;  %v10159_v10 = vpop.eup %7934 }
 0x570   : > { %6991 = vmatmul.msk.f32.gmra.mxu3 %vm525_vm0, %v1526_v18  ;;  %v1444_v8 = vsel %vm525_vm0, %v10159_v10, 0.0  ;;  %v13145_v18 = vld [vmem:[#allocation155_spill] sm:$0xff] }
 0x571   : > { %v1309_v24 = vsub.f32 %v13145_v18, %v9999_v37 }
 0x573   : > { %v1362_v54 = vmul.f32 1.442695, %v1309_v24 }
 0x577   : > { %4024 = vrot.lane.b32.xlu0 %v9245_v13, %s8597_s11  ;;  %s8512_s11 = scalar_lea.hbm %s8511_s12, 256 }
 0x578   : > { %v10173_v31 = vpop.permute.xlu1 %3896  ;;  %p8513_p1 = scmp.ne.s32.totalorder %s8511_s12, %s8512_s11 }
 0x579   : > { %13146 = vst [vmem:[#allocation153_spill] sm:$0xff] %v10173_v31 }
 0x57a   : > { %p8514_p4 = pnand %p8513_p1, %p8745_p5 }
 0x57c   : > { %p8515_p8 = pneg %p8514_p4 }
 0x580   : > { %v10183_v63 = vpop.permute.xlu1 %4030 }
 0x581   : > { %13148 = vst [vmem:[#allocation173_spill] sm:$0xff] %v10183_v63  ;;  %v480_v63 = vld [vmem:[#allocation8 + $0x2b8] sm:$0xff] }
 0x583   : > { %1442 = vadd.xlane.f32.xlu1 %v1441_v1 }
 0x588   : > { %v1431_v43 = vpop.xlane.xlu0 %1430 }
 0x589   : > { %7936 = vrcp.f32 %v1431_v43 }
 0x58a   : > { %7938 = vpow2.f32 %v1366_v35 }
 0x58b   : > { %7940 = vpow2.f32 %v1362_v54 }
 0x58d   : > { %1445 = vadd.xlane.f32.xlu2 %v1444_v8  ;;  %v13150_v8 = vld [vmem:[#allocation117_spill] sm:$0xff] }
 0x58f   : > { %v7937_v59 = vpop.eup %7936 }
 0x590   : > { %v1527_v7 = vmul.f32 %v7937_v59, %v10069_v33  ;;  %v10168_v53 = vpop.eup %7938  ;;  %v10179_v33 = vpop.permute.xlu2 %4081 }
 0x591   : > { %v1453_v47 = vsel %vm525_vm0, %v10168_v53, 0.0  ;;  %v10177_v37 = vpop.eup %7940  ;;  %13147 = vst [vmem:[#allocation155_spill] sm:$0xff] %v10179_v33 }
 0x592   : > { %6992 = vmatmul.msk.f32.gmra.mxu3 %vm525_vm0, %v1527_v7  ;;  %v1447_v1 = vsel %vm525_vm0, %v10177_v37, 0.0  ;;  %v13151_v7 = vld [vmem:[#allocation161_spill] sm:$0xff] }
 0x593   : > { %v1310_v54 = vsub.f32 %v13151_v7, %v10009_v29  ;;  %v1313_v29 = vsub.f32 %v9931_v5, %v10063_v32 }
 0x595   : > { %1454 = vadd.xlane.f32.xlu2 %v1453_v47  ;;  %v13152_v47 = vld [vmem:[#allocation123_spill] sm:$0xff]  ;;  %v1370_v7 = vmul.f32 1.442695, %v1313_v29 }
 0x598   : > { %v10185_v35 = vpop.permute.xlu2 %4083 }
 0x599   : > { %13149 = vst [vmem:[#allocation174_spill] sm:$0xff] %v10185_v35 }
 0x59c   : > { %4022 = vrot.lane.b32.xlu1 %v9283_v50, %s8598_s27 }
 0x5a1   : > { %1448 = vadd.xlane.f32.xlu0 %v1447_v1  ;;  %v13153_v1 = vld [vmem:[#allocation81_spill] sm:$0xff] }
 0x5ab   : > { %v1434_v43 = vpop.xlane.xlu1 %1433 }
 0x5ac   : > { %7942 = vrcp.f32 %v1434_v43  ;;  %v1364_v43 = vmul.f32 1.442695, %v1310_v54  ;;  %v13157_v54 = vld [vmem:[#allocation67_spill] sm:$0xff] }
 0x5ad   : > { %7693 = vrot.lane.b32.xlu2 %v13150_v8, %s8600_s9 }
 0x5af   : > { %v10189_v59 = vpop.xlane.xlu2 %1286 }
 0x5b2   : > { %v7943_v18 = vpop.eup %7942 }
 0x5b3   : > { %v1528_v24 = vmul.f32 %v7943_v18, %v10091_v51  ;;  %v10205_v51 = vpop.permute.xlu0 %4079  ;;  %v13156_v18 = vld [vmem:[#allocation48_spill] sm:$0xff] }
 0x5b4   : > { %13155 = vst [vmem:[#allocation117_spill] sm:$0xff] %v10205_v51 }
 0x5b5   : > { %4020 = vrot.lane.b32.xlu0 %v9259_v11, %s8598_s27  ;;  %6993 = vmatmul.msk.f32.vlgmr.msra.gmra.mxu1 %vm525_vm0, %v1528_v24 }
 0x5b6   : > { %7698 = vrot.lane.b32.xlu2 %v13152_v47, %s8600_s9  ;;  %7025 = vmatpush.xpose.msk.msra.mxu1 %vm747_vm1, %v13153_v1 }
 0x5b7   : > { %v1437_v8 = vpop.xlane.xlu2 %1436 }
 0x5b8   : > { %7944 = vrcp.f32 %v1437_v8 }
 0x5b9   : > { %7946 = vpow2.f32 %v1364_v43  ;;  %v1312_v43 = vsub.f32 %v9917_v6, %v10053_v9 }
 0x5ba   : > { %7026 = vmatpush.xpose.msk.msra.mxu1 %vm747_vm1, %v13154_v27  ;;  %7948 = vpow2.f32 %v1370_v7 }
 0x5bb   : > { %v10217_v5 = vpop.permute.xlu0 %3898  ;;  %v1368_v29 = vmul.f32 1.442695, %v1312_v43  ;;  %v13161_v43 = vld [vmem:[#allocation16_spill] sm:$0xff] }
 0x5bc   : > { %13158 = vst [vmem:[#allocation161_spill] sm:$0xff] %v10217_v5 }
 0x5be   : > { %7027 = vmatpush.xpose.msk.msra.mxu1 %vm747_vm1, %v13156_v18  ;;  %v7945_v24 = vpop.eup %7944 }
 0x5bf   : > { %v1529_v47 = vmul.f32 %v7945_v24, %v10103_v40  ;;  %v10210_v1 = vpop.eup %7946  ;;  %v1314_v40 = vsub.f32 %v9965_v23, %v10087_v57 }
 0x5c0   : > { %v1450_v27 = vsel %vm525_vm0, %v10210_v1, 0.0  ;;  %v10219_v32 = vpop.eup %7948 }
 0x5c1   : > { %6994 = vmatmul.msk.f32.gmra.mxu1 %vm525_vm0, %v1529_v47  ;;  %v1459_v47 = vsel %vm525_vm0, %v10219_v32, 0.0  ;;  %v1372_v18 = vmul.f32 1.442695, %v1314_v40 }
 0x5c2   : > { %7028 = vmatpush.xpose.msk.msra.mxu1 %vm747_vm1, %v13157_v54 }
 0x5c3   : > { %v10237_v57 = vpop.permute.xlu1 %3900 }
 0x5c4   : > { %13159 = vst [vmem:[#allocation81_spill] sm:$0xff] %v10237_v57  ;;  %v431_v57 = vld [vmem:[#allocation8 + $0x130] sm:$0xff] }
 0x5c6   : > { %1451 = vadd.xlane.f32.xlu1 %v1450_v27  ;;  %v13160_v27 = vld [vmem:[#allocation17_spill] sm:$0xff] }
 0x5c7   : > { %v7687_v40 = vpack.i.bf16 %v13161_v43, %v13160_v27 }
 0x5ce   : > { %v1440_v8 = vpop.xlane.xlu0 %1439  ;;  %1460 = vadd.xlane.f32.xlu1 %v1459_v47  ;;  %v10244_v47 = vpop.permute.xlu2 %4026 }
 0x5cf   : > { %7950 = vrcp.f32 %v1440_v8  ;;  %13163 = vst [vmem:[#allocation48_spill] sm:$0xff] %v10244_v47  ;;  %v13164_v8 = vld [vmem:[#allocation19_spill] sm:$0xff]  ;;  %v479_v47 = vld [vmem:[#allocation8 + $0x2b0] sm:$0xff] }
 0x5d0   : > { %7952 = vpow2.f32 %v1368_v29  ;;  %v13165_v29 = vld [vmem:[#allocation18_spill] sm:$0xff] }
 0x5d1   : > { %7954 = vpow2.f32 %v1372_v18  ;;  %v7682_v18 = vpack.i.bf16 %v13165_v29, %v13164_v8 }
 0x5d5   : > { %v7951_v24 = vpop.eup %7950 }
 0x5d6   : > { %v1530_v7 = vmul.f32 %v7951_v24, %v10123_v56  ;;  %v10229_v54 = vpop.eup %7952  ;;  %v10242_v56 = vpop.permute.xlu1 %4016  ;;  %v13166_v24 = vld [vmem:[#allocation30_spill] sm:$0xff] }
 0x5d7   : > { %v10231_v6 = vpop.eup %7954  ;;  %v1456_v23 = vsel %vm525_vm0, %v10229_v54, 0.0  ;;  %13162 = vst [vmem:[#allocation64_spill] sm:$0xff] %v10242_v56  ;;  %v463_v56 = vld [vmem:[#allocation8 + $0x230] sm:$0xff] }
 0x5d8   : > { %6995 = vmatmul.msk.f32.gmra.mxu1 %vm525_vm0, %v1530_v7  ;;  %v1462_v9 = vsel %vm525_vm0, %v10231_v6, 0.0  ;;  %v7707_v7 = vpack.i.bf16 %v13164_v8, %v13166_v24 }
 0x5df   : > { %1457 = vadd.xlane.f32.xlu0 %v1456_v23  ;;  %1463 = vadd.xlane.f32.xlu2 %v1462_v9  ;;  %v10252_v9 = vpop.permute.xlu2 %4018 }
 0x5e0   : > { %13167 = vst [vmem:[#allocation67_spill] sm:$0xff] %v10252_v9 }
 0x5e1   : > { %v10258_v50 = vpop.permute.xlu0 %4028 }
 0x5e2   : > { %13168 = vst [vmem:[#allocation30_spill] sm:$0xff] %v10258_v50 }
 0x5e7   : > { %7688 = vrot.lane.b32.xlu1 %v7687_v40, %s8599_s28 }
 0x5f3   : > { %7683 = vrot.lane.b32.xlu0 %v7682_v18, %s8599_s28  ;;  %v1376_v18 = vmul.f32 1.442695, %v1316_v14 }
 0x5f6   : > { %v1443_v23 = vpop.xlane.xlu1 %1442 }
 0x5f7   : > { %7956 = vrcp.f32 %v1443_v23  ;;  %7708 = vrot.lane.b32.xlu2 %v7707_v7, %s8600_s9  ;;  %v1315_v7 = vsub.f32 %v9979_v26, %v10099_v12  ;;  %v13172_v12 = vld [vmem:[#allocation88_spill] sm:$0xff] }
 0x5f9   : > { %v1374_v14 = vmul.f32 1.442695, %v1315_v7 }
 0x5fd   : > { %v7957_v58 = vpop.eup %7956 }
 0x5fe   : > { %v1531_v13 = vmul.f32 %v7957_v58, %v10149_v25  ;;  %v10264_v58 = vpop.permute.xlu0 %4024  ;;  %v13170_v25 = vld [vmem:[#allocation82_spill] sm:$0xff] }
 0x5ff   : > { %13169 = vst [vmem:[#allocation175_spill] sm:$0xff] %v10264_v58  ;;  %v511_v58 = vld [vmem:[#allocation8 + $0x3b0] sm:$0xff] }
 0x600   : > { %6996 = vmatmul.msk.f32.gmra.mxu1 %vm525_vm0, %v1531_v13  ;;  %v1446_v11 = vpop.xlane.xlu2 %1445 }
 0x601   : > { %7958 = vrcp.f32 %v1446_v11  ;;  %v1317_v11 = vsub.f32 %v10023_v19, %v10145_v52 }
 0x602   : > { %7960 = vpow2.f32 %v1376_v18 }
 0x603   : > { %v1378_v26 = vmul.f32 1.442695, %v1317_v11  ;;  %7962 = vpow2.f32 %v1374_v14  ;;  %v13175_v14 = vld [vmem:[#allocation54_spill] sm:$0xff] }
 0x607   : > { %v7959_v35 = vpop.eup %7958 }
 0x608   : > { %v1532_v23 = vmul.f32 %v7959_v35, %v10159_v10  ;;  %v10268_v13 = vpop.eup %7960  ;;  %v13173_v35 = vld [vmem:[#allocation70_spill] sm:$0xff] }
 0x609   : > { %v1468_v41 = vsel %vm525_vm0, %v10268_v13, 0.0  ;;  %v10280_v19 = vpop.eup %7962 }
 0x60a   : > { %6997 = vmatmul.msk.f32.vlgmr.msra.gmra.mxu2 %vm525_vm0, %v1532_v23  ;;  %v1465_v23 = vsel %vm525_vm0, %v10280_v19, 0.0 }
 0x60b   : > { %7033 = vmatpush.xpose.msk.msra.mxu2 %vm747_vm1, %v13170_v25 }
 0x60e   : > { %v10291_v11 = vpop.permute.xlu1 %4022 }
 0x60f   : > { %7034 = vmatpush.xpose.msk.msra.mxu2 %vm747_vm1, %v13171_v30  ;;  %13174 = vst [vmem:[#allocation82_spill] sm:$0xff] %v10291_v11  ;;  %v7742_v30 = vpack.i.bf16 %v9128_v4, %v9141_v15 }
 0x611   : > { %1469 = vadd.xlane.f32.xlu1 %v1468_v41  ;;  %v1455_v41 = vpop.xlane.xlu2 %1454 }
 0x613   : > { %7035 = vmatpush.xpose.msk.msra.mxu2 %vm747_vm1, %v13172_v12 }
 0x614   : > { %v1449_v10 = vpop.xlane.xlu0 %1448 }
 0x615   : > { %7964 = vrcp.f32 %v1449_v10 }
 0x616   : > { %7966 = vpow2.f32 %v1378_v26 }
 0x617   : > { %7036 = vmatpush.xpose.msk.msra.mxu2 %vm747_vm1, %v13173_v35 }
 0x61b   : > { %v7965_v52 = vpop.eup %7964 }
 0x61c   : > { %v10282_v18 = vpop.eup %7966  ;;  %v1533_v7 = vmul.f32 %v7965_v52, %v10177_v37  ;;  %v1318_v52 = vsub.f32 %v10035_v17, %v10166_v60  ;;  %v13179_v60 = vld [vmem:[#allocation110_spill] sm:$0xff] }
 0x61d   : > { %1466 = vadd.xlane.f32.xlu0 %v1465_v23  ;;  %v1471_v25 = vsel %vm525_vm0, %v10282_v18, 0.0 }
 0x61e   : > { %6998 = vmatmul.msk.f32.gmra.mxu2 %vm525_vm0, %v1533_v7 }
 0x620   : > { %1472 = vadd.xlane.f32.xlu2 %v1471_v25  ;;  %v1380_v25 = vmul.f32 1.442695, %v1318_v52  ;;  %v13184_v52 = vld [vmem:[#allocation86_spill] sm:$0xff] }
 0x627   : > { %v10305_v7 = vpop.permute.xlu0 %4020 }
 0x628   : > { %13176 = vst [vmem:[#allocation66_spill] sm:$0xff] %v10305_v7 }
 0x62a   : > { %7718 = vrot.lane.b32.xlu1 %v7687_v40, %s8600_s9  ;;  %v1319_v40 = vsub.f32 %v10095_v34, %v10189_v59  ;;  %v13178_v59 = vld [vmem:[#allocation26_spill] sm:$0xff] }
 0x62c   : > { %v1382_v35 = vmul.f32 1.442695, %v1319_v40 }
 0x631   : > { %7703 = vrot.lane.b32.xlu0 %v13175_v14, %s8600_s9  ;;  %v10308_v14 = vpop.permute.xlu2 %7693 }
 0x632   : > { %13177 = vst [vmem:[#allocation88_spill] sm:$0xff] %v10308_v14  ;;  %v446_v14 = vld [vmem:[#allocation8 + $0x1a8] sm:$0xff] }
 0x638   : > { %7743 = vrot.lane.b32.xlu2 %v7742_v30, %s8599_s28 }
 0x639   : > { %v1452_v37 = vpop.xlane.xlu1 %1451  ;;  %v10320_v30 = vpop.permute.xlu2 %7698 }
 0x63a   : > { %7968 = vrcp.f32 %v1452_v37  ;;  %13180 = vst [vmem:[#allocation70_spill] sm:$0xff] %v10320_v30  ;;  %v13247_v30 = vld [vmem:[#allocation58_spill] sm:$0xff] }
 0x63b   : > { %7970 = vrcp.f32 %v1455_v41  ;;  %v13181_v41 = vld [vmem:[#allocation114_spill] sm:$0xff] }
 0x63c   : > { %7972 = vpow2.f32 %v1382_v35  ;;  %v13183_v35 = vld [vmem:[#allocation113_spill] sm:$0xff] }
 0x63d   : > { %7974 = vpow2.f32 %v1380_v25 }
 0x640   : > { %v7969_v26 = vpop.eup %7968 }
 0x641   : > { %v1534_v12 = vmul.f32 %v7969_v26, %v10210_v1  ;;  %v7971_v10 = vpop.eup %7970  ;;  %v1461_v37 = vpop.xlane.xlu1 %1460 }
 0x642   : > { %v1535_v23 = vmul.f32 %v7971_v10, %v10168_v53  ;;  %v10310_v1 = vpop.eup %7972  ;;  %v13182_v10 = vld [vmem:[#allocation32_spill] sm:$0xff] }
 0x643   : > { %6999 = vmatmul.msk.f32.gmra.mxu2 %vm525_vm0, %v1534_v12  ;;  %v1477_v17 = vsel %vm525_vm0, %v10310_v1, 0.0  ;;  %v10318_v53 = vpop.eup %7974 }
 0x644   : > { %v1474_v12 = vsel %vm525_vm0, %v10318_v53, 0.0 }
 0x64b   : > { %7000 = vmatmul.msk.f32.gmra.mxu2 %vm525_vm0, %v1535_v23 }
 0x652   : > { %v1458_v34 = vpop.xlane.xlu0 %1457  ;;  %v1464_v23 = vpop.xlane.xlu2 %1463 }
 0x653   : > { %7013 = vmatmul.msk.f32.vlgmr.msrb.gmra.mxu2 %vm747_vm1, %v13178_v59  ;;  %7976 = vrcp.f32 %v1458_v34  ;;  %v13185_v34 = vld [vmem:[#allocation103_spill] sm:$0xff]  ;;  %v13186_v59 = vld [vmem:[#allocation100_spill] sm:$0xff] }
 0x654   : > { %7057 = vmatpush.xpose.msk.msrb.mxu2 %vm747_vm1, %v13179_v60  ;;  %1478 = vadd.xlane.f32.xlu1 %v1477_v17  ;;  %7978 = vrcp.f32 %v1461_v37  ;;  %v13187_v17 = vld [vmem:[#allocation36_spill] sm:$0xff]  ;;  %v13188_v37 = vld [vmem:[#allocation89_spill] sm:$0xff] }
 0x655   : > { %7980 = vrcp.f32 %v1464_v23  ;;  %v13191_v23 = vld [vmem:[#allocation57_spill] sm:$0xff] }
 0x658   : > { %7058 = vmatpush.xpose.msk.msrb.mxu2 %vm747_vm1, %v13181_v41 }
 0x659   : > { %v7977_v26 = vpop.eup %7976 }
 0x65a   : > { %v1536_v40 = vmul.f32 %v7977_v26, %v10229_v54  ;;  %v7979_v25 = vpop.eup %7978  ;;  %v7689_v26 = vpop.permute.xlu1 %7688 }
 0x65b   : > { %1475 = vadd.xlane.f32.xlu0 %v1474_v12  ;;  %7014 = vmatmul.msk.f32.gmra.mxu2 %vm747_vm1, %v13182_v10  ;;  %v1537_v54 = vmul.f32 %v7979_v25, %v10219_v32  ;;  %v7981_v12 = vpop.eup %7980  ;;  %v13189_v10 = vld [vmem:[#allocation79_spill] sm:$0xff]  ;;  %v7727_v25 = vpack.i.bf16 %v8973_v2, %v13191_v23 }
 0x65c   : > { %7059 = vmatpush.xpose.msk.msrb.mxu2 %vm747_vm1, %v13183_v35  ;;  %7001 = vmatmul.msk.f32.vlgmr.msra.gmra.mxu3 %vm525_vm0, %v1536_v40  ;;  %v7690_v35 = vunpack.i.l.bf16 %v7689_v26  ;;  %v1538_v32 = vmul.f32 %v7981_v12, %v10231_v6  ;;  %v13196_v12 = vld [vmem:[#allocation77_spill] sm:$0xff] }
 0x65d   : > { %7041 = vmatpush.xpose.msk.msra.mxu3 %vm747_vm1, %v13184_v52  ;;  %v13190_v52 = vld [vmem:[#allocation31_spill] sm:$0xff] }
 0x660   : > { %7060 = vmatpush.xpose.msk.msrb.mxu2 %vm747_vm1, %v13185_v34  ;;  %v7691_v34 = vunpack.i.h.bf16 %v7689_v26  ;;  %v7570_v26 = vunpack.i.l.bf16 %v13196_v12 }
 0x661   : > { %7042 = vmatpush.xpose.msk.msra.mxu3 %vm747_vm1, %v13186_v59  ;;  %v13192_v59 = vld [vmem:[#allocation29_spill] sm:$0xff] }
 0x663   : > { %7015 = vmatmul.msk.f32.gmra.mxu2 %vm747_vm1, %v13187_v17  ;;  %v13193_v17 = vld [vmem:[#allocation118_spill] sm:$0xff] }
 0x664   : > { %7002 = vmatmul.msk.f32.gmra.mxu3 %vm525_vm0, %v1537_v54  ;;  %v7712_v54 = vpack.i.bf16 %v13165_v29, %v13192_v59  ;;  %v7651_v6 = vunpack.i.h.bf16 %v13193_v17 }
 0x665   : > { %v7684_v60 = vpop.permute.xlu0 %7683  ;;  %7043 = vmatpush.xpose.msk.msra.mxu3 %vm747_vm1, %v13188_v37  ;;  %v13195_v37 = vld [vmem:[#allocation122_spill] sm:$0xff] }
 0x666   : > { %v7685_v41 = vunpack.i.l.bf16 %v7684_v60  ;;  %v7686_v40 = vunpack.i.h.bf16 %v7684_v60  ;;  %v13194_v60 = vld [vmem:[#allocation59_spill] sm:$0xff] }
 0x668   : > { %2844 = vmatpush.msrb.mxu0 %v7685_v41  ;;  %v7641_v41 = vunpack.i.h.bf16 %v13195_v37 }
 0x669   : > { %7044 = vmatpush.xpose.msk.msra.mxu3 %vm747_vm1, %v13189_v10  ;;  %v7571_v10 = vunpack.i.h.bf16 %v13196_v12  ;;  %v13204_v12 = vld [vmem:[#allocation71_spill] sm:$0xff] }
 0x66a   : > { %2845 = vmatpush.msrb.mxu0 %v7686_v40  ;;  %v13197_v40 = vld [vmem:[#allocation125_spill] sm:$0xff] }
 0x66b   : > { %7016 = vmatmul.msk.f32.gmra.mxu2 %vm747_vm1, %v13190_v52  ;;  %v13200_v52 = vld [vmem:[#allocation27_spill] sm:$0xff] }
 0x66c   : > { %2846 = vmatpush.msrb.mxu0 %v7690_v35  ;;  %7003 = vmatmul.msk.f32.gmra.mxu3 %vm525_vm0, %v1538_v32  ;;  %v13198_v35 = vld [vmem:[#allocation78_spill] sm:$0xff]  ;;  %v13199_v32 = vld [vmem:[#allocation55_spill] sm:$0xff] }
 0x66d   : > { %7728 = vrot.lane.b32.xlu1 %v7727_v25, %s8600_s9  ;;  %v7732_v25 = vpack.i.bf16 %v13200_v52, %v13199_v32 }
 0x66e   : > { %2847 = vmatpush.msrb.mxu0 %v7691_v34  ;;  %v13201_v34 = vld [vmem:[#allocation90_spill] sm:$0xff] }
 0x66f   : > { %7713 = vrot.lane.b32.xlu0 %v7712_v54, %s8600_s9 }
 0x673   : > { %7037 = vmatmul.msk.f32.vlgmr.msra.gmra.mxu2 %vm747_vm1, %v13194_v60 }
 0x674   : > { %2950 = vmatpush.msra.mxu2 %v7651_v6  ;;  %v13202_v6 = vld [vmem:[#allocation37_spill] sm:$0xff] }
 0x676   : > { %2951 = vmatpush.msra.mxu2 %v7641_v41  ;;  %v10373_v41 = vpop.permute.xlu2 %7708 }
 0x677   : > { %7723 = vrot.lane.b32.xlu0 %v13197_v40, %s8600_s9  ;;  %13203 = vst [vmem:[#allocation54_spill] sm:$0xff] %v10373_v41  ;;  %v13205_v40 = vld [vmem:[#allocation109_spill] sm:$0xff] }
 0x678   : > { %2952 = vmatpush.msra.mxu2 %v7570_v26 }
 0x67a   : > { %2953 = vmatpush.msra.mxu2 %v7571_v10 }
 0x67b   : > { %7038 = vmatmul.msk.f32.gmra.mxu2 %vm747_vm1, %v13198_v35  ;;  %v13206_v35 = vld [vmem:[#allocation111_spill] sm:$0xff] }
 0x67f   : > { %7733 = vrot.lane.b32.xlu0 %v7732_v25, %s8600_s9  ;;  %v7635_v25 = vunpack.i.l.bf16 %v13206_v35 }
 0x683   : > { %7039 = vmatmul.msk.f32.gmra.mxu2 %vm747_vm1, %v13201_v34 }
 0x684   : > { %v1470_v54 = vpop.xlane.xlu1 %1469 }
 0x685   : > { %7982 = vrcp.f32 %v1470_v54  ;;  %v13207_v54 = vld [vmem:[#allocation99_spill] sm:$0xff] }
 0x687   : > { %7738 = vrot.lane.b32.xlu0 %v13202_v6, %s8600_s9  ;;  %v13208_v6 = vld [vmem:[#allocation112_spill] sm:$0xff] }
 0x68b   : > { %v7983_v60 = vpop.eup %7982  ;;  %7040 = vmatmul.msk.f32.gmra.mxu2 %vm747_vm1, %v13204_v12  ;;  %v7636_v12 = vunpack.i.h.bf16 %v13206_v35 }
 0x68c   : > { %v1540_v26 = vmul.f32 %v7983_v60, %v10268_v13  ;;  %v13209_v13 = vld [vmem:[#allocation108_spill] sm:$0xff] }
 0x68d   : > { %v7625_v60 = vunpack.i.l.bf16 %v13209_v13  ;;  %v7626_v33 = vunpack.i.h.bf16 %v13209_v13 }
 0x68e   : > { %7005 = vmatmul.msk.f32.vlgmr.msrb.gmra.mxu1 %vm525_vm0, %v1540_v26  ;;  %v10388_v26 = vpop.f32.mrf.mxu2 }
 0x68f   : > { %7049 = vmatpush.xpose.msk.msrb.mxu1 %vm747_vm1, %v13205_v40  ;;  %13210 = vst [vmem:[#allocation26_spill] sm:$0xff] %v10388_v26 }
 0x690   : > { %v1467_v10 = vpop.xlane.xlu0 %1466 }
 0x691   : > { %7984 = vrcp.f32 %v1467_v10  ;;  %v13211_v10 = vld [vmem:[#allocation93_spill] sm:$0xff] }
 0x693   : > { %v1473_v34 = vpop.xlane.xlu2 %1472  ;;  %7050 = vmatpush.xpose.msk.msrb.mxu1 %vm747_vm1, %v13207_v54  ;;  %7061 = vmatmul.msk.f32.vlgmr.msrb.gmra.mxu2 %vm747_vm1, %v13208_v6 }
 0x694   : > { %7986 = vrcp.f32 %v1473_v34  ;;  %3162 = vmatpush.msrb.mxu2 %v7635_v25  ;;  %v13212_v25 = vld [vmem:[#allocation105_spill] sm:$0xff]  ;;  %v13213_v34 = vld [vmem:[#allocation106_spill] sm:$0xff] }
 0x696   : > { %3163 = vmatpush.msrb.mxu2 %v7636_v12  ;;  %v10401_v13 = vpop.f32.mrf.mxu2 }
 0x697   : > { %v7985_v40 = vpop.eup %7984  ;;  %7051 = vmatpush.xpose.msk.msrb.mxu1 %vm747_vm1, %v13211_v10  ;;  %13214 = vst [vmem:[#allocation110_spill] sm:$0xff] %v10401_v13 }
 0x698   : > { %3164 = vmatpush.msrb.mxu2 %v7625_v60  ;;  %v1539_v54 = vmul.f32 %v7985_v40, %v10280_v19  ;;  %v13215_v19 = vld [vmem:[#allocation39_spill] sm:$0xff] }
 0x699   : > { %v13217_v40 = vld [vmem:[#allocation115_spill] sm:$0xff] }
 0x69a   : > { %v7987_v51 = vpop.eup %7986  ;;  %7004 = vmatmul.msk.f32.gmra.mxu3 %vm525_vm0, %v1539_v54  ;;  %3165 = vmatpush.msrb.mxu2 %v7626_v33  ;;  %v13216_v33 = vld [vmem:[#allocation129_spill] sm:$0xff]  ;;  %v13221_v54 = vld [vmem:[#allocation116_spill] sm:$0xff] }
 0x69b   : > { %v7744_v35 = vpop.permute.xlu2 %7743  ;;  %7052 = vmatpush.xpose.msk.msrb.mxu1 %vm747_vm1, %v13212_v25  ;;  %7062 = vmatmul.msk.f32.gmra.mxu2 %vm747_vm1, %v13213_v34  ;;  %v1541_v6 = vmul.f32 %v7987_v51, %v10282_v18  ;;  %v13219_v51 = vld [vmem:[#allocation130_spill] sm:$0xff]  ;;  %v13224_v34 = vld [vmem:[#allocation121_spill] sm:$0xff] }
 0x69c   : > { %v7745_v12 = vunpack.i.l.bf16 %v7744_v35  ;;  %v7746_v60 = vunpack.i.h.bf16 %v7744_v35  ;;  %v13220_v18 = vld [vmem:[#allocation38_spill] sm:$0xff]  ;;  %v13222_v35 = vld [vmem:[#allocation120_spill] sm:$0xff] }
 0x69d   : > { %7006 = vmatmul.msk.f32.gmra.mxu1 %vm525_vm0, %v1541_v6  ;;  %v13225_v6 = vld [vmem:[#allocation47_spill] sm:$0xff] }
 0x69e   : > { %3056 = vmatpush.msra.mxu0 %v7745_v12  ;;  %v10409_v10 = vpop.f32.mrf.mxu2 }
 0x69f   : > { %13218 = vst [vmem:[#allocation114_spill] sm:$0xff] %v10409_v10 }
 0x6a0   : > { %3057 = vmatpush.msra.mxu0 %v7746_v60  ;;  %v13227_v60 = vld [vmem:[#allocation62_spill] sm:$0xff] }
 0x6a2   : > { %7021 = vmatmul.msk.f32.vlgmr.msrb.gmra.mxu3 %vm747_vm1, %v13215_v19  ;;  %v10429_v19 = vpop.f32.mrf.mxu3 }
 0x6a3   : > { %7065 = vmatpush.xpose.msk.msrb.mxu3 %vm747_vm1, %v13216_v33  ;;  %7063 = vmatmul.msk.f32.gmra.mxu2 %vm747_vm1, %v13217_v40  ;;  %13228 = vst [vmem:[#allocation86_spill] sm:$0xff] %v10429_v19  ;;  %v13230_v40 = vld [vmem:[#allocation95_spill] sm:$0xff] }
 0x6a6   : > { %v10419_v25 = vpop.f32.mrf.mxu2 }
 0x6a7   : > { %7066 = vmatpush.xpose.msk.msrb.mxu3 %vm747_vm1, %v13219_v51  ;;  %13223 = vst [vmem:[#allocation32_spill] sm:$0xff] %v10419_v25  ;;  %v7595_v51 = vunpack.i.l.bf16 %v13230_v40  ;;  %v13237_v25 = vld [vmem:[#allocation84_spill] sm:$0xff] }
 0x6aa   : > { %7022 = vmatmul.msk.f32.gmra.mxu3 %vm747_vm1, %v13220_v18  ;;  %v13231_v18 = vld [vmem:[#allocation98_spill] sm:$0xff]  ;;  %v10443_v22 = vpop.f32.mrf.mxu3 }
 0x6ab   : > { %7067 = vmatpush.xpose.msk.msrb.mxu3 %vm747_vm1, %v13221_v54  ;;  %7064 = vmatmul.msk.f32.gmra.mxu2 %vm747_vm1, %v13222_v35  ;;  %v7596_v54 = vunpack.i.h.bf16 %v13230_v40  ;;  %v13232_v35 = vld [vmem:[#allocation61_spill] sm:$0xff]  ;;  %13235 = vst [vmem:[#allocation89_spill] sm:$0xff] %v10443_v22 }
 0x6ae   : > { %v10425_v12 = vpop.f32.mrf.mxu2 }
 0x6af   : > { %7068 = vmatpush.xpose.msk.msrb.mxu3 %vm747_vm1, %v13224_v34  ;;  %13226 = vst [vmem:[#allocation113_spill] sm:$0xff] %v10425_v12  ;;  %v7585_v34 = vunpack.i.l.bf16 %v13232_v35 }
 0x6b2   : > { %7023 = vmatmul.msk.f32.gmra.mxu3 %vm747_vm1, %v13225_v6  ;;  %v10438_v6 = vpop.permute.xlu0 %7703 }
 0x6b3   : > { %13233 = vst [vmem:[#allocation100_spill] sm:$0xff] %v10438_v6  ;;  %v13240_v6 = vld [vmem:[#allocation91_spill] sm:$0xff] }
 0x6b6   : > { %v10431_v33 = vpop.f32.mrf.mxu2 }
 0x6b7   : > { %13229 = vst [vmem:[#allocation103_spill] sm:$0xff] %v10431_v33  ;;  %v10445_v33 = vpop.permute.xlu1 %7718 }
 0x6b8   : > { %13236 = vst [vmem:[#allocation79_spill] sm:$0xff] %v10445_v33 }
 0x6ba   : > { %7024 = vmatmul.msk.f32.gmra.mxu3 %vm747_vm1, %v13227_v60  ;;  %v7586_v60 = vunpack.i.h.bf16 %v13232_v35  ;;  %v397_v35 = vld [vmem:[#allocation8 + $0x20] sm:$0xff] }
 0x6c2   : > { %7045 = vmatmul.msk.f32.vlgmr.msra.gmra.mxu3 %vm747_vm1, %v13231_v18  ;;  %v10451_v18 = vpop.f32.mrf.mxu3 }
 0x6c3   : > { %3003 = vmatpush.msra.mxu3 %v7595_v51  ;;  %13239 = vst [vmem:[#allocation118_spill] sm:$0xff] %v10451_v18 }
 0x6c5   : > { %3004 = vmatpush.msra.mxu3 %v7596_v54 }
 0x6c6   : > { %v10440_v12 = vpop.f32.mrf.mxu2 }
 0x6c7   : > { %13234 = vst [vmem:[#allocation36_spill] sm:$0xff] %v10440_v12  ;;  %3005 = vmatpush.msra.mxu3 %v7585_v34  ;;  %v1479_v54 = vpop.xlane.xlu1 %1478 }
 0x6c9   : > { %3006 = vmatpush.msra.mxu3 %v7586_v60 }
 0x6ca   : > { %7046 = vmatmul.msk.f32.gmra.mxu3 %vm747_vm1, %v13237_v25  ;;  %v10456_v55 = vpop.f32.mrf.mxu3 }
 0x6cb   : > { %13241 = vst [vmem:[#allocation59_spill] sm:$0xff] %v10456_v55  ;;  %v494_v55 = vld [vmem:[#allocation8 + $0x328] sm:$0xff] }
 0x6ce   : > { %v1476_v40 = vpop.xlane.xlu0 %1475  ;;  %v10449_v51 = vpop.f32.mrf.mxu2 }
 0x6cf   : > { %13238 = vst [vmem:[#allocation31_spill] sm:$0xff] %v10449_v51  ;;  %7988 = vrcp.f32 %v1476_v40  ;;  %v13242_v40 = vld [vmem:[#allocation102_spill] sm:$0xff]  ;;  %v398_v51 = vld [vmem:[#allocation8 + $0x28] sm:$0xff] }
 0x6d0   : > { %7990 = vrcp.f32 %v1479_v54 }
 0x6d2   : > { %7047 = vmatmul.msk.f32.gmra.mxu3 %vm747_vm1, %v13240_v6  ;;  %v10466_v26 = vpop.f32.mrf.mxu3 }
 0x6d3   : > { %13243 = vst [vmem:[#allocation122_spill] sm:$0xff] %v10466_v26 }
 0x6d5   : > { %v7989_v12 = vpop.eup %7988 }
 0x6d6   : > { %v2017_v34 = vpop.f32.mrf.mxu2  ;;  %v1542_v60 = vmul.f32 %v7989_v12, %v10318_v53  ;;  %v7991_v6 = vpop.eup %7990  ;;  %v13244_v12 = vld [vmem:[#allocation126_spill] sm:$0xff] }
 0x6d7   : > { %v10458_v10 = vadd.f32 %v2017_v34, %v397_v35  ;;  %v1543_v54 = vmul.f32 %v7991_v6, %v10310_v1  ;;  %v7660_v35 = vunpack.i.l.bf16 %v13244_v12  ;;  %v7650_v1 = vunpack.i.l.bf16 %v13193_v17  ;;  %v13246_v6 = vld [vmem:[#allocation141_spill] sm:$0xff] }
 0x6d8   : > { %7007 = vmatmul.msk.f32.gmra.mxu1 %vm525_vm0, %v1542_v60  ;;  %v13245_v60 = vld [vmem:[#allocation119_spill] sm:$0xff] }
 0x6d9   : > { %v2456_v25 = vsel %vm525_vm0, %v10458_v10, -inf }
 0x6da   : > { %7048 = vmatmul.msk.f32.gmra.mxu3 %vm747_vm1, %v13242_v40  ;;  %2457 = vmax.xlane.f32.xlu1 %v2456_v25  ;;  %v7661_v25 = vunpack.i.h.bf16 %v13244_v12  ;;  %v399_v40 = vld [vmem:[#allocation8 + $0x30] sm:$0xff]  ;;  %v13249_v12 = vld [vmem:[#allocation128_spill] sm:$0xff] }
 0x6de   : > { %v2020_v13 = vpop.f32.mrf.mxu2 }
 0x6df   : > { %v10468_v53 = vadd.f32 %v2020_v13, %v398_v51  ;;  %v7640_v51 = vunpack.i.l.bf16 %v13195_v37  ;;  %v13250_v37 = vld [vmem:[#allocation145_spill] sm:$0xff]  ;;  %v10649_v41 = vpop.permute.xlu1 %7728 }
 0x6e0   : > { %7008 = vmatmul.msk.f32.gmra.mxu1 %vm525_vm0, %v1543_v54  ;;  %v7665_v54 = vunpack.i.l.bf16 %v13246_v6  ;;  %13283 = vst [vmem:[#allocation62_spill] sm:$0xff] %v10649_v41 }
 0x6e1   : > { %v2459_v34 = vsel %vm525_vm0, %v10468_v53, -inf  ;;  %v10599_v19 = vpop.permute.xlu0 %7713 }
 0x6e2   : > { %7069 = vmatmul.msk.f32.vlgmr.msrb.gmra.mxu3 %vm747_vm1, %v13245_v60  ;;  %2460 = vmax.xlane.f32.xlu0 %v2459_v34  ;;  %v7666_v34 = vunpack.i.h.bf16 %v13246_v6  ;;  %v10485_v60 = vpop.f32.mrf.mxu3  ;;  %13279 = vst [vmem:[#allocation116_spill] sm:$0xff] %v10599_v19 }
 0x6e3   : > { %3215 = vmatpush.msrb.mxu3 %v7660_v35  ;;  %13248 = vst [vmem:[#allocation77_spill] sm:$0xff] %v10485_v60  ;;  %v7670_v35 = vunpack.i.l.bf16 %v13250_v37 }
 0x6e5   : > { %3216 = vmatpush.msrb.mxu3 %v7661_v25  ;;  %v400_v25 = vld [vmem:[#allocation8 + $0x38] sm:$0xff] }
 0x6e6   : > { %v2023_v13 = vpop.f32.mrf.mxu2 }
 0x6e7   : > { %3217 = vmatpush.msrb.mxu3 %v7650_v1  ;;  %v10480_v26 = vadd.f32 %v2023_v13, %v399_v40  ;;  %v7671_v40 = vunpack.i.h.bf16 %v13250_v37  ;;  %v13251_v13 = vld [vmem:[#allocation74_spill] sm:$0xff]  ;;  %v13254_v37 = vld [vmem:[#allocation51_spill] sm:$0xff] }
 0x6e8   : > { %7029 = vmatmul.msk.f32.vlgmr.msra.gmra.mxu1 %vm747_vm1, %v13247_v30 }
 0x6e9   : > { %2897 = vmatpush.msra.mxu1 %v7665_v54  ;;  %3218 = vmatpush.msrb.mxu3 %v7640_v51  ;;  %v2462_v17 = vsel %vm525_vm0, %v10480_v26, -inf  ;;  %v13253_v54 = vld [vmem:[#allocation124_spill] sm:$0xff]  ;;  %v10609_v7 = vpop.permute.xlu0 %7723 }
 0x6ea   : > { %7070 = vmatmul.msk.f32.gmra.mxu3 %vm747_vm1, %v13249_v12  ;;  %2463 = vmax.xlane.f32.xlu2 %v2462_v17  ;;  %v10497_v51 = vpop.f32.mrf.mxu3  ;;  %13280 = vst [vmem:[#allocation120_spill] sm:$0xff] %v10609_v7 }
 0x6eb   : > { %2898 = vmatpush.msra.mxu1 %v7666_v34  ;;  %13252 = vst [vmem:[#allocation125_spill] sm:$0xff] %v10497_v51  ;;  %v445_v34 = vld [vmem:[#allocation8 + $0x1a0] sm:$0xff] }
 0x6ed   : > { %2899 = vmatpush.msra.mxu1 %v7670_v35 }
 0x6ee   : > { %v2026_v30 = vpop.f32.mrf.mxu2 }
 0x6ef   : > { %2900 = vmatpush.msra.mxu1 %v7671_v40  ;;  %v10493_v1 = vadd.f32 %v2026_v30, %v400_v25  ;;  %v13256_v40 = vld [vmem:[#allocation132_spill] sm:$0xff] }
 0x6f0   : > { %7030 = vmatmul.msk.f32.gmra.mxu1 %vm747_vm1, %v13251_v13  ;;  %v13257_v30 = vld [vmem:[#allocation68_spill] sm:$0xff] }
 0x6f1   : > { %v2465_v6 = vsel %vm525_vm0, %v10493_v1, -inf }
 0x6f2   : > { %7071 = vmatmul.msk.f32.gmra.mxu3 %vm747_vm1, %v13253_v54  ;;  %2466 = vmax.xlane.f32.xlu1 %v2465_v6  ;;  %v10507_v35 = vpop.f32.mrf.mxu3  ;;  %v10517_v6 = vpop.f32.mrf.mxu1  ;;  %v13260_v54 = vld [vmem:[#allocation162_spill] sm:$0xff] }
 0x6f3   : > { %13255 = vst [vmem:[#allocation78_spill] sm:$0xff] %v10507_v35  ;;  %v7680_v35 = vunpack.i.l.bf16 %v9935_v46 }
 0x6f4   : > { %13259 = vst [vmem:[#allocation37_spill] sm:$0xff] %v10517_v6  ;;  %v448_v6 = vld [vmem:[#allocation8 + $0x1b8] sm:$0xff] }
 0x6f6   : > { %v2200_v17 = vpop.f32.mrf.mxu2 }
 0x6f7   : > { %v10503_v12 = vadd.f32 %v2200_v17, %v445_v34  ;;  %v7675_v34 = vunpack.i.l.bf16 %v13260_v54  ;;  %v13261_v17 = vld [vmem:[#allocation96_spill] sm:$0xff] }
 0x6f8   : > { %7031 = vmatmul.msk.f32.gmra.mxu1 %vm747_vm1, %v13254_v37  ;;  %v7676_v37 = vunpack.i.h.bf16 %v13260_v54  ;;  %v13267_v54 = vld [vmem:[#allocation97_spill] sm:$0xff] }
 0x6f9   : > { %v2492_v25 = vsel %vm525_vm0, %v10503_v12, -inf }
 0x6fa   : > { %7072 = vmatmul.msk.f32.gmra.mxu3 %vm747_vm1, %v13256_v40  ;;  %2493 = vmax.xlane.f32.xlu1 %v2492_v25  ;;  %v10515_v13 = vpop.f32.mrf.mxu3  ;;  %v10526_v25 = vpop.f32.mrf.mxu1  ;;  %v7681_v40 = vunpack.i.h.bf16 %v9935_v46 }
 0x6fb   : > { %13258 = vst [vmem:[#allocation90_spill] sm:$0xff] %v10515_v13 }
 0x6fc   : > { %13263 = vst [vmem:[#allocation109_spill] sm:$0xff] %v10526_v25 }
 0x6fe   : > { %v2203_v46 = vpop.f32.mrf.mxu2 }
 0x700   : > { %7032 = vmatmul.msk.f32.gmra.mxu1 %vm747_vm1, %v13257_v30  ;;  %v13264_v30 = vld [vmem:[#allocation107_spill] sm:$0xff] }
 0x702   : > { %v10524_v51 = vpop.f32.mrf.mxu3  ;;  %v10531_v13 = vpop.f32.mrf.mxu1 }
 0x703   : > { %13262 = vst [vmem:[#allocation71_spill] sm:$0xff] %v10524_v51 }
 0x704   : > { %13265 = vst [vmem:[#allocation111_spill] sm:$0xff] %v10531_v13  ;;  %v414_v13 = vld [vmem:[#allocation8 + $0xa8] sm:$0xff] }
 0x708   : > { %7053 = vmatmul.msk.f32.vlgmr.msrb.gmra.mxu1 %vm747_vm1, %v13261_v17 }
 0x709   : > { %3109 = vmatpush.msrb.mxu1 %v7675_v34 }
 0x70a   : > { %v10533_v17 = vpop.f32.mrf.mxu3  ;;  %v10537_v34 = vpop.f32.mrf.mxu1 }
 0x70b   : > { %3110 = vmatpush.msrb.mxu1 %v7676_v37  ;;  %13266 = vst [vmem:[#allocation99_spill] sm:$0xff] %v10533_v17  ;;  %v13270_v37 = vld [vmem:[#allocation101_spill] sm:$0xff] }
 0x70c   : > { %13268 = vst [vmem:[#allocation112_spill] sm:$0xff] %v10537_v34 }
 0x70d   : > { %3111 = vmatpush.msrb.mxu1 %v7680_v35  ;;  %v413_v35 = vld [vmem:[#allocation8 + $0xa0] sm:$0xff] }
 0x70f   : > { %3112 = vmatpush.msrb.mxu1 %v7681_v40 }
 0x710   : > { %7054 = vmatmul.msk.f32.gmra.mxu1 %vm747_vm1, %v13264_v30 }
 0x712   : > { %v10543_v40 = vpop.f32.mrf.mxu1 }
 0x713   : > { %13271 = vst [vmem:[#allocation93_spill] sm:$0xff] %v10543_v40 }
 0x718   : > { %7055 = vmatmul.msk.f32.gmra.mxu1 %vm747_vm1, %v13267_v54  ;;  %v2206_v54 = vpop.f32.mrf.mxu2 }
 0x71a   : > { %v10549_v34 = vpop.f32.mrf.mxu1 }
 0x71b   : > { %13272 = vst [vmem:[#allocation105_spill] sm:$0xff] %v10549_v34 }
 0x71d   : > { %v10539_v51 = vpop.f32.mrf.mxu3 }
 0x71e   : > { %13269 = vst [vmem:[#allocation108_spill] sm:$0xff] %v10539_v51  ;;  %v10551_v51 = vadd.f32 %v2203_v46, %v446_v14 }
 0x720   : > { %7056 = vmatmul.msk.f32.gmra.mxu1 %vm747_vm1, %v13270_v37  ;;  %v2209_v34 = vpop.f32.mrf.mxu2 }
 0x725   : > { %v2078_v60 = vpop.f32.mrf.mxu3 }
 0x726   : > { %v10545_v30 = vadd.f32 %v2078_v60, %v413_v35  ;;  %v2495_v60 = vsel %vm525_vm0, %v10551_v51, -inf  ;;  %v447_v35 = vld [vmem:[#allocation8 + $0x1b0] sm:$0xff] }
 0x727   : > { %v10561_v36 = vadd.f32 %v2206_v54, %v447_v35 }
 0x728   : > { %v2468_v17 = vsel %vm525_vm0, %v10545_v30, -inf }
 0x729   : > { %2469 = vmax.xlane.f32.xlu0 %v2468_v17  ;;  %v10559_v17 = vpop.f32.mrf.mxu1 }
 0x72a   : > { %13273 = vst [vmem:[#allocation106_spill] sm:$0xff] %v10559_v17  ;;  %v2383_v17 = vpop.f32.mrf.mxu2 }
 0x72d   : > { %v2081_v25 = vpop.f32.mrf.mxu3 }
 0x72e   : > { %v10553_v37 = vadd.f32 %v2081_v25, %v414_v13  ;;  %v2498_v25 = vsel %vm525_vm0, %v10561_v36, -inf }
 0x730   : > { %v2471_v40 = vsel %vm525_vm0, %v10553_v37, -inf }
 0x731   : > { %2472 = vmax.xlane.f32.xlu2 %v2471_v40  ;;  %2496 = vmax.xlane.f32.xlu0 %v2495_v60  ;;  %v416_v40 = vld [vmem:[#allocation8 + $0xb8] sm:$0xff]  ;;  %v10569_v60 = vadd.f32 %v2209_v34, %v448_v6  ;;  %v10571_v39 = vpop.f32.mrf.mxu1 }
 0x732   : > { %13274 = vst [vmem:[#allocation39_spill] sm:$0xff] %v10571_v39  ;;  %v2386_v18 = vpop.f32.mrf.mxu2 }
 0x735   : > { %v2084_v14 = vpop.f32.mrf.mxu3 }
 0x736   : > { %v10563_v46 = vadd.f32 %v2084_v14, %v415_v16  ;;  %v2501_v16 = vsel %vm525_vm0, %v10569_v60, -inf }
 0x738   : > { %v2474_v13 = vsel %vm525_vm0, %v10563_v46, -inf }
 0x739   : > { %2475 = vmax.xlane.f32.xlu1 %v2474_v13  ;;  %2499 = vmax.xlane.f32.xlu2 %v2498_v25  ;;  %v461_v13 = vld [vmem:[#allocation8 + $0x220] sm:$0xff]  ;;  %v10579_v25 = vadd.f32 %v2383_v17, %v493_v42  ;;  %v10581_v6 = vpop.f32.mrf.mxu1 }
 0x73a   : > { %13275 = vst [vmem:[#allocation129_spill] sm:$0xff] %v10581_v6  ;;  %v429_v6 = vld [vmem:[#allocation8 + $0x120] sm:$0xff] }
 0x73d   : > { %v2087_v54 = vpop.f32.mrf.mxu3 }
 0x73e   : > { %v10573_v35 = vadd.f32 %v2087_v54, %v416_v40  ;;  %v2528_v40 = vsel %vm525_vm0, %v10579_v25, -inf }
 0x740   : > { %v2477_v14 = vsel %vm525_vm0, %v10573_v35, -inf }
 0x741   : > { %2502 = vmax.xlane.f32.xlu1 %v2501_v16  ;;  %2478 = vmax.xlane.f32.xlu0 %v2477_v14  ;;  %v10589_v16 = vadd.f32 %v2386_v18, %v494_v55  ;;  %v10591_v14 = vpop.f32.mrf.mxu1  ;;  %v462_v18 = vld [vmem:[#allocation8 + $0x228] sm:$0xff] }
 0x742   : > { %13276 = vst [vmem:[#allocation115_spill] sm:$0xff] %v10591_v14 }
 0x743   : > { %v2531_v42 = vsel %vm525_vm0, %v10589_v16, -inf }
 0x745   : > { %v2261_v34 = vpop.f32.mrf.mxu3 }
 0x746   : > { %v10583_v39 = vadd.f32 %v2261_v34, %v461_v13 }
 0x748   : > { %v2504_v54 = vsel %vm525_vm0, %v10583_v39, -inf }
 0x749   : > { %2529 = vmax.xlane.f32.xlu1 %v2528_v40  ;;  %2505 = vmax.xlane.f32.xlu0 %v2504_v54  ;;  %v430_v54 = vld [vmem:[#allocation8 + $0x128] sm:$0xff] }
 0x74d   : > { %v2264_v34 = vpop.f32.mrf.mxu3  ;;  %v2458_v41 = vpop.xlane.xlu1 %2457 }
 0x74e   : > { %v10605_v14 = vadd.f32 %v2264_v34, %v462_v18 }
 0x751   : > { %2532 = vmax.xlane.f32.xlu0 %v2531_v42 }
 0x755   : > { %v10595_v17 = vpop.f32.mrf.mxu1  ;;  %v2267_v40 = vpop.f32.mrf.mxu3 }
 0x756   : > { %13277 = vst [vmem:[#allocation130_spill] sm:$0xff] %v10595_v17  ;;  %v10617_v18 = vadd.f32 %v2267_v40, %v463_v56  ;;  %v464_v56 = vld [vmem:[#allocation8 + $0x238] sm:$0xff] }
 0x757   : > { %v432_v40 = vld [vmem:[#allocation8 + $0x138] sm:$0xff] }
 0x758   : > { %v2510_v7 = vsel %vm525_vm0, %v10617_v18, -inf }
 0x75d   : > { %v10597_v13 = vpop.f32.mrf.mxu1 }
 0x75e   : > { %13278 = vst [vmem:[#allocation38_spill] sm:$0xff] %v10597_v13  ;;  %v2389_v13 = vpop.f32.mrf.mxu2 }
 0x765   : > { %v2139_v22 = vpop.f32.mrf.mxu1 }
 0x766   : > { %v10601_v11 = vadd.f32 %v2139_v22, %v429_v6  ;;  %v2507_v22 = vsel %vm525_vm0, %v10605_v14, -inf  ;;  %v495_v6 = vld [vmem:[#allocation8 + $0x330] sm:$0xff] }
 0x767   : > { %v10615_v34 = vadd.f32 %v2389_v13, %v495_v6  ;;  %v10627_v13 = vpop.permute.xlu0 %7733 }
 0x768   : > { %v2480_v55 = vsel %vm525_vm0, %v10601_v11, -inf  ;;  %13281 = vst [vmem:[#allocation121_spill] sm:$0xff] %v10627_v13 }
 0x769   : > { %2481 = vmax.xlane.f32.xlu2 %v2480_v55  ;;  %v2270_v55 = vpop.f32.mrf.mxu3  ;;  %v2534_v5 = vsel %vm525_vm0, %v10615_v34, -inf }
 0x76d   : > { %v2142_v42 = vpop.f32.mrf.mxu1 }
 0x76e   : > { %v10607_v17 = vadd.f32 %v2142_v42, %v430_v54 }
 0x770   : > { %v2483_v9 = vsel %vm525_vm0, %v10607_v17, -inf }
 0x771   : > { %2484 = vmax.xlane.f32.xlu1 %v2483_v9  ;;  %2508 = vmax.xlane.f32.xlu2 %v2507_v22  ;;  %v496_v9 = vld [vmem:[#allocation8 + $0x338] sm:$0xff]  ;;  %v2392_v22 = vpop.f32.mrf.mxu2  ;;  %v2444_v6 = vpop.f32.mrf.mxu3 }
 0x775   : > { %v2145_v54 = vpop.f32.mrf.mxu1 }
 0x776   : > { %v10619_v42 = vadd.f32 %v2145_v54, %v431_v57  ;;  %v10629_v57 = vadd.f32 %v2392_v22, %v496_v9  ;;  %v10631_v54 = vadd.f32 %v2270_v55, %v464_v56  ;;  %v477_v9 = vld [vmem:[#allocation8 + $0x2a0] sm:$0xff]  ;;  %v10641_v22 = vpop.permute.xlu0 %7738 }
 0x777   : > { %13282 = vst [vmem:[#allocation47_spill] sm:$0xff] %v10641_v22 }
 0x778   : > { %v2486_v31 = vsel %vm525_vm0, %v10619_v42, -inf  ;;  %v2537_v48 = vsel %vm525_vm0, %v10629_v57, -inf }
 0x779   : > { %2511 = vmax.xlane.f32.xlu1 %v2510_v7  ;;  %2535 = vmax.xlane.f32.xlu2 %v2534_v5  ;;  %v509_v5 = vld [vmem:[#allocation8 + $0x3a0] sm:$0xff]  ;;  %v2447_v56 = vpop.f32.mrf.mxu3 }
 0x77a   : > { %2487 = vmax.xlane.f32.xlu0 %v2486_v31  ;;  %v2513_v31 = vsel %vm525_vm0, %v10631_v54, -inf  ;;  %v10643_v55 = vadd.f32 %v2444_v6, %v509_v5 }
 0x77d   : > { %v2148_v33 = vpop.f32.mrf.mxu1 }
 0x77e   : > { %v10633_v19 = vadd.f32 %v2148_v33, %v432_v40  ;;  %v2461_v20 = vpop.xlane.xlu0 %2460 }
 0x780   : > { %v2489_v7 = vsel %vm525_vm0, %v10633_v19, -inf }
 0x781   : > { %2538 = vmax.xlane.f32.xlu1 %v2537_v48  ;;  %2490 = vmax.xlane.f32.xlu2 %v2489_v7  ;;  %v510_v48 = vld [vmem:[#allocation8 + $0x3a8] sm:$0xff]  ;;  %v2540_v7 = vsel %vm525_vm0, %v10643_v55, -inf }
 0x782   : > { %2514 = vmax.xlane.f32.xlu0 %v2513_v31  ;;  %v478_v31 = vld [vmem:[#allocation8 + $0x2a8] sm:$0xff]  ;;  %v10653_v22 = vadd.f32 %v2447_v56, %v510_v48  ;;  %v2464_v48 = vpop.xlane.xlu2 %2463 }
 0x785   : > { %v2322_v33 = vpop.f32.mrf.mxu1 }
 0x786   : > { %v10645_v40 = vadd.f32 %v2322_v33, %v477_v9  ;;  %v2553_v9 = vsub.f32 %v10468_v53, %v2461_v20  ;;  %v2450_v33 = vpop.f32.mrf.mxu3  ;;  %v2552_v20 = vsub.f32 %v10458_v10, %v2458_v41  ;;  %v2554_v53 = vsub.f32 %v10480_v26, %v2464_v48 }
 0x787   : > { %v10662_v56 = vadd.f32 %v2450_v33, %v511_v58  ;;  %v512_v58 = vld [vmem:[#allocation8 + $0x3b8] sm:$0xff] }
 0x788   : > { %v2516_v13 = vsel %vm525_vm0, %v10645_v40, -inf  ;;  %v2584_v33 = vmul.f32 1.442695, %v2552_v20 }
 0x789   : > { %2517 = vmax.xlane.f32.xlu2 %v2516_v13  ;;  %v2543_v13 = vsel %vm525_vm0, %v10653_v22, -inf  ;;  %v2546_v50 = vsel %vm525_vm0, %v10662_v56, -inf }
 0x78a   : > { %2541 = vmax.xlane.f32.xlu0 %v2540_v7  ;;  %v2586_v7 = vmul.f32 1.442695, %v2553_v9 }
 0x78c   : > { %7992 = vpow2.f32 %v2586_v7 }
 0x78d   : > { %v2325_v6 = vpop.f32.mrf.mxu1  ;;  %7994 = vpow2.f32 %v2584_v33 }
 0x78e   : > { %v10655_v5 = vadd.f32 %v2325_v6, %v478_v31  ;;  %v2453_v9 = vpop.f32.mrf.mxu3 }
 0x78f   : > { %v10674_v41 = vadd.f32 %v2453_v9, %v512_v58 }
 0x790   : > { %v2519_v61 = vsel %vm525_vm0, %v10655_v5, -inf }
 0x791   : > { %2520 = vmax.xlane.f32.xlu1 %v2519_v61  ;;  %2544 = vmax.xlane.f32.xlu2 %v2543_v13  ;;  %v2467_v13 = vpop.xlane.xlu1 %2466 }
 0x792   : > { %v10672_v3 = vpop.eup %7992  ;;  %v2555_v48 = vsub.f32 %v10493_v1, %v2467_v13 }
 0x793   : > { %v2651_v20 = vsel %vm525_vm0, %v10672_v3, 0.0  ;;  %v10686_v1 = vpop.eup %7994 }
 0x795   : > { %v2328_v31 = vpop.f32.mrf.mxu1 }
 0x796   : > { %v10664_v6 = vadd.f32 %v2328_v31, %v479_v47  ;;  %v2588_v47 = vmul.f32 1.442695, %v2554_v53 }
 0x798   : > { %v2522_v61 = vsel %vm525_vm0, %v10664_v6, -inf  ;;  %7996 = vpow2.f32 %v2588_v47 }
 0x799   : > { %2547 = vmax.xlane.f32.xlu1 %v2546_v50  ;;  %2523 = vmax.xlane.f32.xlu0 %v2522_v61  ;;  %v2494_v61 = vpop.xlane.xlu1 %2493 }
 0x79c   : > { %v2470_v31 = vpop.xlane.xlu0 %2469 }
 0x79d   : > { %v2556_v26 = vsub.f32 %v10545_v30, %v2470_v31  ;;  %v2331_v10 = vpop.f32.mrf.mxu1  ;;  %v2549_v30 = vsel %vm525_vm0, %v10674_v41, -inf }
 0x79e   : > { %v10677_v7 = vadd.f32 %v2331_v10, %v480_v63  ;;  %v2590_v63 = vmul.f32 1.442695, %v2555_v48  ;;  %v10690_v47 = vpop.eup %7996  ;;  %v2648_v48 = vsel %vm525_vm0, %v10686_v1, 0.0 }
 0x79f   : > { %v2592_v50 = vmul.f32 1.442695, %v2556_v26  ;;  %v2564_v26 = vsub.f32 %v10503_v12, %v2494_v61 }
 0x7a0   : > { %v2525_v53 = vsel %vm525_vm0, %v10677_v7, -inf }
 0x7a1   : > { %7998 = vpow2.f32 %v2592_v50  ;;  %2652 = vadd.xlane.f32.xlu1 %v2651_v20  ;;  %2526 = vmax.xlane.f32.xlu2 %v2525_v53 }
 0x7a2   : > { %2550 = vmax.xlane.f32.xlu0 %v2549_v30  ;;  %8000 = vpow2.f32 %v2590_v63 }
 0x7a4   : > { %v2473_v58 = vpop.xlane.xlu2 %2472  ;;  %v2497_v9 = vpop.xlane.xlu0 %2496 }
 0x7a5   : > { %v2557_v13 = vsub.f32 %v10553_v37, %v2473_v58  ;;  %v2565_v33 = vsub.f32 %v10551_v51, %v2497_v9  ;;  %v2654_v51 = vsel %vm525_vm0, %v10690_v47, 0.0  ;;  %v2608_v37 = vmul.f32 1.442695, %v2564_v26 }
 0x7a7   : > { %v10692_v31 = vpop.eup %7998  ;;  %v2594_v10 = vmul.f32 1.442695, %v2557_v13  ;;  %v2610_v50 = vmul.f32 1.442695, %v2565_v33 }
 0x7a8   : > { %v2660_v20 = vsel %vm525_vm0, %v10692_v31, 0.0  ;;  %v10701_v12 = vpop.eup %8000 }
 0x7a9   : > { %8002 = vpow2.f32 %v2594_v10  ;;  %2649 = vadd.xlane.f32.xlu2 %v2648_v48  ;;  %2661 = vadd.xlane.f32.xlu1 %v2660_v20  ;;  %v2657_v33 = vsel %vm525_vm0, %v10701_v12, 0.0 }
 0x7aa   : > { %8004 = vpow2.f32 %v2610_v50  ;;  %2655 = vadd.xlane.f32.xlu0 %v2654_v51 }
 0x7ab   : > { %8006 = vpow2.f32 %v2608_v37 }
 0x7ac   : > { %v2476_v53 = vpop.xlane.xlu1 %2475  ;;  %v2500_v30 = vpop.xlane.xlu2 %2499 }
 0x7ad   : > { %v2566_v63 = vsub.f32 %v10561_v36, %v2500_v30  ;;  %v2558_v58 = vsub.f32 %v10563_v46, %v2476_v53 }
 0x7af   : > { %v10704_v61 = vpop.eup %8002  ;;  %v2612_v9 = vmul.f32 1.442695, %v2566_v63  ;;  %v2596_v36 = vmul.f32 1.442695, %v2558_v58 }
 0x7b0   : > { %v10707_v13 = vpop.eup %8004  ;;  %v2663_v26 = vsel %vm525_vm0, %v10704_v61, 0.0 }
 0x7b1   : > { %2658 = vadd.xlane.f32.xlu2 %v2657_v33  ;;  %v2687_v10 = vsel %vm525_vm0, %v10707_v13, 0.0  ;;  %8008 = vpow2.f32 %v2612_v9  ;;  %v10715_v46 = vpop.eup %8006 }
 0x7b2   : > { %2664 = vadd.xlane.f32.xlu0 %v2663_v26  ;;  %2688 = vadd.xlane.f32.xlu1 %v2687_v10  ;;  %8010 = vpow2.f32 %v2596_v36  ;;  %v2684_v30 = vsel %vm525_vm0, %v10715_v46, 0.0 }
 0x7b4   : > { %v2503_v50 = vpop.xlane.xlu1 %2502  ;;  %v2479_v48 = vpop.xlane.xlu0 %2478 }
 0x7b5   : > { %v2559_v20 = vsub.f32 %v10573_v35, %v2479_v48  ;;  %v2567_v51 = vsub.f32 %v10569_v60, %v2503_v50 }
 0x7b7   : > { %v2598_v37 = vmul.f32 1.442695, %v2559_v20  ;;  %v10719_v53 = vpop.eup %8008  ;;  %v2614_v58 = vmul.f32 1.442695, %v2567_v51 }
 0x7b8   : > { %v2690_v63 = vsel %vm525_vm0, %v10719_v53, 0.0  ;;  %v10725_v26 = vpop.eup %8010 }
 0x7b9   : > { %2685 = vadd.xlane.f32.xlu2 %v2684_v30  ;;  %8012 = vpow2.f32 %v2598_v37  ;;  %v2666_v50 = vsel %vm525_vm0, %v10725_v26, 0.0 }
 0x7ba   : > { %2691 = vadd.xlane.f32.xlu0 %v2690_v63  ;;  %8014 = vpow2.f32 %v2614_v58 }
 0x7bc   : > { %v2530_v9 = vpop.xlane.xlu1 %2529  ;;  %v2506_v33 = vpop.xlane.xlu0 %2505 }
 0x7bd   : > { %v2568_v35 = vsub.f32 %v10583_v39, %v2506_v33  ;;  %v2576_v60 = vsub.f32 %v10579_v25, %v2530_v9 }
 0x7bf   : > { %v2616_v10 = vmul.f32 1.442695, %v2568_v35  ;;  %v10729_v36 = vpop.eup %8012  ;;  %v2632_v20 = vmul.f32 1.442695, %v2576_v60 }
 0x7c0   : > { %v2669_v48 = vsel %vm525_vm0, %v10729_v36, 0.0  ;;  %v10735_v37 = vpop.eup %8014 }
 0x7c1   : > { %2667 = vadd.xlane.f32.xlu2 %v2666_v50  ;;  %8016 = vpow2.f32 %v2616_v10  ;;  %2670 = vadd.xlane.f32.xlu1 %v2669_v48  ;;  %v2693_v63 = vsel %vm525_vm0, %v10735_v37, 0.0 }
 0x7c2   : > { %8018 = vpow2.f32 %v2632_v20 }
 0x7c4   : > { %v2533_v51 = vpop.xlane.xlu0 %2532 }
 0x7c5   : > { %v2577_v39 = vsub.f32 %v10589_v16, %v2533_v51 }
 0x7c7   : > { %v2634_v25 = vmul.f32 1.442695, %v2577_v39  ;;  %v10738_v30 = vpop.eup %8016 }
 0x7c8   : > { %13284 = vst [vmem:[#allocation95_spill] sm:$0xff] %v10738_v30  ;;  %v2696_v58 = vsel %vm525_vm0, %v10738_v30, 0.0  ;;  %v10744_v9 = vpop.eup %8018 }
 0x7c9   : > { %8020 = vpow2.f32 %v2634_v25  ;;  %2694 = vadd.xlane.f32.xlu2 %v2693_v63  ;;  %2697 = vadd.xlane.f32.xlu1 %v2696_v58  ;;  %v2720_v16 = vsel %vm525_vm0, %v10744_v9, 0.0 }
 0x7cf   : > { %v10746_v33 = vpop.eup %8020 }
 0x7d0   : > { %v2723_v35 = vsel %vm525_vm0, %v10746_v33, 0.0 }
 0x7d1   : > { %2721 = vadd.xlane.f32.xlu2 %v2720_v16  ;;  %2724 = vadd.xlane.f32.xlu1 %v2723_v35 }
 0x7dc   : > { %v2482_v60 = vpop.xlane.xlu2 %2481 }
 0x7dd   : > { %v2560_v10 = vsub.f32 %v10601_v11, %v2482_v60 }
 0x7df   : > { %v2600_v50 = vmul.f32 1.442695, %v2560_v10 }
 0x7e1   : > { %8022 = vpow2.f32 %v2600_v50 }
 0x7e4   : > { %v2485_v48 = vpop.xlane.xlu1 %2484  ;;  %v2509_v20 = vpop.xlane.xlu2 %2508 }
 0x7e5   : > { %v2561_v51 = vsub.f32 %v10607_v17, %v2485_v48  ;;  %v2569_v39 = vsub.f32 %v10605_v14, %v2509_v20 }
 0x7e7   : > { %v10755_v25 = vpop.eup %8022  ;;  %v2602_v63 = vmul.f32 1.442695, %v2561_v51  ;;  %v2618_v58 = vmul.f32 1.442695, %v2569_v39 }
 0x7e8   : > { %v2672_v30 = vsel %vm525_vm0, %v10755_v25, 0.0 }
 0x7e9   : > { %8024 = vpow2.f32 %v2602_v63  ;;  %2673 = vadd.xlane.f32.xlu0 %v2672_v30 }
 0x7ea   : > { %8026 = vpow2.f32 %v2618_v58 }
 0x7ec   : > { %v2512_v16 = vpop.xlane.xlu1 %2511  ;;  %v2536_v11 = vpop.xlane.xlu2 %2535 }
 0x7ed   : > { %v2570_v35 = vsub.f32 %v10617_v18, %v2512_v16  ;;  %v2578_v60 = vsub.f32 %v10615_v34, %v2536_v11  ;;  %v2488_v10 = vpop.xlane.xlu0 %2487 }
 0x7ee   : > { %v2562_v17 = vsub.f32 %v10619_v42, %v2488_v10 }
 0x7ef   : > { %v10762_v14 = vpop.eup %8024  ;;  %v2620_v50 = vmul.f32 1.442695, %v2570_v35  ;;  %v2636_v48 = vmul.f32 1.442695, %v2578_v60 }
 0x7f0   : > { %v10764_v20 = vpop.eup %8026  ;;  %v2604_v51 = vmul.f32 1.442695, %v2562_v17  ;;  %v2675_v30 = vsel %vm525_vm0, %v10762_v14, 0.0 }
 0x7f1   : > { %8028 = vpow2.f32 %v2620_v50  ;;  %2676 = vadd.xlane.f32.xlu2 %v2675_v30  ;;  %v2699_v18 = vsel %vm525_vm0, %v10764_v20, 0.0 }
 0x7f2   : > { %8030 = vpow2.f32 %v2636_v48  ;;  %2700 = vadd.xlane.f32.xlu0 %v2699_v18 }
 0x7f3   : > { %8032 = vpow2.f32 %v2604_v51 }
 0x7f4   : > { %v2539_v34 = vpop.xlane.xlu1 %2538  ;;  %v2491_v42 = vpop.xlane.xlu2 %2490 }
 0x7f5   : > { %v2579_v39 = vsub.f32 %v10629_v57, %v2539_v34  ;;  %v2563_v63 = vsub.f32 %v10633_v19, %v2491_v42  ;;  %v2515_v58 = vpop.xlane.xlu0 %2514 }
 0x7f6   : > { %v2571_v16 = vsub.f32 %v10631_v54, %v2515_v58 }
 0x7f7   : > { %v10773_v11 = vpop.eup %8028  ;;  %v2638_v35 = vmul.f32 1.442695, %v2579_v39  ;;  %v2606_v60 = vmul.f32 1.442695, %v2563_v63 }
 0x7f8   : > { %v10775_v10 = vpop.eup %8030  ;;  %v2622_v17 = vmul.f32 1.442695, %v2571_v16  ;;  %v2702_v50 = vsel %vm525_vm0, %v10773_v11, 0.0 }
 0x7f9   : > { %v10779_v48 = vpop.eup %8032  ;;  %8034 = vpow2.f32 %v2638_v35  ;;  %2703 = vadd.xlane.f32.xlu2 %v2702_v50  ;;  %v2726_v19 = vsel %vm525_vm0, %v10775_v10, 0.0 }
 0x7fa   : > { %8036 = vpow2.f32 %v2606_v60  ;;  %2727 = vadd.xlane.f32.xlu0 %v2726_v19  ;;  %v2678_v57 = vsel %vm525_vm0, %v10779_v48, 0.0 }
 0x7fb   : > { %8038 = vpow2.f32 %v2622_v17  ;;  %2679 = vadd.xlane.f32.xlu1 %v2678_v57 }
 0x7fc   : > { %v2518_v54 = vpop.xlane.xlu2 %2517 }
 0x7fd   : > { %v2572_v51 = vsub.f32 %v10645_v40, %v2518_v54  ;;  %v2542_v30 = vpop.xlane.xlu0 %2541 }
 0x7fe   : > { %v2580_v18 = vsub.f32 %v10643_v55, %v2542_v30 }
 0x7ff   : > { %v10787_v34 = vpop.eup %8034  ;;  %v2624_v42 = vmul.f32 1.442695, %v2572_v51 }
 0x800   : > { %v10789_v39 = vpop.eup %8036  ;;  %v2640_v63 = vmul.f32 1.442695, %v2580_v18  ;;  %v2729_v58 = vsel %vm525_vm0, %v10787_v34, 0.0 }
 0x801   : > { %v10793_v16 = vpop.eup %8038  ;;  %8040 = vpow2.f32 %v2624_v42  ;;  %2730 = vadd.xlane.f32.xlu2 %v2729_v58  ;;  %v2681_v35 = vsel %vm525_vm0, %v10789_v39, 0.0 }
 0x802   : > { %8042 = vpow2.f32 %v2640_v63  ;;  %2682 = vadd.xlane.f32.xlu0 %v2681_v35  ;;  %v2705_v55 = vsel %vm525_vm0, %v10793_v16, 0.0 }
 0x803   : > { %2706 = vadd.xlane.f32.xlu1 %v2705_v55 }
 0x804   : > { %v2521_v40 = vpop.xlane.xlu1 %2520  ;;  %v2545_v60 = vpop.xlane.xlu2 %2544 }
 0x805   : > { %v2573_v17 = vsub.f32 %v10655_v5, %v2521_v40  ;;  %v2581_v50 = vsub.f32 %v10653_v22, %v2545_v60 }
 0x807   : > { %v10801_v19 = vpop.eup %8040  ;;  %v2626_v57 = vmul.f32 1.442695, %v2573_v17  ;;  %v2642_v54 = vmul.f32 1.442695, %v2581_v50 }
 0x808   : > { %v10803_v51 = vpop.eup %8042  ;;  %v2708_v30 = vsel %vm525_vm0, %v10801_v19, 0.0 }
 0x809   : > { %8044 = vpow2.f32 %v2626_v57  ;;  %v2732_v18 = vsel %vm525_vm0, %v10803_v51, 0.0 }
 0x80a   : > { %8046 = vpow2.f32 %v2642_v54  ;;  %2709 = vadd.xlane.f32.xlu0 %v2708_v30 }
 0x80b   : > { %2733 = vadd.xlane.f32.xlu1 %v2732_v18 }
 0x80c   : > { %v2548_v42 = vpop.xlane.xlu1 %2547  ;;  %v2524_v5 = vpop.xlane.xlu0 %2523 }
 0x80d   : > { %v2574_v22 = vsub.f32 %v10664_v6, %v2524_v5  ;;  %v2582_v40 = vsub.f32 %v10662_v56, %v2548_v42  ;;  %v7757_v42 = vpack.i.bf16 %v9141_v15, %v9351_v38  ;;  %v497_v15 = vld [vmem:[#allocation8 + $0x340] sm:$0xff] }
 0x80f   : > { %v10810_v63 = vpop.eup %8044  ;;  %v2628_v58 = vmul.f32 1.442695, %v2574_v22  ;;  %v2644_v6 = vmul.f32 1.442695, %v2582_v40 }
 0x810   : > { %v10812_v35 = vpop.eup %8046  ;;  %v2711_v55 = vsel %vm525_vm0, %v10810_v63, 0.0 }
 0x811   : > { %2712 = vadd.xlane.f32.xlu2 %v2711_v55  ;;  %v2735_v60 = vsel %vm525_vm0, %v10812_v35, 0.0  ;;  %8048 = vpow2.f32 %v2628_v58 }
 0x812   : > { %8050 = vpow2.f32 %v2644_v6 }
 0x813   : > { %2736 = vadd.xlane.f32.xlu1 %v2735_v60 }
 0x814   : > { %v2653_v17 = vpop.xlane.xlu1 %2652  ;;  %v10819_v50 = vpop.xlane.xlu2 %2526 }
 0x815   : > { %v10821_v57 = vpop.xlane.xlu0 %2550 }
 0x817   : > { %v10823_v54 = vpop.eup %8048 }
 0x818   : > { %v2714_v30 = vsel %vm525_vm0, %v10823_v54, 0.0  ;;  %v10830_v22 = vpop.eup %8050 }
 0x819   : > { %v2738_v58 = vsel %vm525_vm0, %v10830_v22, 0.0 }
 0x81b   : > { %2715 = vadd.xlane.f32.xlu1 %v2714_v30 }
 0x81c   : > { %v2650_v56 = vpop.xlane.xlu2 %2649  ;;  %v2662_v18 = vpop.xlane.xlu1 %2661 }
 0x81d   : > { %8052 = vrcp.f32 %v2650_v56  ;;  %v2656_v5 = vpop.xlane.xlu0 %2655 }
 0x81e   : > { %8054 = vrcp.f32 %v2662_v18  ;;  %7758 = vrot.lane.b32.xlu0 %v7757_v42, %s8600_s9  ;;  %v13285_v42 = vld [vmem:[#allocation25_spill] sm:$0xff] }
 0x81f   : > { %8056 = vrcp.f32 %v2653_v17  ;;  %v7762_v17 = vpack.i.bf16 %v9128_v4, %v9325_v0 }
 0x823   : > { %v8053_v55 = vpop.eup %8052  ;;  %2739 = vadd.xlane.f32.xlu1 %v2738_v58  ;;  %v10850_v58 = vpack.i.bf16 %v9078_v44, %v9083_v45  ;;  %v499_v44 = vld [vmem:[#allocation8 + $0x350] sm:$0xff] }
 0x824   : > { %v8055_v40 = vpop.eup %8054  ;;  %v2776_v60 = vmul.f32 %v8053_v55, %v10686_v1  ;;  %v2659_v6 = vpop.xlane.xlu2 %2658 }
 0x825   : > { %v2780_v30 = vmul.f32 %v8055_v40, %v10692_v31  ;;  %v2665_v38 = vpop.xlane.xlu0 %2664  ;;  %v8057_v56 = vpop.eup %8056  ;;  %13286 = vst [vmem:[#allocation98_spill] sm:$0xff] %v10850_v58 }
 0x826   : > { %5291 = vrot.lane.b32.xlu0 %v8973_v2, %s8601_s13  ;;  %7073 = vmatmul.msk.f32.vlgmr.msrb.gmra.mxu0 %vm525_vm0, %v2776_v60  ;;  %8058 = vrcp.f32 %v2665_v38  ;;  %v2777_v31 = vmul.f32 %v8057_v56, %v10672_v3 }
 0x827   : > { %7077 = vmatmul.msk.f32.vlgmr.msra.gmra.mxu1 %vm525_vm0, %v2780_v30  ;;  %8060 = vrcp.f32 %v2656_v5  ;;  %v2689_v5 = vpop.xlane.xlu1 %2688 }
 0x829   : > { %7763 = vrot.lane.b32.xlu2 %v7762_v17, %s8600_s9  ;;  %v13287_v17 = vld [vmem:[#allocation65_spill] sm:$0xff] }
 0x82c   : > { %v2686_v1 = vpop.xlane.xlu2 %2685  ;;  %v8059_v18 = vpop.eup %8058 }
 0x82d   : > { %8062 = vrcp.f32 %v2686_v1  ;;  %v2781_v38 = vmul.f32 %v8059_v18, %v10704_v61  ;;  %v8061_v55 = vpop.eup %8060  ;;  %v2692_v61 = vpop.xlane.xlu0 %2691 }
 0x82e   : > { %5287 = vrot.lane.b32.xlu0 %v13285_v42, %s8601_s13  ;;  %7074 = vmatmul.msk.f32.gmra.mxu0 %vm525_vm0, %v2777_v31  ;;  %8064 = vrcp.f32 %v2659_v6  ;;  %v2778_v30 = vmul.f32 %v8061_v55, %v10690_v47  ;;  %v13288_v47 = vld [vmem:[#allocation56_spill] sm:$0xff]  ;;  %v13289_v55 = vld [vmem:[#allocation45_spill] sm:$0xff] }
 0x82f   : > { %7078 = vmatmul.msk.f32.gmra.mxu1 %vm525_vm0, %v2781_v38  ;;  %8066 = vrcp.f32 %v2689_v5 }
 0x831   : > { %7768 = vrot.lane.b32.xlu2 %v10850_v58, %s8600_s9 }
 0x833   : > { %v8063_v3 = vpop.eup %8062 }
 0x834   : > { %v2788_v40 = vmul.f32 %v8063_v3, %v10715_v46  ;;  %v2668_v60 = vpop.xlane.xlu2 %2667  ;;  %v8065_v56 = vpop.eup %8064 }
 0x835   : > { %8068 = vrcp.f32 %v2668_v60  ;;  %v2671_v6 = vpop.xlane.xlu1 %2670  ;;  %v8067_v46 = vpop.eup %8066  ;;  %v2779_v31 = vmul.f32 %v8065_v56, %v10701_v12  ;;  %v13290_v12 = vld [vmem:[#allocation85_spill] sm:$0xff] }
 0x836   : > { %5167 = vrot.lane.b32.xlu0 %v13165_v29, %s8601_s13  ;;  %7075 = vmatmul.msk.f32.gmra.mxu0 %vm525_vm0, %v2778_v30  ;;  %8070 = vrcp.f32 %v2692_v61  ;;  %v2789_v38 = vmul.f32 %v8067_v46, %v10707_v13  ;;  %v13291_v13 = vld [vmem:[#allocation42_spill] sm:$0xff]  ;;  %v13293_v61 = vld [vmem:[#allocation24_spill] sm:$0xff] }
 0x837   : > { %7085 = vmatmul.msk.f32.vlgmr.msra.gmra.mxu3 %vm525_vm0, %v2788_v40  ;;  %8072 = vrcp.f32 %v2671_v6  ;;  %v13292_v40 = vld [vmem:[#allocation104_spill] sm:$0xff] }
 0x838   : > { %7177 = vmatpush.xpose.msk.msra.mxu3 %vm747_vm1, %v13287_v17 }
 0x839   : > { %5169 = vrot.lane.b32.xlu2 %v13164_v8, %s8601_s13 }
 0x83b   : > { %v8069_v1 = vpop.eup %8068 }
 0x83c   : > { %7178 = vmatpush.xpose.msk.msra.mxu3 %vm747_vm1, %v13288_v47  ;;  %7748 = vrot.lane.b32.xlu1 %v10850_v58, %s8599_s28  ;;  %v2782_v18 = vmul.f32 %v8069_v1, %v10725_v26  ;;  %v8071_v5 = vpop.eup %8070  ;;  %v2695_v3 = vpop.xlane.xlu2 %2694 }
 0x83d   : > { %v8073_v26 = vpop.eup %8072  ;;  %8074 = vrcp.f32 %v2695_v3  ;;  %v2790_v30 = vmul.f32 %v8071_v5, %v10719_v53  ;;  %v13295_v53 = vld [vmem:[#allocation35_spill] sm:$0xff]  ;;  %v10907_v6 = vpop.xlane.xlu1 %2697  ;;  %v13297_v5 = vld [vmem:[#allocation22_spill] sm:$0xff] }
 0x83e   : > { %5281 = vrot.lane.b32.xlu0 %v13200_v52, %s8602_s16  ;;  %7076 = vmatmul.msk.f32.gmra.mxu0 %vm525_vm0, %v2779_v31  ;;  %v2783_v60 = vmul.f32 %v8073_v26, %v10729_v36  ;;  %v13294_v36 = vld [vmem:[#allocation23_spill] sm:$0xff]  ;;  %v13296_v31 = vld [vmem:[#allocation80_spill] sm:$0xff] }
 0x83f   : > { %7079 = vmatmul.msk.f32.gmra.mxu1 %vm525_vm0, %v2782_v18  ;;  %7086 = vmatmul.msk.f32.gmra.mxu3 %vm525_vm0, %v2789_v38  ;;  %v13298_v3 = vld [vmem:[#allocation131_spill] sm:$0xff] }
 0x840   : > { %7179 = vmatpush.xpose.msk.msra.mxu3 %vm747_vm1, %v13289_v55  ;;  %v13299_v26 = vld [vmem:[#allocation139_spill] sm:$0xff] }
 0x841   : > { %7773 = vrot.lane.b32.xlu2 %v13290_v12, %s8600_s9  ;;  %v13404_v12 = vld [vmem:[#allocation93_spill] sm:$0xff] }
 0x843   : > { %v8075_v17 = vpop.eup %8074 }
 0x844   : > { %7180 = vmatpush.xpose.msk.msra.mxu3 %vm747_vm1, %v13291_v13  ;;  %7753 = vrot.lane.b32.xlu1 %v13292_v40, %s8600_s9  ;;  %v2791_v56 = vmul.f32 %v8075_v17, %v10735_v37  ;;  %v2722_v37 = vpop.xlane.xlu2 %2721  ;;  %v13300_v13 = vld [vmem:[#allocation60_spill] sm:$0xff] }
 0x845   : > { %v2725_v55 = vpop.xlane.xlu1 %2724 }
 0x846   : > { %5159 = vrot.lane.b32.xlu0 %v13165_v29, %s8602_s16 }
 0x847   : > { %7080 = vmatmul.msk.f32.gmra.mxu1 %vm525_vm0, %v2783_v60  ;;  %7087 = vmatmul.msk.f32.gmra.mxu3 %vm525_vm0, %v2790_v30 }
 0x849   : > { %5277 = vrot.lane.b32.xlu2 %v13293_v61, %s8602_s16 }
 0x84c   : > { %5289 = vrot.lane.b32.xlu1 %v13200_v52, %s8601_s13 }
 0x84e   : > { %5230 = vrot.lane.b32.xlu0 %v13294_v36, %s8601_s13 }
 0x84f   : > { %7088 = vmatmul.msk.f32.gmra.mxu3 %vm525_vm0, %v2791_v56  ;;  %v13301_v56 = vld [vmem:[#allocation135_spill] sm:$0xff] }
 0x851   : > { %5163 = vrot.lane.b32.xlu2 %v13161_v43, %s8601_s13 }
 0x854   : > { %5285 = vrot.lane.b32.xlu1 %v13293_v61, %s8601_s13 }
 0x856   : > { %5352 = vrot.lane.b32.xlu0 %v13295_v53, %s8601_s13  ;;  %v13428_v53 = vld [vmem:[#allocation129_spill] sm:$0xff] }
 0x859   : > { %5155 = vrot.lane.b32.xlu2 %v13161_v43, %s8602_s16 }
 0x85c   : > { %5165 = vrot.lane.b32.xlu1 %v13160_v27, %s8601_s13  ;;  %v2674_v46 = vpop.xlane.xlu0 %2673 }
 0x85d   : > { %8076 = vrcp.f32 %v2674_v46 }
 0x85e   : > { %5283 = vrot.lane.b32.xlu0 %v8973_v2, %s8602_s16  ;;  %v466_v2 = vld [vmem:[#allocation8 + $0x248] sm:$0xff] }
 0x861   : > { %5279 = vrot.lane.b32.xlu2 %v13285_v42, %s8602_s16 }
 0x863   : > { %v8077_v1 = vpop.eup %8076 }
 0x864   : > { %v2784_v47 = vmul.f32 %v8077_v1, %v10755_v25  ;;  %7778 = vrot.lane.b32.xlu1 %v13296_v31, %s8600_s9  ;;  %v2677_v18 = vpop.xlane.xlu2 %2676  ;;  %v13302_v1 = vld [vmem:[#allocation137_spill] sm:$0xff]  ;;  %s8516_s9 = scalar_lea.hbm %s12849_s6, 512 }
 0x865   : > { %8078 = vrcp.f32 %v2677_v18  ;;  %v10918_v38 = vpop.xlane.xlu0 %2700  ;;  %p8518_p12 = scmp.lt.s32.totalorder %s8516_s9, %s8512_s11 }
 0x866   : > { %5228 = vrot.lane.b32.xlu0 %v13297_v5, %s8601_s13  ;;  %7081 = vmatmul.msk.f32.vlgmr.msra.gmra.mxu2 %vm525_vm0, %v2784_v47 }
 0x867   : > { %7169 = vmatpush.xpose.msk.msra.mxu2 %vm747_vm1, %v13298_v3  ;;  %p8519_p13 = por %p8518_p12, %p8517_p10 }
 0x869   : > { %5157 = vrot.lane.b32.xlu2 %v13160_v27, %s8602_s16  ;;  %v419_v27 = vld [vmem:[#allocation8 + $0xd0] sm:$0xff]  ;;  %p8520_p0 = pnand %p8519_p13, %p8515_p8 }
 0x86b   : > { %v8079_v25 = vpop.eup %8078  ;;  %7170 = vmatpush.xpose.msk.msra.mxu2 %vm747_vm1, %v13299_v26  ;;  %v13303_v26 = vld [vmem:[#allocation33_spill] sm:$0xff] }
 0x86c   : > { %5472 = vrot.lane.b32.xlu1 %v13300_v13, %s8601_s13  ;;  %v2785_v60 = vmul.f32 %v8079_v25, %v10762_v14  ;;  %v10939_v46 = vpop.xlane.xlu2 %2703 }
 0x86d   : > { %v2728_v30 = vpop.xlane.xlu0 %2727 }
 0x86e   : > { %v2680_v17 = vpop.xlane.xlu1 %2679  ;;  %5161 = vrot.lane.b32.xlu0 %v13164_v8, %s8602_s16  ;;  %7082 = vmatmul.msk.f32.gmra.mxu2 %vm525_vm0, %v2785_v60  ;;  %v389_v60 = vld [vmem:[#allocation7] sm:$0xff]  ;;  %v484_v8 = vld [vmem:[#allocation8 + $0x2d8] sm:$0xff] }
 0x86f   : > { %8080 = vrcp.f32 %v2680_v17  ;;  %7171 = vmatpush.xpose.msk.msra.mxu2 %vm747_vm1, %v13301_v56  ;;  %3552 = vmatpush.msra.mxu1 %v389_v60 }
 0x871   : > { %5474 = vrot.lane.b32.xlu2 %v9206_v28, %s8601_s13  ;;  %v13436_v28 = vld [vmem:[#allocation38_spill] sm:$0xff] }
 0x873   : > { %7172 = vmatpush.xpose.msk.msra.mxu2 %vm747_vm1, %v13302_v1 }
 0x874   : > { %5470 = vrot.lane.b32.xlu1 %v13191_v23, %s8601_s13  ;;  %v2731_v25 = vpop.xlane.xlu2 %2730 }
 0x875   : > { %v8081_v14 = vpop.eup %8080  ;;  %v2683_v47 = vpop.xlane.xlu0 %2682 }
 0x876   : > { %v10945_v31 = vpop.xlane.xlu1 %2706  ;;  %8082 = vrcp.f32 %v2683_v47  ;;  %5348 = vrot.lane.b32.xlu0 %v13166_v24, %s8601_s13  ;;  %v2786_v18 = vmul.f32 %v8081_v14, %v10779_v48  ;;  %v13304_v48 = vld [vmem:[#allocation20_spill] sm:$0xff] }
 0x877   : > { %8084 = vrcp.f32 %v2722_v37 }
 0x878   : > { %7083 = vmatmul.msk.f32.gmra.mxu2 %vm525_vm0, %v2786_v18  ;;  %v13305_v18 = vld [vmem:[#allocation21_spill] sm:$0xff] }
 0x879   : > { %5468 = vrot.lane.b32.xlu2 %v13199_v32, %s8601_s13 }
 0x87c   : > { %v8083_v3 = vpop.eup %8082  ;;  %5350 = vrot.lane.b32.xlu1 %v13303_v26, %s8601_s13 }
 0x87d   : > { %v2710_v17 = vpop.xlane.xlu0 %2709  ;;  %v2787_v56 = vmul.f32 %v8083_v3, %v10789_v39  ;;  %v8085_v14 = vpop.eup %8084 }
 0x87e   : > { %v2734_v1 = vpop.xlane.xlu1 %2733  ;;  %8086 = vrcp.f32 %v2710_v17  ;;  %5224 = vrot.lane.b32.xlu0 %v13304_v48, %s8601_s13  ;;  %v2800_v39 = vmul.f32 %v8085_v14, %v10744_v9  ;;  %v13307_v17 = vld [vmem:[#allocation75_spill] sm:$0xff] }
 0x87f   : > { %8088 = vrcp.f32 %v2734_v1  ;;  %v13309_v1 = vld [vmem:[#allocation127_spill] sm:$0xff] }
 0x880   : > { %7084 = vmatmul.msk.f32.gmra.mxu2 %vm525_vm0, %v2787_v56  ;;  %8090 = vrcp.f32 %v2725_v55  ;;  %v13306_v55 = vld [vmem:[#allocation149_spill] sm:$0xff]  ;;  %v13308_v56 = vld [vmem:[#allocation152_spill] sm:$0xff] }
 0x884   : > { %v8087_v47 = vpop.eup %8086  ;;  %5226 = vrot.lane.b32.xlu1 %v13305_v18, %s8601_s13  ;;  %v2713_v58 = vpop.xlane.xlu2 %2712 }
 0x885   : > { %v8089_v37 = vpop.eup %8088  ;;  %v2796_v40 = vmul.f32 %v8087_v47, %v10801_v19  ;;  %8092 = vrcp.f32 %v2713_v58 }
 0x886   : > { %v2804_v3 = vmul.f32 %v8089_v37, %v10803_v51  ;;  %v2737_v60 = vpop.xlane.xlu1 %2736  ;;  %v8091_v19 = vpop.eup %8090 }
 0x887   : > { %8094 = vrcp.f32 %v2737_v60  ;;  %7093 = vmatmul.msk.f32.vlgmr.msrb.gmra.mxu1 %vm525_vm0, %v2796_v40  ;;  %v2801_v47 = vmul.f32 %v8091_v19, %v10746_v33 }
 0x888   : > { %7097 = vmatmul.msk.f32.vlgmr.msrb.gmra.mxu2 %vm525_vm0, %v2800_v39  ;;  %7101 = vmatmul.msk.f32.vlgmr.msrb.gmra.mxu3 %vm525_vm0, %v2804_v3  ;;  %8096 = vrcp.f32 %v2728_v30  ;;  %v2583_v39 = vsub.f32 %v10674_v41, %v10821_v57  ;;  %v13310_v30 = vld [vmem:[#allocation158_spill] sm:$0xff]  ;;  %v13311_v3 = vld [vmem:[#allocation133_spill] sm:$0xff] }
 0x889   : > { %7185 = vmatpush.xpose.msk.msrb.mxu2 %vm747_vm1, %v13306_v55  ;;  %7193 = vmatpush.xpose.msk.msrb.mxu3 %vm747_vm1, %v13307_v17  ;;  %v13312_v57 = vld [vmem:[#allocation157_spill] sm:$0xff]  ;;  %v13313_v55 = vld [vmem:[#allocation134_spill] sm:$0xff]  ;;  %v2575_v17 = vsub.f32 %v10677_v7, %v10819_v50 }
 0x88b   : > { %v8093_v58 = vpop.eup %8092 }
 0x88c   : > { %5460 = vrot.lane.b32.xlu1 %v13199_v32, %s8602_s16  ;;  %v10973_v9 = vpop.permute.xlu2 %7763  ;;  %v2797_v51 = vmul.f32 %v8093_v58, %v10810_v63  ;;  %v404_v32 = vld [vmem:[#allocation8 + $0x58] sm:$0xff] }
 0x88d   : > { %v8095_v40 = vpop.eup %8094  ;;  %7186 = vmatpush.xpose.msk.msrb.mxu2 %vm747_vm1, %v13308_v56  ;;  %7194 = vmatpush.xpose.msk.msrb.mxu3 %vm747_vm1, %v13309_v1 }
 0x88e   : > { %v2716_v14 = vpop.xlane.xlu1 %2715  ;;  %v2805_v37 = vmul.f32 %v8095_v40, %v10812_v35  ;;  %v8097_v33 = vpop.eup %8096  ;;  %v2646_v35 = vmul.f32 1.442695, %v2583_v39  ;;  %v2630_v40 = vmul.f32 1.442695, %v2575_v17 }
 0x88f   : > { %8098 = vrcp.f32 %v2716_v14  ;;  %7094 = vmatmul.msk.f32.gmra.mxu1 %vm525_vm0, %v2797_v51  ;;  %v2802_v51 = vmul.f32 %v8097_v33, %v10775_v10 }
 0x890   : > { %7098 = vmatmul.msk.f32.gmra.mxu2 %vm525_vm0, %v2801_v47  ;;  %7102 = vmatmul.msk.f32.gmra.mxu3 %vm525_vm0, %v2805_v37  ;;  %v10987_v63 = vpop.permute.xlu0 %7758  ;;  %8100 = vrcp.f32 %v2731_v25 }
 0x891   : > { %7187 = vmatpush.xpose.msk.msrb.mxu2 %vm747_vm1, %v13310_v30  ;;  %7195 = vmatpush.xpose.msk.msrb.mxu3 %vm747_vm1, %v13311_v3  ;;  %v13316_v30 = vld [vmem:[#allocation138_spill] sm:$0xff] }
 0x894   : > { %5346 = vrot.lane.b32.xlu1 %v13192_v59, %s8601_s13  ;;  %v10995_v60 = vpop.permute.xlu2 %7768 }
 0x895   : > { %v8099_v41 = vpop.eup %8098  ;;  %7188 = vmatpush.xpose.msk.msrb.mxu2 %vm747_vm1, %v13312_v57  ;;  %7196 = vmatpush.xpose.msk.msrb.mxu3 %vm747_vm1, %v13313_v55  ;;  %v390_v57 = vld [vmem:[#allocation7 + $0x8] sm:$0xff] }
 0x896   : > { %v2740_v19 = vpop.xlane.xlu1 %2739  ;;  %v2798_v58 = vmul.f32 %v8099_v41, %v10823_v54  ;;  %v8101_v56 = vpop.eup %8100 }
 0x897   : > { %8102 = vrcp.f32 %v2740_v19  ;;  %v2803_v50 = vmul.f32 %v8101_v56, %v10787_v34  ;;  %v13320_v19 = vld [vmem:[#allocation147_spill] sm:$0xff] }
 0x898   : > { %8104 = vpow2.f32 %v2646_v35  ;;  %7095 = vmatmul.msk.f32.gmra.mxu1 %vm525_vm0, %v2798_v58  ;;  %7099 = vmatmul.msk.f32.gmra.mxu2 %vm525_vm0, %v2802_v51  ;;  %v11007_v25 = vpop.permute.xlu0 %5291  ;;  %v13317_v35 = vld [vmem:[#allocation143_spill] sm:$0xff] }
 0x899   : > { %13314 = vst [vmem:[#allocation61_spill] sm:$0xff] %v11007_v25  ;;  %8106 = vpow2.f32 %v2630_v40  ;;  %v13322_v40 = vld [vmem:[#allocation154_spill] sm:$0xff] }
 0x89a   : > { %8108 = vrcp.f32 %v10907_v6  ;;  %v13318_v6 = vld [vmem:[#allocation95_spill] sm:$0xff] }
 0x89b   : > { %8110 = vrcp.f32 %v10918_v38 }
 0x89c   : > { %v5170_v1 = vpop.permute.xlu2 %5169  ;;  %8112 = vrcp.f32 %v10939_v46 }
 0x89d   : > { %v8103_v14 = vpop.eup %8102  ;;  %7297 = vmatpush.xpose.msk.msrb.mxu1 %vm747_vm1, %v5170_v1  ;;  %8114 = vrcp.f32 %v10945_v31 }
 0x89e   : > { %v11010_v7 = vpop.eup %8104  ;;  %v2806_v10 = vmul.f32 %v8103_v14, %v10830_v22  ;;  %v13326_v14 = vld [vmem:[#allocation160_spill] sm:$0xff] }
 0x89f   : > { %v2741_v47 = vsel %vm525_vm0, %v11010_v7, 0.0  ;;  %v11020_v37 = vpop.eup %8106 }
 0x8a0   : > { %7100 = vmatmul.msk.f32.gmra.mxu2 %vm525_vm0, %v2803_v50  ;;  %7103 = vmatmul.msk.f32.gmra.mxu3 %vm525_vm0, %v2806_v10  ;;  %v11016_v54 = vpop.permute.xlu0 %5287  ;;  %v2717_v39 = vsel %vm525_vm0, %v11020_v37, 0.0  ;;  %v8109_v3 = vpop.eup %8108  ;;  %v13327_v50 = vld [vmem:[#allocation173_spill] sm:$0xff] }
 0x8a1   : > { %13315 = vst [vmem:[#allocation84_spill] sm:$0xff] %v11016_v54  ;;  %v8111_v17 = vpop.eup %8110 }
 0x8a2   : > { %2742 = vadd.xlane.f32.xlu2 %v2741_v47  ;;  %v8113_v51 = vpop.eup %8112  ;;  %v13328_v47 = vld [vmem:[#allocation30_spill] sm:$0xff] }
 0x8a3   : > { %v2794_v46 = vmul.f32 %v8113_v51, %v10773_v11  ;;  %v8115_v56 = vpop.eup %8114  ;;  %v2849_v11 = vpop.f32.mrf.mxu0 }
 0x8a4   : > { %v11052_v38 = vpop.permute.xlu2 %7773  ;;  %v2795_v10 = vmul.f32 %v8115_v56, %v10793_v16  ;;  %v13331_v16 = vld [vmem:[#allocation175_spill] sm:$0xff] }
 0x8a8   : > { %7173 = vmatmul.msk.f32.vlgmr.msra.gmra.mxu2 %vm747_vm1, %v13316_v30  ;;  %2718 = vadd.xlane.f32.xlu0 %v2717_v39  ;;  %v5168_v34 = vpop.permute.xlu0 %5167  ;;  %v13329_v30 = vld [vmem:[#allocation164_spill] sm:$0xff] }
 0x8a9   : > { %7201 = vmatpush.xpose.msk.msra.mxu2 %vm747_vm1, %v9956_v21  ;;  %7298 = vmatpush.xpose.msk.msrb.mxu1 %vm747_vm1, %v5168_v34  ;;  %v2792_v21 = vmul.f32 %v8109_v3, %v13318_v6  ;;  %v13330_v34 = vld [vmem:[#allocation48_spill] sm:$0xff] }
 0x8ab   : > { %v2852_v3 = vpop.f32.mrf.mxu0 }
 0x8ac   : > { %v11065_v1 = vpop.permute.xlu2 %5277 }
 0x8ad   : > { %7202 = vmatpush.xpose.msk.msra.mxu2 %vm747_vm1, %v10018_v62  ;;  %v13319_v62 = vld [vmem:[#allocation34_spill] sm:$0xff]  ;;  %13325 = vst [vmem:[#allocation119_spill] sm:$0xff] %v11065_v1 }
 0x8ae   : > { %v7749_v22 = vpop.permute.xlu1 %7748 }
 0x8af   : > { %v7750_v33 = vunpack.i.l.bf16 %v7749_v22  ;;  %v7751_v41 = vunpack.i.h.bf16 %v7749_v22 }
 0x8b0   : > { %7174 = vmatmul.msk.f32.gmra.mxu2 %vm747_vm1, %v13317_v35  ;;  %v13333_v35 = vld [vmem:[#allocation167_spill] sm:$0xff] }
 0x8b1   : > { %7203 = vmatpush.xpose.msk.msra.mxu2 %vm747_vm1, %v10076_v49  ;;  %3058 = vmatpush.msra.mxu0 %v7750_v33  ;;  %v2793_v49 = vmul.f32 %v8111_v17, %v10764_v20 }
 0x8b3   : > { %3059 = vmatpush.msra.mxu0 %v7751_v41  ;;  %v13334_v41 = vld [vmem:[#allocation171_spill] sm:$0xff]  ;;  %v2855_v6 = vpop.f32.mrf.mxu0 }
 0x8b4   : > { %7089 = vmatmul.msk.f32.vlgmr.msra.gmra.mxu0 %vm525_vm0, %v2792_v21  ;;  %v5164_v22 = vpop.permute.xlu2 %5163 }
 0x8b5   : > { %7204 = vmatpush.xpose.msk.msra.mxu2 %vm747_vm1, %v13319_v62  ;;  %3343 = vmatpush.msrb.mxu0 %v390_v57  ;;  %v13335_v62 = vld [vmem:[#allocation54_spill] sm:$0xff] }
 0x8b6   : > { %v11041_v55 = vpop.permute.xlu1 %7753  ;;  %v7711_v17 = vunpack.i.h.bf16 %v13335_v62 }
 0x8b8   : > { %7175 = vmatmul.msk.f32.gmra.mxu2 %vm747_vm1, %v13320_v19  ;;  %v13336_v19 = vld [vmem:[#allocation53_spill] sm:$0xff] }
 0x8ba   : > { %5216 = vrot.lane.b32.xlu2 %v13304_v48, %s8602_s16  ;;  %v11060_v48 = vpop.permute.xlu0 %5281 }
 0x8bb   : > { %13323 = vst [vmem:[#allocation102_spill] sm:$0xff] %v11060_v48 }
 0x8bc   : > { %7090 = vmatmul.msk.f32.gmra.mxu0 %vm525_vm0, %v2793_v49  ;;  %5338 = vrot.lane.b32.xlu0 %v13192_v59, %s8602_s16  ;;  %v11096_v57 = vpop.permute.xlu2 %5155  ;;  %v13337_v49 = vld [vmem:[#allocation116_spill] sm:$0xff] }
 0x8bd   : > { %v7716_v51 = vunpack.i.h.bf16 %v13337_v49 }
 0x8be   : > { %v11054_v58 = vpop.permute.xlu1 %5289 }
 0x8bf   : > { %13321 = vst [vmem:[#allocation91_spill] sm:$0xff] %v11054_v58 }
 0x8c0   : > { %7176 = vmatmul.msk.f32.gmra.mxu2 %vm747_vm1, %v13322_v40 }
 0x8c2   : > { %v11073_v31 = vpop.permute.xlu0 %5159 }
 0x8c4   : > { %7091 = vmatmul.msk.f32.gmra.mxu0 %vm525_vm0, %v2794_v46  ;;  %v13338_v46 = vld [vmem:[#allocation79_spill] sm:$0xff] }
 0x8c5   : > { %v7720_v56 = vunpack.i.l.bf16 %v13338_v46 }
 0x8c6   : > { %v11063_v20 = vpop.permute.xlu1 %5285 }
 0x8c7   : > { %13324 = vst [vmem:[#allocation126_spill] sm:$0xff] %v11063_v20 }
 0x8c8   : > { %7189 = vmatmul.msk.f32.vlgmr.msrb.gmra.mxu2 %vm747_vm1, %v13326_v14  ;;  %v2858_v14 = vpop.f32.mrf.mxu0 }
 0x8c9   : > { %7217 = vmatpush.xpose.msk.msrb.mxu2 %vm747_vm1, %v13327_v50 }
 0x8ca   : > { %v11086_v33 = vpop.permute.xlu0 %5230 }
 0x8cb   : > { %13332 = vst [vmem:[#allocation141_spill] sm:$0xff] %v11086_v33 }
 0x8cc   : > { %7092 = vmatmul.msk.f32.gmra.mxu0 %vm525_vm0, %v2795_v10  ;;  %v7721_v10 = vunpack.i.h.bf16 %v13338_v46 }
 0x8cd   : > { %7218 = vmatpush.xpose.msk.msrb.mxu2 %vm747_vm1, %v13328_v47  ;;  %v11107_v47 = vpop.permute.xlu2 %5279 }
 0x8ce   : > { %v5166_v39 = vpop.permute.xlu1 %5165  ;;  %13340 = vst [vmem:[#allocation128_spill] sm:$0xff] %v11107_v47 }
 0x8cf   : > { %7299 = vmatpush.xpose.msk.msrb.mxu1 %vm747_vm1, %v5166_v39  ;;  %v13341_v39 = vld [vmem:[#allocation153_spill] sm:$0xff] }
 0x8d0   : > { %7190 = vmatmul.msk.f32.gmra.mxu2 %vm747_vm1, %v13329_v30 }
 0x8d1   : > { %7219 = vmatpush.xpose.msk.msrb.mxu2 %vm747_vm1, %v13330_v34 }
 0x8d2   : > { %v11093_v21 = vpop.permute.xlu0 %5352 }
 0x8d3   : > { %7300 = vmatpush.xpose.msk.msrb.mxu1 %vm747_vm1, %v5164_v22  ;;  %v13343_v22 = vld [vmem:[#allocation161_spill] sm:$0xff] }
 0x8d4   : > { %7105 = vmatmul.msk.f32.vlgmr.msrb.gmra.mxu0 %vm747_vm1, %v2849_v11  ;;  %v2902_v11 = vpop.f32.mrf.mxu1 }
 0x8d5   : > { %7220 = vmatpush.xpose.msk.msrb.mxu2 %vm747_vm1, %v13331_v16 }
 0x8d8   : > { %7191 = vmatmul.msk.f32.gmra.mxu2 %vm747_vm1, %v13333_v35 }
 0x8da   : > { %v11103_v50 = vpop.permute.xlu0 %5283 }
 0x8db   : > { %13339 = vst [vmem:[#allocation58_spill] sm:$0xff] %v11103_v50  ;;  %v13350_v50 = vld [vmem:[#allocation47_spill] sm:$0xff] }
 0x8dc   : > { %7106 = vmatmul.msk.f32.gmra.mxu0 %vm747_vm1, %v2852_v3  ;;  %v2905_v16 = vpop.f32.mrf.mxu1  ;;  %v11116_v3 = vpop.permute.xlu2 %5157  ;;  %v7740_v48 = vunpack.i.l.bf16 %v13350_v50 }
 0x8e0   : > { %7192 = vmatmul.msk.f32.gmra.mxu2 %vm747_vm1, %v13334_v41  ;;  %v11118_v41 = vpop.permute.xlu1 %7778 }
 0x8e2   : > { %v11112_v34 = vpop.permute.xlu0 %5228 }
 0x8e3   : > { %13342 = vst [vmem:[#allocation145_spill] sm:$0xff] %v11112_v34 }
 0x8e4   : > { %7107 = vmatmul.msk.f32.gmra.mxu0 %vm747_vm1, %v2855_v6 }
 0x8e8   : > { %7205 = vmatmul.msk.f32.vlgmr.msra.gmra.mxu2 %vm747_vm1, %v13336_v19  ;;  %v2908_v19 = vpop.f32.mrf.mxu1 }
 0x8e9   : > { %4526 = vmatpush.msra.mxu2 %v7711_v17  ;;  %v2955_v40 = vpop.f32.mrf.mxu2  ;;  %v13344_v17 = vld [vmem:[#allocation81_spill] sm:$0xff] }
 0x8ea   : > { %v11121_v6 = vpop.permute.xlu0 %5161 }
 0x8eb   : > { %4527 = vmatpush.msra.mxu2 %v7716_v51  ;;  %v11125_v51 = vpop.permute.xlu2 %5474 }
 0x8ec   : > { %7108 = vmatmul.msk.f32.gmra.mxu0 %vm747_vm1, %v2858_v14  ;;  %13345 = vst [vmem:[#allocation74_spill] sm:$0xff] %v11125_v51  ;;  %v13347_v14 = vld [vmem:[#allocation62_spill] sm:$0xff] }
 0x8ed   : > { %4528 = vmatpush.msra.mxu2 %v7720_v56  ;;  %v11128_v56 = vpop.permute.xlu1 %5472 }
 0x8ee   : > { %13346 = vst [vmem:[#allocation124_spill] sm:$0xff] %v11128_v56 }
 0x8ef   : > { %4529 = vmatpush.msra.mxu2 %v7721_v10  ;;  %v7731_v10 = vunpack.i.h.bf16 %v13347_v14 }
 0x8f0   : > { %7206 = vmatmul.msk.f32.gmra.mxu2 %vm747_vm1, %v13341_v39  ;;  %v13349_v39 = vld [vmem:[#allocation121_spill] sm:$0xff] }
 0x8f1   : > { %v2958_v30 = vpop.f32.mrf.mxu2 }
 0x8f3   : > { %v11139_v1 = vpop.permute.xlu2 %5468 }
 0x8f4   : > { %7109 = vmatmul.msk.f32.gmra.mxu0 %vm747_vm1, %v2902_v11  ;;  %v13348_v11 = vld [vmem:[#allocation64_spill] sm:$0xff]  ;;  %13351 = vst [vmem:[#allocation51_spill] sm:$0xff] %v11139_v1 }
 0x8f5   : > { %v11141_v56 = vpop.permute.xlu1 %5470 }
 0x8f6   : > { %13352 = vst [vmem:[#allocation132_spill] sm:$0xff] %v11141_v56  ;;  %v13356_v56 = vld [vmem:[#allocation82_spill] sm:$0xff] }
 0x8f8   : > { %7207 = vmatmul.msk.f32.gmra.mxu2 %vm747_vm1, %v13343_v22  ;;  %v7736_v22 = vunpack.i.h.bf16 %v13349_v39 }
 0x8fb   : > { %v2961_v35 = vpop.f32.mrf.mxu2 }
 0x8fc   : > { %7110 = vmatmul.msk.f32.gmra.mxu0 %vm747_vm1, %v2905_v16  ;;  %v5349_v16 = vpop.permute.xlu0 %5348 }
 0x900   : > { %7208 = vmatmul.msk.f32.gmra.mxu2 %vm747_vm1, %v13344_v17  ;;  %v2911_v17 = vpop.f32.mrf.mxu1 }
 0x903   : > { %v2964_v46 = vpop.f32.mrf.mxu2 }
 0x904   : > { %7111 = vmatmul.msk.f32.gmra.mxu0 %vm747_vm1, %v2908_v19  ;;  %v7741_v19 = vunpack.i.h.bf16 %v13350_v50  ;;  %v5351_v50 = vpop.permute.xlu1 %5350 }
 0x908   : > { %7221 = vmatmul.msk.f32.vlgmr.msrb.gmra.mxu2 %vm747_vm1, %v13348_v11  ;;  %v13353_v11 = vld [vmem:[#allocation67_spill] sm:$0xff] }
 0x909   : > { %4632 = vmatpush.msrb.mxu2 %v7731_v10  ;;  %v11145_v10 = vpop.permute.xlu0 %5224 }
 0x90a   : > { %13354 = vst [vmem:[#allocation68_spill] sm:$0xff] %v11145_v10  ;;  %v13410_v10 = vld [vmem:[#allocation39_spill] sm:$0xff] }
 0x90b   : > { %4633 = vmatpush.msrb.mxu2 %v7736_v22  ;;  %v11135_v47 = vpop.f32.mrf.mxu2 }
 0x90c   : > { %7112 = vmatmul.msk.f32.gmra.mxu0 %vm747_vm1, %v2911_v17  ;;  %v13355_v17 = vld [vmem:[#allocation66_spill] sm:$0xff]  ;;  %v11163_v43 = vpop.permute.xlu1 %5226 }
 0x90d   : > { %4634 = vmatpush.msrb.mxu2 %v7740_v48  ;;  %13357 = vst [vmem:[#allocation162_spill] sm:$0xff] %v11163_v43  ;;  %v13414_v43 = vld [vmem:[#allocation103_spill] sm:$0xff] }
 0x90f   : > { %4635 = vmatpush.msrb.mxu2 %v7741_v19 }
 0x910   : > { %7222 = vmatmul.msk.f32.gmra.mxu2 %vm747_vm1, %v13353_v11 }
 0x913   : > { %v11147_v61 = vpop.f32.mrf.mxu2 }
 0x914   : > { %7113 = vmatmul.msk.f32.gmra.mxu0 %vm747_vm1, %v2955_v40 }
 0x915   : > { %v2743_v22 = vpop.xlane.xlu2 %2742 }
 0x916   : > { %8116 = vrcp.f32 %v2743_v22 }
 0x918   : > { %7223 = vmatmul.msk.f32.gmra.mxu2 %vm747_vm1, %v13355_v17 }
 0x91b   : > { %v11152_v1 = vpop.f32.mrf.mxu2  ;;  %v2719_v48 = vpop.xlane.xlu0 %2718 }
 0x91c   : > { %v8117_v19 = vpop.eup %8116  ;;  %7114 = vmatmul.msk.f32.gmra.mxu0 %vm747_vm1, %v2958_v30  ;;  %8118 = vrcp.f32 %v2719_v48  ;;  %v13358_v30 = vld [vmem:[#allocation44_spill] sm:$0xff] }
 0x91d   : > { %v2807_v11 = vmul.f32 %v8117_v19, %v11010_v7  ;;  %v13359_v7 = vld [vmem:[#allocation146_spill] sm:$0xff]  ;;  %v401_v48 = vld [vmem:[#allocation8 + $0x40] sm:$0xff] }
 0x91f   : > { %7104 = vmatmul.msk.f32.gmra.mxu3 %vm525_vm0, %v2807_v11  ;;  %v13360_v11 = vld [vmem:[#allocation148_spill] sm:$0xff] }
 0x920   : > { %7224 = vmatmul.msk.f32.gmra.mxu2 %vm747_vm1, %v13356_v56 }
 0x922   : > { %v8119_v40 = vpop.eup %8118 }
 0x923   : > { %v11159_v22 = vpop.f32.mrf.mxu2  ;;  %v2799_v17 = vmul.f32 %v8119_v40, %v11020_v37  ;;  %v3008_v37 = vpop.f32.mrf.mxu3 }
 0x924   : > { %7115 = vmatmul.msk.f32.gmra.mxu0 %vm747_vm1, %v2961_v35  ;;  %v13361_v35 = vld [vmem:[#allocation86_spill] sm:$0xff] }
 0x925   : > { %7096 = vmatmul.msk.f32.gmra.mxu1 %vm525_vm0, %v2799_v17  ;;  %v11181_v17 = vpop.permute.xlu1 %5460 }
 0x926   : > { %13362 = vst [vmem:[#allocation96_spill] sm:$0xff] %v11181_v17  ;;  %v417_v17 = vld [vmem:[#allocation8 + $0xc0] sm:$0xff] }
 0x927   : > { %7181 = vmatmul.msk.f32.vlgmr.msra.gmra.mxu3 %vm747_vm1, %v13358_v30  ;;  %v13363_v30 = vld [vmem:[#allocation46_spill] sm:$0xff] }
 0x928   : > { %7209 = vmatpush.xpose.msk.msra.mxu3 %vm747_vm1, %v13359_v7  ;;  %v402_v7 = vld [vmem:[#allocation8 + $0x48] sm:$0xff] }
 0x92b   : > { %v3699_v19 = vpop.f32.mrf.mxu2 }
 0x92c   : > { %v11170_v56 = vadd.f32 %v3699_v19, %v401_v48  ;;  %7116 = vmatmul.msk.f32.gmra.mxu0 %vm747_vm1, %v2964_v46  ;;  %7210 = vmatpush.xpose.msk.msra.mxu3 %vm747_vm1, %v13360_v11  ;;  %v13364_v46 = vld [vmem:[#allocation150_spill] sm:$0xff]  ;;  %v13366_v11 = vld [vmem:[#allocation89_spill] sm:$0xff] }
 0x92d   : > { %7137 = vmatmul.msk.f32.vlgmr.msra.gmra.mxu1 %vm747_vm1, %v13361_v35 }
 0x92e   : > { %7321 = vmatpush.xpose.msk.msra.mxu1 %vm747_vm1, %v11093_v21  ;;  %v4138_v40 = vsel %vm525_vm0, %v11170_v56, -inf  ;;  %v13365_v21 = vld [vmem:[#allocation156_spill] sm:$0xff] }
 0x92f   : > { %4139 = vmax.xlane.f32.xlu1 %v4138_v40  ;;  %7182 = vmatmul.msk.f32.gmra.mxu3 %vm747_vm1, %v13363_v30  ;;  %v3011_v40 = vpop.f32.mrf.mxu3  ;;  %v13367_v30 = vld [vmem:[#allocation50_spill] sm:$0xff] }
 0x930   : > { %7211 = vmatpush.xpose.msk.msra.mxu3 %vm747_vm1, %v13364_v46  ;;  %v13369_v46 = vld [vmem:[#allocation136_spill] sm:$0xff] }
 0x932   : > { %7322 = vmatpush.xpose.msk.msra.mxu1 %vm747_vm1, %v5351_v50  ;;  %v5347_v50 = vpop.permute.xlu1 %5346 }
 0x933   : > { %v3702_v48 = vpop.f32.mrf.mxu2 }
 0x934   : > { %v11188_v19 = vadd.f32 %v3702_v48, %v402_v7  ;;  %7117 = vmatmul.msk.f32.gmra.mxu0 %vm747_vm1, %v3008_v37  ;;  %7212 = vmatpush.xpose.msk.msra.mxu3 %vm747_vm1, %v13365_v21  ;;  %v13368_v37 = vld [vmem:[#allocation118_spill] sm:$0xff]  ;;  %v13370_v7 = vld [vmem:[#allocation59_spill] sm:$0xff]  ;;  %v13371_v48 = vld [vmem:[#allocation140_spill] sm:$0xff] }
 0x935   : > { %7138 = vmatmul.msk.f32.gmra.mxu1 %vm747_vm1, %v13366_v11  ;;  %v13372_v21 = vld [vmem:[#allocation165_spill] sm:$0xff] }
 0x936   : > { %7323 = vmatpush.xpose.msk.msra.mxu1 %vm747_vm1, %v5349_v16  ;;  %v4141_v35 = vsel %vm525_vm0, %v11188_v19, -inf }
 0x937   : > { %4142 = vmax.xlane.f32.xlu1 %v4141_v35  ;;  %7183 = vmatmul.msk.f32.gmra.mxu3 %vm747_vm1, %v13367_v30  ;;  %v3014_v16 = vpop.f32.mrf.mxu3  ;;  %v13373_v35 = vld [vmem:[#allocation168_spill] sm:$0xff]  ;;  %v13374_v30 = vld [vmem:[#allocation37_spill] sm:$0xff] }
 0x93a   : > { %7324 = vmatpush.xpose.msk.msra.mxu1 %vm747_vm1, %v5347_v50  ;;  %v13375_v50 = vld [vmem:[#allocation142_spill] sm:$0xff] }
 0x93c   : > { %7118 = vmatmul.msk.f32.gmra.mxu0 %vm747_vm1, %v3011_v40  ;;  %v3061_v40 = vpop.f32.mrf.mxu0 }
 0x93d   : > { %7139 = vmatmul.msk.f32.gmra.mxu1 %vm747_vm1, %v13368_v37  ;;  %v13376_v37 = vld [vmem:[#allocation169_spill] sm:$0xff] }
 0x93f   : > { %7184 = vmatmul.msk.f32.gmra.mxu3 %vm747_vm1, %v13369_v46  ;;  %v3017_v11 = vpop.f32.mrf.mxu3  ;;  %v13377_v46 = vld [vmem:[#allocation172_spill] sm:$0xff] }
 0x944   : > { %7119 = vmatmul.msk.f32.gmra.mxu0 %vm747_vm1, %v3014_v16  ;;  %v13378_v16 = vld [vmem:[#allocation109_spill] sm:$0xff] }
 0x945   : > { %7140 = vmatmul.msk.f32.gmra.mxu1 %vm747_vm1, %v13370_v7  ;;  %v3064_v7 = vpop.f32.mrf.mxu0 }
 0x947   : > { %7197 = vmatmul.msk.f32.vlgmr.msrb.gmra.mxu3 %vm747_vm1, %v13371_v48  ;;  %v13379_v48 = vld [vmem:[#allocation144_spill] sm:$0xff] }
 0x948   : > { %7225 = vmatpush.xpose.msk.msrb.mxu3 %vm747_vm1, %v13372_v21  ;;  %v13380_v21 = vld [vmem:[#allocation111_spill] sm:$0xff] }
 0x94c   : > { %7120 = vmatmul.msk.f32.gmra.mxu0 %vm747_vm1, %v3017_v11  ;;  %7226 = vmatpush.xpose.msk.msrb.mxu3 %vm747_vm1, %v13373_v35  ;;  %v13381_v11 = vld [vmem:[#allocation151_spill] sm:$0xff] }
 0x94d   : > { %7141 = vmatmul.msk.f32.gmra.mxu1 %vm747_vm1, %v13374_v30  ;;  %v3067_v35 = vpop.f32.mrf.mxu0  ;;  %v13383_v30 = vld [vmem:[#allocation88_spill] sm:$0xff] }
 0x94f   : > { %7198 = vmatmul.msk.f32.gmra.mxu3 %vm747_vm1, %v13375_v50  ;;  %v7695_v50 = vunpack.i.l.bf16 %v13383_v30 }
 0x950   : > { %7227 = vmatpush.xpose.msk.msrb.mxu3 %vm747_vm1, %v13376_v37  ;;  %v13384_v37 = vld [vmem:[#allocation159_spill] sm:$0xff] }
 0x954   : > { %7121 = vmatmul.msk.f32.gmra.mxu0 %vm747_vm1, %v3061_v40  ;;  %7228 = vmatpush.xpose.msk.msrb.mxu3 %vm747_vm1, %v13377_v46  ;;  %v13382_v40 = vld [vmem:[#allocation112_spill] sm:$0xff]  ;;  %v7696_v46 = vunpack.i.h.bf16 %v13383_v30  ;;  %v13388_v30 = vld [vmem:[#allocation110_spill] sm:$0xff] }
 0x955   : > { %7142 = vmatmul.msk.f32.gmra.mxu1 %vm747_vm1, %v13378_v16  ;;  %v13385_v16 = vld [vmem:[#allocation70_spill] sm:$0xff] }
 0x957   : > { %7199 = vmatmul.msk.f32.gmra.mxu3 %vm747_vm1, %v13379_v48  ;;  %v3070_v48 = vpop.f32.mrf.mxu0 }
 0x95c   : > { %7122 = vmatmul.msk.f32.gmra.mxu0 %vm747_vm1, %v3064_v7  ;;  %v7700_v7 = vunpack.i.l.bf16 %v13385_v16 }
 0x95d   : > { %7143 = vmatmul.msk.f32.gmra.mxu1 %vm747_vm1, %v13380_v21  ;;  %v7701_v21 = vunpack.i.h.bf16 %v13385_v16  ;;  %v13391_v16 = vld [vmem:[#allocation170_spill] sm:$0xff] }
 0x95f   : > { %7200 = vmatmul.msk.f32.gmra.mxu3 %vm747_vm1, %v13381_v11  ;;  %v13386_v11 = vld [vmem:[#allocation26_spill] sm:$0xff] }
 0x964   : > { %7123 = vmatmul.msk.f32.gmra.mxu0 %vm747_vm1, %v3067_v35  ;;  %v3114_v35 = vpop.f32.mrf.mxu1 }
 0x965   : > { %7144 = vmatmul.msk.f32.gmra.mxu1 %vm747_vm1, %v13382_v40  ;;  %v13387_v40 = vld [vmem:[#allocation163_spill] sm:$0xff] }
 0x967   : > { %7213 = vmatmul.msk.f32.vlgmr.msra.gmra.mxu3 %vm747_vm1, %v13384_v37 }
 0x968   : > { %4579 = vmatpush.msra.mxu3 %v7695_v50  ;;  %v13389_v50 = vld [vmem:[#allocation166_spill] sm:$0xff] }
 0x96a   : > { %4580 = vmatpush.msra.mxu3 %v7696_v46  ;;  %v13390_v46 = vld [vmem:[#allocation114_spill] sm:$0xff] }
 0x96c   : > { %7124 = vmatmul.msk.f32.gmra.mxu0 %vm747_vm1, %v3070_v48  ;;  %4581 = vmatpush.msra.mxu3 %v7700_v7  ;;  %v3117_v37 = vpop.f32.mrf.mxu1  ;;  %v13392_v48 = vld [vmem:[#allocation32_spill] sm:$0xff] }
 0x96d   : > { %7145 = vmatmul.msk.f32.gmra.mxu1 %vm747_vm1, %v13386_v11 }
 0x96e   : > { %4582 = vmatpush.msra.mxu3 %v7701_v21  ;;  %v13393_v21 = vld [vmem:[#allocation100_spill] sm:$0xff] }
 0x96f   : > { %7214 = vmatmul.msk.f32.gmra.mxu3 %vm747_vm1, %v13387_v40  ;;  %v7705_v11 = vunpack.i.l.bf16 %v13393_v21  ;;  %v7706_v40 = vunpack.i.h.bf16 %v13393_v21  ;;  %v13397_v21 = vld [vmem:[#allocation77_spill] sm:$0xff] }
 0x974   : > { %7125 = vmatmul.msk.f32.gmra.mxu0 %vm747_vm1, %v3114_v35  ;;  %v3120_v7 = vpop.f32.mrf.mxu1  ;;  %v13394_v35 = vld [vmem:[#allocation43_spill] sm:$0xff] }
 0x975   : > { %7146 = vmatmul.msk.f32.gmra.mxu1 %vm747_vm1, %v13388_v30  ;;  %v11265_v30 = vpop.f32.mrf.mxu3 }
 0x977   : > { %7215 = vmatmul.msk.f32.gmra.mxu3 %vm747_vm1, %v13389_v50  ;;  %v7710_v50 = vunpack.i.l.bf16 %v13335_v62 }
 0x97c   : > { %7126 = vmatmul.msk.f32.gmra.mxu0 %vm747_vm1, %v3117_v37  ;;  %v7715_v37 = vunpack.i.l.bf16 %v13337_v49  ;;  %v11281_v49 = vpop.f32.mrf.mxu0 }
 0x97d   : > { %7147 = vmatmul.msk.f32.gmra.mxu1 %vm747_vm1, %v13390_v46  ;;  %v13395_v46 = vld [vmem:[#allocation122_spill] sm:$0xff]  ;;  %13399 = vst [vmem:[#allocation107_spill] sm:$0xff] %v11281_v49 }
 0x97f   : > { %7216 = vmatmul.msk.f32.gmra.mxu3 %vm747_vm1, %v13391_v16  ;;  %v3705_v16 = vpop.f32.mrf.mxu2 }
 0x984   : > { %7127 = vmatmul.msk.f32.gmra.mxu0 %vm747_vm1, %v3120_v7  ;;  %v13396_v7 = vld [vmem:[#allocation117_spill] sm:$0xff] }
 0x985   : > { %7148 = vmatmul.msk.f32.gmra.mxu1 %vm747_vm1, %v13392_v48  ;;  %v11273_v48 = vpop.f32.mrf.mxu3 }
 0x987   : > { %7229 = vmatmul.msk.f32.vlgmr.msrb.gmra.mxu3 %vm747_vm1, %v13394_v35  ;;  %v3708_v62 = vpop.f32.mrf.mxu2 }
 0x988   : > { %4685 = vmatpush.msrb.mxu3 %v7705_v11  ;;  %v13398_v11 = vld [vmem:[#allocation155_spill] sm:$0xff] }
 0x98a   : > { %4686 = vmatpush.msrb.mxu3 %v7706_v40  ;;  %v13400_v40 = vld [vmem:[#allocation125_spill] sm:$0xff] }
 0x98c   : > { %4687 = vmatpush.msrb.mxu3 %v7710_v50  ;;  %v13401_v50 = vld [vmem:[#allocation174_spill] sm:$0xff] }
 0x98d   : > { %7149 = vmatmul.msk.f32.gmra.mxu1 %vm747_vm1, %v13395_v46  ;;  %v11279_v35 = vpop.f32.mrf.mxu3 }
 0x98e   : > { %4688 = vmatpush.msrb.mxu3 %v7715_v37 }
 0x98f   : > { %7230 = vmatmul.msk.f32.gmra.mxu3 %vm747_vm1, %v13396_v7  ;;  %v11287_v46 = vpop.f32.mrf.mxu2 }
 0x995   : > { %7150 = vmatmul.msk.f32.gmra.mxu1 %vm747_vm1, %v13397_v21  ;;  %v13402_v21 = vld [vmem:[#allocation78_spill] sm:$0xff] }
 0x997   : > { %7231 = vmatmul.msk.f32.gmra.mxu3 %vm747_vm1, %v13398_v11  ;;  %v11294_v11 = vpop.f32.mrf.mxu0 }
 0x998   : > { %13403 = vst [vmem:[#allocation97_spill] sm:$0xff] %v11294_v11 }
 0x99d   : > { %7151 = vmatmul.msk.f32.gmra.mxu1 %vm747_vm1, %v13400_v40 }
 0x99f   : > { %7232 = vmatmul.msk.f32.gmra.mxu3 %vm747_vm1, %v13401_v50  ;;  %v3824_v50 = vpop.f32.mrf.mxu2 }
 0x9a2   : > { %v3123_v37 = vpop.f32.mrf.mxu1  ;;  %v11289_v7 = vpop.f32.mrf.mxu3 }
 0x9a3   : > { %7128 = vmatmul.msk.f32.gmra.mxu0 %vm747_vm1, %v3123_v37  ;;  %v11304_v37 = vpop.f32.mrf.mxu0 }
 0x9a4   : > { %13405 = vst [vmem:[#allocation101_spill] sm:$0xff] %v11304_v37 }
 0x9a5   : > { %7152 = vmatmul.msk.f32.gmra.mxu1 %vm747_vm1, %v13402_v21  ;;  %v418_v21 = vld [vmem:[#allocation8 + $0xc8] sm:$0xff] }
 0x9aa   : > { %v3760_v40 = vpop.f32.mrf.mxu3 }
 0x9ab   : > { %7129 = vmatmul.msk.f32.gmra.mxu0 %vm747_vm1, %v11135_v47  ;;  %v11298_v49 = vadd.f32 %v3760_v40, %v417_v17  ;;  %v13406_v47 = vld [vmem:[#allocation105_spill] sm:$0xff]  ;;  %v3827_v40 = vpop.f32.mrf.mxu2  ;;  %v11316_v37 = vpop.f32.mrf.mxu0 }
 0x9ac   : > { %13407 = vst [vmem:[#allocation65_spill] sm:$0xff] %v11316_v37  ;;  %v420_v37 = vld [vmem:[#allocation8 + $0xd8] sm:$0xff] }
 0x9ad   : > { %7153 = vmatmul.msk.f32.gmra.mxu1 %vm747_vm1, %v13404_v12  ;;  %v4150_v51 = vsel %vm525_vm0, %v11298_v49, -inf  ;;  %v403_v12 = vld [vmem:[#allocation8 + $0x50] sm:$0xff] }
 0x9ae   : > { %4151 = vmax.xlane.f32.xlu2 %v4150_v51  ;;  %v11314_v51 = vadd.f32 %v3705_v16, %v403_v12  ;;  %v434_v16 = vld [vmem:[#allocation8 + $0x148] sm:$0xff] }
 0x9b2   : > { %v3763_v11 = vpop.f32.mrf.mxu3 }
 0x9b3   : > { %7130 = vmatmul.msk.f32.gmra.mxu0 %vm747_vm1, %v11147_v61  ;;  %v11308_v42 = vadd.f32 %v3763_v11, %v418_v21  ;;  %v13408_v21 = vld [vmem:[#allocation106_spill] sm:$0xff]  ;;  %v11328_v12 = vpop.f32.mrf.mxu2  ;;  %v11338_v59 = vpop.f32.mrf.mxu0 }
 0x9b4   : > { %13409 = vst [vmem:[#allocation56_spill] sm:$0xff] %v11338_v59 }
 0x9b5   : > { %7154 = vmatmul.msk.f32.gmra.mxu1 %vm747_vm1, %v13406_v47  ;;  %v4153_v17 = vsel %vm525_vm0, %v11308_v42, -inf  ;;  %v4144_v47 = vsel %vm525_vm0, %v11314_v51, -inf }
 0x9b6   : > { %4154 = vmax.xlane.f32.xlu0 %v4153_v17 }
 0x9ba   : > { %v3766_v61 = vpop.f32.mrf.mxu3 }
 0x9bb   : > { %7131 = vmatmul.msk.f32.gmra.mxu0 %vm747_vm1, %v11152_v1  ;;  %v11320_v11 = vadd.f32 %v3766_v61, %v419_v27  ;;  %v11330_v1 = vadd.f32 %v3708_v62, %v404_v32  ;;  %v11332_v27 = vadd.f32 %v3824_v50, %v434_v16  ;;  %v449_v50 = vld [vmem:[#allocation8 + $0x1c0] sm:$0xff]  ;;  %v11358_v59 = vpop.f32.mrf.mxu0 }
 0x9bc   : > { %13412 = vst [vmem:[#allocation45_spill] sm:$0xff] %v11358_v59  ;;  %v467_v59 = vld [vmem:[#allocation8 + $0x250] sm:$0xff] }
 0x9bd   : > { %7155 = vmatmul.msk.f32.gmra.mxu1 %vm747_vm1, %v13408_v21  ;;  %v4156_v17 = vsel %vm525_vm0, %v11320_v11, -inf  ;;  %v4147_v32 = vsel %vm525_vm0, %v11330_v1, -inf  ;;  %v4165_v62 = vsel %vm525_vm0, %v11332_v27, -inf }
 0x9be   : > { %4145 = vmax.xlane.f32.xlu0 %v4144_v47  ;;  %4157 = vmax.xlane.f32.xlu1 %v4156_v17  ;;  %v3943_v17 = vpop.f32.mrf.mxu2 }
 0x9c2   : > { %v3769_v61 = vpop.f32.mrf.mxu3 }
 0x9c3   : > { %7132 = vmatmul.msk.f32.gmra.mxu0 %vm747_vm1, %v11159_v22  ;;  %v11336_v21 = vadd.f32 %v3769_v61, %v420_v37  ;;  %v435_v22 = vld [vmem:[#allocation8 + $0x150] sm:$0xff]  ;;  %v13411_v61 = vld [vmem:[#allocation113_spill] sm:$0xff] }
 0x9c4   : > { %v11348_v37 = vadd.f32 %v3827_v40, %v435_v22 }
 0x9c5   : > { %7156 = vmatmul.msk.f32.gmra.mxu1 %vm747_vm1, %v13410_v10  ;;  %v4159_v47 = vsel %vm525_vm0, %v11336_v21, -inf }
 0x9c6   : > { %4160 = vmax.xlane.f32.xlu2 %v4159_v47  ;;  %4148 = vmax.xlane.f32.xlu0 %v4147_v32  ;;  %v433_v32 = vld [vmem:[#allocation8 + $0x140] sm:$0xff]  ;;  %v4168_v40 = vsel %vm525_vm0, %v11348_v37, -inf }
 0x9c7   : > { %4166 = vmax.xlane.f32.xlu1 %v4165_v62  ;;  %v450_v62 = vld [vmem:[#allocation8 + $0x1c8] sm:$0xff] }
 0x9ca   : > { %v3882_v10 = vpop.f32.mrf.mxu3 }
 0x9cb   : > { %7133 = vmatmul.msk.f32.gmra.mxu0 %vm747_vm1, %v11265_v30  ;;  %v11352_v16 = vadd.f32 %v3882_v10, %v449_v50  ;;  %v11363_v30 = vadd.f32 %v11287_v46, %v433_v32  ;;  %v3946_v10 = vpop.f32.mrf.mxu2  ;;  %v11377_v46 = vpop.f32.mrf.mxu0 }
 0x9cc   : > { %13415 = vst [vmem:[#allocation80_spill] sm:$0xff] %v11377_v46 }
 0x9cd   : > { %7157 = vmatmul.msk.f32.gmra.mxu1 %vm747_vm1, %v13411_v61  ;;  %v4174_v47 = vsel %vm525_vm0, %v11352_v16, -inf  ;;  %v11369_v61 = vpop.f32.mrf.mxu1 }
 0x9ce   : > { %4175 = vmax.xlane.f32.xlu0 %v4174_v47  ;;  %13413 = vst [vmem:[#allocation42_spill] sm:$0xff] %v11369_v61 }
 0x9cf   : > { %4169 = vmax.xlane.f32.xlu1 %v4168_v40  ;;  %v4162_v40 = vsel %vm525_vm0, %v11363_v30, -inf }
 0x9d2   : > { %v3885_v22 = vpop.f32.mrf.mxu3 }
 0x9d3   : > { %7134 = vmatmul.msk.f32.gmra.mxu0 %vm747_vm1, %v11273_v48  ;;  %v11367_v50 = vadd.f32 %v3885_v22, %v450_v62  ;;  %v451_v48 = vld [vmem:[#allocation8 + $0x1d0] sm:$0xff]  ;;  %v13416_v22 = vld [vmem:[#allocation36_spill] sm:$0xff]  ;;  %v3949_v61 = vpop.f32.mrf.mxu2  ;;  %v11391_v46 = vpop.f32.mrf.mxu0 }
 0x9d4   : > { %13418 = vst [vmem:[#allocation131_spill] sm:$0xff] %v11391_v46  ;;  %v13421_v46 = vld [vmem:[#allocation90_spill] sm:$0xff] }
 0x9d5   : > { %7158 = vmatmul.msk.f32.gmra.mxu1 %vm747_vm1, %v13414_v43  ;;  %v4177_v47 = vsel %vm525_vm0, %v11367_v50, -inf  ;;  %v11387_v34 = vpop.f32.mrf.mxu1 }
 0x9d6   : > { %4178 = vmax.xlane.f32.xlu2 %v4177_v47  ;;  %4163 = vmax.xlane.f32.xlu0 %v4162_v40  ;;  %13417 = vst [vmem:[#allocation22_spill] sm:$0xff] %v11387_v34  ;;  %v452_v47 = vld [vmem:[#allocation8 + $0x1d8] sm:$0xff]  ;;  %v11389_v40 = vadd.f32 %v3949_v61, %v467_v59  ;;  %v481_v61 = vld [vmem:[#allocation8 + $0x2c0] sm:$0xff] }
 0x9d7   : > { %v436_v34 = vld [vmem:[#allocation8 + $0x158] sm:$0xff] }
 0x9da   : > { %v3888_v32 = vpop.f32.mrf.mxu3 }
 0x9db   : > { %7135 = vmatmul.msk.f32.gmra.mxu0 %vm747_vm1, %v11279_v35  ;;  %v11381_v62 = vadd.f32 %v3888_v32, %v451_v48  ;;  %v13419_v32 = vld [vmem:[#allocation31_spill] sm:$0xff] }
 0x9dd   : > { %7159 = vmatmul.msk.f32.gmra.mxu1 %vm747_vm1, %v13416_v22  ;;  %v4180_v43 = vsel %vm525_vm0, %v11381_v62, -inf  ;;  %v4192_v22 = vsel %vm525_vm0, %v11389_v40, -inf  ;;  %v11403_v59 = vpop.f32.mrf.mxu1 }
 0x9de   : > { %4181 = vmax.xlane.f32.xlu2 %v4180_v43  ;;  %13420 = vst [vmem:[#allocation139_spill] sm:$0xff] %v11403_v59 }
 0x9e2   : > { %v3891_v35 = vpop.f32.mrf.mxu3 }
 0x9e3   : > { %7136 = vmatmul.msk.f32.gmra.mxu0 %vm747_vm1, %v11289_v7  ;;  %v11395_v48 = vadd.f32 %v3891_v35, %v452_v47  ;;  %v11406_v7 = vadd.f32 %v11328_v12, %v436_v34 }
 0x9e5   : > { %7160 = vmatmul.msk.f32.gmra.mxu1 %vm747_vm1, %v13419_v32  ;;  %v4183_v43 = vsel %vm525_vm0, %v11395_v48, -inf  ;;  %v4171_v52 = vsel %vm525_vm0, %v11406_v7, -inf  ;;  %v11418_v34 = vpop.f32.mrf.mxu1 }
 0x9e6   : > { %4193 = vmax.xlane.f32.xlu2 %v4192_v22  ;;  %4184 = vmax.xlane.f32.xlu1 %v4183_v43  ;;  %v465_v22 = vld [vmem:[#allocation8 + $0x240] sm:$0xff]  ;;  %v482_v43 = vld [vmem:[#allocation8 + $0x2c8] sm:$0xff]  ;;  %13422 = vst [vmem:[#allocation135_spill] sm:$0xff] %v11418_v34 }
 0x9e7   : > { %v11416_v59 = vadd.f32 %v3943_v17, %v465_v22 }
 0x9ea   : > { %v4004_v47 = vpop.f32.mrf.mxu3 }
 0x9eb   : > { %v11408_v35 = vadd.f32 %v4004_v47, %v481_v61  ;;  %v13423_v47 = vld [vmem:[#allocation71_spill] sm:$0xff] }
 0x9ed   : > { %7161 = vmatmul.msk.f32.gmra.mxu1 %vm747_vm1, %v13421_v46  ;;  %v4198_v32 = vsel %vm525_vm0, %v11408_v35, -inf  ;;  %v4186_v46 = vsel %vm525_vm0, %v11416_v59, -inf  ;;  %v11430_v22 = vpop.f32.mrf.mxu1 }
 0x9ee   : > { %4199 = vmax.xlane.f32.xlu0 %v4198_v32  ;;  %4172 = vmax.xlane.f32.xlu1 %v4171_v52  ;;  %v3952_v32 = vpop.f32.mrf.mxu2  ;;  %v11428_v52 = vadd.f32 %v3946_v10, %v466_v2  ;;  %13424 = vst [vmem:[#allocation137_spill] sm:$0xff] %v11430_v22  ;;  %v13426_v2 = vld [vmem:[#allocation108_spill] sm:$0xff] }
 0x9f2   : > { %v4007_v12 = vpop.f32.mrf.mxu3 }
 0x9f3   : > { %v11420_v61 = vadd.f32 %v4007_v12, %v482_v43  ;;  %v13425_v43 = vld [vmem:[#allocation99_spill] sm:$0xff]  ;;  %v4189_v12 = vsel %vm525_vm0, %v11428_v52, -inf }
 0x9f5   : > { %7162 = vmatmul.msk.f32.gmra.mxu1 %vm747_vm1, %v13423_v47  ;;  %v4201_v29 = vsel %vm525_vm0, %v11420_v61, -inf  ;;  %v483_v47 = vld [vmem:[#allocation8 + $0x2d0] sm:$0xff]  ;;  %v11446_v22 = vpop.f32.mrf.mxu1 }
 0x9f6   : > { %4187 = vmax.xlane.f32.xlu0 %v4186_v46  ;;  %4202 = vmax.xlane.f32.xlu1 %v4201_v29  ;;  %v4065_v34 = vpop.f32.mrf.mxu2  ;;  %13427 = vst [vmem:[#allocation33_spill] sm:$0xff] %v11446_v22  ;;  %v498_v22 = vld [vmem:[#allocation8 + $0x348] sm:$0xff] }
 0x9fa   : > { %v4010_v17 = vpop.f32.mrf.mxu3 }
 0x9fb   : > { %v11436_v33 = vadd.f32 %v4010_v17, %v483_v47 }
 0x9fd   : > { %7163 = vmatmul.msk.f32.gmra.mxu1 %vm747_vm1, %v13425_v43  ;;  %v4204_v10 = vsel %vm525_vm0, %v11436_v33, -inf  ;;  %v468_v43 = vld [vmem:[#allocation8 + $0x258] sm:$0xff] }
 0x9fe   : > { %4190 = vmax.xlane.f32.xlu0 %v4189_v12  ;;  %v513_v12 = vld [vmem:[#allocation8 + $0x3c0] sm:$0xff]  ;;  %v11448_v17 = vadd.f32 %v3952_v32, %v468_v43  ;;  %v4068_v47 = vpop.f32.mrf.mxu2  ;;  %v11460_v32 = vadd.f32 %v4065_v34, %v497_v15  ;;  %v4140_v34 = vpop.xlane.xlu1 %4139 }
 0x9ff   : > { %v4234_v54 = vsub.f32 %v11170_v56, %v4140_v34 }
 0xa02   : > { %v4013_v0 = vpop.f32.mrf.mxu3 }
 0xa03   : > { %v11438_v46 = vadd.f32 %v4013_v0, %v484_v8 }
 0xa05   : > { %7164 = vmatmul.msk.f32.gmra.mxu1 %vm747_vm1, %v13426_v2  ;;  %v4207_v29 = vsel %vm525_vm0, %v11438_v46, -inf  ;;  %v4195_v2 = vsel %vm525_vm0, %v11448_v17, -inf }
 0xa06   : > { %4208 = vmax.xlane.f32.xlu2 %v4207_v29  ;;  %4205 = vmax.xlane.f32.xlu0 %v4204_v10  ;;  %v11458_v29 = vpop.f32.mrf.mxu1  ;;  %v11462_v10 = vadd.f32 %v4068_v47, %v498_v22 }
 0xa07   : > { %13429 = vst [vmem:[#allocation20_spill] sm:$0xff] %v11458_v29  ;;  %v13433_v29 = vld [vmem:[#allocation130_spill] sm:$0xff] }
 0xa08   : > { %v4213_v20 = vsel %vm525_vm0, %v11462_v10, -inf }
 0xa0a   : > { %v4126_v0 = vpop.f32.mrf.mxu3 }
 0xa0b   : > { %v11450_v8 = vadd.f32 %v4126_v0, %v513_v12  ;;  %v4071_v12 = vpop.f32.mrf.mxu2  ;;  %v13430_v0 = vld [vmem:[#allocation115_spill] sm:$0xff] }
 0xa0c   : > { %v11472_v15 = vadd.f32 %v4071_v12, %v499_v44  ;;  %v515_v12 = vld [vmem:[#allocation8 + $0x3d0] sm:$0xff] }
 0xa0d   : > { %7165 = vmatmul.msk.f32.gmra.mxu1 %vm747_vm1, %v13428_v53  ;;  %v4222_v4 = vsel %vm525_vm0, %v11450_v8, -inf  ;;  %v4210_v53 = vsel %vm525_vm0, %v11460_v32, -inf }
 0xa0e   : > { %4196 = vmax.xlane.f32.xlu2 %v4195_v2  ;;  %4223 = vmax.xlane.f32.xlu0 %v4222_v4  ;;  %v514_v2 = vld [vmem:[#allocation8 + $0x3c8] sm:$0xff]  ;;  %v11470_v4 = vpop.permute.xlu2 %5216  ;;  %v11476_v47 = vpop.f32.mrf.mxu1 }
 0xa0f   : > { %13431 = vst [vmem:[#allocation21_spill] sm:$0xff] %v11470_v4 }
 0xa10   : > { %13432 = vst [vmem:[#allocation149_spill] sm:$0xff] %v11476_v47  ;;  %v4266_v47 = vmul.f32 1.442695, %v4234_v54 }
 0xa12   : > { %v4129_v43 = vpop.f32.mrf.mxu3  ;;  %8120 = vpow2.f32 %v4266_v47 }
 0xa13   : > { %v11474_v22 = vadd.f32 %v4129_v43, %v514_v2  ;;  %v4074_v44 = vpop.f32.mrf.mxu2  ;;  %v516_v43 = vld [vmem:[#allocation8 + $0x3d8] sm:$0xff]  ;;  %v11485_v2 = vpop.permute.xlu0 %5338 }
 0xa15   : > { %7166 = vmatmul.msk.f32.gmra.mxu1 %vm747_vm1, %v13430_v0  ;;  %v4225_v13 = vsel %vm525_vm0, %v11474_v22, -inf }
 0xa16   : > { %4211 = vmax.xlane.f32.xlu2 %v4210_v53  ;;  %4214 = vmax.xlane.f32.xlu0 %v4213_v20  ;;  %v4216_v20 = vsel %vm525_vm0, %v11472_v15, -inf  ;;  %v500_v53 = vld [vmem:[#allocation8 + $0x358] sm:$0xff]  ;;  %v11494_v25 = vpop.f32.mrf.mxu1 }
 0xa17   : > { %v11487_v4 = vadd.f32 %v4074_v44, %v500_v53  ;;  %13435 = vst [vmem:[#allocation152_spill] sm:$0xff] %v11494_v25 }
 0xa18   : > { %v11505_v53 = vpop.eup %8120 }
 0xa19   : > { %13434 = vst [vmem:[#allocation75_spill] sm:$0xff] %v11487_v4  ;;  %v4219_v54 = vsel %vm525_vm0, %v11487_v4, -inf }
 0xa1a   : > { %v4132_v0 = vpop.f32.mrf.mxu3 }
 0xa1d   : > { %7167 = vmatmul.msk.f32.gmra.mxu1 %vm747_vm1, %v13433_v29  ;;  %v11489_v29 = vadd.f32 %v4132_v0, %v515_v12 }
 0xa1e   : > { %4226 = vmax.xlane.f32.xlu2 %v4225_v13  ;;  %4217 = vmax.xlane.f32.xlu0 %v4216_v20  ;;  %v11514_v12 = vpop.f32.mrf.mxu1 }
 0xa1f   : > { %v4228_v13 = vsel %vm525_vm0, %v11489_v29, -inf  ;;  %13437 = vst [vmem:[#allocation127_spill] sm:$0xff] %v11514_v12 }
 0xa21   : > { %v4152_v56 = vpop.xlane.xlu2 %4151 }
 0xa22   : > { %v4238_v34 = vsub.f32 %v11298_v49, %v4152_v56  ;;  %v4135_v58 = vpop.f32.mrf.mxu3 }
 0xa23   : > { %v11492_v45 = vadd.f32 %v4135_v58, %v516_v43  ;;  %v4143_v58 = vpop.xlane.xlu1 %4142 }
 0xa24   : > { %v4274_v36 = vmul.f32 1.442695, %v4238_v34  ;;  %v4235_v47 = vsub.f32 %v11188_v19, %v4143_v58 }
 0xa25   : > { %7168 = vmatmul.msk.f32.gmra.mxu1 %vm747_vm1, %v13436_v28  ;;  %v4231_v0 = vsel %vm525_vm0, %v11492_v45, -inf }
 0xa26   : > { %8122 = vpow2.f32 %v4274_v36  ;;  %4229 = vmax.xlane.f32.xlu2 %v4228_v13  ;;  %4220 = vmax.xlane.f32.xlu0 %v4219_v54  ;;  %v4268_v43 = vmul.f32 1.442695, %v4235_v47 }
 0xa27   : > { %4232 = vmax.xlane.f32.xlu1 %v4231_v0 }
 0xa29   : > { %v4155_v49 = vpop.xlane.xlu0 %4154 }
 0xa2a   : > { %v4239_v20 = vsub.f32 %v11308_v42, %v4155_v49  ;;  %v4330_v42 = vsel %vm525_vm0, %v11505_v53, 0.0  ;;  %v11526_v49 = vpop.f32.mrf.mxu1 }
 0xa2b   : > { %13438 = vst [vmem:[#allocation158_spill] sm:$0xff] %v11526_v49 }
 0xa2c   : > { %v11507_v28 = vpop.eup %8122  ;;  %v4276_v44 = vmul.f32 1.442695, %v4239_v20 }
 0xa2d   : > { %7301 = vmatmul.msk.f32.vlgmr.msrb.gmra.mxu1 %vm747_vm1, %v11096_v57  ;;  %v4342_v36 = vsel %vm525_vm0, %v11507_v28, 0.0 }
 0xa2e   : > { %8124 = vpow2.f32 %v4276_v44  ;;  %4343 = vadd.xlane.f32.xlu2 %v4342_v36 }
 0xa2f   : > { %4331 = vadd.xlane.f32.xlu1 %v4330_v42  ;;  %8126 = vpow2.f32 %v4268_v43 }
 0xa31   : > { %v4158_v56 = vpop.xlane.xlu1 %4157  ;;  %v4146_v19 = vpop.xlane.xlu0 %4145 }
 0xa32   : > { %v4240_v34 = vsub.f32 %v11320_v11, %v4158_v56  ;;  %v4236_v13 = vsub.f32 %v11314_v51, %v4146_v19  ;;  %v11544_v19 = vpop.f32.mrf.mxu1 }
 0xa33   : > { %13439 = vst [vmem:[#allocation133_spill] sm:$0xff] %v11544_v19 }
 0xa34   : > { %v11520_v54 = vpop.eup %8124  ;;  %v4278_v57 = vmul.f32 1.442695, %v4240_v34  ;;  %v4270_v0 = vmul.f32 1.442695, %v4236_v13 }
 0xa35   : > { %7302 = vmatmul.msk.f32.gmra.mxu1 %vm747_vm1, %v11116_v3  ;;  %v4345_v58 = vsel %vm525_vm0, %v11520_v54, 0.0  ;;  %v11528_v20 = vpop.eup %8126 }
 0xa36   : > { %8128 = vpow2.f32 %v4278_v57  ;;  %4346 = vadd.xlane.f32.xlu2 %v4345_v58  ;;  %v4333_v56 = vsel %vm525_vm0, %v11528_v20, 0.0 }
 0xa37   : > { %8130 = vpow2.f32 %v4270_v0 }
 0xa39   : > { %v4161_v11 = vpop.xlane.xlu2 %4160  ;;  %v4149_v47 = vpop.xlane.xlu0 %4148 }
 0xa3a   : > { %v4241_v51 = vsub.f32 %v11336_v21, %v4161_v11  ;;  %v4237_v42 = vsub.f32 %v11330_v1, %v4149_v47  ;;  %v4167_v58 = vpop.xlane.xlu1 %4166 }
 0xa3c   : > { %v11531_v44 = vpop.eup %8128  ;;  %v4280_v36 = vmul.f32 1.442695, %v4241_v51  ;;  %v4272_v34 = vmul.f32 1.442695, %v4237_v42  ;;  %v11557_v42 = vpop.f32.mrf.mxu1 }
 0xa3d   : > { %7303 = vmatmul.msk.f32.gmra.mxu1 %vm747_vm1, %v11073_v31  ;;  %v11535_v3 = vpop.eup %8130  ;;  %v4348_v43 = vsel %vm525_vm0, %v11531_v44, 0.0  ;;  %13440 = vst [vmem:[#allocation157_spill] sm:$0xff] %v11557_v42 }
 0xa3e   : > { %8132 = vpow2.f32 %v4280_v36  ;;  %4349 = vadd.xlane.f32.xlu1 %v4348_v43  ;;  %4334 = vadd.xlane.f32.xlu2 %v4333_v56  ;;  %v4336_v21 = vsel %vm525_vm0, %v11535_v3, 0.0 }
 0xa3f   : > { %4337 = vadd.xlane.f32.xlu0 %v4336_v21  ;;  %8134 = vpow2.f32 %v4272_v34 }
 0xa41   : > { %v4176_v31 = vpop.xlane.xlu0 %4175 }
 0xa42   : > { %v4246_v13 = vsub.f32 %v11352_v16, %v4176_v31  ;;  %v4170_v31 = vpop.xlane.xlu1 %4169 }
 0xa44   : > { %v11547_v1 = vpop.eup %8132  ;;  %v4290_v57 = vmul.f32 1.442695, %v4246_v13 }
 0xa45   : > { %7304 = vmatmul.msk.f32.gmra.mxu1 %vm747_vm1, %v11121_v6  ;;  %v4351_v0 = vsel %vm525_vm0, %v11547_v1, 0.0  ;;  %v11554_v36 = vpop.eup %8134  ;;  %v4243_v6 = vsub.f32 %v11332_v27, %v4167_v58  ;;  %v4244_v27 = vsub.f32 %v11348_v37, %v4170_v31 }
 0xa46   : > { %8136 = vpow2.f32 %v4290_v57 }
 0xa47   : > { %4352 = vadd.xlane.f32.xlu0 %v4351_v0  ;;  %v4284_v34 = vmul.f32 1.442695, %v4243_v6 }
 0xa49   : > { %v4179_v11 = vpop.xlane.xlu2 %4178  ;;  %v4164_v47 = vpop.xlane.xlu0 %4163 }
 0xa4a   : > { %v4247_v51 = vsub.f32 %v11367_v50, %v4179_v11  ;;  %v4242_v16 = vsub.f32 %v11363_v30, %v4164_v47  ;;  %v4339_v50 = vsel %vm525_vm0, %v11554_v36, 0.0  ;;  %v4286_v47 = vmul.f32 1.442695, %v4244_v27 }
 0xa4c   : > { %v4292_v43 = vmul.f32 1.442695, %v4247_v51  ;;  %v4282_v56 = vmul.f32 1.442695, %v4242_v16  ;;  %v11562_v21 = vpop.eup %8136 }
 0xa4d   : > { %7325 = vmatmul.msk.f32.vlgmr.msra.gmra.mxu1 %vm747_vm1, %v11485_v2  ;;  %v4366_v30 = vsel %vm525_vm0, %v11562_v21, 0.0 }
 0xa4e   : > { %8138 = vpow2.f32 %v4292_v43  ;;  %4367 = vadd.xlane.f32.xlu2 %v4366_v30 }
 0xa4f   : > { %8140 = vpow2.f32 %v4282_v56  ;;  %4340 = vadd.xlane.f32.xlu0 %v4339_v50 }
 0xa50   : > { %8142 = vpow2.f32 %v4284_v34 }
 0xa51   : > { %v4182_v13 = vpop.xlane.xlu2 %4181 }
 0xa52   : > { %v4248_v2 = vsub.f32 %v11381_v62, %v4182_v13 }
 0xa54   : > { %v11569_v57 = vpop.eup %8138  ;;  %v4294_v0 = vmul.f32 1.442695, %v4248_v2 }
 0xa55   : > { %v11572_v58 = vpop.eup %8140  ;;  %v4369_v11 = vsel %vm525_vm0, %v11569_v57, 0.0 }
 0xa56   : > { %8144 = vpow2.f32 %v4294_v0  ;;  %4370 = vadd.xlane.f32.xlu1 %v4369_v11  ;;  %v4354_v51 = vsel %vm525_vm0, %v11572_v58, 0.0  ;;  %v11579_v43 = vpop.eup %8142 }
 0xa57   : > { %4355 = vadd.xlane.f32.xlu2 %v4354_v51  ;;  %8146 = vpow2.f32 %v4286_v47  ;;  %v4357_v50 = vsel %vm525_vm0, %v11579_v43, 0.0 }
 0xa59   : > { %v4185_v16 = vpop.xlane.xlu1 %4184 }
 0xa5a   : > { %v4249_v62 = vsub.f32 %v11395_v48, %v4185_v16 }
 0xa5c   : > { %v11581_v37 = vpop.eup %8144  ;;  %v4296_v6 = vmul.f32 1.442695, %v4249_v62 }
 0xa5d   : > { %v4372_v56 = vsel %vm525_vm0, %v11581_v37, 0.0  ;;  %v11587_v31 = vpop.eup %8146 }
 0xa5e   : > { %4373 = vadd.xlane.f32.xlu1 %v4372_v56  ;;  %8148 = vpow2.f32 %v4296_v6  ;;  %v4360_v11 = vsel %vm525_vm0, %v11587_v31, 0.0  ;;  %v4194_v6 = vpop.xlane.xlu2 %4193 }
 0xa5f   : > { %4358 = vadd.xlane.f32.xlu2 %v4357_v50 }
 0xa61   : > { %v4173_v30 = vpop.xlane.xlu1 %4172  ;;  %v4200_v34 = vpop.xlane.xlu0 %4199 }
 0xa62   : > { %v4245_v48 = vsub.f32 %v11406_v7, %v4173_v30  ;;  %v4254_v13 = vsub.f32 %v11408_v35, %v4200_v34 }
 0xa64   : > { %v4288_v2 = vmul.f32 1.442695, %v4245_v48  ;;  %v4306_v27 = vmul.f32 1.442695, %v4254_v13  ;;  %v11591_v0 = vpop.eup %8148 }
 0xa65   : > { %v4375_v51 = vsel %vm525_vm0, %v11591_v0, 0.0 }
 0xa66   : > { %8150 = vpow2.f32 %v4288_v2  ;;  %4361 = vadd.xlane.f32.xlu1 %v4360_v11  ;;  %v11613_v2 = vpop.f32.mrf.mxu1 }
 0xa67   : > { %8152 = vpow2.f32 %v4306_v27  ;;  %4376 = vadd.xlane.f32.xlu2 %v4375_v51  ;;  %13441 = vst [vmem:[#allocation134_spill] sm:$0xff] %v11613_v2  ;;  %v4252_v2 = vsub.f32 %v11389_v40, %v4194_v6 }
 0xa69   : > { %v4188_v35 = vpop.xlane.xlu0 %4187  ;;  %v4203_v11 = vpop.xlane.xlu1 %4202 }
 0xa6a   : > { %v4255_v25 = vsub.f32 %v11420_v61, %v4203_v11  ;;  %v13443_v11 = vld [vmem:[#allocation120_spill] sm:$0xff] }
 0xa6c   : > { %v11597_v47 = vpop.eup %8150 }
 0xa6d   : > { %v11599_v16 = vpop.eup %8152  ;;  %v4363_v7 = vsel %vm525_vm0, %v11597_v47, 0.0 }
 0xa6e   : > { %4364 = vadd.xlane.f32.xlu0 %v4363_v7  ;;  %v4390_v62 = vsel %vm525_vm0, %v11599_v16, 0.0  ;;  %v11619_v7 = vpop.f32.mrf.mxu1 }
 0xa6f   : > { %4391 = vadd.xlane.f32.xlu1 %v4390_v62  ;;  %13442 = vst [vmem:[#allocation138_spill] sm:$0xff] %v11619_v7 }
 0xa71   : > { %v4191_v56 = vpop.xlane.xlu0 %4190 }
 0xa72   : > { %v4251_v40 = vsub.f32 %v11428_v52, %v4191_v56  ;;  %v7761_v56 = vunpack.i.h.bf16 %v10987_v63 }
 0xa79   : > { %v11605_v50 = vpop.xlane.xlu2 %4208  ;;  %v4206_v34 = vpop.xlane.xlu0 %4205 }
 0xa7a   : > { %v4256_v62 = vsub.f32 %v11436_v33, %v4206_v34  ;;  %v4308_v33 = vmul.f32 1.442695, %v4255_v25  ;;  %v4302_v34 = vmul.f32 1.442695, %v4252_v2 }
 0xa7c   : > { %v4310_v12 = vmul.f32 1.442695, %v4256_v62 }
 0xa7f   : > { %5218 = vrot.lane.b32.xlu2 %v13305_v18, %s8602_s16  ;;  %v4250_v18 = vsub.f32 %v11416_v59, %v4188_v35 }
 0xa81   : > { %v4197_v30 = vpop.xlane.xlu2 %4196  ;;  %v4224_v13 = vpop.xlane.xlu0 %4223  ;;  %v4298_v49 = vmul.f32 1.442695, %v4250_v18 }
 0xa82   : > { %5340 = vrot.lane.b32.xlu0 %v13166_v24, %s8602_s16  ;;  %v4262_v35 = vsub.f32 %v11450_v8, %v4224_v13 }
 0xa83   : > { %8154 = vpow2.f32 %v4298_v49 }
 0xa84   : > { %8156 = vpow2.f32 %v4310_v12  ;;  %v4322_v61 = vmul.f32 1.442695, %v4262_v35  ;;  %v4253_v12 = vsub.f32 %v11448_v17, %v4197_v30  ;;  %v4300_v30 = vmul.f32 1.442695, %v4251_v40 }
 0xa85   : > { %v7730_v40 = vunpack.i.l.bf16 %v13347_v14 }
 0xa88   : > { %5462 = vrot.lane.b32.xlu1 %v13191_v23, %s8602_s16  ;;  %v11631_v23 = vpop.f32.mrf.mxu1 }
 0xa89   : > { %v4212_v48 = vpop.xlane.xlu2 %4211  ;;  %v11617_v51 = vpop.xlane.xlu0 %4214 }
 0xa8a   : > { %v11634_v18 = vpop.eup %8154  ;;  %v4258_v8 = vsub.f32 %v11460_v32, %v4212_v48  ;;  %v7726_v32 = vunpack.i.h.bf16 %v13443_v11 }
 0xa8b   : > { %v11636_v62 = vpop.eup %8156  ;;  %v4378_v6 = vsel %vm525_vm0, %v11634_v18, 0.0 }
 0xa8c   : > { %v4396_v48 = vsel %vm525_vm0, %v11636_v62, 0.0  ;;  %v4314_v35 = vmul.f32 1.442695, %v4258_v8 }
 0xa90   : > { %v11649_v17 = vpop.f32.mrf.mxu1 }
 0xa91   : > { %v11615_v27 = vpop.xlane.xlu2 %4226  ;;  %v11629_v4 = vpop.xlane.xlu0 %4217  ;;  %13444 = vst [vmem:[#allocation143_spill] sm:$0xff] %v11649_v17 }
 0xa99   : > { %v11623_v42 = vpop.xlane.xlu2 %4229 }
 0xa9a   : > { %v11625_v19 = vpop.xlane.xlu1 %4232 }
 0xaa1   : > { %v4344_v7 = vpop.xlane.xlu2 %4343 }
 0xaa2   : > { %8158 = vrcp.f32 %v4344_v7  ;;  %v4332_v59 = vpop.xlane.xlu1 %4331  ;;  %v7725_v7 = vunpack.i.l.bf16 %v13443_v11 }
 0xaa3   : > { %8160 = vrcp.f32 %v4332_v59  ;;  %v11645_v59 = vpop.xlane.xlu0 %4220 }
 0xaa4   : > { %8162 = vpow2.f32 %v4308_v33 }
 0xaa5   : > { %8164 = vpow2.f32 %v4302_v34 }
 0xaa8   : > { %v8159_v49 = vpop.eup %8158  ;;  %4379 = vadd.xlane.f32.xlu2 %v4378_v6  ;;  %v7735_v6 = vunpack.i.l.bf16 %v13349_v39 }
 0xaa9   : > { %v8161_v25 = vpop.eup %8160  ;;  %v4462_v13 = vmul.f32 %v8159_v49, %v11507_v28  ;;  %v4347_v2 = vpop.xlane.xlu2 %4346  ;;  %v4304_v28 = vmul.f32 1.442695, %v4253_v12  ;;  %v4257_v49 = vsub.f32 %v11438_v46, %v11605_v50 }
 0xaaa   : > { %v4458_v52 = vmul.f32 %v8161_v25, %v11505_v53  ;;  %8166 = vrcp.f32 %v4347_v2  ;;  %v11656_v33 = vpop.eup %8162  ;;  %v7766_v53 = vunpack.i.h.bf16 %v10973_v9  ;;  %v4263_v25 = vsub.f32 %v11474_v22, %v11615_v27 }
 0xaab   : > { %8168 = vpow2.f32 %v4322_v61  ;;  %7237 = vmatmul.msk.f32.vlgmr.msra.gmra.mxu3 %vm525_vm0, %v4462_v13  ;;  %v11659_v34 = vpop.eup %8164  ;;  %v7770_v61 = vunpack.i.l.bf16 %v10995_v60  ;;  %v4393_v8 = vsel %vm525_vm0, %v11656_v33, 0.0  ;;  %v7771_v13 = vunpack.i.h.bf16 %v10995_v60 }
 0xaac   : > { %7233 = vmatmul.msk.f32.vlgmr.msra.gmra.mxu2 %vm525_vm0, %v4458_v52  ;;  %4791 = vmatpush.msra.mxu3 %v7725_v7  ;;  %8170 = vpow2.f32 %v4300_v30  ;;  %v4384_v39 = vsel %vm525_vm0, %v11659_v34, 0.0  ;;  %v4260_v22 = vsub.f32 %v11472_v15, %v11629_v4  ;;  %v4312_v11 = vmul.f32 1.442695, %v4257_v49 }
 0xaad   : > { %4738 = vmatpush.msra.mxu2 %v7761_v56  ;;  %4397 = vadd.xlane.f32.xlu0 %v4396_v48  ;;  %8172 = vpow2.f32 %v4304_v28  ;;  %v4324_v60 = vmul.f32 1.442695, %v4263_v25  ;;  %v11683_v56 = vpop.f32.mrf.mxu1 }
 0xaae   : > { %4792 = vmatpush.msra.mxu3 %v7726_v32  ;;  %8174 = vpow2.f32 %v4314_v35  ;;  %13445 = vst [vmem:[#allocation95_spill] sm:$0xff] %v11683_v56  ;;  %v4318_v4 = vmul.f32 1.442695, %v4260_v22  ;;  %v4259_v32 = vsub.f32 %v11462_v10, %v11617_v51 }
 0xaaf   : > { %4739 = vmatpush.msra.mxu2 %v7766_v53 }
 0xab0   : > { %v8167_v12 = vpop.eup %8166  ;;  %4793 = vmatpush.msra.mxu3 %v7730_v40  ;;  %4394 = vadd.xlane.f32.xlu2 %v4393_v8  ;;  %v4316_v10 = vmul.f32 1.442695, %v4259_v32 }
 0xab1   : > { %v11670_v14 = vpop.eup %8168  ;;  %4740 = vmatpush.msra.mxu2 %v7770_v61  ;;  %v4350_v46 = vpop.xlane.xlu1 %4349  ;;  %v4463_v2 = vmul.f32 %v8167_v12, %v11520_v54 }
 0xab2   : > { %v4335_v50 = vpop.xlane.xlu2 %4334  ;;  %4794 = vmatpush.msra.mxu3 %v7735_v6  ;;  %8176 = vrcp.f32 %v4350_v46  ;;  %4385 = vadd.xlane.f32.xlu1 %v4384_v39  ;;  %v4338_v27 = vpop.xlane.xlu0 %4337  ;;  %v4414_v7 = vsel %vm525_vm0, %v11670_v14, 0.0 }
 0xab3   : > { %8178 = vrcp.f32 %v4335_v50  ;;  %4741 = vmatpush.msra.mxu2 %v7771_v13  ;;  %7238 = vmatmul.msk.f32.gmra.mxu3 %vm525_vm0, %v4463_v2  ;;  %v11681_v52 = vpop.eup %8170 }
 0xab4   : > { %v11685_v54 = vpop.eup %8172  ;;  %8180 = vpow2.f32 %v4312_v11  ;;  %v4381_v28 = vsel %vm525_vm0, %v11681_v52, 0.0 }
 0xab5   : > { %4415 = vadd.xlane.f32.xlu0 %v4414_v7  ;;  %v11687_v15 = vpop.eup %8174  ;;  %8182 = vpow2.f32 %v4324_v60  ;;  %v4387_v53 = vsel %vm525_vm0, %v11685_v54, 0.0  ;;  %v11705_v6 = vpop.f32.mrf.mxu1 }
 0xab6   : > { %8184 = vrcp.f32 %v4338_v27  ;;  %v4402_v51 = vsel %vm525_vm0, %v11687_v15, 0.0  ;;  %13446 = vst [vmem:[#allocation34_spill] sm:$0xff] %v11705_v6 }
 0xab7   : > { %8186 = vpow2.f32 %v4318_v4 }
 0xab8   : > { %v8177_v30 = vpop.eup %8176  ;;  %4382 = vadd.xlane.f32.xlu2 %v4381_v28 }
 0xab9   : > { %v8179_v48 = vpop.eup %8178  ;;  %v4464_v35 = vmul.f32 %v8177_v30, %v11531_v44 }
 0xaba   : > { %4388 = vadd.xlane.f32.xlu1 %v4387_v53  ;;  %v4353_v40 = vpop.xlane.xlu0 %4352  ;;  %v4459_v61 = vmul.f32 %v8179_v48, %v11528_v20  ;;  %v11701_v49 = vpop.eup %8180  ;;  %v4264_v20 = vsub.f32 %v11489_v29, %v11623_v42  ;;  %v7755_v48 = vunpack.i.l.bf16 %v11041_v55 }
 0xabb   : > { %8188 = vrcp.f32 %v4353_v40  ;;  %7239 = vmatmul.msk.f32.gmra.mxu3 %vm525_vm0, %v4464_v35  ;;  %v11703_v12 = vpop.eup %8182  ;;  %v4399_v8 = vsel %vm525_vm0, %v11701_v49, 0.0  ;;  %v7760_v40 = vunpack.i.l.bf16 %v10987_v63  ;;  %v7775_v63 = vunpack.i.l.bf16 %v11052_v38 }
 0xabc   : > { %7234 = vmatmul.msk.f32.gmra.mxu2 %vm525_vm0, %v4459_v61  ;;  %v8185_v44 = vpop.eup %8184  ;;  %8190 = vpow2.f32 %v4316_v10  ;;  %v4417_v46 = vsel %vm525_vm0, %v11703_v12, 0.0  ;;  %v4326_v27 = vmul.f32 1.442695, %v4264_v20 }
 0xabd   : > { %4403 = vadd.xlane.f32.xlu0 %v4402_v51  ;;  %v11707_v25 = vpop.eup %8186  ;;  %v4460_v39 = vmul.f32 %v8185_v44, %v11535_v3  ;;  %v4265_v3 = vsub.f32 %v11492_v45, %v11625_v19  ;;  %v7756_v19 = vunpack.i.h.bf16 %v11041_v55  ;;  %v7765_v51 = vunpack.i.l.bf16 %v10973_v9 }
 0xabe   : > { %v4408_v29 = vsel %vm525_vm0, %v11707_v25, 0.0  ;;  %v7776_v9 = vunpack.i.h.bf16 %v11052_v38  ;;  %v7781_v38 = vunpack.i.h.bf16 %v11118_v41 }
 0xabf   : > { %v4328_v53 = vmul.f32 1.442695, %v4265_v3 }
 0xac0   : > { %4400 = vadd.xlane.f32.xlu2 %v4399_v8 }
 0xac1   : > { %v8189_v13 = vpop.eup %8188  ;;  %v4368_v22 = vpop.xlane.xlu2 %4367 }
 0xac2   : > { %4418 = vadd.xlane.f32.xlu1 %v4417_v46  ;;  %v4341_v50 = vpop.xlane.xlu0 %4340  ;;  %v4465_v2 = vmul.f32 %v8189_v13, %v11547_v1  ;;  %v11721_v42 = vpop.eup %8190  ;;  %v7780_v13 = vunpack.i.l.bf16 %v11118_v41  ;;  %v13451_v41 = vld [vmem:[#allocation63_spill] sm:$0xff] }
 0xac3   : > { %8192 = vrcp.f32 %v4341_v50  ;;  %v11725_v1 = vpop.f32.mrf.mxu1  ;;  %v4405_v7 = vsel %vm525_vm0, %v11721_v42, 0.0 }
 0xac4   : > { %8194 = vrcp.f32 %v4368_v22  ;;  %7235 = vmatmul.msk.f32.gmra.mxu2 %vm525_vm0, %v4460_v39  ;;  %7240 = vmatmul.msk.f32.gmra.mxu3 %vm525_vm0, %v4465_v2  ;;  %13447 = vst [vmem:[#allocation147_spill] sm:$0xff] %v11725_v1 }
 0xac5   : > { %4409 = vadd.xlane.f32.xlu0 %v4408_v29  ;;  %8196 = vpow2.f32 %v4326_v27 }
 0xac9   : > { %v8193_v11 = vpop.eup %8192  ;;  %v4371_v60 = vpop.xlane.xlu1 %4370 }
 0xaca   : > { %v8195_v4 = vpop.eup %8194  ;;  %8198 = vrcp.f32 %v4371_v60  ;;  %4406 = vadd.xlane.f32.xlu1 %v4405_v7  ;;  %v4461_v30 = vmul.f32 %v8193_v11, %v11554_v36  ;;  %v4356_v28 = vpop.xlane.xlu2 %4355 }
 0xacb   : > { %v4470_v32 = vmul.f32 %v8195_v4, %v11562_v21  ;;  %8200 = vrcp.f32 %v4356_v28  ;;  %v11734_v45 = vpop.eup %8196  ;;  %v11742_v44 = vpop.f32.mrf.mxu1  ;;  %v13453_v28 = vld [vmem:[#allocation72_spill] sm:$0xff] }
 0xacc   : > { %7236 = vmatmul.msk.f32.gmra.mxu2 %vm525_vm0, %v4461_v30  ;;  %8202 = vpow2.f32 %v4328_v53  ;;  %v4420_v21 = vsel %vm525_vm0, %v11734_v45, 0.0  ;;  %13448 = vst [vmem:[#allocation154_spill] sm:$0xff] %v11742_v44 }
 0xacd   : > { %7245 = vmatmul.msk.f32.vlgmr.msrb.gmra.mxu3 %vm525_vm0, %v4470_v32 }
 0xace   : > { %4897 = vmatpush.msrb.mxu3 %v7755_v48  ;;  %v13454_v48 = vld [vmem:[#allocation23_spill] sm:$0xff] }
 0xad0   : > { %v8199_v35 = vpop.eup %8198  ;;  %4898 = vmatpush.msrb.mxu3 %v7756_v19 }
 0xad1   : > { %v4374_v36 = vpop.xlane.xlu1 %4373  ;;  %v4471_v61 = vmul.f32 %v8199_v35, %v11569_v57  ;;  %v8201_v10 = vpop.eup %8200  ;;  %v13457_v35 = vld [vmem:[#allocation41_spill] sm:$0xff] }
 0xad2   : > { %4899 = vmatpush.msrb.mxu3 %v7760_v40  ;;  %8204 = vrcp.f32 %v4374_v36  ;;  %4421 = vadd.xlane.f32.xlu1 %v4420_v21  ;;  %v4466_v55 = vmul.f32 %v8201_v10, %v11572_v58  ;;  %v4359_v20 = vpop.xlane.xlu2 %4358  ;;  %v11748_v57 = vpop.eup %8202  ;;  %v13458_v40 = vld [vmem:[#allocation73_spill] sm:$0xff]  ;;  %v13459_v36 = vld [vmem:[#allocation91_spill] sm:$0xff]  ;;  %v13461_v21 = vld [vmem:[#allocation84_spill] sm:$0xff] }
 0xad3   : > { %8206 = vrcp.f32 %v4359_v20  ;;  %v4423_v46 = vsel %vm525_vm0, %v11748_v57, 0.0  ;;  %v11761_v27 = vpop.f32.mrf.mxu1  ;;  %v13463_v10 = vld [vmem:[#allocation40_spill] sm:$0xff] }
 0xad4   : > { %4900 = vmatpush.msrb.mxu3 %v7765_v51  ;;  %7241 = vmatmul.msk.f32.vlgmr.msrb.gmra.mxu2 %vm525_vm0, %v4466_v55  ;;  %13449 = vst [vmem:[#allocation160_spill] sm:$0xff] %v11761_v27  ;;  %v13464_v51 = vld [vmem:[#allocation126_spill] sm:$0xff]  ;;  %v13466_v20 = vld [vmem:[#allocation52_spill] sm:$0xff] }
 0xad5   : > { %7246 = vmatmul.msk.f32.gmra.mxu3 %vm525_vm0, %v4471_v61  ;;  %4844 = vmatpush.msrb.mxu2 %v7775_v63  ;;  %v13462_v61 = vld [vmem:[#allocation69_spill] sm:$0xff] }
 0xad6   : > { %v13467_v63 = vld [vmem:[#allocation49_spill] sm:$0xff] }
 0xad7   : > { %4845 = vmatpush.msrb.mxu2 %v7776_v9 }
 0xad8   : > { %v8205_v8 = vpop.eup %8204  ;;  %5220 = vrot.lane.b32.xlu2 %v13297_v5, %s8602_s16 }
 0xad9   : > { %5342 = vrot.lane.b32.xlu0 %v13303_v26, %s8602_s16  ;;  %v4362_v58 = vpop.xlane.xlu1 %4361  ;;  %v4472_v50 = vmul.f32 %v8205_v8, %v11581_v37  ;;  %v8207_v39 = vpop.eup %8206  ;;  %4846 = vmatpush.msrb.mxu2 %v7780_v13  ;;  %v13450_v37 = vld [vmem:[#allocation76_spill] sm:$0xff]  ;;  %v13469_v8 = vld [vmem:[#allocation94_spill] sm:$0xff] }
 0xada   : > { %8208 = vrcp.f32 %v4362_v58  ;;  %4424 = vadd.xlane.f32.xlu1 %v4423_v46  ;;  %v4377_v2 = vpop.xlane.xlu2 %4376  ;;  %v4467_v22 = vmul.f32 %v8207_v39, %v11579_v43  ;;  %v11820_v13 = vpop.f32.mrf.mxu0  ;;  %v13470_v58 = vld [vmem:[#allocation35_spill] sm:$0xff] }
 0xadb   : > { %8210 = vrcp.f32 %v4377_v2  ;;  %4847 = vmatpush.msrb.mxu2 %v7781_v38  ;;  %v11773_v4 = vpop.f32.mrf.mxu1 }
 0xadc   : > { %7242 = vmatmul.msk.f32.gmra.mxu2 %vm525_vm0, %v4467_v22  ;;  %13452 = vst [vmem:[#allocation173_spill] sm:$0xff] %v11773_v4  ;;  %v13473_v22 = vld [vmem:[#allocation83_spill] sm:$0xff] }
 0xadd   : > { %7247 = vmatmul.msk.f32.gmra.mxu3 %vm525_vm0, %v4472_v50  ;;  %v391_v50 = vld [vmem:[#allocation7 + $0x10] sm:$0xff] }
 0xade   : > { %5025 = vmatpush.msra.mxu0 %v391_v50 }
 0xae0   : > { %v8209_v29 = vpop.eup %8208  ;;  %5535 = vrot.lane.b32.xlu2 %v13450_v37, %s8601_s13 }
 0xae1   : > { %5466 = vrot.lane.b32.xlu0 %v13451_v41, %s8602_s16  ;;  %v4365_v3 = vpop.xlane.xlu0 %4364  ;;  %v4468_v11 = vmul.f32 %v8209_v29, %v11587_v31  ;;  %v8211_v60 = vpop.eup %8210 }
 0xae2   : > { %v4392_v43 = vpop.xlane.xlu1 %4391  ;;  %8212 = vrcp.f32 %v4365_v3  ;;  %v4473_v7 = vmul.f32 %v8211_v60, %v11591_v0  ;;  %v13455_v0 = vld [vmem:[#allocation61_spill] sm:$0xff]  ;;  %v11832_v39 = vpop.f32.mrf.mxu0 }
 0xae3   : > { %8214 = vrcp.f32 %v4392_v43  ;;  %v11785_v19 = vpop.f32.mrf.mxu1  ;;  %v11834_v38 = vpop.permute.xlu2 %5218 }
 0xae4   : > { %7243 = vmatmul.msk.f32.gmra.mxu2 %vm525_vm0, %v4468_v11  ;;  %13456 = vst [vmem:[#allocation30_spill] sm:$0xff] %v11785_v19  ;;  %v13474_v11 = vld [vmem:[#allocation92_spill] sm:$0xff] }
 0xae5   : > { %7248 = vmatmul.msk.f32.gmra.mxu3 %vm525_vm0, %v4473_v7 }
 0xae8   : > { %v8213_v30 = vpop.eup %8212  ;;  %5533 = vrot.lane.b32.xlu2 %v13453_v28, %s8601_s13 }
 0xae9   : > { %v8215_v32 = vpop.eup %8214  ;;  %5222 = vrot.lane.b32.xlu0 %v13454_v48, %s8602_s16  ;;  %v4469_v31 = vmul.f32 %v8213_v30, %v11597_v47  ;;  %v13460_v47 = vld [vmem:[#allocation60_spill] sm:$0xff] }
 0xaea   : > { %v4478_v53 = vmul.f32 %v8215_v32, %v11599_v16  ;;  %v11846_v3 = vpop.f32.mrf.mxu0 }
 0xaeb   : > { %v11804_v55 = vpop.f32.mrf.mxu1 }
 0xaec   : > { %7244 = vmatmul.msk.f32.gmra.mxu2 %vm525_vm0, %v4469_v31  ;;  %13465 = vst [vmem:[#allocation164_spill] sm:$0xff] %v11804_v55  ;;  %v13476_v31 = vld [vmem:[#allocation141_spill] sm:$0xff] }
 0xaed   : > { %7253 = vmatmul.msk.f32.vlgmr.msra.gmra.mxu3 %vm525_vm0, %v4478_v53  ;;  %v13477_v53 = vld [vmem:[#allocation19_spill] sm:$0xff] }
 0xaee   : > { %7313 = vmatpush.xpose.msk.msra.mxu3 %vm747_vm1, %v13455_v0  ;;  %v13478_v0 = vld [vmem:[#allocation28_spill] sm:$0xff] }
 0xaf0   : > { %5409 = vrot.lane.b32.xlu2 %v13457_v35, %s8601_s13 }
 0xaf1   : > { %5531 = vrot.lane.b32.xlu0 %v13458_v40, %s8601_s13 }
 0xaf2   : > { %7314 = vmatpush.xpose.msk.msra.mxu3 %vm747_vm1, %v13459_v36  ;;  %v13479_v36 = vld [vmem:[#allocation18_spill] sm:$0xff] }
 0xaf3   : > { %5464 = vrot.lane.b32.xlu1 %v13460_v47, %s8602_s16  ;;  %v11814_v9 = vpop.f32.mrf.mxu1 }
 0xaf4   : > { %v5341_v16 = vpop.permute.xlu0 %5340  ;;  %13468 = vst [vmem:[#allocation48_spill] sm:$0xff] %v11814_v9 }
 0xaf5   : > { %7326 = vmatmul.msk.f32.gmra.mxu1 %vm747_vm1, %v5341_v16  ;;  %v13480_v16 = vld [vmem:[#allocation27_spill] sm:$0xff] }
 0xaf6   : > { %7315 = vmatpush.xpose.msk.msra.mxu3 %vm747_vm1, %v13461_v21  ;;  %v7787_v21 = vpack.i.bf16 %v13480_v16, %v13479_v36  ;;  %v13486_v36 = vld [vmem:[#allocation87_spill] sm:$0xff] }
 0xaf8   : > { %5529 = vrot.lane.b32.xlu2 %v13462_v61, %s8601_s13 }
 0xaf9   : > { %5399 = vrot.lane.b32.xlu0 %v13463_v10, %s8602_s16 }
 0xafa   : > { %7316 = vmatpush.xpose.msk.msra.mxu3 %vm747_vm1, %v13464_v51  ;;  %v13481_v51 = vld [vmem:[#allocation145_spill] sm:$0xff] }
 0xafb   : > { %5413 = vrot.lane.b32.xlu1 %v13466_v20, %s8601_s13  ;;  %v11824_v46 = vpop.f32.mrf.mxu1 }
 0xafc   : > { %13471 = vst [vmem:[#allocation175_spill] sm:$0xff] %v11824_v46 }
 0xb00   : > { %5401 = vrot.lane.b32.xlu2 %v13457_v35, %s8602_s16  ;;  %v7782_v35 = vpack.i.bf16 %v13478_v0, %v13477_v53 }
 0xb01   : > { %5523 = vrot.lane.b32.xlu0 %v13458_v40, %s8602_s16 }
 0xb03   : > { %5411 = vrot.lane.b32.xlu1 %v13467_v63, %s8601_s13  ;;  %v11836_v2 = vpop.f32.mrf.mxu1 }
 0xb04   : > { %13472 = vst [vmem:[#allocation167_spill] sm:$0xff] %v11836_v2 }
 0xb08   : > { %5525 = vrot.lane.b32.xlu2 %v13453_v28, %s8602_s16 }
 0xb09   : > { %5596 = vrot.lane.b32.xlu0 %v13469_v8, %s8601_s13 }
 0xb0b   : > { %5344 = vrot.lane.b32.xlu1 %v13470_v58, %s8602_s16  ;;  %v11852_v43 = vpop.f32.mrf.mxu1 }
 0xb0c   : > { %13475 = vst [vmem:[#allocation171_spill] sm:$0xff] %v11852_v43 }
 0xb10   : > { %5405 = vrot.lane.b32.xlu2 %v13466_v20, %s8602_s16 }
 0xb11   : > { %5527 = vrot.lane.b32.xlu0 %v13450_v37, %s8602_s16  ;;  %v11844_v37 = vpop.permute.xlu1 %5462 }
 0xb13   : > { %5407 = vrot.lane.b32.xlu1 %v13463_v10, %s8601_s13  ;;  %v11864_v10 = vpop.f32.mrf.mxu0 }
 0xb18   : > { %5590 = vrot.lane.b32.xlu2 %v13473_v22, %s8601_s13 }
 0xb19   : > { %5582 = vrot.lane.b32.xlu0 %v13473_v22, %s8602_s16 }
 0xb1b   : > { %5521 = vrot.lane.b32.xlu1 %v13462_v61, %s8602_s16  ;;  %v4380_v29 = vpop.xlane.xlu2 %4379 }
 0xb1c   : > { %8216 = vrcp.f32 %v4380_v29  ;;  %v11873_v29 = vpop.f32.mrf.mxu1 }
 0xb1d   : > { %13482 = vst [vmem:[#allocation54_spill] sm:$0xff] %v11873_v29 }
 0xb20   : > { %5586 = vrot.lane.b32.xlu2 %v13474_v11, %s8602_s16  ;;  %v4398_v32 = vpop.xlane.xlu0 %4397 }
 0xb21   : > { %5588 = vrot.lane.b32.xlu0 %v13469_v8, %s8602_s16 }
 0xb22   : > { %v8217_v60 = vpop.eup %8216 }
 0xb23   : > { %5403 = vrot.lane.b32.xlu1 %v13467_v63, %s8602_s16  ;;  %v4474_v7 = vmul.f32 %v8217_v60, %v11634_v18  ;;  %v4395_v30 = vpop.xlane.xlu2 %4394 }
 0xb24   : > { %8218 = vrcp.f32 %v4395_v30  ;;  %v13483_v30 = vld [vmem:[#allocation162_spill] sm:$0xff] }
 0xb25   : > { %v4386_v28 = vpop.xlane.xlu1 %4385  ;;  %7249 = vmatmul.msk.f32.vlgmr.msra.gmra.mxu2 %vm525_vm0, %v4474_v7  ;;  %8220 = vrcp.f32 %v4398_v32 }
 0xb26   : > { %7305 = vmatpush.xpose.msk.msra.mxu2 %vm747_vm1, %v13476_v31  ;;  %v13484_v31 = vld [vmem:[#allocation57_spill] sm:$0xff] }
 0xb27   : > { %v7812_v53 = vpack.i.bf16 %v13484_v31, %v13166_v24 }
 0xb28   : > { %7783 = vrot.lane.b32.xlu2 %v7782_v35, %s8603_s17  ;;  %v4416_v7 = vpop.xlane.xlu0 %4415  ;;  %v13485_v35 = vld [vmem:[#allocation68_spill] sm:$0xff] }
 0xb29   : > { %7788 = vrot.lane.b32.xlu0 %v7787_v21, %s8603_s17 }
 0xb2a   : > { %v8219_v18 = vpop.eup %8218  ;;  %7306 = vmatpush.xpose.msk.msra.mxu2 %vm747_vm1, %v13481_v51  ;;  %v11892_v51 = vpop.f32.mrf.mxu1 }
 0xb2b   : > { %5594 = vrot.lane.b32.xlu1 %v13474_v11, %s8601_s13  ;;  %v4383_v8 = vpop.xlane.xlu2 %4382  ;;  %v4479_v50 = vmul.f32 %v8219_v18, %v11656_v33  ;;  %v8221_v11 = vpop.eup %8220  ;;  %13487 = vst [vmem:[#allocation53_spill] sm:$0xff] %v11892_v51 }
 0xb2c   : > { %8222 = vrcp.f32 %v4383_v8  ;;  %v11882_v33 = vpop.f32.mrf.mxu0  ;;  %v4480_v24 = vmul.f32 %v8221_v11, %v11636_v62 }
 0xb2d   : > { %v4389_v60 = vpop.xlane.xlu1 %4388  ;;  %7254 = vmatmul.msk.f32.gmra.mxu3 %vm525_vm0, %v4479_v50  ;;  %8224 = vrcp.f32 %v4386_v28  ;;  %v13488_v28 = vld [vmem:[#allocation29_spill] sm:$0xff] }
 0xb2e   : > { %7307 = vmatpush.xpose.msk.msra.mxu2 %vm747_vm1, %v13483_v30  ;;  %v7817_v8 = vpack.i.bf16 %v13488_v28, %v13454_v48 }
 0xb2f   : > { %v4531_v32 = vpop.f32.mrf.mxu2 }
 0xb30   : > { %7265 = vmatmul.msk.f32.vlgmr.msra.gmra.mxu0 %vm747_vm1, %v4531_v32  ;;  %v4404_v30 = vpop.xlane.xlu0 %4403 }
 0xb31   : > { %7813 = vrot.lane.b32.xlu0 %v7812_v53, %s8603_s17 }
 0xb32   : > { %v8223_v0 = vpop.eup %8222  ;;  %7308 = vmatpush.xpose.msk.msra.mxu2 %vm747_vm1, %v13485_v35  ;;  %v13490_v35 = vld [vmem:[#allocation75_spill] sm:$0xff] }
 0xb33   : > { %5592 = vrot.lane.b32.xlu1 %v13486_v36, %s8601_s13  ;;  %v4401_v16 = vpop.xlane.xlu2 %4400  ;;  %v4475_v21 = vmul.f32 %v8223_v0, %v11681_v52  ;;  %v8225_v50 = vpop.eup %8224 }
 0xb34   : > { %8226 = vrcp.f32 %v4401_v16  ;;  %v11899_v62 = vpop.f32.mrf.mxu0  ;;  %v4476_v31 = vmul.f32 %v8225_v50, %v11659_v34  ;;  %v4261_v16 = vsub.f32 %v13490_v35, %v11645_v59  ;;  %v13492_v34 = vld [vmem:[#allocation17_spill] sm:$0xff] }
 0xb35   : > { %v4419_v18 = vpop.xlane.xlu1 %4418  ;;  %7250 = vmatmul.msk.f32.gmra.mxu2 %vm525_vm0, %v4475_v21  ;;  %7255 = vmatmul.msk.f32.gmra.mxu3 %vm525_vm0, %v4480_v24  ;;  %8228 = vrcp.f32 %v4416_v7  ;;  %v13489_v7 = vld [vmem:[#allocation55_spill] sm:$0xff]  ;;  %v11912_v24 = vpop.f32.mrf.mxu1 }
 0xb36   : > { %8230 = vrcp.f32 %v4389_v60  ;;  %v7822_v60 = vpack.i.bf16 %v13297_v5, %v13489_v7  ;;  %13491 = vst [vmem:[#allocation116_spill] sm:$0xff] %v11912_v24  ;;  %v4320_v5 = vmul.f32 1.442695, %v4261_v16  ;;  %v13496_v7 = vld [vmem:[#allocation16_spill] sm:$0xff] }
 0xb37   : > { %8232 = vrcp.f32 %v4404_v30  ;;  %v13494_v30 = vld [vmem:[#allocation74_spill] sm:$0xff]  ;;  %v13498_v16 = vld [vmem:[#allocation124_spill] sm:$0xff] }
 0xb38   : > { %8234 = vrcp.f32 %v4419_v18 }
 0xb39   : > { %7818 = vrot.lane.b32.xlu0 %v7817_v8, %s8603_s17  ;;  %v4410_v8 = vpop.xlane.xlu0 %4409  ;;  %8236 = vpow2.f32 %v4320_v5 }
 0xb3a   : > { %v8227_v32 = vpop.eup %8226 }
 0xb3b   : > { %5584 = vrot.lane.b32.xlu1 %v13486_v36, %s8602_s16  ;;  %v11901_v52 = vpop.permute.xlu2 %5220  ;;  %v4481_v53 = vmul.f32 %v8227_v32, %v11701_v49  ;;  %v8229_v0 = vpop.eup %8228  ;;  %v13493_v49 = vld [vmem:[#allocation25_spill] sm:$0xff] }
 0xb3c   : > { %v8231_v21 = vpop.eup %8230  ;;  %v7792_v28 = vpack.i.bf16 %v13493_v49, %v13492_v34  ;;  %v4486_v50 = vmul.f32 %v8229_v0, %v11670_v14 }
 0xb3d   : > { %v4407_v11 = vpop.xlane.xlu1 %4406  ;;  %7251 = vmatmul.msk.f32.gmra.mxu2 %vm525_vm0, %v4476_v31  ;;  %7256 = vmatmul.msk.f32.gmra.mxu3 %vm525_vm0, %v4481_v53  ;;  %v4477_v59 = vmul.f32 %v8231_v21, %v11685_v54  ;;  %v11921_v31 = vpop.f32.mrf.mxu0  ;;  %v13495_v54 = vld [vmem:[#allocation85_spill] sm:$0xff] }
 0xb3e   : > { %8238 = vrcp.f32 %v4407_v11  ;;  %v11932_v35 = vpop.f32.mrf.mxu1  ;;  %v13499_v11 = vld [vmem:[#allocation132_spill] sm:$0xff] }
 0xb3f   : > { %v4534_v48 = vpop.f32.mrf.mxu2 }
 0xb40   : > { %7266 = vmatmul.msk.f32.gmra.mxu0 %vm747_vm1, %v4534_v48  ;;  %v8233_v48 = vpop.eup %8232 }
 0xb41   : > { %7823 = vrot.lane.b32.xlu0 %v7822_v60, %s8603_s17  ;;  %v8235_v14 = vpop.eup %8234  ;;  %v13497_v60 = vld [vmem:[#allocation24_spill] sm:$0xff]  ;;  %v4482_v34 = vmul.f32 %v8233_v48, %v11687_v15  ;;  %v13500_v48 = vld [vmem:[#allocation51_spill] sm:$0xff] }
 0xb42   : > { %v7797_v0 = vpack.i.bf16 %v13497_v60, %v13496_v7  ;;  %v11941_v5 = vpop.eup %8236 }
 0xb43   : > { %7793 = vrot.lane.b32.xlu1 %v7792_v28, %s8603_s17  ;;  %v5536_v32 = vpop.permute.xlu2 %5535  ;;  %v4487_v28 = vmul.f32 %v8235_v14, %v11703_v12  ;;  %v4584_v12 = vpop.f32.mrf.mxu3 }
 0xb44   : > { %7345 = vmatpush.xpose.msk.msrb.mxu1 %vm747_vm1, %v5536_v32  ;;  %v8239_v32 = vpop.eup %8238 }
 0xb45   : > { %v4422_v53 = vpop.xlane.xlu1 %4421  ;;  %7252 = vmatmul.msk.f32.gmra.mxu2 %vm525_vm0, %v4477_v59  ;;  %7261 = vmatmul.msk.f32.vlgmr.msrb.gmra.mxu3 %vm525_vm0, %v4486_v50  ;;  %v11947_v59 = vpop.f32.mrf.mxu0  ;;  %v4483_v7 = vmul.f32 %v8239_v32, %v11721_v42 }
 0xb46   : > { %7337 = vmatpush.xpose.msk.msrb.mxu3 %vm747_vm1, %v13494_v30  ;;  %8240 = vrcp.f32 %v4422_v53  ;;  %v4411_v30 = vsel %vm525_vm0, %v11941_v5, 0.0 }
 0xb47   : > { %v4537_v18 = vpop.f32.mrf.mxu2  ;;  %8242 = vrcp.f32 %v4410_v8 }
 0xb48   : > { %7267 = vmatmul.msk.f32.gmra.mxu0 %vm747_vm1, %v4537_v18  ;;  %v7802_v18 = vpack.i.bf16 %v13451_v41, %v13470_v58 }
 0xb49   : > { %7833 = vrot.lane.b32.xlu0 %v13495_v54, %s8603_s17 }
 0xb4a   : > { %7338 = vmatpush.xpose.msk.msrb.mxu3 %vm747_vm1, %v13498_v16 }
 0xb4b   : > { %7798 = vrot.lane.b32.xlu1 %v7797_v0, %s8603_s17  ;;  %v5343_v21 = vpop.permute.xlu0 %5342  ;;  %v5534_v49 = vpop.permute.xlu2 %5533 }
 0xb4c   : > { %7327 = vmatmul.msk.f32.gmra.mxu1 %vm747_vm1, %v5343_v21  ;;  %v8241_v53 = vpop.eup %8240  ;;  %v5207_v0 = vpop.f32.mrf.mxu1  ;;  %v13502_v21 = vld [vmem:[#allocation123_spill] sm:$0xff] }
 0xb4d   : > { %7346 = vmatpush.xpose.msk.msrb.mxu1 %vm747_vm1, %v5534_v49  ;;  %7257 = vmatmul.msk.f32.vlgmr.msrb.gmra.mxu2 %vm525_vm0, %v4482_v34  ;;  %v4425_v15 = vpop.xlane.xlu1 %4424  ;;  %v4488_v60 = vmul.f32 %v8241_v53, %v11734_v45  ;;  %v8243_v41 = vpop.eup %8242 }
 0xb4e   : > { %7262 = vmatmul.msk.f32.gmra.mxu3 %vm525_vm0, %v4487_v28  ;;  %8244 = vrcp.f32 %v4425_v15  ;;  %v11964_v8 = vpop.f32.mrf.mxu0  ;;  %v4587_v16 = vpop.f32.mrf.mxu3  ;;  %v4484_v45 = vmul.f32 %v8243_v41, %v11707_v25  ;;  %v13504_v25 = vld [vmem:[#allocation119_spill] sm:$0xff] }
 0xb4f   : > { %7339 = vmatpush.xpose.msk.msrb.mxu3 %vm747_vm1, %v13499_v11  ;;  %v4540_v50 = vpop.f32.mrf.mxu2  ;;  %13501 = vst [vmem:[#allocation79_spill] sm:$0xff] %v11964_v8 }
 0xb50   : > { %7268 = vmatmul.msk.f32.gmra.mxu0 %vm747_vm1, %v4540_v50 }
 0xb51   : > { %4412 = vadd.xlane.f32.xlu2 %v4411_v30  ;;  %v406_v30 = vld [vmem:[#allocation8 + $0x68] sm:$0xff] }
 0xb52   : > { %v11997_v41 = vadd.f32 %v5207_v0, %v406_v30 }
 0xb53   : > { %7340 = vmatpush.xpose.msk.msrb.mxu3 %vm747_vm1, %v13500_v48  ;;  %7803 = vrot.lane.b32.xlu1 %v7802_v18, %s8603_s17  ;;  %v11957_v14 = vpop.permute.xlu0 %5466  ;;  %v5410_v54 = vpop.permute.xlu2 %5409 }
 0xb54   : > { %v8245_v58 = vpop.eup %8244  ;;  %v11974_v28 = vpop.f32.mrf.mxu1 }
 0xb55   : > { %7258 = vmatmul.msk.f32.gmra.mxu2 %vm525_vm0, %v4483_v7  ;;  %v4489_v49 = vmul.f32 %v8245_v58, %v11748_v57  ;;  %v7807_v57 = vpack.i.bf16 %v13460_v47, %v13303_v26  ;;  %v13506_v58 = vld [vmem:[#allocation128_spill] sm:$0xff]  ;;  %v5646_v47 = vsel %vm525_vm0, %v11997_v41, -inf }
 0xb56   : > { %7263 = vmatmul.msk.f32.gmra.mxu3 %vm525_vm0, %v4488_v60  ;;  %v11977_v50 = vpop.f32.mrf.mxu0  ;;  %v4590_v15 = vpop.f32.mrf.mxu3 }
 0xb57   : > { %13503 = vst [vmem:[#allocation153_spill] sm:$0xff] %v11977_v50  ;;  %v4637_v26 = vpop.f32.mrf.mxu2 }
 0xb58   : > { %7269 = vmatmul.msk.f32.gmra.mxu0 %vm747_vm1, %v4584_v12 }
 0xb5b   : > { %7828 = vrot.lane.b32.xlu1 %v13502_v21, %s8603_s17  ;;  %v11968_v34 = vpop.permute.xlu0 %5222  ;;  %v5530_v42 = vpop.permute.xlu2 %5529  ;;  %v453_v21 = vld [vmem:[#allocation8 + $0x1e0] sm:$0xff] }
 0xb5c   : > { %v5213_v12 = vpop.f32.mrf.mxu1 }
 0xb5d   : > { %7259 = vmatmul.msk.f32.gmra.mxu2 %vm525_vm0, %v4484_v45 }
 0xb5e   : > { %7264 = vmatmul.msk.f32.gmra.mxu3 %vm525_vm0, %v4489_v49  ;;  %v11995_v60 = vpop.f32.mrf.mxu0 }
 0xb5f   : > { %13505 = vst [vmem:[#allocation161_spill] sm:$0xff] %v11995_v60 }
 0xb60   : > { %7270 = vmatmul.msk.f32.gmra.mxu0 %vm747_vm1, %v4587_v16  ;;  %v4593_v16 = vpop.f32.mrf.mxu3 }
 0xb63   : > { %v5532_v11 = vpop.permute.xlu0 %5531  ;;  %v11979_v32 = vpop.permute.xlu2 %5401 }
 0xb64   : > { %7347 = vmatpush.xpose.msk.msrb.mxu1 %vm747_vm1, %v5532_v11 }
 0xb65   : > { %v11982_v53 = vpop.permute.xlu1 %5464 }
 0xb66   : > { %7317 = vmatmul.msk.f32.vlgmr.msra.gmra.mxu3 %vm747_vm1, %v13504_v25  ;;  %v12012_v25 = vpop.f32.mrf.mxu0 }
 0xb67   : > { %13508 = vst [vmem:[#allocation81_spill] sm:$0xff] %v12012_v25 }
 0xb68   : > { %7271 = vmatmul.msk.f32.gmra.mxu0 %vm747_vm1, %v4590_v15  ;;  %7348 = vmatpush.xpose.msk.msrb.mxu1 %vm747_vm1, %v5530_v42  ;;  %v5387_v42 = vpop.f32.mrf.mxu1  ;;  %v13507_v15 = vld [vmem:[#allocation102_spill] sm:$0xff]  ;;  %v4690_v24 = vpop.f32.mrf.mxu3 }
 0xb69   : > { %7808 = vrot.lane.b32.xlu2 %v7807_v57, %s8603_s17  ;;  %v12007_v11 = vadd.f32 %v5387_v42, %v453_v21  ;;  %v4640_v57 = vpop.f32.mrf.mxu2  ;;  %v405_v21 = vld [vmem:[#allocation8 + $0x60] sm:$0xff] }
 0xb6b   : > { %v11991_v18 = vpop.permute.xlu0 %5399  ;;  %v11993_v48 = vpop.permute.xlu2 %5525  ;;  %v5679_v30 = vsel %vm525_vm0, %v12007_v11, -inf }
 0xb6d   : > { %v5414_v7 = vpop.permute.xlu1 %5413 }
 0xb6e   : > { %7318 = vmatmul.msk.f32.gmra.mxu3 %vm747_vm1, %v13506_v58  ;;  %7329 = vmatpush.xpose.msk.msrb.mxu2 %vm747_vm1, %v5414_v7  ;;  %v454_v7 = vld [vmem:[#allocation8 + $0x1e8] sm:$0xff] }
 0xb70   : > { %7272 = vmatmul.msk.f32.gmra.mxu0 %vm747_vm1, %v4593_v16  ;;  %v4693_v46 = vpop.f32.mrf.mxu3 }
 0xb72   : > { %v5390_v58 = vpop.f32.mrf.mxu1 }
 0xb73   : > { %5647 = vmax.xlane.f32.xlu0 %v5646_v47  ;;  %v5524_v45 = vpop.permute.xlu0 %5523  ;;  %v12005_v49 = vpop.permute.xlu2 %5405 }
 0xb75   : > { %v5412_v0 = vpop.permute.xlu1 %5411 }
 0xb76   : > { %7319 = vmatmul.msk.f32.gmra.mxu3 %vm747_vm1, %v13507_v15  ;;  %7330 = vmatpush.xpose.msk.msrb.mxu2 %vm747_vm1, %v5412_v0  ;;  %v12022_v0 = vadd.f32 %v5390_v58, %v454_v7  ;;  %v13509_v15 = vld [vmem:[#allocation58_spill] sm:$0xff] }
 0xb78   : > { %7273 = vmatmul.msk.f32.gmra.mxu0 %vm747_vm1, %v4637_v26  ;;  %v12031_v26 = vpop.f32.mrf.mxu0 }
 0xb7a   : > { %7331 = vmatpush.xpose.msk.msrb.mxu2 %vm747_vm1, %v5410_v54  ;;  %v12028_v54 = vadd.f32 %v11932_v35, %v405_v21  ;;  %v13510_v21 = vld [vmem:[#allocation96_spill] sm:$0xff] }
 0xb7b   : > { %5680 = vmax.xlane.f32.xlu0 %v5679_v30  ;;  %v12018_v16 = vpop.permute.xlu0 %5596  ;;  %v12020_v47 = vpop.permute.xlu2 %5590  ;;  %v5682_v30 = vsel %vm525_vm0, %v12022_v0, -inf }
 0xb7c   : > { %v5643_v58 = vsel %vm525_vm0, %v12028_v54, -inf }
 0xb7d   : > { %v5345_v42 = vpop.permute.xlu1 %5344 }
 0xb7e   : > { %7320 = vmatmul.msk.f32.gmra.mxu3 %vm747_vm1, %v13509_v15  ;;  %7328 = vmatmul.msk.f32.gmra.mxu1 %vm747_vm1, %v5345_v42  ;;  %v408_v15 = vld [vmem:[#allocation8 + $0x78] sm:$0xff]  ;;  %v4643_v42 = vpop.f32.mrf.mxu2 }
 0xb80   : > { %7274 = vmatmul.msk.f32.gmra.mxu0 %vm747_vm1, %v4640_v57  ;;  %v12042_v57 = vadd.f32 %v5213_v12, %v408_v15  ;;  %v12047_v43 = vpop.f32.mrf.mxu0 }
 0xb81   : > { %13511 = vst [vmem:[#allocation62_spill] sm:$0xff] %v12047_v43 }
 0xb83   : > { %5683 = vmax.xlane.f32.xlu0 %v5682_v30  ;;  %v5528_v51 = vpop.permute.xlu0 %5527  ;;  %v12035_v7 = vpop.permute.xlu2 %5586  ;;  %v407_v30 = vld [vmem:[#allocation8 + $0x70] sm:$0xff] }
 0xb84   : > { %v12055_v12 = vadd.f32 %v11974_v28, %v407_v30 }
 0xb85   : > { %5644 = vmax.xlane.f32.xlu1 %v5643_v58  ;;  %v5408_v35 = vpop.permute.xlu1 %5407  ;;  %v5652_v58 = vsel %vm525_vm0, %v12042_v57, -inf }
 0xb86   : > { %7341 = vmatmul.msk.f32.vlgmr.msrb.gmra.mxu3 %vm747_vm1, %v13510_v21  ;;  %7332 = vmatpush.xpose.msk.msrb.mxu2 %vm747_vm1, %v5408_v35  ;;  %v4646_v15 = vpop.f32.mrf.mxu2 }
 0xb88   : > { %7275 = vmatmul.msk.f32.gmra.mxu0 %vm747_vm1, %v4643_v42  ;;  %v5649_v42 = vsel %vm525_vm0, %v12055_v12, -inf  ;;  %v12067_v1 = vpop.f32.mrf.mxu0 }
 0xb89   : > { %13512 = vst [vmem:[#allocation64_spill] sm:$0xff] %v12067_v1 }
 0xb8b   : > { %v12045_v29 = vpop.permute.xlu0 %5582  ;;  %v12049_v2 = vpop.permute.xlu2 %7783 }
 0xb8c   : > { %v7785_v9 = vunpack.i.l.bf16 %v12049_v2 }
 0xb8d   : > { %5653 = vmax.xlane.f32.xlu1 %v5652_v58  ;;  %v5522_v21 = vpop.permute.xlu1 %5521 }
 0xb8e   : > { %7342 = vmatmul.msk.f32.gmra.mxu3 %vm747_vm1, %v11844_v37  ;;  %7349 = vmatmul.msk.f32.vlgmr.msrb.gmra.mxu1 %vm747_vm1, %v5522_v21  ;;  %v4696_v37 = vpop.f32.mrf.mxu3 }
 0xb8f   : > { %6031 = vmatpush.msra.mxu3 %v7785_v9 }
 0xb90   : > { %7276 = vmatmul.msk.f32.gmra.mxu0 %vm747_vm1, %v4646_v15  ;;  %v12078_v21 = vpop.f32.mrf.mxu0 }
 0xb91   : > { %13513 = vst [vmem:[#allocation121_spill] sm:$0xff] %v12078_v21 }
 0xb92   : > { %5650 = vmax.xlane.f32.xlu2 %v5649_v42 }
 0xb93   : > { %v12063_v35 = vpop.permute.xlu0 %5588 }
 0xb95   : > { %v12065_v58 = vpop.permute.xlu1 %5403 }
 0xb96   : > { %7343 = vmatmul.msk.f32.gmra.mxu3 %vm747_vm1, %v11982_v53  ;;  %7350 = vmatmul.msk.f32.gmra.mxu1 %vm747_vm1, %v5524_v45  ;;  %v4699_v53 = vpop.f32.mrf.mxu3 }
 0xb98   : > { %7277 = vmatmul.msk.f32.gmra.mxu0 %vm747_vm1, %v4690_v24  ;;  %v12090_v15 = vpop.f32.mrf.mxu0 }
 0xb99   : > { %13514 = vst [vmem:[#allocation47_spill] sm:$0xff] %v12090_v15 }
 0xb9b   : > { %v12073_v9 = vpop.permute.xlu0 %7788 }
 0xb9c   : > { %v7790_v28 = vunpack.i.l.bf16 %v12073_v9 }
 0xb9d   : > { %v12076_v30 = vpop.permute.xlu1 %5594 }
 0xb9e   : > { %7344 = vmatmul.msk.f32.gmra.mxu3 %vm747_vm1, %v11957_v14  ;;  %7351 = vmatmul.msk.f32.gmra.mxu1 %vm747_vm1, %v11993_v48  ;;  %v4796_v42 = vpop.f32.mrf.mxu3 }
 0xb9f   : > { %6032 = vmatpush.msra.mxu3 %v7790_v28 }
 0xba0   : > { %7278 = vmatmul.msk.f32.gmra.mxu0 %vm747_vm1, %v4693_v46  ;;  %v12096_v46 = vpop.f32.mrf.mxu0 }
 0xba1   : > { %13515 = vst [vmem:[#allocation67_spill] sm:$0xff] %v12096_v46 }
 0xba3   : > { %v12085_v45 = vpop.permute.xlu0 %7813 }
 0xba5   : > { %v12087_v24 = vpop.permute.xlu1 %5592 }
 0xba6   : > { %7352 = vmatmul.msk.f32.gmra.mxu1 %vm747_vm1, %v5528_v51 }
 0xba8   : > { %7279 = vmatmul.msk.f32.gmra.mxu0 %vm747_vm1, %v4696_v37  ;;  %v4743_v48 = vpop.f32.mrf.mxu2 }
 0xbab   : > { %v7819_v25 = vpop.permute.xlu0 %7818 }
 0xbac   : > { %v7820_v14 = vunpack.i.l.bf16 %v7819_v25  ;;  %v7821_v44 = vunpack.i.h.bf16 %v7819_v25 }
 0xbad   : > { %v12093_v55 = vpop.permute.xlu1 %5584 }
 0xbae   : > { %6084 = vmatpush.msra.mxu1 %v7820_v14  ;;  %v12105_v14 = vpop.f32.mrf.mxu0 }
 0xbaf   : > { %13516 = vst [vmem:[#allocation66_spill] sm:$0xff] %v12105_v14 }
 0xbb0   : > { %7280 = vmatmul.msk.f32.gmra.mxu0 %vm747_vm1, %v4699_v53  ;;  %v4799_v28 = vpop.f32.mrf.mxu3 }
 0xbb3   : > { %v12098_v6 = vpop.permute.xlu0 %7823 }
 0xbb4   : > { %v7826_v51 = vunpack.i.h.bf16 %v12098_v6 }
 0xbb5   : > { %v12101_v60 = vpop.permute.xlu1 %7793 }
 0xbb6   : > { %v7795_v37 = vunpack.i.l.bf16 %v12101_v60  ;;  %6085 = vmatpush.msra.mxu1 %v7826_v51  ;;  %v12113_v4 = vpop.f32.mrf.mxu0 }
 0xbb7   : > { %13517 = vst [vmem:[#allocation82_spill] sm:$0xff] %v12113_v4 }
 0xbb8   : > { %7281 = vmatmul.msk.f32.gmra.mxu0 %vm747_vm1, %v4743_v48  ;;  %6033 = vmatpush.msra.mxu3 %v7795_v37  ;;  %v4746_v15 = vpop.f32.mrf.mxu2  ;;  %v4802_v53 = vpop.f32.mrf.mxu3  ;;  %v455_v37 = vld [vmem:[#allocation8 + $0x1f0] sm:$0xff] }
 0xbbd   : > { %v12107_v19 = vpop.permute.xlu1 %7798 }
 0xbbe   : > { %v7800_v46 = vunpack.i.l.bf16 %v12107_v19 }
 0xbc0   : > { %7282 = vmatmul.msk.f32.gmra.mxu0 %vm747_vm1, %v4746_v15  ;;  %6034 = vmatpush.msra.mxu3 %v7800_v46  ;;  %v4749_v21 = vpop.f32.mrf.mxu2  ;;  %v4805_v51 = vpop.f32.mrf.mxu3 }
 0xbc4   : > { %v4413_v56 = vpop.xlane.xlu2 %4412 }
 0xbc5   : > { %v12111_v50 = vpop.permute.xlu1 %7803  ;;  %8246 = vrcp.f32 %v4413_v56 }
 0xbc6   : > { %v7805_v48 = vunpack.i.l.bf16 %v12111_v50 }
 0xbc8   : > { %7283 = vmatmul.msk.f32.gmra.mxu0 %vm747_vm1, %v4749_v21  ;;  %6190 = vmatpush.msrb.mxu3 %v7805_v48  ;;  %v4752_v43 = vpop.f32.mrf.mxu2  ;;  %v12126_v21 = vpop.f32.mrf.mxu0 }
 0xbc9   : > { %v5393_v14 = vpop.f32.mrf.mxu1  ;;  %13518 = vst [vmem:[#allocation44_spill] sm:$0xff] %v12126_v21  ;;  %v12130_v48 = vpop.f32.mrf.mxu3 }
 0xbca   : > { %v12117_v1 = vadd.f32 %v5393_v14, %v455_v37  ;;  %v7815_v14 = vunpack.i.l.bf16 %v12085_v45 }
 0xbcb   : > { %v8247_v17 = vpop.eup %8246 }
 0xbcc   : > { %v12119_v15 = vpop.permute.xlu2 %7808  ;;  %v5685_v8 = vsel %vm525_vm0, %v12117_v1, -inf  ;;  %v4485_v4 = vmul.f32 %v8247_v17, %v11941_v5  ;;  %v13519_v17 = vld [vmem:[#allocation21_spill] sm:$0xff] }
 0xbcd   : > { %v7829_v46 = vpop.permute.xlu1 %7828  ;;  %v7810_v56 = vunpack.i.l.bf16 %v12119_v15  ;;  %5686 = vmax.xlane.f32.xlu0 %v5685_v8 }
 0xbce   : > { %v7830_v27 = vunpack.i.l.bf16 %v7829_v46  ;;  %7260 = vmatmul.msk.f32.gmra.mxu2 %vm525_vm0, %v4485_v4  ;;  %v7831_v37 = vunpack.i.h.bf16 %v7829_v46 }
 0xbcf   : > { %6191 = vmatpush.msrb.mxu3 %v7810_v56  ;;  %v456_v56 = vld [vmem:[#allocation8 + $0x1f8] sm:$0xff] }
 0xbd0   : > { %7284 = vmatmul.msk.f32.gmra.mxu0 %vm747_vm1, %v4752_v43  ;;  %6086 = vmatpush.msra.mxu1 %v7830_v27  ;;  %v12137_v4 = vpop.f32.mrf.mxu0  ;;  %v12143_v27 = vpop.permute.xlu0 %7833 }
 0xbd1   : > { %6192 = vmatpush.msrb.mxu3 %v7815_v14  ;;  %13520 = vst [vmem:[#allocation146_spill] sm:$0xff] %v12137_v4  ;;  %v12139_v5 = vpop.f32.mrf.mxu3  ;;  %v517_v4 = vld [vmem:[#allocation8 + $0x3e0] sm:$0xff] }
 0xbd2   : > { %6087 = vmatpush.msra.mxu1 %v7831_v37 }
 0xbd3   : > { %6193 = vmatpush.msrb.mxu3 %v7821_v44 }
 0xbd6   : > { %7309 = vmatmul.msk.f32.vlgmr.msra.gmra.mxu2 %vm747_vm1, %v13519_v17 }
 0xbd7   : > { %7353 = vmatpush.xpose.msk.msra.mxu2 %vm747_vm1, %v12018_v16 }
 0xbd8   : > { %7285 = vmatmul.msk.f32.gmra.mxu0 %vm747_vm1, %v4796_v42  ;;  %v12150_v44 = vpop.f32.mrf.mxu0  ;;  %v7786_v42 = vunpack.i.h.bf16 %v12049_v2  ;;  %v7796_v2 = vunpack.i.h.bf16 %v12101_v60 }
 0xbd9   : > { %13521 = vst [vmem:[#allocation148_spill] sm:$0xff] %v12150_v44  ;;  %v12154_v43 = vpop.f32.mrf.mxu3 }
 0xbdb   : > { %7354 = vmatpush.xpose.msk.msra.mxu2 %vm747_vm1, %v12076_v30 }
 0xbde   : > { %7310 = vmatmul.msk.f32.gmra.mxu2 %vm747_vm1, %v11834_v38 }
 0xbdf   : > { %7355 = vmatpush.xpose.msk.msra.mxu2 %vm747_vm1, %v12087_v24  ;;  %v4849_v24 = vpop.f32.mrf.mxu2 }
 0xbe0   : > { %7286 = vmatmul.msk.f32.gmra.mxu0 %vm747_vm1, %v4799_v28  ;;  %v12161_v38 = vpop.f32.mrf.mxu0 }
 0xbe1   : > { %13522 = vst [vmem:[#allocation86_spill] sm:$0xff] %v12161_v38  ;;  %v12163_v16 = vpop.f32.mrf.mxu3 }
 0xbe3   : > { %7356 = vmatpush.xpose.msk.msra.mxu2 %vm747_vm1, %v12020_v47 }
 0xbe6   : > { %v12156_v8 = vpop.xlane.xlu0 %5647  ;;  %7311 = vmatmul.msk.f32.gmra.mxu2 %vm747_vm1, %v11901_v52 }
 0xbe7   : > { %v4852_v37 = vpop.f32.mrf.mxu2 }
 0xbe8   : > { %7287 = vmatmul.msk.f32.gmra.mxu0 %vm747_vm1, %v4802_v53  ;;  %v12170_v52 = vpop.f32.mrf.mxu0 }
 0xbee   : > { %v5681_v25 = vpop.xlane.xlu0 %5680  ;;  %7312 = vmatmul.msk.f32.gmra.mxu2 %vm747_vm1, %v11968_v34 }
 0xbef   : > { %v5751_v30 = vsub.f32 %v12007_v11, %v5681_v25  ;;  %v7791_v11 = vunpack.i.h.bf16 %v12073_v9 }
 0xbf0   : > { %7288 = vmatmul.msk.f32.gmra.mxu0 %vm747_vm1, %v4805_v51  ;;  %v12179_v51 = vpop.f32.mrf.mxu3  ;;  %v12187_v17 = vpop.f32.mrf.mxu0 }
 0xbf1   : > { %v5795_v47 = vmul.f32 1.442695, %v5751_v30  ;;  %v438_v30 = vld [vmem:[#allocation8 + $0x168] sm:$0xff] }
 0xbf3   : > { %8248 = vpow2.f32 %v5795_v47 }
 0xbf6   : > { %v5684_v28 = vpop.xlane.xlu0 %5683  ;;  %7333 = vmatmul.msk.f32.vlgmr.msrb.gmra.mxu2 %vm747_vm1, %v11991_v18  ;;  %v7801_v18 = vunpack.i.h.bf16 %v12107_v19 }
 0xbf7   : > { %v5752_v53 = vsub.f32 %v12022_v0, %v5684_v28  ;;  %6137 = vmatpush.msrb.mxu2 %v7786_v42  ;;  %v4855_v42 = vpop.f32.mrf.mxu2 }
 0xbf8   : > { %7289 = vmatmul.msk.f32.gmra.mxu0 %vm747_vm1, %v4849_v24  ;;  %v5329_v47 = vpop.f32.mrf.mxu3  ;;  %v12202_v28 = vpop.f32.mrf.mxu0 }
 0xbf9   : > { %v12177_v34 = vpop.eup %8248  ;;  %v5797_v46 = vmul.f32 1.442695, %v5752_v53  ;;  %6138 = vmatpush.msrb.mxu2 %v7791_v11  ;;  %v12198_v24 = vadd.f32 %v5329_v47, %v438_v30  ;;  %v503_v30 = vld [vmem:[#allocation8 + $0x370] sm:$0xff]  ;;  %v7816_v47 = vunpack.i.h.bf16 %v12085_v45 }
 0xbfa   : > { %v5871_v0 = vsel %vm525_vm0, %v12177_v34, 0.0 }
 0xbfb   : > { %8250 = vpow2.f32 %v5797_v46  ;;  %v5396_v14 = vpop.f32.mrf.mxu1  ;;  %5872 = vadd.xlane.f32.xlu1 %v5871_v0  ;;  %6139 = vmatpush.msrb.mxu2 %v7796_v2  ;;  %v5670_v53 = vsel %vm525_vm0, %v12198_v24, -inf  ;;  %v5645_v2 = vpop.xlane.xlu1 %5644 }
 0xbfc   : > { %v12185_v9 = vadd.f32 %v5396_v14, %v456_v56 }
 0xbfd   : > { %6140 = vmatpush.msrb.mxu2 %v7801_v18  ;;  %v5739_v18 = vsub.f32 %v12028_v54, %v5645_v2  ;;  %v7825_v54 = vunpack.i.l.bf16 %v12098_v6 }
 0xbfe   : > { %v5688_v25 = vsel %vm525_vm0, %v12185_v9, -inf  ;;  %7334 = vmatmul.msk.f32.gmra.mxu2 %vm747_vm1, %v11979_v32  ;;  %v501_v32 = vld [vmem:[#allocation8 + $0x360] sm:$0xff] }
 0xbff   : > { %5689 = vmax.xlane.f32.xlu0 %v5688_v25 }
 0xc00   : > { %7290 = vmatmul.msk.f32.gmra.mxu0 %vm747_vm1, %v4852_v37  ;;  %v7806_v37 = vunpack.i.h.bf16 %v12111_v50 }
 0xc01   : > { %v12194_v60 = vpop.eup %8250 }
 0xc02   : > { %v5874_v19 = vsel %vm525_vm0, %v12194_v60, 0.0 }
 0xc03   : > { %5875 = vadd.xlane.f32.xlu1 %v5874_v19  ;;  %v7811_v19 = vunpack.i.h.bf16 %v12119_v15  ;;  %v504_v15 = vld [vmem:[#allocation8 + $0x378] sm:$0xff]  ;;  %v5654_v2 = vpop.xlane.xlu1 %5653 }
 0xc06   : > { %7335 = vmatmul.msk.f32.gmra.mxu2 %vm747_vm1, %v12065_v58  ;;  %v502_v58 = vld [vmem:[#allocation8 + $0x368] sm:$0xff] }
 0xc08   : > { %7291 = vmatmul.msk.f32.gmra.mxu0 %vm747_vm1, %v4855_v42 }
 0xc0b   : > { %v5570_v11 = vpop.f32.mrf.mxu1  ;;  %5671 = vmax.xlane.f32.xlu1 %v5670_v53  ;;  %v5651_v53 = vpop.xlane.xlu2 %5650 }
 0xc0c   : > { %v12207_v46 = vadd.f32 %v5570_v11, %v501_v32  ;;  %v5740_v32 = vsub.f32 %v11997_v41, %v12156_v8  ;;  %v5741_v41 = vsub.f32 %v12055_v12, %v5651_v53  ;;  %v421_v53 = vld [vmem:[#allocation8 + $0xe0] sm:$0xff] }
 0xc0e   : > { %v5715_v56 = vsel %vm525_vm0, %v12207_v46, -inf  ;;  %7336 = vmatmul.msk.f32.gmra.mxu2 %vm747_vm1, %v12005_v49  ;;  %v5771_v49 = vmul.f32 1.442695, %v5739_v18  ;;  %v5773_v45 = vmul.f32 1.442695, %v5740_v32  ;;  %v5742_v18 = vsub.f32 %v12042_v57, %v5654_v2  ;;  %v437_v32 = vld [vmem:[#allocation8 + $0x160] sm:$0xff] }
 0xc0f   : > { %5716 = vmax.xlane.f32.xlu2 %v5715_v56 }
 0xc10   : > { %8252 = vpow2.f32 %v5771_v49 }
 0xc11   : > { %8254 = vpow2.f32 %v5773_v45 }
 0xc13   : > { %v5573_v0 = vpop.f32.mrf.mxu1 }
 0xc14   : > { %v12213_v14 = vadd.f32 %v5573_v0, %v502_v58 }
 0xc16   : > { %v5718_v25 = vsel %vm525_vm0, %v12213_v14, -inf  ;;  %7357 = vmatmul.msk.f32.vlgmr.msra.gmra.mxu2 %vm747_vm1, %v12045_v29  ;;  %v12232_v11 = vpop.eup %8252 }
 0xc17   : > { %5719 = vmax.xlane.f32.xlu0 %v5718_v25  ;;  %6296 = vmatpush.msra.mxu2 %v7806_v37  ;;  %v5835_v8 = vsel %vm525_vm0, %v12232_v11, 0.0  ;;  %v12243_v0 = vpop.eup %8254  ;;  %v5777_v37 = vmul.f32 1.442695, %v5742_v18 }
 0xc18   : > { %v5838_v12 = vsel %vm525_vm0, %v12243_v0, 0.0 }
 0xc19   : > { %6297 = vmatpush.msra.mxu2 %v7811_v19 }
 0xc1b   : > { %v5576_v42 = vpop.f32.mrf.mxu1  ;;  %6298 = vmatpush.msra.mxu2 %v7816_v47 }
 0xc1c   : > { %v12224_v50 = vadd.f32 %v5576_v42, %v503_v30 }
 0xc1d   : > { %6299 = vmatpush.msra.mxu2 %v7825_v54 }
 0xc1e   : > { %v5721_v29 = vsel %vm525_vm0, %v12224_v50, -inf  ;;  %7358 = vmatmul.msk.f32.gmra.mxu2 %vm747_vm1, %v12093_v55  ;;  %v5775_v55 = vmul.f32 1.442695, %v5741_v41 }
 0xc1f   : > { %5722 = vmax.xlane.f32.xlu2 %v5721_v29  ;;  %v12266_v29 = vadd.f32 %v12179_v51, %v437_v32 }
 0xc20   : > { %8256 = vpow2.f32 %v5775_v55  ;;  %v422_v55 = vld [vmem:[#allocation8 + $0xe8] sm:$0xff] }
 0xc21   : > { %8258 = vpow2.f32 %v5777_v37  ;;  %v440_v37 = vld [vmem:[#allocation8 + $0x178] sm:$0xff] }
 0xc23   : > { %v5579_v6 = vpop.f32.mrf.mxu1 }
 0xc24   : > { %v12234_v56 = vadd.f32 %v5579_v6, %v504_v15 }
 0xc26   : > { %v5724_v58 = vsel %vm525_vm0, %v12234_v56, -inf  ;;  %7359 = vmatmul.msk.f32.gmra.mxu2 %vm747_vm1, %v12035_v7  ;;  %v12250_v25 = vpop.eup %8256 }
 0xc27   : > { %5836 = vadd.xlane.f32.xlu2 %v5835_v8  ;;  %5725 = vmax.xlane.f32.xlu0 %v5724_v58  ;;  %v5841_v7 = vsel %vm525_vm0, %v12250_v25, 0.0  ;;  %v12254_v19 = vpop.eup %8258  ;;  %v12277_v8 = vpop.f32.mrf.mxu3 }
 0xc28   : > { %v5844_v57 = vsel %vm525_vm0, %v12254_v19, 0.0 }
 0xc2e   : > { %7360 = vmatmul.msk.f32.gmra.mxu2 %vm747_vm1, %v12063_v35  ;;  %v12259_v35 = vpop.f32.mrf.mxu0 }
 0xc2f   : > { %5839 = vadd.xlane.f32.xlu2 %v5838_v12 }
 0xc36   : > { %v12269_v15 = vpop.f32.mrf.mxu0 }
 0xc37   : > { %5842 = vadd.xlane.f32.xlu2 %v5841_v7  ;;  %v423_v7 = vld [vmem:[#allocation8 + $0xf0] sm:$0xff] }
 0xc3e   : > { %v12281_v58 = vpop.f32.mrf.mxu0 }
 0xc3f   : > { %5845 = vadd.xlane.f32.xlu2 %v5844_v57  ;;  %13523 = vst [vmem:[#allocation46_spill] sm:$0xff] %v12281_v58 }
 0xc40   : > { %v5687_v49 = vpop.xlane.xlu0 %5686 }
 0xc41   : > { %v5753_v30 = vsub.f32 %v12117_v1, %v5687_v49  ;;  %v5667_v1 = vsel %vm525_vm0, %v12266_v29, -inf }
 0xc43   : > { %v5799_v47 = vmul.f32 1.442695, %v5753_v30 }
 0xc45   : > { %8260 = vpow2.f32 %v5799_v47 }
 0xc46   : > { %v12289_v57 = vpop.f32.mrf.mxu0 }
 0xc47   : > { %13524 = vst [vmem:[#allocation150_spill] sm:$0xff] %v12289_v57 }
 0xc4b   : > { %v12261_v42 = vpop.eup %8260 }
 0xc4c   : > { %v5877_v54 = vsel %vm525_vm0, %v12261_v42, 0.0 }
 0xc4d   : > { %5878 = vadd.xlane.f32.xlu2 %v5877_v54 }
 0xc51   : > { %v4858_v45 = vpop.f32.mrf.mxu2 }
 0xc52   : > { %7292 = vmatmul.msk.f32.gmra.mxu0 %vm747_vm1, %v4858_v45  ;;  %v424_v45 = vld [vmem:[#allocation8 + $0xf8] sm:$0xff] }
 0xc55   : > { %5668 = vmax.xlane.f32.xlu2 %v5667_v1 }
 0xc59   : > { %v5265_v6 = vpop.f32.mrf.mxu2 }
 0xc5a   : > { %v12273_v41 = vadd.f32 %v5265_v6, %v421_v53  ;;  %7293 = vmatmul.msk.f32.gmra.mxu0 %vm747_vm1, %v12130_v48  ;;  %v5335_v48 = vpop.f32.mrf.mxu3  ;;  %v12301_v6 = vpop.f32.mrf.mxu0 }
 0xc5b   : > { %v12291_v49 = vadd.f32 %v5335_v48, %v440_v37  ;;  %13525 = vst [vmem:[#allocation156_spill] sm:$0xff] %v12301_v6  ;;  %v469_v37 = vld [vmem:[#allocation8 + $0x260] sm:$0xff] }
 0xc5c   : > { %v5655_v51 = vsel %vm525_vm0, %v12273_v41, -inf }
 0xc5d   : > { %5656 = vmax.xlane.f32.xlu2 %v5655_v51  ;;  %v5676_v54 = vsel %vm525_vm0, %v12291_v49, -inf }
 0xc61   : > { %v5268_v2 = vpop.f32.mrf.mxu2 }
 0xc62   : > { %v12283_v18 = vadd.f32 %v5268_v2, %v422_v55  ;;  %7294 = vmatmul.msk.f32.gmra.mxu0 %vm747_vm1, %v12139_v5  ;;  %v5509_v32 = vpop.f32.mrf.mxu3 }
 0xc64   : > { %v5658_v12 = vsel %vm525_vm0, %v12283_v18, -inf }
 0xc65   : > { %5659 = vmax.xlane.f32.xlu2 %v5658_v12  ;;  %v485_v12 = vld [vmem:[#allocation8 + $0x2e0] sm:$0xff] }
 0xc66   : > { %v12310_v48 = vadd.f32 %v5509_v32, %v485_v12 }
 0xc69   : > { %v5271_v30 = vpop.f32.mrf.mxu2 }
 0xc6a   : > { %v12293_v47 = vadd.f32 %v5271_v30, %v423_v7  ;;  %7295 = vmatmul.msk.f32.gmra.mxu0 %vm747_vm1, %v12154_v43  ;;  %v5512_v7 = vpop.f32.mrf.mxu3 }
 0xc6c   : > { %v5661_v5 = vsel %vm525_vm0, %v12293_v47, -inf }
 0xc6d   : > { %5662 = vmax.xlane.f32.xlu1 %v5661_v5  ;;  %5677 = vmax.xlane.f32.xlu2 %v5676_v54 }
 0xc71   : > { %v5274_v1 = vpop.f32.mrf.mxu2 }
 0xc72   : > { %v5690_v53 = vpop.xlane.xlu0 %5689  ;;  %v12303_v51 = vadd.f32 %v5274_v1, %v424_v45  ;;  %7296 = vmatmul.msk.f32.gmra.mxu0 %vm747_vm1, %v12163_v16  ;;  %v486_v45 = vld [vmem:[#allocation8 + $0x2e8] sm:$0xff] }
 0xc73   : > { %v5754_v55 = vsub.f32 %v12185_v9, %v5690_v53  ;;  %v5703_v9 = vsel %vm525_vm0, %v12310_v48, -inf  ;;  %v12322_v32 = vadd.f32 %v5512_v7, %v486_v45 }
 0xc74   : > { %v5664_v2 = vsel %vm525_vm0, %v12303_v51, -inf }
 0xc75   : > { %v5801_v43 = vmul.f32 1.442695, %v5754_v55  ;;  %5665 = vmax.xlane.f32.xlu1 %v5664_v2  ;;  %v5515_v2 = vpop.f32.mrf.mxu3 }
 0xc77   : > { %8262 = vpow2.f32 %v5801_v43 }
 0xc79   : > { %v5448_v30 = vpop.f32.mrf.mxu2 }
 0xc7a   : > { %v12312_v5 = vadd.f32 %v5448_v30, %v469_v37  ;;  %v5706_v37 = vsel %vm525_vm0, %v12322_v32, -inf  ;;  %v487_v30 = vld [vmem:[#allocation8 + $0x2f0] sm:$0xff] }
 0xc7c   : > { %v5691_v16 = vsel %vm525_vm0, %v12312_v5, -inf }
 0xc7d   : > { %v12314_v54 = vpop.eup %8262  ;;  %5704 = vmax.xlane.f32.xlu1 %v5703_v9  ;;  %5692 = vmax.xlane.f32.xlu2 %v5691_v16  ;;  %v471_v9 = vld [vmem:[#allocation8 + $0x270] sm:$0xff]  ;;  %v12327_v16 = vadd.f32 %v5515_v2, %v487_v30 }
 0xc7e   : > { %v5880_v1 = vsel %vm525_vm0, %v12314_v54, 0.0  ;;  %v439_v2 = vld [vmem:[#allocation8 + $0x170] sm:$0xff] }
 0xc7f   : > { %5881 = vadd.xlane.f32.xlu0 %v5880_v1  ;;  %v5709_v45 = vsel %vm525_vm0, %v12327_v16, -inf  ;;  %v488_v1 = vld [vmem:[#allocation8 + $0x2f8] sm:$0xff] }
 0xc81   : > { %v5451_v53 = vpop.f32.mrf.mxu2 }
 0xc82   : > { %v5717_v55 = vpop.xlane.xlu2 %5716 }
 0xc83   : > { %v5763_v43 = vsub.f32 %v12207_v46, %v5717_v55  ;;  %v5518_v55 = vpop.f32.mrf.mxu3 }
 0xc85   : > { %v5819_v12 = vmul.f32 1.442695, %v5763_v43  ;;  %5707 = vmax.xlane.f32.xlu1 %v5706_v37 }
 0xc87   : > { %8264 = vpow2.f32 %v5819_v12  ;;  %v12339_v12 = vadd.f32 %v5518_v55, %v488_v1 }
 0xc89   : > { %v5454_v38 = vpop.f32.mrf.mxu2 }
 0xc8a   : > { %v12329_v44 = vadd.f32 %v5454_v38, %v471_v9  ;;  %v12342_v38 = vadd.f32 %v12277_v8, %v439_v2  ;;  %v5712_v9 = vsel %vm525_vm0, %v12339_v12, -inf }
 0xc8c   : > { %v5697_v46 = vsel %vm525_vm0, %v12329_v44, -inf }
 0xc8d   : > { %v12331_v7 = vpop.eup %8264  ;;  %5710 = vmax.xlane.f32.xlu1 %v5709_v45  ;;  %5698 = vmax.xlane.f32.xlu2 %v5697_v46  ;;  %v5673_v45 = vsel %vm525_vm0, %v12342_v38, -inf  ;;  %v470_v46 = vld [vmem:[#allocation8 + $0x268] sm:$0xff] }
 0xc8e   : > { %v5907_v43 = vsel %vm525_vm0, %v12331_v7, 0.0  ;;  %v12350_v21 = vadd.f32 %v5451_v53, %v470_v46 }
 0xc8f   : > { %5908 = vadd.xlane.f32.xlu0 %v5907_v43 }
 0xc90   : > { %v5694_v2 = vsel %vm525_vm0, %v12350_v21, -inf }
 0xc91   : > { %v5457_v37 = vpop.f32.mrf.mxu2 }
 0xc92   : > { %v12344_v30 = vpop.xlane.xlu2 %5722 }
 0xc95   : > { %5713 = vmax.xlane.f32.xlu1 %v5712_v9  ;;  %v472_v9 = vld [vmem:[#allocation8 + $0x278] sm:$0xff] }
 0xc96   : > { %v12358_v57 = vadd.f32 %v5457_v37, %v472_v9  ;;  %v519_v37 = vld [vmem:[#allocation8 + $0x3f0] sm:$0xff] }
 0xc97   : > { %5674 = vmax.xlane.f32.xlu0 %v5673_v45 }
 0xc99   : > { %v5631_v1 = vpop.f32.mrf.mxu2 }
 0xc9a   : > { %v5837_v55 = vpop.xlane.xlu2 %5836  ;;  %v12352_v43 = vadd.f32 %v5631_v1, %v517_v4  ;;  %v7835_v4 = vunpack.i.l.bf16 %v12143_v27  ;;  %v7836_v1 = vunpack.i.h.bf16 %v12143_v27 }
 0xc9b   : > { %8266 = vrcp.f32 %v5837_v55  ;;  %v5700_v55 = vsel %vm525_vm0, %v12358_v57, -inf }
 0xc9c   : > { %v5727_v8 = vsel %vm525_vm0, %v12352_v43, -inf }
 0xc9d   : > { %5728 = vmax.xlane.f32.xlu1 %v5727_v8  ;;  %v518_v8 = vld [vmem:[#allocation8 + $0x3e8] sm:$0xff] }
 0xc9f   : > { %5695 = vmax.xlane.f32.xlu0 %v5694_v2 }
 0xca1   : > { %v8267_v6 = vpop.eup %8266  ;;  %v5634_v45 = vpop.f32.mrf.mxu2 }
 0xca2   : > { %v5963_v53 = vmul.f32 %v8267_v6, %v12232_v11  ;;  %v5840_v46 = vpop.xlane.xlu2 %5839  ;;  %v12366_v9 = vadd.f32 %v5634_v45, %v518_v8 }
 0xca3   : > { %8268 = vrcp.f32 %v5840_v46 }
 0xca4   : > { %7361 = vmatmul.msk.f32.vlgmr.msra.gmra.mxu3 %vm525_vm0, %v5963_v53  ;;  %v5730_v53 = vsel %vm525_vm0, %v12366_v9, -inf }
 0xca5   : > { %6349 = vmatpush.msra.mxu3 %v7835_v4 }
 0xca7   : > { %6350 = vmatpush.msra.mxu3 %v7836_v1  ;;  %5701 = vmax.xlane.f32.xlu0 %v5700_v55  ;;  %v5873_v55 = vpop.xlane.xlu1 %5872 }
 0xca9   : > { %v8269_v2 = vpop.eup %8268  ;;  %v5637_v11 = vpop.f32.mrf.mxu2 }
 0xcaa   : > { %v5843_v6 = vpop.xlane.xlu2 %5842  ;;  %v5964_v58 = vmul.f32 %v8269_v2, %v12243_v0  ;;  %v12369_v46 = vadd.f32 %v5637_v11, %v519_v37 }
 0xcab   : > { %8270 = vrcp.f32 %v5843_v6 }
 0xcac   : > { %7362 = vmatmul.msk.f32.gmra.mxu3 %vm525_vm0, %v5964_v58  ;;  %v5733_v27 = vsel %vm525_vm0, %v12369_v46, -inf }
 0xcad   : > { %5734 = vmax.xlane.f32.xlu2 %v5733_v27 }
 0xcaf   : > { %5731 = vmax.xlane.f32.xlu0 %v5730_v53  ;;  %v5876_v8 = vpop.xlane.xlu1 %5875 }
 0xcb1   : > { %v8271_v4 = vpop.eup %8270 }
 0xcb2   : > { %v5846_v45 = vpop.xlane.xlu2 %5845  ;;  %v5965_v1 = vmul.f32 %v8271_v4, %v12250_v25 }
 0xcb3   : > { %8272 = vrcp.f32 %v5846_v45 }
 0xcb4   : > { %7363 = vmatmul.msk.f32.gmra.mxu3 %vm525_vm0, %v5965_v1  ;;  %8274 = vrcp.f32 %v5873_v55 }
 0xcb5   : > { %8276 = vrcp.f32 %v5876_v8 }
 0xcb7   : > { %v5672_v45 = vpop.xlane.xlu1 %5671 }
 0xcb9   : > { %v8273_v0 = vpop.eup %8272 }
 0xcba   : > { %v5966_v58 = vmul.f32 %v8273_v0, %v12254_v19  ;;  %v8275_v37 = vpop.eup %8274 }
 0xcbb   : > { %v5975_v11 = vmul.f32 %v8275_v37, %v12177_v34  ;;  %v8277_v6 = vpop.eup %8276 }
 0xcbc   : > { %7364 = vmatmul.msk.f32.gmra.mxu3 %vm525_vm0, %v5966_v58  ;;  %v5976_v53 = vmul.f32 %v8277_v6, %v12194_v60  ;;  %v5748_v58 = vsub.f32 %v12198_v24, %v5672_v45  ;;  %v5720_v24 = vpop.xlane.xlu0 %5719 }
 0xcc0   : > { %v5879_v2 = vpop.xlane.xlu2 %5878 }
 0xcc1   : > { %8278 = vrcp.f32 %v5879_v2 }
 0xcc4   : > { %7373 = vmatmul.msk.f32.vlgmr.msrb.gmra.mxu3 %vm525_vm0, %v5975_v11 }
 0xcc7   : > { %v8279_v19 = vpop.eup %8278 }
 0xcc8   : > { %v5669_v25 = vpop.xlane.xlu2 %5668  ;;  %v5977_v34 = vmul.f32 %v8279_v19, %v12261_v42 }
 0xcc9   : > { %v5747_v27 = vsub.f32 %v12266_v29, %v5669_v25  ;;  %v5789_v29 = vmul.f32 1.442695, %v5748_v58 }
 0xccb   : > { %v5787_v4 = vmul.f32 1.442695, %v5747_v27 }
 0xccc   : > { %7374 = vmatmul.msk.f32.gmra.mxu3 %vm525_vm0, %v5976_v53 }
 0xccd   : > { %8280 = vpow2.f32 %v5787_v4 }
 0xcd0   : > { %v5657_v1 = vpop.xlane.xlu2 %5656 }
 0xcd1   : > { %v5743_v55 = vsub.f32 %v12273_v41, %v5657_v1 }
 0xcd3   : > { %v12387_v0 = vpop.eup %8280  ;;  %v5779_v8 = vmul.f32 1.442695, %v5743_v55 }
 0xcd4   : > { %7375 = vmatmul.msk.f32.gmra.mxu3 %vm525_vm0, %v5977_v34  ;;  %v5859_v60 = vsel %vm525_vm0, %v12387_v0, 0.0 }
 0xcd5   : > { %8282 = vpow2.f32 %v5779_v8  ;;  %5860 = vadd.xlane.f32.xlu0 %v5859_v60 }
 0xcd6   : > { %8284 = vpow2.f32 %v5789_v29 }
 0xcd8   : > { %v5660_v37 = vpop.xlane.xlu2 %5659 }
 0xcd9   : > { %v5744_v2 = vsub.f32 %v12283_v18, %v5660_v37  ;;  %v5764_v18 = vsub.f32 %v12213_v14, %v5720_v24  ;;  %v520_v24 = vld [vmem:[#allocation8 + $0x3f8] sm:$0xff] }
 0xcdb   : > { %v12394_v11 = vpop.eup %8282  ;;  %v5781_v42 = vmul.f32 1.442695, %v5744_v2  ;;  %v5821_v58 = vmul.f32 1.442695, %v5764_v18 }
 0xcdc   : > { %v5847_v41 = vsel %vm525_vm0, %v12394_v11, 0.0  ;;  %v12398_v27 = vpop.eup %8284 }
 0xcdd   : > { %8286 = vpow2.f32 %v5781_v42  ;;  %5848 = vadd.xlane.f32.xlu0 %v5847_v41  ;;  %v5862_v55 = vsel %vm525_vm0, %v12398_v27, 0.0 }
 0xce0   : > { %v5663_v6 = vpop.xlane.xlu1 %5662  ;;  %v5678_v25 = vpop.xlane.xlu2 %5677 }
 0xce1   : > { %v5745_v53 = vsub.f32 %v12293_v47, %v5663_v6  ;;  %v5750_v4 = vsub.f32 %v12291_v49, %v5678_v25  ;;  %v12409_v47 = vpop.xlane.xlu0 %5725  ;;  %v5640_v6 = vpop.f32.mrf.mxu2 }
 0xce2   : > { %v12426_v18 = vadd.f32 %v5640_v6, %v520_v24 }
 0xce3   : > { %v12402_v19 = vpop.eup %8286  ;;  %v5783_v45 = vmul.f32 1.442695, %v5745_v53  ;;  %v5793_v1 = vmul.f32 1.442695, %v5750_v4 }
 0xce4   : > { %v5850_v34 = vsel %vm525_vm0, %v12402_v19, 0.0 }
 0xce5   : > { %8288 = vpow2.f32 %v5783_v45  ;;  %5863 = vadd.xlane.f32.xlu0 %v5862_v55  ;;  %5851 = vadd.xlane.f32.xlu2 %v5850_v34 }
 0xce6   : > { %8290 = vpow2.f32 %v5793_v1 }
 0xce7   : > { %8292 = vpow2.f32 %v5821_v58 }
 0xce8   : > { %v5666_v14 = vpop.xlane.xlu1 %5665 }
 0xce9   : > { %v5746_v42 = vsub.f32 %v12303_v51, %v5666_v14  ;;  %v5736_v51 = vsel %vm525_vm0, %v12426_v18, -inf }
 0xceb   : > { %v12411_v49 = vpop.eup %8288  ;;  %v5785_v53 = vmul.f32 1.442695, %v5746_v42 }
 0xcec   : > { %v12413_v8 = vpop.eup %8290  ;;  %v5853_v60 = vsel %vm525_vm0, %v12411_v49, 0.0 }
 0xced   : > { %5854 = vadd.xlane.f32.xlu2 %v5853_v60  ;;  %v5868_v29 = vsel %vm525_vm0, %v12413_v8, 0.0  ;;  %v12419_v37 = vpop.eup %8292 }
 0xcee   : > { %5869 = vadd.xlane.f32.xlu1 %v5868_v29  ;;  %v5910_v41 = vsel %vm525_vm0, %v12419_v37, 0.0 }
 0xcf0   : > { %v12424_v25 = vpop.xlane.xlu1 %5704  ;;  %v5693_v45 = vpop.xlane.xlu2 %5692 }
 0xcf1   : > { %v5755_v55 = vsub.f32 %v12312_v5, %v5693_v45  ;;  %v7837_v5 = vpack.i.bf16 %v13466_v20, %v13458_v40 }
 0xcf2   : > { %v5882_v2 = vpop.xlane.xlu0 %5881 }
 0xcf3   : > { %8294 = vrcp.f32 %v5882_v2  ;;  %v5803_v34 = vmul.f32 1.442695, %v5755_v55 }
 0xcf4   : > { %8296 = vpow2.f32 %v5785_v53 }
 0xcf5   : > { %5911 = vadd.xlane.f32.xlu2 %v5910_v41  ;;  %8298 = vpow2.f32 %v5803_v34 }
 0xcf8   : > { %v5708_v58 = vpop.xlane.xlu1 %5707 }
 0xcf9   : > { %v8295_v4 = vpop.eup %8294  ;;  %v5760_v29 = vsub.f32 %v12322_v32, %v5708_v58 }
 0xcfa   : > { %v5978_v1 = vmul.f32 %v8295_v4, %v12314_v54  ;;  %v12433_v14 = vpop.eup %8296 }
 0xcfb   : > { %v5856_v54 = vsel %vm525_vm0, %v12433_v14, 0.0  ;;  %v5813_v2 = vmul.f32 1.442695, %v5760_v29  ;;  %v12443_v42 = vpop.eup %8298 }
 0xcfc   : > { %7376 = vmatmul.msk.f32.gmra.mxu3 %vm525_vm0, %v5978_v1  ;;  %v5883_v32 = vsel %vm525_vm0, %v12443_v42, 0.0 }
 0xcfd   : > { %5737 = vmax.xlane.f32.xlu2 %v5736_v51  ;;  %8300 = vpow2.f32 %v5813_v2 }
 0xd00   : > { %v5711_v4 = vpop.xlane.xlu1 %5710 }
 0xd01   : > { %v5761_v1 = vsub.f32 %v12327_v16, %v5711_v4 }
 0xd02   : > { %v12435_v60 = vpop.xlane.xlu0 %5908 }
 0xd03   : > { %v12448_v53 = vpop.eup %8300  ;;  %v5815_v34 = vmul.f32 1.442695, %v5761_v1 }
 0xd05   : > { %5857 = vadd.xlane.f32.xlu2 %v5856_v54  ;;  %v5699_v54 = vpop.xlane.xlu2 %5698 }
 0xd07   : > { %7838 = vrot.lane.b32.xlu1 %v7837_v5, %s8603_s17  ;;  %v5757_v5 = vsub.f32 %v12329_v44, %v5699_v54  ;;  %v7842_v44 = vpack.i.bf16 %v13467_v63, %v13462_v61 }
 0xd0a   : > { %v5675_v41 = vpop.xlane.xlu0 %5674 }
 0xd0b   : > { %v5749_v24 = vsub.f32 %v12342_v38, %v5675_v41  ;;  %v5898_v38 = vsel %vm525_vm0, %v12448_v53, 0.0  ;;  %v5714_v41 = vpop.xlane.xlu1 %5713 }
 0xd0d   : > { %v5791_v6 = vmul.f32 1.442695, %v5749_v24  ;;  %5884 = vadd.xlane.f32.xlu2 %v5883_v32  ;;  %v5762_v32 = vsub.f32 %v12339_v12, %v5714_v41 }
 0xd0f   : > { %8302 = vpow2.f32 %v5791_v6  ;;  %v5807_v6 = vmul.f32 1.442695, %v5757_v5 }
 0xd12   : > { %v5696_v45 = vpop.xlane.xlu0 %5695 }
 0xd13   : > { %v5756_v40 = vsub.f32 %v12350_v21, %v5696_v45  ;;  %v5766_v21 = vsub.f32 %v12234_v56, %v12409_v47  ;;  %v5817_v45 = vmul.f32 1.442695, %v5762_v32  ;;  %v5729_v61 = vpop.xlane.xlu1 %5728 }
 0xd15   : > { %v12451_v20 = vpop.eup %8302  ;;  %v5805_v55 = vmul.f32 1.442695, %v5756_v40  ;;  %5899 = vadd.xlane.f32.xlu2 %v5898_v38  ;;  %v5825_v2 = vmul.f32 1.442695, %v5766_v21 }
 0xd16   : > { %v5865_v51 = vsel %vm525_vm0, %v12451_v20, 0.0 }
 0xd17   : > { %8304 = vpow2.f32 %v5805_v55  ;;  %5866 = vadd.xlane.f32.xlu0 %v5865_v51 }
 0xd18   : > { %8306 = vpow2.f32 %v5815_v34  ;;  %v5767_v34 = vsub.f32 %v12352_v43, %v5729_v61 }
 0xd19   : > { %8308 = vpow2.f32 %v5825_v2  ;;  %v5759_v2 = vsub.f32 %v12310_v48, %v12424_v25 }
 0xd1a   : > { %v5702_v58 = vpop.xlane.xlu0 %5701  ;;  %8310 = vpow2.f32 %v5807_v6 }
 0xd1b   : > { %8312 = vpow2.f32 %v5817_v45  ;;  %v5758_v12 = vsub.f32 %v12358_v57, %v5702_v58  ;;  %v5827_v58 = vmul.f32 1.442695, %v5767_v34  ;;  %v5811_v6 = vmul.f32 1.442695, %v5759_v2 }
 0xd1d   : > { %v12458_v29 = vpop.eup %8304 }
 0xd1e   : > { %v5886_v16 = vsel %vm525_vm0, %v12458_v29, 0.0  ;;  %v12465_v24 = vpop.eup %8306 }
 0xd1f   : > { %5887 = vadd.xlane.f32.xlu2 %v5886_v16  ;;  %v5901_v56 = vsel %vm525_vm0, %v12465_v24, 0.0  ;;  %v12473_v40 = vpop.eup %8308 }
 0xd20   : > { %v12477_v55 = vpop.eup %8310  ;;  %v5916_v38 = vsel %vm525_vm0, %v12473_v40, 0.0 }
 0xd21   : > { %v5889_v51 = vsel %vm525_vm0, %v12477_v55, 0.0  ;;  %v12483_v63 = vpop.eup %8312 }
 0xd22   : > { %v5732_v4 = vpop.xlane.xlu0 %5731  ;;  %v5904_v57 = vsel %vm525_vm0, %v12483_v63, 0.0 }
 0xd23   : > { %v5768_v47 = vsub.f32 %v12366_v9, %v5732_v4  ;;  %v5809_v9 = vmul.f32 1.442695, %v5758_v12 }
 0xd25   : > { %v5829_v1 = vmul.f32 1.442695, %v5768_v47  ;;  %v5735_v47 = vpop.xlane.xlu2 %5734 }
 0xd27   : > { %5902 = vadd.xlane.f32.xlu2 %v5901_v56  ;;  %8314 = vpow2.f32 %v5829_v1 }
 0xd28   : > { %8316 = vpow2.f32 %v5809_v9  ;;  %v13526_v9 = vld [vmem:[#allocation104_spill] sm:$0xff] }
 0xd29   : > { %8318 = vpow2.f32 %v5827_v58 }
 0xd2b   : > { %7843 = vrot.lane.b32.xlu0 %v7842_v44, %s8603_s17 }
 0xd2d   : > { %v12486_v21 = vpop.eup %8314 }
 0xd2e   : > { %v5922_v54 = vsel %vm525_vm0, %v12486_v21, 0.0  ;;  %v12492_v16 = vpop.eup %8316 }
 0xd2f   : > { %5917 = vadd.xlane.f32.xlu2 %v5916_v38  ;;  %v5892_v5 = vsel %vm525_vm0, %v12492_v16, 0.0  ;;  %v12496_v43 = vpop.eup %8318 }
 0xd30   : > { %v5919_v41 = vsel %vm525_vm0, %v12496_v43, 0.0 }
 0xd31   : > { %5890 = vadd.xlane.f32.xlu1 %v5889_v51 }
 0xd37   : > { %5905 = vadd.xlane.f32.xlu2 %v5904_v57 }
 0xd39   : > { %5923 = vadd.xlane.f32.xlu1 %v5922_v54  ;;  %v13527_v54 = vld [vmem:[#allocation98_spill] sm:$0xff] }
 0xd3f   : > { %5893 = vadd.xlane.f32.xlu2 %v5892_v5 }
 0xd47   : > { %5920 = vadd.xlane.f32.xlu2 %v5919_v41 }
 0xd48   : > { %v5861_v32 = vpop.xlane.xlu0 %5860 }
 0xd49   : > { %8320 = vrcp.f32 %v5861_v32 }
 0xd4a   : > { %8322 = vpow2.f32 %v5811_v6 }
 0xd4f   : > { %v8321_v4 = vpop.eup %8320 }
 0xd50   : > { %v12502_v56 = vpop.eup %8322  ;;  %v5971_v45 = vmul.f32 %v8321_v4, %v12387_v0  ;;  %v5849_v44 = vpop.xlane.xlu0 %5848 }
 0xd51   : > { %8324 = vrcp.f32 %v5849_v44  ;;  %v5895_v48 = vsel %vm525_vm0, %v12502_v56, 0.0 }
 0xd52   : > { %7369 = vmatmul.msk.f32.vlgmr.msrb.gmra.mxu2 %vm525_vm0, %v5971_v45 }
 0xd55   : > { %5896 = vadd.xlane.f32.xlu0 %v5895_v48 }
 0xd57   : > { %v8325_v25 = vpop.eup %8324 }
 0xd58   : > { %v5967_v1 = vmul.f32 %v8325_v25, %v12394_v11  ;;  %v5864_v12 = vpop.xlane.xlu0 %5863  ;;  %v5852_v38 = vpop.xlane.xlu2 %5851 }
 0xd59   : > { %8326 = vrcp.f32 %v5864_v12 }
 0xd5a   : > { %8328 = vrcp.f32 %v5852_v38  ;;  %7365 = vmatmul.msk.f32.vlgmr.msra.gmra.mxu1 %vm525_vm0, %v5967_v1 }
 0xd5f   : > { %7853 = vrot.lane.b32.xlu2 %v13526_v9, %s8603_s17  ;;  %v8327_v0 = vpop.eup %8326 }
 0xd60   : > { %v8329_v51 = vpop.eup %8328  ;;  %v5855_v61 = vpop.xlane.xlu2 %5854  ;;  %v5972_v34 = vmul.f32 %v8327_v0, %v12398_v27 }
 0xd61   : > { %8330 = vrcp.f32 %v5855_v61  ;;  %v5968_v57 = vmul.f32 %v8329_v51, %v12402_v19  ;;  %v5870_v41 = vpop.xlane.xlu1 %5869  ;;  %v5769_v19 = vsub.f32 %v12369_v46, %v5735_v47  ;;  %v5765_v46 = vsub.f32 %v12224_v50, %v12344_v30 }
 0xd62   : > { %7370 = vmatmul.msk.f32.gmra.mxu2 %vm525_vm0, %v5972_v34 }
 0xd63   : > { %7366 = vmatmul.msk.f32.gmra.mxu1 %vm525_vm0, %v5968_v57  ;;  %v5831_v4 = vmul.f32 1.442695, %v5769_v19  ;;  %v5823_v12 = vmul.f32 1.442695, %v5765_v46 }
 0xd67   : > { %v8331_v11 = vpop.eup %8330 }
 0xd68   : > { %v5912_v58 = vpop.xlane.xlu2 %5911  ;;  %v5969_v5 = vmul.f32 %v8331_v11, %v12411_v49 }
 0xd69   : > { %7848 = vrot.lane.b32.xlu0 %v13527_v54, %s8603_s17 }
 0xd6b   : > { %7367 = vmatmul.msk.f32.gmra.mxu1 %vm525_vm0, %v5969_v5 }
 0xd70   : > { %v5738_v2 = vpop.xlane.xlu2 %5737 }
 0xd71   : > { %v5770_v27 = vsub.f32 %v12426_v18, %v5738_v2 }
 0xd73   : > { %v5833_v6 = vmul.f32 1.442695, %v5770_v27 }
 0xd75   : > { %8332 = vpow2.f32 %v5833_v6 }
 0xd78   : > { %v5858_v32 = vpop.xlane.xlu2 %5857 }
 0xd79   : > { %v7839_v45 = vpop.permute.xlu1 %7838  ;;  %8334 = vrcp.f32 %v5858_v32 }
 0xd7a   : > { %v7841_v44 = vunpack.i.h.bf16 %v7839_v45  ;;  %v7840_v48 = vunpack.i.l.bf16 %v7839_v45  ;;  %8336 = vpow2.f32 %v5831_v4 }
 0xd7b   : > { %v12522_v25 = vpop.eup %8332  ;;  %8338 = vpow2.f32 %v5823_v12 }
 0xd7c   : > { %6243 = vmatpush.msrb.mxu1 %v7841_v44  ;;  %6351 = vmatpush.msra.mxu3 %v7840_v48  ;;  %v5928_v49 = vsel %vm525_vm0, %v12522_v25, 0.0  ;;  %v12552_v44 = vld [vmem:[#allocation7 + $0x18] sm:$0xff] }
 0xd7d   : > { %5929 = vadd.xlane.f32.xlu1 %v5928_v49  ;;  %7432 = vmatpush.msrb.mxu2 %v12552_v44 }
 0xd7f   : > { %v8335_v18 = vpop.eup %8334 }
 0xd80   : > { %v5970_v47 = vmul.f32 %v8335_v18, %v12433_v14  ;;  %v12530_v1 = vpop.eup %8336  ;;  %v5885_v51 = vpop.xlane.xlu2 %5884 }
 0xd81   : > { %v5925_v38 = vsel %vm525_vm0, %v12530_v1, 0.0  ;;  %v12534_v0 = vpop.eup %8338 }
 0xd82   : > { %7368 = vmatmul.msk.f32.gmra.mxu1 %vm525_vm0, %v5970_v47  ;;  %v5913_v50 = vsel %vm525_vm0, %v12534_v0, 0.0 }
 0xd88   : > { %5926 = vadd.xlane.f32.xlu2 %v5925_v38  ;;  %v5900_v34 = vpop.xlane.xlu2 %5899 }
 0xd8a   : > { %v5867_v9 = vpop.xlane.xlu0 %5866 }
 0xd8b   : > { %8340 = vrcp.f32 %v5867_v9 }
 0xd8c   : > { %8342 = vrcp.f32 %v5870_v41 }
 0xd8d   : > { %8344 = vrcp.f32 %v12435_v60  ;;  %v7857_v60 = vpack.i.bf16 %v13473_v22, %v13486_v36 }
 0xd8e   : > { %8346 = vrcp.f32 %v5912_v58 }
 0xd91   : > { %v8341_v61 = vpop.eup %8340 }
 0xd92   : > { %v5973_v30 = vmul.f32 %v8341_v61, %v12451_v20  ;;  %v8343_v14 = vpop.eup %8342  ;;  %v5888_v20 = vpop.xlane.xlu2 %5887 }
 0xd93   : > { %5914 = vadd.xlane.f32.xlu0 %v5913_v50  ;;  %v5974_v57 = vmul.f32 %v8343_v14, %v12413_v8  ;;  %v8345_v11 = vpop.eup %8344 }
 0xd94   : > { %7371 = vmatmul.msk.f32.gmra.mxu2 %vm525_vm0, %v5973_v30  ;;  %v5987_v41 = vmul.f32 %v8345_v11, %v12331_v7  ;;  %v8347_v27 = vpop.eup %8346 }
 0xd95   : > { %v5988_v8 = vmul.f32 %v8347_v27, %v12419_v37 }
 0xd9a   : > { %v5903_v58 = vpop.xlane.xlu2 %5902 }
 0xd9c   : > { %7372 = vmatmul.msk.f32.gmra.mxu2 %vm525_vm0, %v5974_v57 }
 0xd9d   : > { %v7844_v54 = vpop.permute.xlu0 %7843 }
 0xd9e   : > { %v7846_v5 = vunpack.i.h.bf16 %v7844_v54  ;;  %v7845_v2 = vunpack.i.l.bf16 %v7844_v54 }
 0xda0   : > { %6244 = vmatpush.msrb.mxu1 %v7846_v5  ;;  %6352 = vmatpush.msra.mxu3 %v7845_v2 }
 0xda1   : > { %7385 = vmatmul.msk.f32.vlgmr.msra.gmra.mxu3 %vm525_vm0, %v5987_v41 }
 0xda2   : > { %v5918_v6 = vpop.xlane.xlu2 %5917  ;;  %7433 = vmatpush.msrb.mxu3 %v12552_v44 }
 0xda7   : > { %7858 = vrot.lane.b32.xlu0 %v7857_v60, %s8603_s17 }
 0xda9   : > { %7386 = vmatmul.msk.f32.gmra.mxu3 %vm525_vm0, %v5988_v8 }
 0xdaa   : > { %v5906_v19 = vpop.xlane.xlu2 %5905 }
 0xdb2   : > { %v5894_v7 = vpop.xlane.xlu2 %5893 }
 0xdba   : > { %v5921_v22 = vpop.xlane.xlu2 %5920 }
 0xdc2   : > { %v7854_v46 = vpop.permute.xlu2 %7853 }
 0xdc3   : > { %v7855_v38 = vunpack.i.l.bf16 %v7854_v46 }
 0xdc8   : > { %v5897_v32 = vpop.xlane.xlu0 %5896 }
 0xdc9   : > { %8348 = vrcp.f32 %v5897_v32 }
 0xdca   : > { %8350 = vrcp.f32 %v5900_v34 }
 0xdcb   : > { %8352 = vrcp.f32 %v5885_v51  ;;  %v5891_v51 = vpop.xlane.xlu1 %5890 }
 0xdcc   : > { %8354 = vrcp.f32 %v5903_v58 }
 0xdcd   : > { %8356 = vrcp.f32 %v5888_v20 }
 0xdce   : > { %8358 = vrcp.f32 %v5906_v19 }
 0xdcf   : > { %v8349_v4 = vpop.eup %8348  ;;  %8360 = vrcp.f32 %v5891_v51 }
 0xdd0   : > { %v5983_v45 = vmul.f32 %v8349_v4, %v12502_v56  ;;  %v8351_v36 = vpop.eup %8350  ;;  %8362 = vrcp.f32 %v5894_v7 }
 0xdd1   : > { %v5984_v37 = vmul.f32 %v8351_v36, %v12448_v53  ;;  %v8353_v49 = vpop.eup %8352  ;;  %v7856_v53 = vunpack.i.h.bf16 %v7854_v46 }
 0xdd2   : > { %7381 = vmatmul.msk.f32.vlgmr.msra.gmra.mxu2 %vm525_vm0, %v5983_v45  ;;  %v8355_v56 = vpop.eup %8354  ;;  %v5979_v12 = vmul.f32 %v8353_v49, %v12443_v42 }
 0xdd3   : > { %v5985_v9 = vmul.f32 %v8355_v56, %v12465_v24  ;;  %v8357_v61 = vpop.eup %8356  ;;  %v5924_v8 = vpop.xlane.xlu1 %5923 }
 0xdd4   : > { %v8359_v50 = vpop.eup %8358  ;;  %v5980_v30 = vmul.f32 %v8357_v61, %v12458_v29  ;;  %v6036_v29 = vpop.f32.mrf.mxu3 }
 0xdd5   : > { %v5986_v42 = vmul.f32 %v8359_v50, %v12483_v63  ;;  %v8361_v24 = vpop.eup %8360  ;;  %v6142_v34 = vpop.f32.mrf.mxu2 }
 0xdd6   : > { %v5981_v14 = vmul.f32 %v8361_v24, %v12477_v55  ;;  %v8363_v57 = vpop.eup %8362 }
 0xdd7   : > { %v5982_v11 = vmul.f32 %v8363_v57, %v12492_v16 }
 0xdda   : > { %7382 = vmatmul.msk.f32.gmra.mxu2 %vm525_vm0, %v5984_v37 }
 0xddb   : > { %v7849_v48 = vpop.permute.xlu0 %7848 }
 0xddc   : > { %v7850_v18 = vunpack.i.l.bf16 %v7849_v48  ;;  %v7851_v47 = vunpack.i.h.bf16 %v7849_v48  ;;  %v6039_v63 = vpop.f32.mrf.mxu3 }
 0xdde   : > { %6245 = vmatpush.msrb.mxu1 %v7850_v18 }
 0xde0   : > { %6246 = vmatpush.msrb.mxu1 %v7851_v47  ;;  %v5051_v47 = vpop.f32.mrf.mxu0 }
 0xde1   : > { %7377 = vmatmul.msk.f32.vlgmr.msrb.gmra.mxu1 %vm525_vm0, %v5979_v12 }
 0xde2   : > { %6402 = vmatpush.msra.mxu1 %v7855_v38  ;;  %7383 = vmatmul.msk.f32.gmra.mxu2 %vm525_vm0, %v5985_v9 }
 0xde4   : > { %6403 = vmatpush.msra.mxu1 %v7856_v53  ;;  %v6042_v55 = vpop.f32.mrf.mxu3 }
 0xde5   : > { %v6145_v54 = vpop.f32.mrf.mxu2 }
 0xde8   : > { %v5054_v38 = vpop.f32.mrf.mxu0 }
 0xde9   : > { %7378 = vmatmul.msk.f32.gmra.mxu1 %vm525_vm0, %v5980_v30 }
 0xdea   : > { %7384 = vmatmul.msk.f32.gmra.mxu2 %vm525_vm0, %v5986_v42 }
 0xdec   : > { %v6045_v60 = vpop.f32.mrf.mxu3 }
 0xdf0   : > { %v5930_v36 = vpop.xlane.xlu1 %5929  ;;  %v5057_v50 = vpop.f32.mrf.mxu0 }
 0xdf1   : > { %7379 = vmatmul.msk.f32.gmra.mxu1 %vm525_vm0, %v5981_v14  ;;  %v13528_v14 = vld [vmem:[#allocation152_spill] sm:$0xff] }
 0xdf2   : > { %7401 = vmatmul.msk.f32.vlgmr.msrb.gmra.mxu2 %vm747_vm1, %v6142_v34  ;;  %v3579_v34 = vadd.f32 %v13528_v14, %v11820_v13  ;;  %v13529_v13 = vld [vmem:[#allocation127_spill] sm:$0xff] }
 0xdf4   : > { %v6195_v45 = vpop.f32.mrf.mxu3 }
 0xdf8   : > { %v5060_v24 = vpop.f32.mrf.mxu0 }
 0xdf9   : > { %7380 = vmatmul.msk.f32.gmra.mxu1 %vm525_vm0, %v5982_v11  ;;  %v5131_v11 = vadd.f32 %v5051_v47, %v3579_v34  ;;  %v13536_v34 = vld [vmem:[#allocation42_spill] sm:$0xff] }
 0xdfa   : > { %7402 = vmatmul.msk.f32.gmra.mxu2 %vm747_vm1, %v6145_v54  ;;  %v12610_v54 = vld [vmem:[%s12847_s4] ss:$0 sm:$0xff] }
 0xdfc   : > { %v6198_v37 = vpop.f32.mrf.mxu3 }
 0xe04   : > { %v6201_v18 = vpop.f32.mrf.mxu3 }
 0xe06   : > { %v5915_v5 = vpop.xlane.xlu0 %5914 }
 0xe07   : > { %8364 = vrcp.f32 %v5915_v5 }
 0xe08   : > { %8366 = vrcp.f32 %v5918_v6 }
 0xe09   : > { %8368 = vrcp.f32 %v5921_v22 }
 0xe0a   : > { %8370 = vrcp.f32 %v5924_v8 }
 0xe0c   : > { %v6204_v56 = vpop.f32.mrf.mxu3 }
 0xe0d   : > { %v8365_v2 = vpop.eup %8364 }
 0xe0e   : > { %v5989_v41 = vmul.f32 %v8365_v2, %v12534_v0  ;;  %v8367_v20 = vpop.eup %8366 }
 0xe0f   : > { %v5990_v16 = vmul.f32 %v8367_v20, %v12473_v40  ;;  %v8369_v19 = vpop.eup %8368  ;;  %v5927_v40 = vpop.xlane.xlu2 %5926 }
 0xe10   : > { %7387 = vmatmul.msk.f32.gmra.mxu3 %vm525_vm0, %v5989_v41  ;;  %v5991_v0 = vmul.f32 %v8369_v19, %v12496_v43  ;;  %v8371_v4 = vpop.eup %8370  ;;  %8372 = vrcp.f32 %v5927_v40  ;;  %v5063_v41 = vpop.f32.mrf.mxu0 }
 0xe11   : > { %v5992_v22 = vmul.f32 %v8371_v4, %v12486_v21  ;;  %8374 = vrcp.f32 %v5930_v36  ;;  %v6089_v21 = vpop.f32.mrf.mxu1 }
 0xe16   : > { %v8373_v43 = vpop.eup %8372 }
 0xe17   : > { %v6148_v27 = vpop.f32.mrf.mxu2  ;;  %v5993_v48 = vmul.f32 %v8373_v43, %v12530_v1  ;;  %v13531_v43 = vld [vmem:[#allocation133_spill] sm:$0xff] }
 0xe18   : > { %7388 = vmatmul.msk.f32.gmra.mxu3 %vm525_vm0, %v5990_v16  ;;  %7403 = vmatmul.msk.f32.gmra.mxu2 %vm747_vm1, %v6148_v27 }
 0xe19   : > { %v7859_v58 = vpop.permute.xlu0 %7858  ;;  %v6092_v46 = vpop.f32.mrf.mxu1 }
 0xe1a   : > { %v7860_v32 = vunpack.i.l.bf16 %v7859_v58  ;;  %v7861_v6 = vunpack.i.h.bf16 %v7859_v58 }
 0xe1c   : > { %6404 = vmatpush.msra.mxu1 %v7860_v32  ;;  %v13530_v32 = vld [vmem:[#allocation158_spill] sm:$0xff] }
 0xe1e   : > { %6405 = vmatpush.msra.mxu1 %v7861_v6  ;;  %v3585_v6 = vadd.f32 %v13530_v32, %v11846_v3 }
 0xe1f   : > { %v6151_v7 = vpop.f32.mrf.mxu2  ;;  %7389 = vmatmul.msk.f32.vlgmr.msra.gmra.mxu1 %vm525_vm0, %v5991_v0 }
 0xe20   : > { %7404 = vmatmul.msk.f32.gmra.mxu2 %vm747_vm1, %v6151_v7  ;;  %6530 = vmatpush.msrb.mxu1 %v12552_v44  ;;  %v8375_v44 = vpop.eup %8374  ;;  %v5133_v7 = vadd.f32 %v5057_v50, %v3585_v6 }
 0xe21   : > { %v5994_v49 = vmul.f32 %v8375_v44, %v12522_v25  ;;  %v6095_v1 = vpop.f32.mrf.mxu1 }
 0xe24   : > { %v6354_v57 = vpop.f32.mrf.mxu3 }
 0xe27   : > { %7390 = vmatmul.msk.f32.gmra.mxu1 %vm525_vm0, %v5992_v22 }
 0xe28   : > { %7405 = vmatmul.msk.f32.gmra.mxu2 %vm747_vm1, %v6195_v45 }
 0xe29   : > { %v6098_v25 = vpop.f32.mrf.mxu1 }
 0xe2c   : > { %v6357_v16 = vpop.f32.mrf.mxu3 }
 0xe2f   : > { %7391 = vmatmul.msk.f32.gmra.mxu1 %vm525_vm0, %v5993_v48 }
 0xe30   : > { %7406 = vmatmul.msk.f32.gmra.mxu2 %vm747_vm1, %v6198_v37  ;;  %v3588_v37 = vadd.f32 %v13531_v43, %v11864_v10  ;;  %v13542_v43 = vld [vmem:[#allocation135_spill] sm:$0xff] }
 0xe32   : > { %v5134_v48 = vadd.f32 %v5060_v24, %v3588_v37  ;;  %v13534_v24 = vld [vmem:[#allocation138_spill] sm:$0xff] }
 0xe33   : > { %v3597_v14 = vadd.f32 %v13534_v24, %v11921_v31 }
 0xe37   : > { %7392 = vmatmul.msk.f32.gmra.mxu1 %vm525_vm0, %v5994_v49 }
 0xe38   : > { %7407 = vmatmul.msk.f32.gmra.mxu2 %vm747_vm1, %v6201_v18 }
 0xe3f   : > { %7393 = vmatmul.msk.f32.vlgmr.msrb.gmra.mxu1 %vm747_vm1, %v6036_v29 }
 0xe40   : > { %7408 = vmatmul.msk.f32.gmra.mxu2 %vm747_vm1, %v6204_v56  ;;  %v13532_v56 = vld [vmem:[#allocation157_spill] sm:$0xff] }
 0xe47   : > { %7394 = vmatmul.msk.f32.gmra.mxu1 %vm747_vm1, %v6039_v63 }
 0xe4f   : > { %7395 = vmatmul.msk.f32.gmra.mxu1 %vm747_vm1, %v6042_v55  ;;  %v3582_v55 = vadd.f32 %v13529_v13, %v11832_v39  ;;  %v5066_v39 = vpop.f32.mrf.mxu0 }
 0xe51   : > { %v5132_v20 = vadd.f32 %v5054_v38, %v3582_v55 }
 0xe55   : > { %v6301_v12 = vpop.f32.mrf.mxu2 }
 0xe56   : > { %7413 = vmatmul.msk.f32.vlgmr.msrb.gmra.mxu3 %vm747_vm1, %v6301_v12 }
 0xe57   : > { %7396 = vmatmul.msk.f32.gmra.mxu1 %vm747_vm1, %v6045_v60  ;;  %v5069_v58 = vpop.f32.mrf.mxu0 }
 0xe5d   : > { %v6304_v9 = vpop.f32.mrf.mxu2 }
 0xe5e   : > { %v6248_v53 = vpop.f32.mrf.mxu1  ;;  %7414 = vmatmul.msk.f32.gmra.mxu3 %vm747_vm1, %v6304_v9  ;;  %v13533_v9 = vld [vmem:[#allocation134_spill] sm:$0xff] }
 0xe5f   : > { %7397 = vmatmul.msk.f32.gmra.mxu1 %vm747_vm1, %v6089_v21  ;;  %7409 = vmatmul.msk.f32.gmra.mxu2 %vm747_vm1, %v6248_v53  ;;  %v5072_v0 = vpop.f32.mrf.mxu0  ;;  %v3594_v53 = vadd.f32 %v13533_v9, %v11899_v62  ;;  %v13535_v62 = vld [vmem:[#allocation107_spill] sm:$0xff] }
 0xe65   : > { %v6307_v51 = vpop.f32.mrf.mxu2 }
 0xe66   : > { %v6251_v61 = vpop.f32.mrf.mxu1  ;;  %7415 = vmatmul.msk.f32.gmra.mxu3 %vm747_vm1, %v6307_v51  ;;  %v5136_v51 = vadd.f32 %v5066_v39, %v3594_v53 }
 0xe67   : > { %7398 = vmatmul.msk.f32.gmra.mxu1 %vm747_vm1, %v6092_v46  ;;  %7410 = vmatmul.msk.f32.gmra.mxu2 %vm747_vm1, %v6251_v61  ;;  %v12637_v44 = vpop.f32.mrf.mxu0  ;;  %v3591_v46 = vadd.f32 %v13532_v56, %v11882_v33 }
 0xe6d   : > { %v6310_v30 = vpop.f32.mrf.mxu2 }
 0xe6e   : > { %v6254_v42 = vpop.f32.mrf.mxu1  ;;  %7416 = vmatmul.msk.f32.gmra.mxu3 %vm747_vm1, %v6310_v30 }
 0xe6f   : > { %7399 = vmatmul.msk.f32.gmra.mxu1 %vm747_vm1, %v6095_v1  ;;  %7411 = vmatmul.msk.f32.gmra.mxu2 %vm747_vm1, %v6254_v42  ;;  %v5135_v1 = vadd.f32 %v5063_v41, %v3591_v46  ;;  %v3600_v41 = vadd.f32 %v11631_v23, %v11947_v59  ;;  %v13539_v59 = vld [vmem:[#allocation101_spill] sm:$0xff] }
 0xe75   : > { %v6556_v29 = vpop.f32.mrf.mxu2 }
 0xe76   : > { %v6636_v63 = vadd.f32 %v6556_v29, %v5131_v11  ;;  %v6257_v5 = vpop.f32.mrf.mxu1  ;;  %7417 = vmatmul.msk.f32.gmra.mxu3 %vm747_vm1, %v6354_v57  ;;  %v3555_v57 = vadd.f32 %v13536_v34, %v13535_v62  ;;  %v5137_v11 = vadd.f32 %v5069_v58, %v3597_v14 }
 0xe77   : > { %7400 = vmatmul.msk.f32.gmra.mxu1 %vm747_vm1, %v6098_v25  ;;  %7412 = vmatmul.msk.f32.gmra.mxu2 %vm747_vm1, %v6257_v5  ;;  %v12646_v25 = vpop.f32.mrf.mxu0 }
 0xe78   : > { %v6672_v2 = vadd.f32 %v12610_v54, %v6636_v63  ;;  %v5123_v29 = vadd.f32 %v12170_v52, %v3555_v57  ;;  %v13550_v57 = vld [vmem:[#allocation45_spill] sm:$0xff] }
 0xe7a   : > { %6704 = vst.msk [vmem:[%s12620_s18 + $0x40] sm:$0xff] %vm525_vm0, %v6672_v2 }
 0xe7d   : > { %v6559_v27 = vpop.f32.mrf.mxu2 }
 0xe7e   : > { %v6637_v60 = vadd.f32 %v6559_v27, %v5132_v20  ;;  %7418 = vmatmul.msk.f32.gmra.mxu3 %vm747_vm1, %v6357_v16  ;;  %v13537_v20 = vld [vmem:[#allocation97_spill] sm:$0xff]  ;;  %v13538_v16 = vld [vmem:[#allocation22_spill] sm:$0xff] }
 0xe7f   : > { %v12655_v42 = vpop.f32.mrf.mxu0  ;;  %v3558_v52 = vadd.f32 %v13538_v16, %v13537_v20 }
 0xe80   : > { %v6673_v8 = vadd.f32 %v12610_v54, %v6637_v60  ;;  %v5138_v60 = vadd.f32 %v5072_v0, %v3600_v41 }
 0xe82   : > { %6705 = vst.msk [vmem:[%s12620_s18 + $0x48] sm:$0xff] %vm525_vm0, %v6673_v8  ;;  %v5124_v8 = vadd.f32 %v12187_v17, %v3558_v52 }
 0xe87   : > { %v12673_v27 = vpop.f32.mrf.mxu0 }
 0xe8f   : > { %v5087_v17 = vpop.f32.mrf.mxu0 }
 0xe93   : > { %v6360_v19 = vpop.f32.mrf.mxu3 }
 0xe94   : > { %7419 = vmatmul.msk.f32.gmra.mxu3 %vm747_vm1, %v6360_v19 }
 0xe9b   : > { %v6363_v40 = vpop.f32.mrf.mxu3  ;;  %v6562_v4 = vpop.f32.mrf.mxu2 }
 0xe9c   : > { %v6638_v45 = vadd.f32 %v6562_v4, %v5133_v7  ;;  %v6407_v22 = vpop.f32.mrf.mxu1  ;;  %7420 = vmatmul.msk.f32.gmra.mxu3 %vm747_vm1, %v6363_v40  ;;  %v13540_v7 = vld [vmem:[#allocation139_spill] sm:$0xff] }
 0xe9d   : > { %v3561_v40 = vadd.f32 %v13540_v7, %v13539_v59  ;;  %v13558_v59 = vld [vmem:[#allocation20_spill] sm:$0xff] }
 0xe9e   : > { %v6674_v36 = vadd.f32 %v12610_v54, %v6638_v45 }
 0xe9f   : > { %v5125_v0 = vadd.f32 %v12202_v28, %v3561_v40 }
 0xea0   : > { %6706 = vst.msk [vmem:[%s12620_s18 + $0x50] sm:$0xff] %vm525_vm0, %v6674_v36  ;;  %v13541_v36 = vld [vmem:[#allocation65_spill] sm:$0xff] }
 0xea1   : > { %v3564_v37 = vadd.f32 %v13542_v43, %v13541_v36 }
 0xea3   : > { %v6565_v3 = vpop.f32.mrf.mxu2 }
 0xea4   : > { %v6639_v49 = vadd.f32 %v6565_v3, %v5134_v48  ;;  %v6410_v18 = vpop.f32.mrf.mxu1  ;;  %7421 = vmatmul.msk.f32.gmra.mxu3 %vm747_vm1, %v6407_v22  ;;  %v5126_v48 = vadd.f32 %v12259_v35, %v3564_v37 }
 0xea6   : > { %v6675_v21 = vadd.f32 %v12610_v54, %v6639_v49  ;;  %v5090_v49 = vpop.f32.mrf.mxu0 }
 0xea8   : > { %6707 = vst.msk [vmem:[%s12620_s18 + $0x58] sm:$0xff] %vm525_vm0, %v6675_v21  ;;  %v13543_v21 = vld [vmem:[#allocation154_spill] sm:$0xff] }
 0xea9   : > { %v3615_v56 = vadd.f32 %v13543_v21, %v12031_v26  ;;  %v13561_v21 = vld [vmem:[#allocation30_spill] sm:$0xff] }
 0xeab   : > { %v6568_v10 = vpop.f32.mrf.mxu2  ;;  %v5143_v46 = vadd.f32 %v5087_v17, %v3615_v56 }
 0xeac   : > { %v6640_v47 = vadd.f32 %v6568_v10, %v5135_v1  ;;  %v6413_v12 = vpop.f32.mrf.mxu1  ;;  %7422 = vmatmul.msk.f32.gmra.mxu3 %vm747_vm1, %v6410_v18  ;;  %v13544_v1 = vld [vmem:[#allocation56_spill] sm:$0xff]  ;;  %v13545_v10 = vld [vmem:[#allocation137_spill] sm:$0xff] }
 0xeae   : > { %v6676_v38 = vadd.f32 %v12610_v54, %v6640_v47  ;;  %v3567_v47 = vadd.f32 %v13545_v10, %v13544_v1  ;;  %v5093_v14 = vpop.f32.mrf.mxu0 }
 0xeb0   : > { %6708 = vst.msk [vmem:[%s12620_s18 + $0x60] sm:$0xff] %vm525_vm0, %v6676_v38  ;;  %v5127_v35 = vadd.f32 %v12269_v15, %v3567_v47  ;;  %v13564_v47 = vld [vmem:[#allocation131_spill] sm:$0xff] }
 0xeb3   : > { %v6571_v33 = vpop.f32.mrf.mxu2 }
 0xeb4   : > { %v6641_v61 = vadd.f32 %v6571_v33, %v5136_v51  ;;  %v6416_v50 = vpop.f32.mrf.mxu1  ;;  %7423 = vmatmul.msk.f32.gmra.mxu3 %vm747_vm1, %v6413_v12  ;;  %v13546_v33 = vld [vmem:[#allocation62_spill] sm:$0xff] }
 0xeb6   : > { %v6677_v30 = vadd.f32 %v12610_v54, %v6641_v61  ;;  %v13547_v61 = vld [vmem:[#allocation160_spill] sm:$0xff] }
 0xeb7   : > { %v3618_v26 = vadd.f32 %v13547_v61, %v13546_v33  ;;  %v13566_v33 = vld [vmem:[#allocation156_spill] sm:$0xff] }
 0xeb8   : > { %6709 = vst.msk [vmem:[%s12620_s18 + $0x68] sm:$0xff] %vm525_vm0, %v6677_v30  ;;  %v13549_v30 = vld [vmem:[#allocation143_spill] sm:$0xff] }
 0xeb9   : > { %v5144_v34 = vadd.f32 %v5090_v49, %v3618_v26 }
 0xebb   : > { %v6574_v63 = vpop.f32.mrf.mxu2 }
 0xebc   : > { %v6642_v5 = vadd.f32 %v6574_v63, %v5137_v11  ;;  %v6532_v2 = vpop.f32.mrf.mxu1  ;;  %7424 = vmatmul.msk.f32.gmra.mxu3 %vm747_vm1, %v6416_v50  ;;  %v13548_v50 = vld [vmem:[#allocation79_spill] sm:$0xff]  ;;  %v13551_v11 = vld [vmem:[#allocation33_spill] sm:$0xff] }
 0xebd   : > { %v6628_v13 = vadd.f32 %v6532_v2, %v5123_v29  ;;  %v3603_v24 = vadd.f32 %v13549_v30, %v13548_v50  ;;  %v3570_v15 = vadd.f32 %v13551_v11, %v13550_v57  ;;  %v13568_v57 = vld [vmem:[#allocation164_spill] sm:$0xff] }
 0xebe   : > { %v6678_v55 = vadd.f32 %v12610_v54, %v6642_v5 }
 0xebf   : > { %v6664_v31 = vadd.f32 %v12610_v54, %v6628_v13  ;;  %v5139_v29 = vadd.f32 %v12637_v44, %v3603_v24  ;;  %v13552_v13 = vld [vmem:[#allocation46_spill] sm:$0xff]  ;;  %v13555_v44 = vld [vmem:[#allocation153_spill] sm:$0xff] }
 0xec0   : > { %6710 = vst.msk [vmem:[%s12620_s18 + $0x70] sm:$0xff] %vm525_vm0, %v6678_v55  ;;  %v5128_v55 = vadd.f32 %v13552_v13, %v3570_v15  ;;  %v13570_v15 = vld [vmem:[#allocation147_spill] sm:$0xff] }
 0xec1   : > { %6696 = vst.msk [vmem:[%s12620_s18] sm:$0xff] %vm525_vm0, %v6664_v31 }
 0xec3   : > { %v6577_v39 = vpop.f32.mrf.mxu2 }
 0xec4   : > { %v6643_v58 = vadd.f32 %v6577_v39, %v5138_v60  ;;  %v6535_v19 = vpop.f32.mrf.mxu1  ;;  %v13553_v60 = vld [vmem:[#allocation64_spill] sm:$0xff] }
 0xec5   : > { %v6629_v32 = vadd.f32 %v6535_v19, %v5124_v8  ;;  %v13554_v8 = vld [vmem:[#allocation173_spill] sm:$0xff] }
 0xec6   : > { %v6679_v6 = vadd.f32 %v12610_v54, %v6643_v58  ;;  %v3621_v39 = vadd.f32 %v13554_v8, %v13553_v60  ;;  %v13556_v58 = vld [vmem:[#allocation95_spill] sm:$0xff]  ;;  %v13572_v8 = vld [vmem:[#allocation48_spill] sm:$0xff] }
 0xec7   : > { %v6665_v23 = vadd.f32 %v12610_v54, %v6629_v32  ;;  %v3606_v19 = vadd.f32 %v13556_v58, %v13555_v44  ;;  %v13571_v60 = vld [vmem:[#allocation67_spill] sm:$0xff] }
 0xec8   : > { %6711 = vst.msk [vmem:[%s12620_s18 + $0x78] sm:$0xff] %vm525_vm0, %v6679_v6  ;;  %v5145_v6 = vadd.f32 %v5093_v14, %v3621_v39  ;;  %v3630_v39 = vadd.f32 %v13572_v8, %v13571_v60 }
 0xec9   : > { %6697 = vst.msk [vmem:[%s12620_s18 + $0x8] sm:$0xff] %vm525_vm0, %v6665_v23  ;;  %v13557_v23 = vld [vmem:[#allocation80_spill] sm:$0xff]  ;;  %v5140_v40 = vadd.f32 %v12646_v25, %v3606_v19  ;;  %v13562_v25 = vld [vmem:[#allocation161_spill] sm:$0xff] }
 0xeca   : > { %v3573_v7 = vadd.f32 %v13558_v59, %v13557_v23  ;;  %v13573_v23 = vld [vmem:[#allocation66_spill] sm:$0xff]  ;;  %v13574_v59 = vld [vmem:[#allocation175_spill] sm:$0xff] }
 0xecc   : > { %v6538_v4 = vpop.f32.mrf.mxu1 }
 0xecd   : > { %v6630_v45 = vadd.f32 %v6538_v4, %v5125_v0  ;;  %v5096_v0 = vpop.f32.mrf.mxu0 }
 0xecf   : > { %v6666_v22 = vadd.f32 %v12610_v54, %v6630_v45 }
 0xed1   : > { %6698 = vst.msk [vmem:[%s12620_s18 + $0x10] sm:$0xff] %vm525_vm0, %v6666_v22  ;;  %v13559_v22 = vld [vmem:[#allocation150_spill] sm:$0xff] }
 0xed2   : > { %v5129_v36 = vadd.f32 %v13559_v22, %v3573_v7  ;;  %v3633_v7 = vadd.f32 %v13574_v59, %v13573_v23  ;;  %v13576_v22 = vld [vmem:[#allocation167_spill] sm:$0xff] }
 0xed4   : > { %v6541_v3 = vpop.f32.mrf.mxu1 }
 0xed5   : > { %v6631_v18 = vadd.f32 %v6541_v3, %v5126_v48  ;;  %v5099_v26 = vpop.f32.mrf.mxu0 }
 0xed7   : > { %v6667_v28 = vadd.f32 %v12610_v54, %v6631_v18  ;;  %v13560_v18 = vld [vmem:[#allocation121_spill] sm:$0xff] }
 0xed8   : > { %v3624_v56 = vadd.f32 %v13561_v21, %v13560_v18  ;;  %v13577_v18 = vld [vmem:[#allocation44_spill] sm:$0xff]  ;;  %v13578_v21 = vld [vmem:[#allocation171_spill] sm:$0xff] }
 0xed9   : > { %6699 = vst.msk [vmem:[%s12620_s18 + $0x18] sm:$0xff] %vm525_vm0, %v6667_v28  ;;  %v6592_v12 = vpop.f32.mrf.mxu3  ;;  %v13563_v28 = vld [vmem:[#allocation34_spill] sm:$0xff] }
 0xeda   : > { %v6648_v38 = vadd.f32 %v6592_v12, %v5143_v46  ;;  %v3609_v46 = vadd.f32 %v13563_v28, %v13562_v25  ;;  %v5146_v10 = vadd.f32 %v5096_v0, %v3624_v56  ;;  %v13565_v12 = vld [vmem:[#allocation149_spill] sm:$0xff]  ;;  %v3639_v56 = vadd.f32 %v13578_v21, %v13577_v18 }
 0xedc   : > { %v6684_v9 = vadd.f32 %v12610_v54, %v6648_v38  ;;  %v6544_v53 = vpop.f32.mrf.mxu1  ;;  %v3576_v38 = vadd.f32 %v13565_v12, %v13564_v47  ;;  %v13579_v47 = vld [vmem:[#allocation146_spill] sm:$0xff] }
 0xedd   : > { %v6632_v51 = vadd.f32 %v6544_v53, %v5127_v35  ;;  %v5141_v35 = vadd.f32 %v12655_v42, %v3609_v46  ;;  %v13569_v42 = vld [vmem:[#allocation81_spill] sm:$0xff]  ;;  %v13580_v12 = vld [vmem:[#allocation54_spill] sm:$0xff] }
 0xede   : > { %6716 = vst.msk [vmem:[%s12620_s18 + $0xa0] sm:$0xff] %vm525_vm0, %v6684_v9  ;;  %v5130_v61 = vadd.f32 %v13566_v33, %v3576_v38  ;;  %v3642_v38 = vadd.f32 %v13580_v12, %v13579_v47 }
 0xedf   : > { %v6668_v62 = vadd.f32 %v12610_v54, %v6632_v51 }
 0xee1   : > { %6700 = vst.msk [vmem:[%s12620_s18 + $0x20] sm:$0xff] %vm525_vm0, %v6668_v62  ;;  %v6595_v63 = vpop.f32.mrf.mxu3 }
 0xee2   : > { %v6649_v5 = vadd.f32 %v6595_v63, %v5144_v34  ;;  %v6580_v2 = vpop.f32.mrf.mxu2  ;;  %v13567_v34 = vld [vmem:[#allocation47_spill] sm:$0xff] }
 0xee3   : > { %v6644_v31 = vadd.f32 %v6580_v2, %v5139_v29  ;;  %v3627_v11 = vadd.f32 %v13568_v57, %v13567_v34  ;;  %v3612_v29 = vadd.f32 %v13570_v15, %v13569_v42  ;;  %v13583_v57 = vld [vmem:[#allocation86_spill] sm:$0xff] }
 0xee4   : > { %v6685_v41 = vadd.f32 %v12610_v54, %v6649_v5  ;;  %v6547_v20 = vpop.f32.mrf.mxu1 }
 0xee5   : > { %v6680_v16 = vadd.f32 %v12610_v54, %v6644_v31  ;;  %v6633_v52 = vadd.f32 %v6547_v20, %v5128_v55  ;;  %v5147_v5 = vadd.f32 %v5099_v26, %v3627_v11  ;;  %v5142_v2 = vadd.f32 %v12673_v27, %v3612_v29  ;;  %v13582_v26 = vld [vmem:[#allocation53_spill] sm:$0xff]  ;;  %v13584_v11 = vld [vmem:[#allocation116_spill] sm:$0xff] }
 0xee6   : > { %6717 = vst.msk [vmem:[%s12620_s18 + $0xa8] sm:$0xff] %vm525_vm0, %v6685_v41  ;;  %v3648_v42 = vadd.f32 %v13584_v11, %v13583_v57 }
 0xee7   : > { %6712 = vst.msk [vmem:[%s12620_s18 + $0x80] sm:$0xff] %vm525_vm0, %v6680_v16  ;;  %v6669_v32 = vadd.f32 %v12610_v54, %v6633_v52  ;;  %v5102_v16 = vpop.f32.mrf.mxu0 }
 0xee8   : > { %v5148_v27 = vadd.f32 %v5102_v16, %v3630_v39 }
 0xee9   : > { %6701 = vst.msk [vmem:[%s12620_s18 + $0x28] sm:$0xff] %vm525_vm0, %v6669_v32  ;;  %v6598_v17 = vpop.f32.mrf.mxu3 }
 0xeea   : > { %v6650_v4 = vadd.f32 %v6598_v17, %v5145_v6  ;;  %v6583_v45 = vpop.f32.mrf.mxu2 }
 0xeeb   : > { %v6645_v43 = vadd.f32 %v6583_v45, %v5140_v40  ;;  %v13575_v45 = vld [vmem:[#allocation82_spill] sm:$0xff] }
 0xeec   : > { %v6686_v37 = vadd.f32 %v12610_v54, %v6650_v4  ;;  %v6550_v48 = vpop.f32.mrf.mxu1 }
 0xeed   : > { %v6681_v3 = vadd.f32 %v12610_v54, %v6645_v43  ;;  %v6634_v49 = vadd.f32 %v6550_v48, %v5129_v36  ;;  %v3636_v36 = vadd.f32 %v13576_v22, %v13575_v45 }
 0xeee   : > { %6718 = vst.msk [vmem:[%s12620_s18 + $0xb0] sm:$0xff] %vm525_vm0, %v6686_v37 }
 0xeef   : > { %6713 = vst.msk [vmem:[%s12620_s18 + $0x88] sm:$0xff] %vm525_vm0, %v6681_v3  ;;  %v6670_v1 = vadd.f32 %v12610_v54, %v6634_v49  ;;  %v5105_v32 = vpop.f32.mrf.mxu0 }
 0xef0   : > { %v5149_v40 = vadd.f32 %v5105_v32, %v3633_v7 }
 0xef1   : > { %6702 = vst.msk [vmem:[%s12620_s18 + $0x30] sm:$0xff] %vm525_vm0, %v6670_v1  ;;  %v6601_v9 = vpop.f32.mrf.mxu3 }
 0xef2   : > { %v6651_v53 = vadd.f32 %v6601_v9, %v5146_v10  ;;  %v6586_v51 = vpop.f32.mrf.mxu2 }
 0xef3   : > { %v6646_v50 = vadd.f32 %v6586_v51, %v5141_v35 }
 0xef4   : > { %v6687_v30 = vadd.f32 %v12610_v54, %v6651_v53  ;;  %v6553_v24 = vpop.f32.mrf.mxu1 }
 0xef5   : > { %v6682_v14 = vadd.f32 %v12610_v54, %v6646_v50  ;;  %v6635_v62 = vadd.f32 %v6553_v24, %v5130_v61  ;;  %v13581_v61 = vld [vmem:[#allocation148_spill] sm:$0xff] }
 0xef6   : > { %6719 = vst.msk [vmem:[%s12620_s18 + $0xb8] sm:$0xff] %vm525_vm0, %v6687_v30  ;;  %v3645_v50 = vadd.f32 %v13582_v26, %v13581_v61 }
 0xef7   : > { %6714 = vst.msk [vmem:[%s12620_s18 + $0x90] sm:$0xff] %vm525_vm0, %v6682_v14  ;;  %v6671_v63 = vadd.f32 %v12610_v54, %v6635_v62  ;;  %v5108_v6 = vpop.f32.mrf.mxu0 }
 0xef8   : > { %v5150_v37 = vadd.f32 %v5108_v6, %v3636_v36 }
 0xef9   : > { %6703 = vst.msk [vmem:[%s12620_s18 + $0x38] sm:$0xff] %vm525_vm0, %v6671_v63  ;;  %v6604_v13 = vpop.f32.mrf.mxu3 }
 0xefa   : > { %v6652_v55 = vadd.f32 %v6604_v13, %v5147_v5  ;;  %v6589_v31 = vpop.f32.mrf.mxu2 }
 0xefb   : > { %v6647_v41 = vadd.f32 %v6589_v31, %v5142_v2 }
 0xefc   : > { %v6688_v20 = vadd.f32 %v12610_v54, %v6652_v55 }
 0xefd   : > { %v6683_v52 = vadd.f32 %v12610_v54, %v6647_v41 }
 0xefe   : > { %6720 = vst.msk [vmem:[%s12620_s18 + $0xc0] sm:$0xff] %vm525_vm0, %v6688_v20 }
 0xeff   : > { %6715 = vst.msk [vmem:[%s12620_s18 + $0x98] sm:$0xff] %vm525_vm0, %v6683_v52  ;;  %v5111_v43 = vpop.f32.mrf.mxu0 }
 0xf00   : > { %v5151_v25 = vadd.f32 %v5111_v43, %v3639_v56 }
 0xf01   : > { %v6607_v44 = vpop.f32.mrf.mxu3 }
 0xf02   : > { %v6653_v58 = vadd.f32 %v6607_v44, %v5148_v27 }
 0xf04   : > { %v6689_v19 = vadd.f32 %v12610_v54, %v6653_v58 }
 0xf06   : > { %6721 = vst.msk [vmem:[%s12620_s18 + $0xc8] sm:$0xff] %vm525_vm0, %v6689_v19 }
 0xf07   : > { %v5114_v28 = vpop.f32.mrf.mxu0 }
 0xf08   : > { %v5152_v35 = vadd.f32 %v5114_v28, %v3642_v38 }
 0xf0f   : > { %v5117_v51 = vpop.f32.mrf.mxu0 }
 0xf10   : > { %v5153_v30 = vadd.f32 %v5117_v51, %v3645_v50 }
 0xf17   : > { %v6610_v0 = vpop.f32.mrf.mxu3  ;;  %v5120_v34 = vpop.f32.mrf.mxu0 }
 0xf18   : > { %v6654_v17 = vadd.f32 %v6610_v0, %v5149_v40  ;;  %v5154_v15 = vadd.f32 %v5120_v34, %v3648_v42 }
 0xf1a   : > { %v6690_v4 = vadd.f32 %v12610_v54, %v6654_v17 }
 0xf1c   : > { %6722 = vst.msk [vmem:[%s12620_s18 + $0xd0] sm:$0xff] %vm525_vm0, %v6690_v4 }
 0xf1f   : > { %v6613_v48 = vpop.f32.mrf.mxu3 }
 0xf20   : > { %v6655_v3 = vadd.f32 %v6613_v48, %v5150_v37 }
 0xf22   : > { %v6691_v49 = vadd.f32 %v12610_v54, %v6655_v3 }
 0xf24   : > { %6723 = vst.msk [vmem:[%s12620_s18 + $0xd8] sm:$0xff] %vm525_vm0, %v6691_v49 }
 0xf27   : > { %v6616_v46 = vpop.f32.mrf.mxu3 }
 0xf28   : > { %v6656_v1 = vadd.f32 %v6616_v46, %v5151_v25 }
 0xf2a   : > { %v6692_v10 = vadd.f32 %v12610_v54, %v6656_v1 }
 0xf2c   : > { %6724 = vst.msk [vmem:[%s12620_s18 + $0xe0] sm:$0xff] %vm525_vm0, %v6692_v10 }
 0xf2f   : > { %v6619_v9 = vpop.f32.mrf.mxu3 }
 0xf30   : > { %v6657_v53 = vadd.f32 %v6619_v9, %v5152_v35 }
 0xf32   : > { %v6693_v33 = vadd.f32 %v12610_v54, %v6657_v53 }
 0xf34   : > { %6725 = vst.msk [vmem:[%s12620_s18 + $0xe8] sm:$0xff] %vm525_vm0, %v6693_v33 }
 0xf37   : > { %v6622_v24 = vpop.f32.mrf.mxu3 }
 0xf38   : > { %v6658_v14 = vadd.f32 %v6622_v24, %v5153_v30 }
 0xf3a   : > { %v6694_v62 = vadd.f32 %v12610_v54, %v6658_v14 }
 0xf3c   : > { %6726 = vst.msk [vmem:[%s12620_s18 + $0xf0] sm:$0xff] %vm525_vm0, %v6694_v62 }
 0xf3f   : > { %v6625_v29 = vpop.f32.mrf.mxu3 }
 0xf40   : > { %v6659_v63 = vadd.f32 %v6625_v29, %v5154_v15 }
 0xf42   : > { %v6695_v5 = vadd.f32 %v12610_v54, %v6659_v63 }
 0xf44   : > { %6727 = vst.msk [vmem:[%s12620_s18 + $0xf8] sm:$0xff] %vm525_vm0, %v6695_v5 }
 0xf45   : > { %8523 = shalt.err (!%p8520_p0)
}
 0xf46   : > { %s8604_s14 = smov 128   ;;  %s8605_s17 = smov 8  }
 0xf47   : > { %7448 = dma.vmem_to_hbm [thread:$0]  (%p8745_p5), %s6745_s29, 4096, %s6747_s7, %s6729_s24, %s8604_s14, %s8604_s14, %s8605_s17  }
 0xf48 PF: > { %s6761_s30 = sand.u32 1, %s8566_s21   ;;  %p7465_p3 = pnand %p6871_p11, %p8690_p6 }
 0xf49   : > { %s6762_s20 = scalar_lea.sflag [#allocation4], %s6761_s30 }
 0xf4a   : > { %p7466_p7 = pneg %p7465_p3 }
 0xf4c   : > { %8561 = dma.done.wait (%p7466_p7), %s6762_s20, 4096  }
 0xf4d   : > { %8563 = vsyncadd (%p7466_p7), %s6762_s20, 4294963200  ;;  %s24_s26 = sadd.s32 1, %s8586_s26   ;;  %s13585_s15 = sld [smem:[#allocation15_spill]] }
 0xf4e   : > { %p21_p9 = scmp.ge.s32.totalorder %s24_s26, 4   ;;  %s13586_s21 = smov %s8570_s22 }
 0xf4f   : > { %s13587_s22 = smov %s8574_s23  ;;  %s13588_s23 = smov %s8754_s10 }
 0xf50   : > { %s13589_s24 = smov %s8582_s25  ;;  %23 = sbr.rel (!%p21_p9) target bundleno = 12 (0xc), region = 102 }
 0xf53   : > { %s13590_s25 = smov %s13585_s15 }
 0xf55   :  { %6768 = vsyncpa [#allocation3], 1 }
 0xf56   :  { %6770 = vsyncpa [#allocation3 + $0x1], 1 }
 0xf57   :  { %6771 = vsyncpa [#allocation6], 1 }
 0xf58   :  { %6772 = vsyncpa [#allocation9], 1 }
 0xf59   :  { %6773 = vsyncpa [#allocation4], 1 }
 0xf5a   :  { %6775 = vsyncpa [#allocation4 + $0x1], 1 }

</bundles_post_ra>
